<compile_context>
chip_gen: v6e
topology: v6e:2x2x1
jax: 0.10.0
libtpu: 0.0.40
codegen_flags: <defaults>
</compile_context>

<pallas_src>
import functools

import jax
import jax.numpy as jnp
from jax import lax
from jax.experimental import pallas as pl
from jax.experimental.pallas import tpu as pltpu

BETA = 0.9
THRESHOLD = 1.0
NUM_STEPS = 100
NUM_INPUTS = 2
NUM_HIDDEN = 64
NUM_OUTPUTS = 1

HP = 128      # lane-padded hidden width (64 -> 128)
CHUNK = 8     # rows per fc2 matmul / per aligned block


def _lif_step(mem, spk, cur):
    """One snntorch Leaky step, reset_mechanism='subtract'.

    `spk` is the previous step's spike, which equals the reset computed from the
    pre-update membrane, so this is exactly equivalent to the reference but
    saves one compare+select per step.  Association matches the reference:
    ((beta*mem + cur) - reset*threshold).
    """
    sub = spk if THRESHOLD == 1.0 else spk * THRESHOLD
    mem = BETA * mem + cur - sub
    spk = (mem > THRESHOLD).astype(jnp.float32)
    return mem, spk


def snn_kernel(x_ref, w1_ref, b1_ref, w2_ref, b2_ref, w3_ref, b3_ref,
               cur3_ref, spk1_ref, spk2_ref, cur2_scr,
               *, num_steps, num_inputs, chunk, t_pad):
    f32 = jnp.float32
    hp = w1_ref.shape[1]
    num_chunks = t_pad // chunk

    # ---- fc1 once (input is loop-invariant): K=2 scalar*vector FMAs on the VPU.
    cur1 = x_ref[0, 0] * w1_ref[0:1, :]
    for i in range(1, num_inputs):
        cur1 = cur1 + x_ref[0, i] * w1_ref[i:i + 1, :]
    cur1 = cur1 + b1_ref[...]                                     # (1, HP)

    w2 = w2_ref[...]                                              # (HP, HP)
    b2 = b2_ref[...]                                              # (1, HP)

    mem1 = jnp.zeros((1, hp), f32)
    spk1 = jnp.zeros((1, hp), f32)
    mem2 = jnp.zeros((1, hp), f32)
    spk2 = jnp.zeros((1, hp), f32)
    spk2_last = jnp.zeros((1, hp), f32)

    # ---- Fused, software-pipelined chunk loop (1-chunk lag between the chains).
    #   stage A (chunk c):   mem1/spk1 recurrence -> spk1 rows -> fc2 matmul -> cur2
    #   stage B (chunk c-1): mem2/spk2 recurrence on cur2 rows -> spk2 rows
    for c in range(num_chunks + 1):
        if c < num_chunks:                                        # stage A
            base = c * chunk
            for i in range(chunk):
                mem1, spk1 = _lif_step(mem1, spk1, cur1)
                spk1_ref[base + i:base + i + 1, :] = spk1         # idle vst slot
            blk = spk1_ref[base:base + chunk, :]                  # aligned (8, HP)
            cur2_scr[base:base + chunk, :] = (
                jnp.dot(blk, w2, preferred_element_type=f32) + b2)
        if c > 0:                                                 # stage B
            base = (c - 1) * chunk
            for i in range(chunk):
                cur2 = cur2_scr[base + i:base + i + 1, :]         # idle vld slot
                mem2, spk2 = _lif_step(mem2, spk2, cur2)
                spk2_ref[base + i:base + i + 1, :] = spk2
                if base + i == num_steps - 1:                     # static capture
                    spk2_last = spk2

    # ---- fc3 once, on the step-(num_steps-1) spikes: VPU multiply + lane sum.
    # (num_outputs == 1, so w3 is passed as its single lane-padded row.)
    cur3 = jnp.sum(spk2_last * w3_ref[...], axis=-1, keepdims=True)  # (1, 1)
    cur3_ref[...] = cur3 + b3_ref[...]                               # lane 0 is cur3


def pad_params(params):
    """Zero-pad weights/biases to 128 lanes ONCE (hoisted out of the hot path).

    Padded lanes stay exactly zero through the whole recurrence.
    """
    w1t, b1, w2t, b2, w3t, b3 = params
    ni, nh = w1t.shape
    no = w3t.shape[1]
    assert no == 1, "fc3 lane-reduction path assumes a single output"
    f32 = jnp.float32
    w1p = jnp.zeros((ni, HP), f32).at[:, :nh].set(w1t.astype(f32))
    b1p = jnp.zeros((1, HP), f32).at[:, :nh].set(b1.astype(f32))
    w2p = jnp.zeros((HP, HP), f32).at[:nh, :nh].set(w2t.astype(f32))
    b2p = jnp.zeros((1, HP), f32).at[:, :nh].set(b2.astype(f32))
    w3p = jnp.zeros((1, HP), f32).at[:, :nh].set(w3t[:, 0].astype(f32)[None, :])
    b3p = jnp.zeros((1, HP), f32).at[:, :no].set(b3.astype(f32))
    return (w1p, b1p, w2p, b2p, w3p, b3p)


def snn_forward(x, padded_params, *, num_steps=NUM_STEPS, num_inputs=NUM_INPUTS,
                num_hidden=NUM_HIDDEN, num_outputs=NUM_OUTPUTS):
    w1p, b1p, w2p, b2p, w3p, b3p = padded_params
    f32 = jnp.float32
    t_pad = pl.cdiv(num_steps, CHUNK) * CHUNK                     # 100 -> 104

    kernel = functools.partial(snn_kernel, num_steps=num_steps,
                               num_inputs=num_inputs, chunk=CHUNK, t_pad=t_pad)

    vmem = pl.BlockSpec(memory_space=pltpu.MemorySpace.VMEM)
    smem = pl.BlockSpec(memory_space=pltpu.MemorySpace.SMEM)

    cur3_p, spk1_p, spk2_p = pl.pallas_call(
        kernel,
        out_shape=(
            jax.ShapeDtypeStruct((1, HP), f32),        # cur3 (lane-padded)
            jax.ShapeDtypeStruct((t_pad, HP), f32),    # spk1 record (padded)
            jax.ShapeDtypeStruct((t_pad, HP), f32),    # spk2 record (padded)
        ),
        in_specs=[smem] + [vmem] * 6,                  # x read as scalars from SMEM
        out_specs=(vmem, vmem, vmem),
        scratch_shapes=[pltpu.VMEM((t_pad, HP), f32)], # cur2 (all steps)
        cost_estimate=pl.CostEstimate(
            flops=2 * t_pad * HP * HP,
            transcendentals=0,
            bytes_accessed=4 * (3 * t_pad * HP + HP * HP),
        ),
    )(x.astype(f32), w1p, b1p, w2p, b2p, w3p, b3p)

    # slice padding away & match torch record shapes (num_steps, 1, num_hidden)
    cur3 = cur3_p[:, :num_outputs]
    spk1_rec = spk1_p[:num_steps, :num_hidden].reshape(num_steps, 1, num_hidden)
    spk2_rec = spk2_p[:num_steps, :num_hidden].reshape(num_steps, 1, num_hidden)
    return cur3, spk1_rec, spk2_rec


def snn_reference(x, params, num_steps=NUM_STEPS):
    """Plain-JAX reference with identical semantics (for validation)."""
    w1t, b1, w2t, b2, w3t, b3 = params
    cur1 = x @ w1t + b1

    def step(carry, _):
        mem1, mem2 = carry
        reset1 = (mem1 > THRESHOLD).astype(jnp.float32)
        mem1 = BETA * mem1 + cur1 - reset1 * THRESHOLD
        spk1 = (mem1 > THRESHOLD).astype(jnp.float32)
        cur2 = spk1 @ w2t + b2
        reset2 = (mem2 > THRESHOLD).astype(jnp.float32)
        mem2 = BETA * mem2 + cur2 - reset2 * THRESHOLD
        spk2 = (mem2 > THRESHOLD).astype(jnp.float32)
        cur3 = spk2 @ w3t + b3
        return (mem1, mem2), (spk1, spk2, cur3)

    init = (jnp.zeros_like(cur1), jnp.zeros((1, w2t.shape[1]), jnp.float32))
    _, (s1, s2, c3) = lax.scan(step, init, None, length=num_steps)
    return c3[-1], s1, s2


def init_params(key):
    """Deterministic init mimicking torch.nn.Linear default (U(-1/sqrt(fan_in), +))."""
    ks = jax.random.split(key, 6)

    def lin(kw, kb, fan_in, fan_out):
        bound = 1.0 / jnp.sqrt(fan_in)
        w_t = jax.random.uniform(kw, (fan_in, fan_out), jnp.float32, -bound, bound)
        b = jax.random.uniform(kb, (1, fan_out), jnp.float32, -bound, bound)
        return w_t, b

    w1t, b1 = lin(ks[0], ks[1], NUM_INPUTS, NUM_HIDDEN)
    w2t, b2 = lin(ks[2], ks[3], NUM_HIDDEN, NUM_HIDDEN)
    w3t, b3 = lin(ks[4], ks[5], NUM_HIDDEN, NUM_OUTPUTS)
    return (w1t, b1, w2t, b2, w3t, b3)


if __name__ == "__main__":
    key = jax.random.PRNGKey(0)
    k_x, k_p = jax.random.split(key)

    # input current large enough that membranes actually cross threshold
    x = jax.random.uniform(k_x, (1, NUM_INPUTS), jnp.float32, 0.5, 1.5)
    params = init_params(k_p)

    padded = pad_params(params)                 # pad once, outside the hot path
    fwd = jax.jit(snn_forward)

    cur3, spk1, spk2 = fwd(x, padded)
    jax.block_until_ready((cur3, spk1, spk2))

    # sanity check against plain-JAX reference
    cur3_ref, spk1_ref, spk2_ref = snn_reference(x, params)
    assert cur3.shape == (1, NUM_OUTPUTS)
    assert spk1.shape == (NUM_STEPS, 1, NUM_HIDDEN)
    assert spk2.shape == (NUM_STEPS, 1, NUM_HIDDEN)
    assert jnp.allclose(cur3, cur3_ref, atol=1e-3, rtol=1e-3)
    # spike trains are binary; allow a tiny fraction of threshold-boundary flips
    assert float(jnp.mean(jnp.abs(spk1 - spk1_ref))) < 0.02
    assert float(jnp.mean(jnp.abs(spk2 - spk2_ref))) < 0.02

    print("KERNEL_OK")
</pallas_src>

<mosaic_0001>
module attributes {stable_mosaic.version = 11 : i64} {
  func.func @snn_kernel(%arg0: memref<1x2xf32, #tpu.memory_space<smem>>, %arg1: memref<2x128xf32, #tpu.memory_space<vmem>>, %arg2: memref<1x128xf32, #tpu.memory_space<vmem>>, %arg3: memref<128x128xf32, #tpu.memory_space<vmem>>, %arg4: memref<1x128xf32, #tpu.memory_space<vmem>>, %arg5: memref<1x128xf32, #tpu.memory_space<vmem>>, %arg6: memref<1x128xf32, #tpu.memory_space<vmem>>, %arg7: memref<1x128xf32, #tpu.memory_space<vmem>>, %arg8: memref<104x128xf32, #tpu.memory_space<vmem>>, %arg9: memref<104x128xf32, #tpu.memory_space<vmem>>, %arg10: memref<104x128xf32, #tpu.memory_space<vmem>>) attributes {dimension_semantics = [], scalar_prefetch = 0 : i64, scratch_operands = 1 : i64, tpu.core_type = #tpu.core_type<tc>} {
    %c0 = arith.constant 0 : index
    %c0_0 = arith.constant 0 : index
    %0 = memref.load %arg0[%c0, %c0_0] : memref<1x2xf32, #tpu.memory_space<smem>>
    %c0_1 = arith.constant 0 : index
    %c0_2 = arith.constant 0 : index
    %1 = vector.load %arg1[%c0_1, %c0_2] : memref<2x128xf32, #tpu.memory_space<vmem>>, vector<1x128xf32>
    %2 = vector.broadcast %0 : f32 to vector<1x128xf32>
    %3 = arith.mulf %2, %1 : vector<1x128xf32>
    %c0_3 = arith.constant 0 : index
    %c1 = arith.constant 1 : index
    %4 = memref.load %arg0[%c0_3, %c1] : memref<1x2xf32, #tpu.memory_space<smem>>
    %c1_4 = arith.constant 1 : index
    %c0_5 = arith.constant 0 : index
    %5 = vector.load %arg1[%c1_4, %c0_5] : memref<2x128xf32, #tpu.memory_space<vmem>>, vector<1x128xf32>
    %6 = vector.broadcast %4 : f32 to vector<1x128xf32>
    %7 = arith.mulf %6, %5 : vector<1x128xf32>
    %8 = arith.addf %3, %7 : vector<1x128xf32>
    %c0_6 = arith.constant 0 : index
    %c0_7 = arith.constant 0 : index
    %9 = vector.load %arg2[%c0_6, %c0_7] : memref<1x128xf32, #tpu.memory_space<vmem>>, vector<1x128xf32>
    %10 = arith.addf %8, %9 : vector<1x128xf32>
    %c0_8 = arith.constant 0 : index
    %c0_9 = arith.constant 0 : index
    %11 = vector.load %arg3[%c0_8, %c0_9] : memref<128x128xf32, #tpu.memory_space<vmem>>, vector<128x128xf32>
    %c0_10 = arith.constant 0 : index
    %c0_11 = arith.constant 0 : index
    %12 = vector.load %arg4[%c0_10, %c0_11] : memref<1x128xf32, #tpu.memory_space<vmem>>, vector<1x128xf32>
    %cst = arith.constant 0.000000e+00 : f32
    %13 = vector.broadcast %cst : f32 to vector<1x128xf32>
    %cst_12 = arith.constant 0.000000e+00 : f32
    %14 = vector.broadcast %cst_12 : f32 to vector<1x128xf32>
    %cst_13 = arith.constant 0.000000e+00 : f32
    %15 = vector.broadcast %cst_13 : f32 to vector<1x128xf32>
    %cst_14 = arith.constant 0.000000e+00 : f32
    %16 = vector.broadcast %cst_14 : f32 to vector<1x128xf32>
    %cst_15 = arith.constant 0.899999976 : f32
    %17 = vector.broadcast %cst_15 : f32 to vector<1x128xf32>
    %18 = arith.mulf %17, %13 : vector<1x128xf32>
    %19 = arith.addf %18, %10 : vector<1x128xf32>
    %20 = arith.subf %19, %14 : vector<1x128xf32>
    %cst_16 = arith.constant 1.000000e+00 : f32
    %21 = vector.broadcast %cst_16 : f32 to vector<1x128xf32>
    %22 = arith.cmpf ogt, %20, %21 : vector<1x128xf32>
    %23 = arith.extui %22 : vector<1x128xi1> to vector<1x128xi32>
    %24 = arith.sitofp %23 : vector<1x128xi32> to vector<1x128xf32>
    %c0_17 = arith.constant 0 : index
    %c0_18 = arith.constant 0 : index
    %25 = vector.load %arg8[%c0_17, %c0_18] : memref<104x128xf32, #tpu.memory_space<vmem>>, vector<1x128xf32>
    tpu.vector_store %arg8[%c0_17, %c0_18], %24 {strides = array<i32>} : memref<104x128xf32, #tpu.memory_space<vmem>>, vector<1x128xf32>,
    %cst_19 = arith.constant 0.899999976 : f32
    %26 = vector.broadcast %cst_19 : f32 to vector<1x128xf32>
    %27 = arith.mulf %26, %20 : vector<1x128xf32>
    %28 = arith.addf %27, %10 : vector<1x128xf32>
    %29 = arith.subf %28, %24 : vector<1x128xf32>
    %cst_20 = arith.constant 1.000000e+00 : f32
    %30 = vector.broadcast %cst_20 : f32 to vector<1x128xf32>
    %31 = arith.cmpf ogt, %29, %30 : vector<1x128xf32>
    %32 = arith.extui %31 : vector<1x128xi1> to vector<1x128xi32>
    %33 = arith.sitofp %32 : vector<1x128xi32> to vector<1x128xf32>
    %c1_21 = arith.constant 1 : index
    %c0_22 = arith.constant 0 : index
    %34 = vector.load %arg8[%c1_21, %c0_22] : memref<104x128xf32, #tpu.memory_space<vmem>>, vector<1x128xf32>
    tpu.vector_store %arg8[%c1_21, %c0_22], %33 {strides = array<i32>} : memref<104x128xf32, #tpu.memory_space<vmem>>, vector<1x128xf32>,
    %cst_23 = arith.constant 0.899999976 : f32
    %35 = vector.broadcast %cst_23 : f32 to vector<1x128xf32>
    %36 = arith.mulf %35, %29 : vector<1x128xf32>
    %37 = arith.addf %36, %10 : vector<1x128xf32>
    %38 = arith.subf %37, %33 : vector<1x128xf32>
    %cst_24 = arith.constant 1.000000e+00 : f32
    %39 = vector.broadcast %cst_24 : f32 to vector<1x128xf32>
    %40 = arith.cmpf ogt, %38, %39 : vector<1x128xf32>
    %41 = arith.extui %40 : vector<1x128xi1> to vector<1x128xi32>
    %42 = arith.sitofp %41 : vector<1x128xi32> to vector<1x128xf32>
    %c2 = arith.constant 2 : index
    %c0_25 = arith.constant 0 : index
    %43 = vector.load %arg8[%c2, %c0_25] : memref<104x128xf32, #tpu.memory_space<vmem>>, vector<1x128xf32>
    tpu.vector_store %arg8[%c2, %c0_25], %42 {strides = array<i32>} : memref<104x128xf32, #tpu.memory_space<vmem>>, vector<1x128xf32>,
    %cst_26 = arith.constant 0.899999976 : f32
    %44 = vector.broadcast %cst_26 : f32 to vector<1x128xf32>
    %45 = arith.mulf %44, %38 : vector<1x128xf32>
    %46 = arith.addf %45, %10 : vector<1x128xf32>
    %47 = arith.subf %46, %42 : vector<1x128xf32>
    %cst_27 = arith.constant 1.000000e+00 : f32
    %48 = vector.broadcast %cst_27 : f32 to vector<1x128xf32>
    %49 = arith.cmpf ogt, %47, %48 : vector<1x128xf32>
    %50 = arith.extui %49 : vector<1x128xi1> to vector<1x128xi32>
    %51 = arith.sitofp %50 : vector<1x128xi32> to vector<1x128xf32>
    %c3 = arith.constant 3 : index
    %c0_28 = arith.constant 0 : index
    %52 = vector.load %arg8[%c3, %c0_28] : memref<104x128xf32, #tpu.memory_space<vmem>>, vector<1x128xf32>
    tpu.vector_store %arg8[%c3, %c0_28], %51 {strides = array<i32>} : memref<104x128xf32, #tpu.memory_space<vmem>>, vector<1x128xf32>,
    %cst_29 = arith.constant 0.899999976 : f32
    %53 = vector.broadcast %cst_29 : f32 to vector<1x128xf32>
    %54 = arith.mulf %53, %47 : vector<1x128xf32>
    %55 = arith.addf %54, %10 : vector<1x128xf32>
    %56 = arith.subf %55, %51 : vector<1x128xf32>
    %cst_30 = arith.constant 1.000000e+00 : f32
    %57 = vector.broadcast %cst_30 : f32 to vector<1x128xf32>
    %58 = arith.cmpf ogt, %56, %57 : vector<1x128xf32>
    %59 = arith.extui %58 : vector<1x128xi1> to vector<1x128xi32>
    %60 = arith.sitofp %59 : vector<1x128xi32> to vector<1x128xf32>
    %c4 = arith.constant 4 : index
    %c0_31 = arith.constant 0 : index
    %61 = vector.load %arg8[%c4, %c0_31] : memref<104x128xf32, #tpu.memory_space<vmem>>, vector<1x128xf32>
    tpu.vector_store %arg8[%c4, %c0_31], %60 {strides = array<i32>} : memref<104x128xf32, #tpu.memory_space<vmem>>, vector<1x128xf32>,
    %cst_32 = arith.constant 0.899999976 : f32
    %62 = vector.broadcast %cst_32 : f32 to vector<1x128xf32>
    %63 = arith.mulf %62, %56 : vector<1x128xf32>
    %64 = arith.addf %63, %10 : vector<1x128xf32>
    %65 = arith.subf %64, %60 : vector<1x128xf32>
    %cst_33 = arith.constant 1.000000e+00 : f32
    %66 = vector.broadcast %cst_33 : f32 to vector<1x128xf32>
    %67 = arith.cmpf ogt, %65, %66 : vector<1x128xf32>
    %68 = arith.extui %67 : vector<1x128xi1> to vector<1x128xi32>
    %69 = arith.sitofp %68 : vector<1x128xi32> to vector<1x128xf32>
    %c5 = arith.constant 5 : index
    %c0_34 = arith.constant 0 : index
    %70 = vector.load %arg8[%c5, %c0_34] : memref<104x128xf32, #tpu.memory_space<vmem>>, vector<1x128xf32>
    tpu.vector_store %arg8[%c5, %c0_34], %69 {strides = array<i32>} : memref<104x128xf32, #tpu.memory_space<vmem>>, vector<1x128xf32>,
    %cst_35 = arith.constant 0.899999976 : f32
    %71 = vector.broadcast %cst_35 : f32 to vector<1x128xf32>
    %72 = arith.mulf %71, %65 : vector<1x128xf32>
    %73 = arith.addf %72, %10 : vector<1x128xf32>
    %74 = arith.subf %73, %69 : vector<1x128xf32>
    %cst_36 = arith.constant 1.000000e+00 : f32
    %75 = vector.broadcast %cst_36 : f32 to vector<1x128xf32>
    %76 = arith.cmpf ogt, %74, %75 : vector<1x128xf32>
    %77 = arith.extui %76 : vector<1x128xi1> to vector<1x128xi32>
    %78 = arith.sitofp %77 : vector<1x128xi32> to vector<1x128xf32>
    %c6 = arith.constant 6 : index
    %c0_37 = arith.constant 0 : index
    %79 = vector.load %arg8[%c6, %c0_37] : memref<104x128xf32, #tpu.memory_space<vmem>>, vector<1x128xf32>
    tpu.vector_store %arg8[%c6, %c0_37], %78 {strides = array<i32>} : memref<104x128xf32, #tpu.memory_space<vmem>>, vector<1x128xf32>,
    %cst_38 = arith.constant 0.899999976 : f32
    %80 = vector.broadcast %cst_38 : f32 to vector<1x128xf32>
    %81 = arith.mulf %80, %74 : vector<1x128xf32>
    %82 = arith.addf %81, %10 : vector<1x128xf32>
    %83 = arith.subf %82, %78 : vector<1x128xf32>
    %cst_39 = arith.constant 1.000000e+00 : f32
    %84 = vector.broadcast %cst_39 : f32 to vector<1x128xf32>
    %85 = arith.cmpf ogt, %83, %84 : vector<1x128xf32>
    %86 = arith.extui %85 : vector<1x128xi1> to vector<1x128xi32>
    %87 = arith.sitofp %86 : vector<1x128xi32> to vector<1x128xf32>
    %c7 = arith.constant 7 : index
    %c0_40 = arith.constant 0 : index
    %88 = vector.load %arg8[%c7, %c0_40] : memref<104x128xf32, #tpu.memory_space<vmem>>, vector<1x128xf32>
    tpu.vector_store %arg8[%c7, %c0_40], %87 {strides = array<i32>} : memref<104x128xf32, #tpu.memory_space<vmem>>, vector<1x128xf32>,
    %c0_41 = arith.constant 0 : index
    %c0_42 = arith.constant 0 : index
    %89 = vector.load %arg8[%c0_41, %c0_42] : memref<104x128xf32, #tpu.memory_space<vmem>>, vector<8x128xf32>
    %cst_43 = arith.constant dense<0.000000e+00> : vector<8x128xf32>
    %90 = tpu.matmul %89, %11, %cst_43 {dimension_numbers = #tpu.dot_dimension_numbers<[1], [0], [0], [1], [0, 0, 1, 1], [], []>} : vector<8x128xf32>, vector<128x128xf32>, vector<8x128xf32> -> vector<8x128xf32>
    %91 = vector.broadcast %12 : vector<1x128xf32> to vector<8x128xf32>
    %92 = arith.addf %90, %91 : vector<8x128xf32>
    %c0_44 = arith.constant 0 : index
    %c0_45 = arith.constant 0 : index
    %93 = vector.load %arg10[%c0_44, %c0_45] : memref<104x128xf32, #tpu.memory_space<vmem>>, vector<8x128xf32>
    tpu.vector_store %arg10[%c0_44, %c0_45], %92 {strides = array<i32>} : memref<104x128xf32, #tpu.memory_space<vmem>>, vector<8x128xf32>,
    %cst_46 = arith.constant 0.899999976 : f32
    %94 = vector.broadcast %cst_46 : f32 to vector<1x128xf32>
    %95 = arith.mulf %94, %83 : vector<1x128xf32>
    %96 = arith.addf %95, %10 : vector<1x128xf32>
    %97 = arith.subf %96, %87 : vector<1x128xf32>
    %cst_47 = arith.constant 1.000000e+00 : f32
    %98 = vector.broadcast %cst_47 : f32 to vector<1x128xf32>
    %99 = arith.cmpf ogt, %97, %98 : vector<1x128xf32>
    %100 = arith.extui %99 : vector<1x128xi1> to vector<1x128xi32>
    %101 = arith.sitofp %100 : vector<1x128xi32> to vector<1x128xf32>
    %c8 = arith.constant 8 : index
    %c0_48 = arith.constant 0 : index
    %102 = vector.load %arg8[%c8, %c0_48] : memref<104x128xf32, #tpu.memory_space<vmem>>, vector<1x128xf32>
    tpu.vector_store %arg8[%c8, %c0_48], %101 {strides = array<i32>} : memref<104x128xf32, #tpu.memory_space<vmem>>, vector<1x128xf32>,
    %cst_49 = arith.constant 0.899999976 : f32
    %103 = vector.broadcast %cst_49 : f32 to vector<1x128xf32>
    %104 = arith.mulf %103, %97 : vector<1x128xf32>
    %105 = arith.addf %104, %10 : vector<1x128xf32>
    %106 = arith.subf %105, %101 : vector<1x128xf32>
    %cst_50 = arith.constant 1.000000e+00 : f32
    %107 = vector.broadcast %cst_50 : f32 to vector<1x128xf32>
    %108 = arith.cmpf ogt, %106, %107 : vector<1x128xf32>
    %109 = arith.extui %108 : vector<1x128xi1> to vector<1x128xi32>
    %110 = arith.sitofp %109 : vector<1x128xi32> to vector<1x128xf32>
    %c9 = arith.constant 9 : index
    %c0_51 = arith.constant 0 : index
    %111 = vector.load %arg8[%c9, %c0_51] : memref<104x128xf32, #tpu.memory_space<vmem>>, vector<1x128xf32>
    tpu.vector_store %arg8[%c9, %c0_51], %110 {strides = array<i32>} : memref<104x128xf32, #tpu.memory_space<vmem>>, vector<1x128xf32>,
    %cst_52 = arith.constant 0.899999976 : f32
    %112 = vector.broadcast %cst_52 : f32 to vector<1x128xf32>
    %113 = arith.mulf %112, %106 : vector<1x128xf32>
    %114 = arith.addf %113, %10 : vector<1x128xf32>
    %115 = arith.subf %114, %110 : vector<1x128xf32>
    %cst_53 = arith.constant 1.000000e+00 : f32
    %116 = vector.broadcast %cst_53 : f32 to vector<1x128xf32>
    %117 = arith.cmpf ogt, %115, %116 : vector<1x128xf32>
    %118 = arith.extui %117 : vector<1x128xi1> to vector<1x128xi32>
    %119 = arith.sitofp %118 : vector<1x128xi32> to vector<1x128xf32>
    %c10 = arith.constant 10 : index
    %c0_54 = arith.constant 0 : index
    %120 = vector.load %arg8[%c10, %c0_54] : memref<104x128xf32, #tpu.memory_space<vmem>>, vector<1x128xf32>
    tpu.vector_store %arg8[%c10, %c0_54], %119 {strides = array<i32>} : memref<104x128xf32, #tpu.memory_space<vmem>>, vector<1x128xf32>,
    %cst_55 = arith.constant 0.899999976 : f32
    %121 = vector.broadcast %cst_55 : f32 to vector<1x128xf32>
    %122 = arith.mulf %121, %115 : vector<1x128xf32>
    %123 = arith.addf %122, %10 : vector<1x128xf32>
    %124 = arith.subf %123, %119 : vector<1x128xf32>
    %cst_56 = arith.constant 1.000000e+00 : f32
    %125 = vector.broadcast %cst_56 : f32 to vector<1x128xf32>
    %126 = arith.cmpf ogt, %124, %125 : vector<1x128xf32>
    %127 = arith.extui %126 : vector<1x128xi1> to vector<1x128xi32>
    %128 = arith.sitofp %127 : vector<1x128xi32> to vector<1x128xf32>
    %c11 = arith.constant 11 : index
    %c0_57 = arith.constant 0 : index
    %129 = vector.load %arg8[%c11, %c0_57] : memref<104x128xf32, #tpu.memory_space<vmem>>, vector<1x128xf32>
    tpu.vector_store %arg8[%c11, %c0_57], %128 {strides = array<i32>} : memref<104x128xf32, #tpu.memory_space<vmem>>, vector<1x128xf32>,
    %cst_58 = arith.constant 0.899999976 : f32
    %130 = vector.broadcast %cst_58 : f32 to vector<1x128xf32>
    %131 = arith.mulf %130, %124 : vector<1x128xf32>
    %132 = arith.addf %131, %10 : vector<1x128xf32>
    %133 = arith.subf %132, %128 : vector<1x128xf32>
    %cst_59 = arith.constant 1.000000e+00 : f32
    %134 = vector.broadcast %cst_59 : f32 to vector<1x128xf32>
    %135 = arith.cmpf ogt, %133, %134 : vector<1x128xf32>
    %136 = arith.extui %135 : vector<1x128xi1> to vector<1x128xi32>
    %137 = arith.sitofp %136 : vector<1x128xi32> to vector<1x128xf32>
    %c12 = arith.constant 12 : index
    %c0_60 = arith.constant 0 : index
    %138 = vector.load %arg8[%c12, %c0_60] : memref<104x128xf32, #tpu.memory_space<vmem>>, vector<1x128xf32>
    tpu.vector_store %arg8[%c12, %c0_60], %137 {strides = array<i32>} : memref<104x128xf32, #tpu.memory_space<vmem>>, vector<1x128xf32>,
    %cst_61 = arith.constant 0.899999976 : f32
    %139 = vector.broadcast %cst_61 : f32 to vector<1x128xf32>
    %140 = arith.mulf %139, %133 : vector<1x128xf32>
    %141 = arith.addf %140, %10 : vector<1x128xf32>
    %142 = arith.subf %141, %137 : vector<1x128xf32>
    %cst_62 = arith.constant 1.000000e+00 : f32
    %143 = vector.broadcast %cst_62 : f32 to vector<1x128xf32>
    %144 = arith.cmpf ogt, %142, %143 : vector<1x128xf32>
    %145 = arith.extui %144 : vector<1x128xi1> to vector<1x128xi32>
    %146 = arith.sitofp %145 : vector<1x128xi32> to vector<1x128xf32>
    %c13 = arith.constant 13 : index
    %c0_63 = arith.constant 0 : index
    %147 = vector.load %arg8[%c13, %c0_63] : memref<104x128xf32, #tpu.memory_space<vmem>>, vector<1x128xf32>
    tpu.vector_store %arg8[%c13, %c0_63], %146 {strides = array<i32>} : memref<104x128xf32, #tpu.memory_space<vmem>>, vector<1x128xf32>,
    %cst_64 = arith.constant 0.899999976 : f32
    %148 = vector.broadcast %cst_64 : f32 to vector<1x128xf32>
    %149 = arith.mulf %148, %142 : vector<1x128xf32>
    %150 = arith.addf %149, %10 : vector<1x128xf32>
    %151 = arith.subf %150, %146 : vector<1x128xf32>
    %cst_65 = arith.constant 1.000000e+00 : f32
    %152 = vector.broadcast %cst_65 : f32 to vector<1x128xf32>
    %153 = arith.cmpf ogt, %151, %152 : vector<1x128xf32>
    %154 = arith.extui %153 : vector<1x128xi1> to vector<1x128xi32>
    %155 = arith.sitofp %154 : vector<1x128xi32> to vector<1x128xf32>
    %c14 = arith.constant 14 : index
    %c0_66 = arith.constant 0 : index
    %156 = vector.load %arg8[%c14, %c0_66] : memref<104x128xf32, #tpu.memory_space<vmem>>, vector<1x128xf32>
    tpu.vector_store %arg8[%c14, %c0_66], %155 {strides = array<i32>} : memref<104x128xf32, #tpu.memory_space<vmem>>, vector<1x128xf32>,
    %cst_67 = arith.constant 0.899999976 : f32
    %157 = vector.broadcast %cst_67 : f32 to vector<1x128xf32>
    %158 = arith.mulf %157, %151 : vector<1x128xf32>
    %159 = arith.addf %158, %10 : vector<1x128xf32>
    %160 = arith.subf %159, %155 : vector<1x128xf32>
    %cst_68 = arith.constant 1.000000e+00 : f32
    %161 = vector.broadcast %cst_68 : f32 to vector<1x128xf32>
    %162 = arith.cmpf ogt, %160, %161 : vector<1x128xf32>
    %163 = arith.extui %162 : vector<1x128xi1> to vector<1x128xi32>
    %164 = arith.sitofp %163 : vector<1x128xi32> to vector<1x128xf32>
    %c15 = arith.constant 15 : index
    %c0_69 = arith.constant 0 : index
    %165 = vector.load %arg8[%c15, %c0_69] : memref<104x128xf32, #tpu.memory_space<vmem>>, vector<1x128xf32>
    tpu.vector_store %arg8[%c15, %c0_69], %164 {strides = array<i32>} : memref<104x128xf32, #tpu.memory_space<vmem>>, vector<1x128xf32>,
    %c8_70 = arith.constant 8 : index
    %c0_71 = arith.constant 0 : index
    %166 = vector.load %arg8[%c8_70, %c0_71] : memref<104x128xf32, #tpu.memory_space<vmem>>, vector<8x128xf32>
    %cst_72 = arith.constant dense<0.000000e+00> : vector<8x128xf32>
    %167 = tpu.matmul %166, %11, %cst_72 {dimension_numbers = #tpu.dot_dimension_numbers<[1], [0], [0], [1], [0, 0, 1, 1], [], []>} : vector<8x128xf32>, vector<128x128xf32>, vector<8x128xf32> -> vector<8x128xf32>
    %168 = vector.broadcast %12 : vector<1x128xf32> to vector<8x128xf32>
    %169 = arith.addf %167, %168 : vector<8x128xf32>
    %c8_73 = arith.constant 8 : index
    %c0_74 = arith.constant 0 : index
    %170 = vector.load %arg10[%c8_73, %c0_74] : memref<104x128xf32, #tpu.memory_space<vmem>>, vector<8x128xf32>
    tpu.vector_store %arg10[%c8_73, %c0_74], %169 {strides = array<i32>} : memref<104x128xf32, #tpu.memory_space<vmem>>, vector<8x128xf32>,
    %c0_75 = arith.constant 0 : index
    %c0_76 = arith.constant 0 : index
    %171 = vector.load %arg10[%c0_75, %c0_76] : memref<104x128xf32, #tpu.memory_space<vmem>>, vector<1x128xf32>
    %cst_77 = arith.constant 0.899999976 : f32
    %172 = vector.broadcast %cst_77 : f32 to vector<1x128xf32>
    %173 = arith.mulf %172, %15 : vector<1x128xf32>
    %174 = arith.addf %173, %171 : vector<1x128xf32>
    %175 = arith.subf %174, %16 : vector<1x128xf32>
    %cst_78 = arith.constant 1.000000e+00 : f32
    %176 = vector.broadcast %cst_78 : f32 to vector<1x128xf32>
    %177 = arith.cmpf ogt, %175, %176 : vector<1x128xf32>
    %178 = arith.extui %177 : vector<1x128xi1> to vector<1x128xi32>
    %179 = arith.sitofp %178 : vector<1x128xi32> to vector<1x128xf32>
    %c0_79 = arith.constant 0 : index
    %c0_80 = arith.constant 0 : index
    %180 = vector.load %arg9[%c0_79, %c0_80] : memref<104x128xf32, #tpu.memory_space<vmem>>, vector<1x128xf32>
    tpu.vector_store %arg9[%c0_79, %c0_80], %179 {strides = array<i32>} : memref<104x128xf32, #tpu.memory_space<vmem>>, vector<1x128xf32>,
    %c1_81 = arith.constant 1 : index
    %c0_82 = arith.constant 0 : index
    %181 = vector.load %arg10[%c1_81, %c0_82] : memref<104x128xf32, #tpu.memory_space<vmem>>, vector<1x128xf32>
    %cst_83 = arith.constant 0.899999976 : f32
    %182 = vector.broadcast %cst_83 : f32 to vector<1x128xf32>
    %183 = arith.mulf %182, %175 : vector<1x128xf32>
    %184 = arith.addf %183, %181 : vector<1x128xf32>
    %185 = arith.subf %184, %179 : vector<1x128xf32>
    %cst_84 = arith.constant 1.000000e+00 : f32
    %186 = vector.broadcast %cst_84 : f32 to vector<1x128xf32>
    %187 = arith.cmpf ogt, %185, %186 : vector<1x128xf32>
    %188 = arith.extui %187 : vector<1x128xi1> to vector<1x128xi32>
    %189 = arith.sitofp %188 : vector<1x128xi32> to vector<1x128xf32>
    %c1_85 = arith.constant 1 : index
    %c0_86 = arith.constant 0 : index
    %190 = vector.load %arg9[%c1_85, %c0_86] : memref<104x128xf32, #tpu.memory_space<vmem>>, vector<1x128xf32>
    tpu.vector_store %arg9[%c1_85, %c0_86], %189 {strides = array<i32>} : memref<104x128xf32, #tpu.memory_space<vmem>>, vector<1x128xf32>,
    %c2_87 = arith.constant 2 : index
    %c0_88 = arith.constant 0 : index
    %191 = vector.load %arg10[%c2_87, %c0_88] : memref<104x128xf32, #tpu.memory_space<vmem>>, vector<1x128xf32>
    %cst_89 = arith.constant 0.899999976 : f32
    %192 = vector.broadcast %cst_89 : f32 to vector<1x128xf32>
    %193 = arith.mulf %192, %185 : vector<1x128xf32>
    %194 = arith.addf %193, %191 : vector<1x128xf32>
    %195 = arith.subf %194, %189 : vector<1x128xf32>
    %cst_90 = arith.constant 1.000000e+00 : f32
    %196 = vector.broadcast %cst_90 : f32 to vector<1x128xf32>
    %197 = arith.cmpf ogt, %195, %196 : vector<1x128xf32>
    %198 = arith.extui %197 : vector<1x128xi1> to vector<1x128xi32>
    %199 = arith.sitofp %198 : vector<1x128xi32> to vector<1x128xf32>
    %c2_91 = arith.constant 2 : index
    %c0_92 = arith.constant 0 : index
    %200 = vector.load %arg9[%c2_91, %c0_92] : memref<104x128xf32, #tpu.memory_space<vmem>>, vector<1x128xf32>
    tpu.vector_store %arg9[%c2_91, %c0_92], %199 {strides = array<i32>} : memref<104x128xf32, #tpu.memory_space<vmem>>, vector<1x128xf32>,
    %c3_93 = arith.constant 3 : index
    %c0_94 = arith.constant 0 : index
    %201 = vector.load %arg10[%c3_93, %c0_94] : memref<104x128xf32, #tpu.memory_space<vmem>>, vector<1x128xf32>
    %cst_95 = arith.constant 0.899999976 : f32
    %202 = vector.broadcast %cst_95 : f32 to vector<1x128xf32>
    %203 = arith.mulf %202, %195 : vector<1x128xf32>
    %204 = arith.addf %203, %201 : vector<1x128xf32>
    %205 = arith.subf %204, %199 : vector<1x128xf32>
    %cst_96 = arith.constant 1.000000e+00 : f32
    %206 = vector.broadcast %cst_96 : f32 to vector<1x128xf32>
    %207 = arith.cmpf ogt, %205, %206 : vector<1x128xf32>
    %208 = arith.extui %207 : vector<1x128xi1> to vector<1x128xi32>
    %209 = arith.sitofp %208 : vector<1x128xi32> to vector<1x128xf32>
    %c3_97 = arith.constant 3 : index
    %c0_98 = arith.constant 0 : index
    %210 = vector.load %arg9[%c3_97, %c0_98] : memref<104x128xf32, #tpu.memory_space<vmem>>, vector<1x128xf32>
    tpu.vector_store %arg9[%c3_97, %c0_98], %209 {strides = array<i32>} : memref<104x128xf32, #tpu.memory_space<vmem>>, vector<1x128xf32>,
    %c4_99 = arith.constant 4 : index
    %c0_100 = arith.constant 0 : index
    %211 = vector.load %arg10[%c4_99, %c0_100] : memref<104x128xf32, #tpu.memory_space<vmem>>, vector<1x128xf32>
    %cst_101 = arith.constant 0.899999976 : f32
    %212 = vector.broadcast %cst_101 : f32 to vector<1x128xf32>
    %213 = arith.mulf %212, %205 : vector<1x128xf32>
    %214 = arith.addf %213, %211 : vector<1x128xf32>
    %215 = arith.subf %214, %209 : vector<1x128xf32>
    %cst_102 = arith.constant 1.000000e+00 : f32
    %216 = vector.broadcast %cst_102 : f32 to vector<1x128xf32>
    %217 = arith.cmpf ogt, %215, %216 : vector<1x128xf32>
    %218 = arith.extui %217 : vector<1x128xi1> to vector<1x128xi32>
    %219 = arith.sitofp %218 : vector<1x128xi32> to vector<1x128xf32>
    %c4_103 = arith.constant 4 : index
    %c0_104 = arith.constant 0 : index
    %220 = vector.load %arg9[%c4_103, %c0_104] : memref<104x128xf32, #tpu.memory_space<vmem>>, vector<1x128xf32>
    tpu.vector_store %arg9[%c4_103, %c0_104], %219 {strides = array<i32>} : memref<104x128xf32, #tpu.memory_space<vmem>>, vector<1x128xf32>,
    %c5_105 = arith.constant 5 : index
    %c0_106 = arith.constant 0 : index
    %221 = vector.load %arg10[%c5_105, %c0_106] : memref<104x128xf32, #tpu.memory_space<vmem>>, vector<1x128xf32>
    %cst_107 = arith.constant 0.899999976 : f32
    %222 = vector.broadcast %cst_107 : f32 to vector<1x128xf32>
    %223 = arith.mulf %222, %215 : vector<1x128xf32>
    %224 = arith.addf %223, %221 : vector<1x128xf32>
    %225 = arith.subf %224, %219 : vector<1x128xf32>
    %cst_108 = arith.constant 1.000000e+00 : f32
    %226 = vector.broadcast %cst_108 : f32 to vector<1x128xf32>
    %227 = arith.cmpf ogt, %225, %226 : vector<1x128xf32>
    %228 = arith.extui %227 : vector<1x128xi1> to vector<1x128xi32>
    %229 = arith.sitofp %228 : vector<1x128xi32> to vector<1x128xf32>
    %c5_109 = arith.constant 5 : index
    %c0_110 = arith.constant 0 : index
    %230 = vector.load %arg9[%c5_109, %c0_110] : memref<104x128xf32, #tpu.memory_space<vmem>>, vector<1x128xf32>
    tpu.vector_store %arg9[%c5_109, %c0_110], %229 {strides = array<i32>} : memref<104x128xf32, #tpu.memory_space<vmem>>, vector<1x128xf32>,
    %c6_111 = arith.constant 6 : index
    %c0_112 = arith.constant 0 : index
    %231 = vector.load %arg10[%c6_111, %c0_112] : memref<104x128xf32, #tpu.memory_space<vmem>>, vector<1x128xf32>
    %cst_113 = arith.constant 0.899999976 : f32
    %232 = vector.broadcast %cst_113 : f32 to vector<1x128xf32>
    %233 = arith.mulf %232, %225 : vector<1x128xf32>
    %234 = arith.addf %233, %231 : vector<1x128xf32>
    %235 = arith.subf %234, %229 : vector<1x128xf32>
    %cst_114 = arith.constant 1.000000e+00 : f32
    %236 = vector.broadcast %cst_114 : f32 to vector<1x128xf32>
    %237 = arith.cmpf ogt, %235, %236 : vector<1x128xf32>
    %238 = arith.extui %237 : vector<1x128xi1> to vector<1x128xi32>
    %239 = arith.sitofp %238 : vector<1x128xi32> to vector<1x128xf32>
    %c6_115 = arith.constant 6 : index
    %c0_116 = arith.constant 0 : index
    %240 = vector.load %arg9[%c6_115, %c0_116] : memref<104x128xf32, #tpu.memory_space<vmem>>, vector<1x128xf32>
    tpu.vector_store %arg9[%c6_115, %c0_116], %239 {strides = array<i32>} : memref<104x128xf32, #tpu.memory_space<vmem>>, vector<1x128xf32>,
    %c7_117 = arith.constant 7 : index
    %c0_118 = arith.constant 0 : index
    %241 = vector.load %arg10[%c7_117, %c0_118] : memref<104x128xf32, #tpu.memory_space<vmem>>, vector<1x128xf32>
    %cst_119 = arith.constant 0.899999976 : f32
    %242 = vector.broadcast %cst_119 : f32 to vector<1x128xf32>
    %243 = arith.mulf %242, %235 : vector<1x128xf32>
    %244 = arith.addf %243, %241 : vector<1x128xf32>
    %245 = arith.subf %244, %239 : vector<1x128xf32>
    %cst_120 = arith.constant 1.000000e+00 : f32
    %246 = vector.broadcast %cst_120 : f32 to vector<1x128xf32>
    %247 = arith.cmpf ogt, %245, %246 : vector<1x128xf32>
    %248 = arith.extui %247 : vector<1x128xi1> to vector<1x128xi32>
    %249 = arith.sitofp %248 : vector<1x128xi32> to vector<1x128xf32>
    %c7_121 = arith.constant 7 : index
    %c0_122 = arith.constant 0 : index
    %250 = vector.load %arg9[%c7_121, %c0_122] : memref<104x128xf32, #tpu.memory_space<vmem>>, vector<1x128xf32>
    tpu.vector_store %arg9[%c7_121, %c0_122], %249 {strides = array<i32>} : memref<104x128xf32, #tpu.memory_space<vmem>>, vector<1x128xf32>,
    %cst_123 = arith.constant 0.899999976 : f32
    %251 = vector.broadcast %cst_123 : f32 to vector<1x128xf32>
    %252 = arith.mulf %251, %160 : vector<1x128xf32>
    %253 = arith.addf %252, %10 : vector<1x128xf32>
    %254 = arith.subf %253, %164 : vector<1x128xf32>
    %cst_124 = arith.constant 1.000000e+00 : f32
    %255 = vector.broadcast %cst_124 : f32 to vector<1x128xf32>
    %256 = arith.cmpf ogt, %254, %255 : vector<1x128xf32>
    %257 = arith.extui %256 : vector<1x128xi1> to vector<1x128xi32>
    %258 = arith.sitofp %257 : vector<1x128xi32> to vector<1x128xf32>
    %c16 = arith.constant 16 : index
    %c0_125 = arith.constant 0 : index
    %259 = vector.load %arg8[%c16, %c0_125] : memref<104x128xf32, #tpu.memory_space<vmem>>, vector<1x128xf32>
    tpu.vector_store %arg8[%c16, %c0_125], %258 {strides = array<i32>} : memref<104x128xf32, #tpu.memory_space<vmem>>, vector<1x128xf32>,
    %cst_126 = arith.constant 0.899999976 : f32
    %260 = vector.broadcast %cst_126 : f32 to vector<1x128xf32>
    %261 = arith.mulf %260, %254 : vector<1x128xf32>
    %262 = arith.addf %261, %10 : vector<1x128xf32>
    %263 = arith.subf %262, %258 : vector<1x128xf32>
    %cst_127 = arith.constant 1.000000e+00 : f32
    %264 = vector.broadcast %cst_127 : f32 to vector<1x128xf32>
    %265 = arith.cmpf ogt, %263, %264 : vector<1x128xf32>
    %266 = arith.extui %265 : vector<1x128xi1> to vector<1x128xi32>
    %267 = arith.sitofp %266 : vector<1x128xi32> to vector<1x128xf32>
    %c17 = arith.constant 17 : index
    %c0_128 = arith.constant 0 : index
    %268 = vector.load %arg8[%c17, %c0_128] : memref<104x128xf32, #tpu.memory_space<vmem>>, vector<1x128xf32>
    tpu.vector_store %arg8[%c17, %c0_128], %267 {strides = array<i32>} : memref<104x128xf32, #tpu.memory_space<vmem>>, vector<1x128xf32>,
    %cst_129 = arith.constant 0.899999976 : f32
    %269 = vector.broadcast %cst_129 : f32 to vector<1x128xf32>
    %270 = arith.mulf %269, %263 : vector<1x128xf32>
    %271 = arith.addf %270, %10 : vector<1x128xf32>
    %272 = arith.subf %271, %267 : vector<1x128xf32>
    %cst_130 = arith.constant 1.000000e+00 : f32
    %273 = vector.broadcast %cst_130 : f32 to vector<1x128xf32>
    %274 = arith.cmpf ogt, %272, %273 : vector<1x128xf32>
    %275 = arith.extui %274 : vector<1x128xi1> to vector<1x128xi32>
    %276 = arith.sitofp %275 : vector<1x128xi32> to vector<1x128xf32>
    %c18 = arith.constant 18 : index
    %c0_131 = arith.constant 0 : index
    %277 = vector.load %arg8[%c18, %c0_131] : memref<104x128xf32, #tpu.memory_space<vmem>>, vector<1x128xf32>
    tpu.vector_store %arg8[%c18, %c0_131], %276 {strides = array<i32>} : memref<104x128xf32, #tpu.memory_space<vmem>>, vector<1x128xf32>,
    %cst_132 = arith.constant 0.899999976 : f32
    %278 = vector.broadcast %cst_132 : f32 to vector<1x128xf32>
    %279 = arith.mulf %278, %272 : vector<1x128xf32>
    %280 = arith.addf %279, %10 : vector<1x128xf32>
    %281 = arith.subf %280, %276 : vector<1x128xf32>
    %cst_133 = arith.constant 1.000000e+00 : f32
    %282 = vector.broadcast %cst_133 : f32 to vector<1x128xf32>
    %283 = arith.cmpf ogt, %281, %282 : vector<1x128xf32>
    %284 = arith.extui %283 : vector<1x128xi1> to vector<1x128xi32>
    %285 = arith.sitofp %284 : vector<1x128xi32> to vector<1x128xf32>
    %c19 = arith.constant 19 : index
    %c0_134 = arith.constant 0 : index
    %286 = vector.load %arg8[%c19, %c0_134] : memref<104x128xf32, #tpu.memory_space<vmem>>, vector<1x128xf32>
    tpu.vector_store %arg8[%c19, %c0_134], %285 {strides = array<i32>} : memref<104x128xf32, #tpu.memory_space<vmem>>, vector<1x128xf32>,
    %cst_135 = arith.constant 0.899999976 : f32
    %287 = vector.broadcast %cst_135 : f32 to vector<1x128xf32>
    %288 = arith.mulf %287, %281 : vector<1x128xf32>
    %289 = arith.addf %288, %10 : vector<1x128xf32>
    %290 = arith.subf %289, %285 : vector<1x128xf32>
    %cst_136 = arith.constant 1.000000e+00 : f32
    %291 = vector.broadcast %cst_136 : f32 to vector<1x128xf32>
    %292 = arith.cmpf ogt, %290, %291 : vector<1x128xf32>
    %293 = arith.extui %292 : vector<1x128xi1> to vector<1x128xi32>
    %294 = arith.sitofp %293 : vector<1x128xi32> to vector<1x128xf32>
    %c20 = arith.constant 20 : index
    %c0_137 = arith.constant 0 : index
    %295 = vector.load %arg8[%c20, %c0_137] : memref<104x128xf32, #tpu.memory_space<vmem>>, vector<1x128xf32>
    tpu.vector_store %arg8[%c20, %c0_137], %294 {strides = array<i32>} : memref<104x128xf32, #tpu.memory_space<vmem>>, vector<1x128xf32>,
    %cst_138 = arith.constant 0.899999976 : f32
    %296 = vector.broadcast %cst_138 : f32 to vector<1x128xf32>
    %297 = arith.mulf %296, %290 : vector<1x128xf32>
    %298 = arith.addf %297, %10 : vector<1x128xf32>
    %299 = arith.subf %298, %294 : vector<1x128xf32>
    %cst_139 = arith.constant 1.000000e+00 : f32
    %300 = vector.broadcast %cst_139 : f32 to vector<1x128xf32>
    %301 = arith.cmpf ogt, %299, %300 : vector<1x128xf32>
    %302 = arith.extui %301 : vector<1x128xi1> to vector<1x128xi32>
    %303 = arith.sitofp %302 : vector<1x128xi32> to vector<1x128xf32>
    %c21 = arith.constant 21 : index
    %c0_140 = arith.constant 0 : index
    %304 = vector.load %arg8[%c21, %c0_140] : memref<104x128xf32, #tpu.memory_space<vmem>>, vector<1x128xf32>
    tpu.vector_store %arg8[%c21, %c0_140], %303 {strides = array<i32>} : memref<104x128xf32, #tpu.memory_space<vmem>>, vector<1x128xf32>,
    %cst_141 = arith.constant 0.899999976 : f32
    %305 = vector.broadcast %cst_141 : f32 to vector<1x128xf32>
    %306 = arith.mulf %305, %299 : vector<1x128xf32>
    %307 = arith.addf %306, %10 : vector<1x128xf32>
    %308 = arith.subf %307, %303 : vector<1x128xf32>
    %cst_142 = arith.constant 1.000000e+00 : f32
    %309 = vector.broadcast %cst_142 : f32 to vector<1x128xf32>
    %310 = arith.cmpf ogt, %308, %309 : vector<1x128xf32>
    %311 = arith.extui %310 : vector<1x128xi1> to vector<1x128xi32>
    %312 = arith.sitofp %311 : vector<1x128xi32> to vector<1x128xf32>
    %c22 = arith.constant 22 : index
    %c0_143 = arith.constant 0 : index
    %313 = vector.load %arg8[%c22, %c0_143] : memref<104x128xf32, #tpu.memory_space<vmem>>, vector<1x128xf32>
    tpu.vector_store %arg8[%c22, %c0_143], %312 {strides = array<i32>} : memref<104x128xf32, #tpu.memory_space<vmem>>, vector<1x128xf32>,
    %cst_144 = arith.constant 0.899999976 : f32
    %314 = vector.broadcast %cst_144 : f32 to vector<1x128xf32>
    %315 = arith.mulf %314, %308 : vector<1x128xf32>
    %316 = arith.addf %315, %10 : vector<1x128xf32>
    %317 = arith.subf %316, %312 : vector<1x128xf32>
    %cst_145 = arith.constant 1.000000e+00 : f32
    %318 = vector.broadcast %cst_145 : f32 to vector<1x128xf32>
    %319 = arith.cmpf ogt, %317, %318 : vector<1x128xf32>
    %320 = arith.extui %319 : vector<1x128xi1> to vector<1x128xi32>
    %321 = arith.sitofp %320 : vector<1x128xi32> to vector<1x128xf32>
    %c23 = arith.constant 23 : index
    %c0_146 = arith.constant 0 : index
    %322 = vector.load %arg8[%c23, %c0_146] : memref<104x128xf32, #tpu.memory_space<vmem>>, vector<1x128xf32>
    tpu.vector_store %arg8[%c23, %c0_146], %321 {strides = array<i32>} : memref<104x128xf32, #tpu.memory_space<vmem>>, vector<1x128xf32>,
    %c16_147 = arith.constant 16 : index
    %c0_148 = arith.constant 0 : index
    %323 = vector.load %arg8[%c16_147, %c0_148] : memref<104x128xf32, #tpu.memory_space<vmem>>, vector<8x128xf32>
    %cst_149 = arith.constant dense<0.000000e+00> : vector<8x128xf32>
    %324 = tpu.matmul %323, %11, %cst_149 {dimension_numbers = #tpu.dot_dimension_numbers<[1], [0], [0], [1], [0, 0, 1, 1], [], []>} : vector<8x128xf32>, vector<128x128xf32>, vector<8x128xf32> -> vector<8x128xf32>
    %325 = vector.broadcast %12 : vector<1x128xf32> to vector<8x128xf32>
    %326 = arith.addf %324, %325 : vector<8x128xf32>
    %c16_150 = arith.constant 16 : index
    %c0_151 = arith.constant 0 : index
    %327 = vector.load %arg10[%c16_150, %c0_151] : memref<104x128xf32, #tpu.memory_space<vmem>>, vector<8x128xf32>
    tpu.vector_store %arg10[%c16_150, %c0_151], %326 {strides = array<i32>} : memref<104x128xf32, #tpu.memory_space<vmem>>, vector<8x128xf32>,
    %c8_152 = arith.constant 8 : index
    %c0_153 = arith.constant 0 : index
    %328 = vector.load %arg10[%c8_152, %c0_153] : memref<104x128xf32, #tpu.memory_space<vmem>>, vector<1x128xf32>
    %cst_154 = arith.constant 0.899999976 : f32
    %329 = vector.broadcast %cst_154 : f32 to vector<1x128xf32>
    %330 = arith.mulf %329, %245 : vector<1x128xf32>
    %331 = arith.addf %330, %328 : vector<1x128xf32>
    %332 = arith.subf %331, %249 : vector<1x128xf32>
    %cst_155 = arith.constant 1.000000e+00 : f32
    %333 = vector.broadcast %cst_155 : f32 to vector<1x128xf32>
    %334 = arith.cmpf ogt, %332, %333 : vector<1x128xf32>
    %335 = arith.extui %334 : vector<1x128xi1> to vector<1x128xi32>
    %336 = arith.sitofp %335 : vector<1x128xi32> to vector<1x128xf32>
    %c8_156 = arith.constant 8 : index
    %c0_157 = arith.constant 0 : index
    %337 = vector.load %arg9[%c8_156, %c0_157] : memref<104x128xf32, #tpu.memory_space<vmem>>, vector<1x128xf32>
    tpu.vector_store %arg9[%c8_156, %c0_157], %336 {strides = array<i32>} : memref<104x128xf32, #tpu.memory_space<vmem>>, vector<1x128xf32>,
    %c9_158 = arith.constant 9 : index
    %c0_159 = arith.constant 0 : index
    %338 = vector.load %arg10[%c9_158, %c0_159] : memref<104x128xf32, #tpu.memory_space<vmem>>, vector<1x128xf32>
    %cst_160 = arith.constant 0.899999976 : f32
    %339 = vector.broadcast %cst_160 : f32 to vector<1x128xf32>
    %340 = arith.mulf %339, %332 : vector<1x128xf32>
    %341 = arith.addf %340, %338 : vector<1x128xf32>
    %342 = arith.subf %341, %336 : vector<1x128xf32>
    %cst_161 = arith.constant 1.000000e+00 : f32
    %343 = vector.broadcast %cst_161 : f32 to vector<1x128xf32>
    %344 = arith.cmpf ogt, %342, %343 : vector<1x128xf32>
    %345 = arith.extui %344 : vector<1x128xi1> to vector<1x128xi32>
    %346 = arith.sitofp %345 : vector<1x128xi32> to vector<1x128xf32>
    %c9_162 = arith.constant 9 : index
    %c0_163 = arith.constant 0 : index
    %347 = vector.load %arg9[%c9_162, %c0_163] : memref<104x128xf32, #tpu.memory_space<vmem>>, vector<1x128xf32>
    tpu.vector_store %arg9[%c9_162, %c0_163], %346 {strides = array<i32>} : memref<104x128xf32, #tpu.memory_space<vmem>>, vector<1x128xf32>,
    %c10_164 = arith.constant 10 : index
    %c0_165 = arith.constant 0 : index
    %348 = vector.load %arg10[%c10_164, %c0_165] : memref<104x128xf32, #tpu.memory_space<vmem>>, vector<1x128xf32>
    %cst_166 = arith.constant 0.899999976 : f32
    %349 = vector.broadcast %cst_166 : f32 to vector<1x128xf32>
    %350 = arith.mulf %349, %342 : vector<1x128xf32>
    %351 = arith.addf %350, %348 : vector<1x128xf32>
    %352 = arith.subf %351, %346 : vector<1x128xf32>
    %cst_167 = arith.constant 1.000000e+00 : f32
    %353 = vector.broadcast %cst_167 : f32 to vector<1x128xf32>
    %354 = arith.cmpf ogt, %352, %353 : vector<1x128xf32>
    %355 = arith.extui %354 : vector<1x128xi1> to vector<1x128xi32>
    %356 = arith.sitofp %355 : vector<1x128xi32> to vector<1x128xf32>
    %c10_168 = arith.constant 10 : index
    %c0_169 = arith.constant 0 : index
    %357 = vector.load %arg9[%c10_168, %c0_169] : memref<104x128xf32, #tpu.memory_space<vmem>>, vector<1x128xf32>
    tpu.vector_store %arg9[%c10_168, %c0_169], %356 {strides = array<i32>} : memref<104x128xf32, #tpu.memory_space<vmem>>, vector<1x128xf32>,
    %c11_170 = arith.constant 11 : index
    %c0_171 = arith.constant 0 : index
    %358 = vector.load %arg10[%c11_170, %c0_171] : memref<104x128xf32, #tpu.memory_space<vmem>>, vector<1x128xf32>
    %cst_172 = arith.constant 0.899999976 : f32
    %359 = vector.broadcast %cst_172 : f32 to vector<1x128xf32>
    %360 = arith.mulf %359, %352 : vector<1x128xf32>
    %361 = arith.addf %360, %358 : vector<1x128xf32>
    %362 = arith.subf %361, %356 : vector<1x128xf32>
    %cst_173 = arith.constant 1.000000e+00 : f32
    %363 = vector.broadcast %cst_173 : f32 to vector<1x128xf32>
    %364 = arith.cmpf ogt, %362, %363 : vector<1x128xf32>
    %365 = arith.extui %364 : vector<1x128xi1> to vector<1x128xi32>
    %366 = arith.sitofp %365 : vector<1x128xi32> to vector<1x128xf32>
    %c11_174 = arith.constant 11 : index
    %c0_175 = arith.constant 0 : index
    %367 = vector.load %arg9[%c11_174, %c0_175] : memref<104x128xf32, #tpu.memory_space<vmem>>, vector<1x128xf32>
    tpu.vector_store %arg9[%c11_174, %c0_175], %366 {strides = array<i32>} : memref<104x128xf32, #tpu.memory_space<vmem>>, vector<1x128xf32>,
    %c12_176 = arith.constant 12 : index
    %c0_177 = arith.constant 0 : index
    %368 = vector.load %arg10[%c12_176, %c0_177] : memref<104x128xf32, #tpu.memory_space<vmem>>, vector<1x128xf32>
    %cst_178 = arith.constant 0.899999976 : f32
    %369 = vector.broadcast %cst_178 : f32 to vector<1x128xf32>
    %370 = arith.mulf %369, %362 : vector<1x128xf32>
    %371 = arith.addf %370, %368 : vector<1x128xf32>
    %372 = arith.subf %371, %366 : vector<1x128xf32>
    %cst_179 = arith.constant 1.000000e+00 : f32
    %373 = vector.broadcast %cst_179 : f32 to vector<1x128xf32>
    %374 = arith.cmpf ogt, %372, %373 : vector<1x128xf32>
    %375 = arith.extui %374 : vector<1x128xi1> to vector<1x128xi32>
    %376 = arith.sitofp %375 : vector<1x128xi32> to vector<1x128xf32>
    %c12_180 = arith.constant 12 : index
    %c0_181 = arith.constant 0 : index
    %377 = vector.load %arg9[%c12_180, %c0_181] : memref<104x128xf32, #tpu.memory_space<vmem>>, vector<1x128xf32>
    tpu.vector_store %arg9[%c12_180, %c0_181], %376 {strides = array<i32>} : memref<104x128xf32, #tpu.memory_space<vmem>>, vector<1x128xf32>,
    %c13_182 = arith.constant 13 : index
    %c0_183 = arith.constant 0 : index
    %378 = vector.load %arg10[%c13_182, %c0_183] : memref<104x128xf32, #tpu.memory_space<vmem>>, vector<1x128xf32>
    %cst_184 = arith.constant 0.899999976 : f32
    %379 = vector.broadcast %cst_184 : f32 to vector<1x128xf32>
    %380 = arith.mulf %379, %372 : vector<1x128xf32>
    %381 = arith.addf %380, %378 : vector<1x128xf32>
    %382 = arith.subf %381, %376 : vector<1x128xf32>
    %cst_185 = arith.constant 1.000000e+00 : f32
    %383 = vector.broadcast %cst_185 : f32 to vector<1x128xf32>
    %384 = arith.cmpf ogt, %382, %383 : vector<1x128xf32>
    %385 = arith.extui %384 : vector<1x128xi1> to vector<1x128xi32>
    %386 = arith.sitofp %385 : vector<1x128xi32> to vector<1x128xf32>
    %c13_186 = arith.constant 13 : index
    %c0_187 = arith.constant 0 : index
    %387 = vector.load %arg9[%c13_186, %c0_187] : memref<104x128xf32, #tpu.memory_space<vmem>>, vector<1x128xf32>
    tpu.vector_store %arg9[%c13_186, %c0_187], %386 {strides = array<i32>} : memref<104x128xf32, #tpu.memory_space<vmem>>, vector<1x128xf32>,
    %c14_188 = arith.constant 14 : index
    %c0_189 = arith.constant 0 : index
    %388 = vector.load %arg10[%c14_188, %c0_189] : memref<104x128xf32, #tpu.memory_space<vmem>>, vector<1x128xf32>
    %cst_190 = arith.constant 0.899999976 : f32
    %389 = vector.broadcast %cst_190 : f32 to vector<1x128xf32>
    %390 = arith.mulf %389, %382 : vector<1x128xf32>
    %391 = arith.addf %390, %388 : vector<1x128xf32>
    %392 = arith.subf %391, %386 : vector<1x128xf32>
    %cst_191 = arith.constant 1.000000e+00 : f32
    %393 = vector.broadcast %cst_191 : f32 to vector<1x128xf32>
    %394 = arith.cmpf ogt, %392, %393 : vector<1x128xf32>
    %395 = arith.extui %394 : vector<1x128xi1> to vector<1x128xi32>
    %396 = arith.sitofp %395 : vector<1x128xi32> to vector<1x128xf32>
    %c14_192 = arith.constant 14 : index
    %c0_193 = arith.constant 0 : index
    %397 = vector.load %arg9[%c14_192, %c0_193] : memref<104x128xf32, #tpu.memory_space<vmem>>, vector<1x128xf32>
    tpu.vector_store %arg9[%c14_192, %c0_193], %396 {strides = array<i32>} : memref<104x128xf32, #tpu.memory_space<vmem>>, vector<1x128xf32>,
    %c15_194 = arith.constant 15 : index
    %c0_195 = arith.constant 0 : index
    %398 = vector.load %arg10[%c15_194, %c0_195] : memref<104x128xf32, #tpu.memory_space<vmem>>, vector<1x128xf32>
    %cst_196 = arith.constant 0.899999976 : f32
    %399 = vector.broadcast %cst_196 : f32 to vector<1x128xf32>
    %400 = arith.mulf %399, %392 : vector<1x128xf32>
    %401 = arith.addf %400, %398 : vector<1x128xf32>
    %402 = arith.subf %401, %396 : vector<1x128xf32>
    %cst_197 = arith.constant 1.000000e+00 : f32
    %403 = vector.broadcast %cst_197 : f32 to vector<1x128xf32>
    %404 = arith.cmpf ogt, %402, %403 : vector<1x128xf32>
    %405 = arith.extui %404 : vector<1x128xi1> to vector<1x128xi32>
    %406 = arith.sitofp %405 : vector<1x128xi32> to vector<1x128xf32>
    %c15_198 = arith.constant 15 : index
    %c0_199 = arith.constant 0 : index
    %407 = vector.load %arg9[%c15_198, %c0_199] : memref<104x128xf32, #tpu.memory_space<vmem>>, vector<1x128xf32>
    tpu.vector_store %arg9[%c15_198, %c0_199], %406 {strides = array<i32>} : memref<104x128xf32, #tpu.memory_space<vmem>>, vector<1x128xf32>,
    %cst_200 = arith.constant 0.899999976 : f32
    %408 = vector.broadcast %cst_200 : f32 to vector<1x128xf32>
    %409 = arith.mulf %408, %317 : vector<1x128xf32>
    %410 = arith.addf %409, %10 : vector<1x128xf32>
    %411 = arith.subf %410, %321 : vector<1x128xf32>
    %cst_201 = arith.constant 1.000000e+00 : f32
    %412 = vector.broadcast %cst_201 : f32 to vector<1x128xf32>
    %413 = arith.cmpf ogt, %411, %412 : vector<1x128xf32>
    %414 = arith.extui %413 : vector<1x128xi1> to vector<1x128xi32>
    %415 = arith.sitofp %414 : vector<1x128xi32> to vector<1x128xf32>
    %c24 = arith.constant 24 : index
    %c0_202 = arith.constant 0 : index
    %416 = vector.load %arg8[%c24, %c0_202] : memref<104x128xf32, #tpu.memory_space<vmem>>, vector<1x128xf32>
    tpu.vector_store %arg8[%c24, %c0_202], %415 {strides = array<i32>} : memref<104x128xf32, #tpu.memory_space<vmem>>, vector<1x128xf32>,
    %cst_203 = arith.constant 0.899999976 : f32
    %417 = vector.broadcast %cst_203 : f32 to vector<1x128xf32>
    %418 = arith.mulf %417, %411 : vector<1x128xf32>
    %419 = arith.addf %418, %10 : vector<1x128xf32>
    %420 = arith.subf %419, %415 : vector<1x128xf32>
    %cst_204 = arith.constant 1.000000e+00 : f32
    %421 = vector.broadcast %cst_204 : f32 to vector<1x128xf32>
    %422 = arith.cmpf ogt, %420, %421 : vector<1x128xf32>
    %423 = arith.extui %422 : vector<1x128xi1> to vector<1x128xi32>
    %424 = arith.sitofp %423 : vector<1x128xi32> to vector<1x128xf32>
    %c25 = arith.constant 25 : index
    %c0_205 = arith.constant 0 : index
    %425 = vector.load %arg8[%c25, %c0_205] : memref<104x128xf32, #tpu.memory_space<vmem>>, vector<1x128xf32>
    tpu.vector_store %arg8[%c25, %c0_205], %424 {strides = array<i32>} : memref<104x128xf32, #tpu.memory_space<vmem>>, vector<1x128xf32>,
    %cst_206 = arith.constant 0.899999976 : f32
    %426 = vector.broadcast %cst_206 : f32 to vector<1x128xf32>
    %427 = arith.mulf %426, %420 : vector<1x128xf32>
    %428 = arith.addf %427, %10 : vector<1x128xf32>
    %429 = arith.subf %428, %424 : vector<1x128xf32>
    %cst_207 = arith.constant 1.000000e+00 : f32
    %430 = vector.broadcast %cst_207 : f32 to vector<1x128xf32>
    %431 = arith.cmpf ogt, %429, %430 : vector<1x128xf32>
    %432 = arith.extui %431 : vector<1x128xi1> to vector<1x128xi32>
    %433 = arith.sitofp %432 : vector<1x128xi32> to vector<1x128xf32>
    %c26 = arith.constant 26 : index
    %c0_208 = arith.constant 0 : index
    %434 = vector.load %arg8[%c26, %c0_208] : memref<104x128xf32, #tpu.memory_space<vmem>>, vector<1x128xf32>
    tpu.vector_store %arg8[%c26, %c0_208], %433 {strides = array<i32>} : memref<104x128xf32, #tpu.memory_space<vmem>>, vector<1x128xf32>,
    %cst_209 = arith.constant 0.899999976 : f32
    %435 = vector.broadcast %cst_209 : f32 to vector<1x128xf32>
    %436 = arith.mulf %435, %429 : vector<1x128xf32>
    %437 = arith.addf %436, %10 : vector<1x128xf32>
    %438 = arith.subf %437, %433 : vector<1x128xf32>
    %cst_210 = arith.constant 1.000000e+00 : f32
    %439 = vector.broadcast %cst_210 : f32 to vector<1x128xf32>
    %440 = arith.cmpf ogt, %438, %439 : vector<1x128xf32>
    %441 = arith.extui %440 : vector<1x128xi1> to vector<1x128xi32>
    %442 = arith.sitofp %441 : vector<1x128xi32> to vector<1x128xf32>
    %c27 = arith.constant 27 : index
    %c0_211 = arith.constant 0 : index
    %443 = vector.load %arg8[%c27, %c0_211] : memref<104x128xf32, #tpu.memory_space<vmem>>, vector<1x128xf32>
    tpu.vector_store %arg8[%c27, %c0_211], %442 {strides = array<i32>} : memref<104x128xf32, #tpu.memory_space<vmem>>, vector<1x128xf32>,
    %cst_212 = arith.constant 0.899999976 : f32
    %444 = vector.broadcast %cst_212 : f32 to vector<1x128xf32>
    %445 = arith.mulf %444, %438 : vector<1x128xf32>
    %446 = arith.addf %445, %10 : vector<1x128xf32>
    %447 = arith.subf %446, %442 : vector<1x128xf32>
    %cst_213 = arith.constant 1.000000e+00 : f32
    %448 = vector.broadcast %cst_213 : f32 to vector<1x128xf32>
    %449 = arith.cmpf ogt, %447, %448 : vector<1x128xf32>
    %450 = arith.extui %449 : vector<1x128xi1> to vector<1x128xi32>
    %451 = arith.sitofp %450 : vector<1x128xi32> to vector<1x128xf32>
    %c28 = arith.constant 28 : index
    %c0_214 = arith.constant 0 : index
    %452 = vector.load %arg8[%c28, %c0_214] : memref<104x128xf32, #tpu.memory_space<vmem>>, vector<1x128xf32>
    tpu.vector_store %arg8[%c28, %c0_214], %451 {strides = array<i32>} : memref<104x128xf32, #tpu.memory_space<vmem>>, vector<1x128xf32>,
    %cst_215 = arith.constant 0.899999976 : f32
    %453 = vector.broadcast %cst_215 : f32 to vector<1x128xf32>
    %454 = arith.mulf %453, %447 : vector<1x128xf32>
    %455 = arith.addf %454, %10 : vector<1x128xf32>
    %456 = arith.subf %455, %451 : vector<1x128xf32>
    %cst_216 = arith.constant 1.000000e+00 : f32
    %457 = vector.broadcast %cst_216 : f32 to vector<1x128xf32>
    %458 = arith.cmpf ogt, %456, %457 : vector<1x128xf32>
    %459 = arith.extui %458 : vector<1x128xi1> to vector<1x128xi32>
    %460 = arith.sitofp %459 : vector<1x128xi32> to vector<1x128xf32>
    %c29 = arith.constant 29 : index
    %c0_217 = arith.constant 0 : index
    %461 = vector.load %arg8[%c29, %c0_217] : memref<104x128xf32, #tpu.memory_space<vmem>>, vector<1x128xf32>
    tpu.vector_store %arg8[%c29, %c0_217], %460 {strides = array<i32>} : memref<104x128xf32, #tpu.memory_space<vmem>>, vector<1x128xf32>,
    %cst_218 = arith.constant 0.899999976 : f32
    %462 = vector.broadcast %cst_218 : f32 to vector<1x128xf32>
    %463 = arith.mulf %462, %456 : vector<1x128xf32>
    %464 = arith.addf %463, %10 : vector<1x128xf32>
    %465 = arith.subf %464, %460 : vector<1x128xf32>
    %cst_219 = arith.constant 1.000000e+00 : f32
    %466 = vector.broadcast %cst_219 : f32 to vector<1x128xf32>
    %467 = arith.cmpf ogt, %465, %466 : vector<1x128xf32>
    %468 = arith.extui %467 : vector<1x128xi1> to vector<1x128xi32>
    %469 = arith.sitofp %468 : vector<1x128xi32> to vector<1x128xf32>
    %c30 = arith.constant 30 : index
    %c0_220 = arith.constant 0 : index
    %470 = vector.load %arg8[%c30, %c0_220] : memref<104x128xf32, #tpu.memory_space<vmem>>, vector<1x128xf32>
    tpu.vector_store %arg8[%c30, %c0_220], %469 {strides = array<i32>} : memref<104x128xf32, #tpu.memory_space<vmem>>, vector<1x128xf32>,
    %cst_221 = arith.constant 0.899999976 : f32
    %471 = vector.broadcast %cst_221 : f32 to vector<1x128xf32>
    %472 = arith.mulf %471, %465 : vector<1x128xf32>
    %473 = arith.addf %472, %10 : vector<1x128xf32>
    %474 = arith.subf %473, %469 : vector<1x128xf32>
    %cst_222 = arith.constant 1.000000e+00 : f32
    %475 = vector.broadcast %cst_222 : f32 to vector<1x128xf32>
    %476 = arith.cmpf ogt, %474, %475 : vector<1x128xf32>
    %477 = arith.extui %476 : vector<1x128xi1> to vector<1x128xi32>
    %478 = arith.sitofp %477 : vector<1x128xi32> to vector<1x128xf32>
    %c31 = arith.constant 31 : index
    %c0_223 = arith.constant 0 : index
    %479 = vector.load %arg8[%c31, %c0_223] : memref<104x128xf32, #tpu.memory_space<vmem>>, vector<1x128xf32>
    tpu.vector_store %arg8[%c31, %c0_223], %478 {strides = array<i32>} : memref<104x128xf32, #tpu.memory_space<vmem>>, vector<1x128xf32>,
    %c24_224 = arith.constant 24 : index
    %c0_225 = arith.constant 0 : index
    %480 = vector.load %arg8[%c24_224, %c0_225] : memref<104x128xf32, #tpu.memory_space<vmem>>, vector<8x128xf32>
    %cst_226 = arith.constant dense<0.000000e+00> : vector<8x128xf32>
    %481 = tpu.matmul %480, %11, %cst_226 {dimension_numbers = #tpu.dot_dimension_numbers<[1], [0], [0], [1], [0, 0, 1, 1], [], []>} : vector<8x128xf32>, vector<128x128xf32>, vector<8x128xf32> -> vector<8x128xf32>
    %482 = vector.broadcast %12 : vector<1x128xf32> to vector<8x128xf32>
    %483 = arith.addf %481, %482 : vector<8x128xf32>
    %c24_227 = arith.constant 24 : index
    %c0_228 = arith.constant 0 : index
    %484 = vector.load %arg10[%c24_227, %c0_228] : memref<104x128xf32, #tpu.memory_space<vmem>>, vector<8x128xf32>
    tpu.vector_store %arg10[%c24_227, %c0_228], %483 {strides = array<i32>} : memref<104x128xf32, #tpu.memory_space<vmem>>, vector<8x128xf32>,
    %c16_229 = arith.constant 16 : index
    %c0_230 = arith.constant 0 : index
    %485 = vector.load %arg10[%c16_229, %c0_230] : memref<104x128xf32, #tpu.memory_space<vmem>>, vector<1x128xf32>
    %cst_231 = arith.constant 0.899999976 : f32
    %486 = vector.broadcast %cst_231 : f32 to vector<1x128xf32>
    %487 = arith.mulf %486, %402 : vector<1x128xf32>
    %488 = arith.addf %487, %485 : vector<1x128xf32>
    %489 = arith.subf %488, %406 : vector<1x128xf32>
    %cst_232 = arith.constant 1.000000e+00 : f32
    %490 = vector.broadcast %cst_232 : f32 to vector<1x128xf32>
    %491 = arith.cmpf ogt, %489, %490 : vector<1x128xf32>
    %492 = arith.extui %491 : vector<1x128xi1> to vector<1x128xi32>
    %493 = arith.sitofp %492 : vector<1x128xi32> to vector<1x128xf32>
    %c16_233 = arith.constant 16 : index
    %c0_234 = arith.constant 0 : index
    %494 = vector.load %arg9[%c16_233, %c0_234] : memref<104x128xf32, #tpu.memory_space<vmem>>, vector<1x128xf32>
    tpu.vector_store %arg9[%c16_233, %c0_234], %493 {strides = array<i32>} : memref<104x128xf32, #tpu.memory_space<vmem>>, vector<1x128xf32>,
    %c17_235 = arith.constant 17 : index
    %c0_236 = arith.constant 0 : index
    %495 = vector.load %arg10[%c17_235, %c0_236] : memref<104x128xf32, #tpu.memory_space<vmem>>, vector<1x128xf32>
    %cst_237 = arith.constant 0.899999976 : f32
    %496 = vector.broadcast %cst_237 : f32 to vector<1x128xf32>
    %497 = arith.mulf %496, %489 : vector<1x128xf32>
    %498 = arith.addf %497, %495 : vector<1x128xf32>
    %499 = arith.subf %498, %493 : vector<1x128xf32>
    %cst_238 = arith.constant 1.000000e+00 : f32
    %500 = vector.broadcast %cst_238 : f32 to vector<1x128xf32>
    %501 = arith.cmpf ogt, %499, %500 : vector<1x128xf32>
    %502 = arith.extui %501 : vector<1x128xi1> to vector<1x128xi32>
    %503 = arith.sitofp %502 : vector<1x128xi32> to vector<1x128xf32>
    %c17_239 = arith.constant 17 : index
    %c0_240 = arith.constant 0 : index
    %504 = vector.load %arg9[%c17_239, %c0_240] : memref<104x128xf32, #tpu.memory_space<vmem>>, vector<1x128xf32>
    tpu.vector_store %arg9[%c17_239, %c0_240], %503 {strides = array<i32>} : memref<104x128xf32, #tpu.memory_space<vmem>>, vector<1x128xf32>,
    %c18_241 = arith.constant 18 : index
    %c0_242 = arith.constant 0 : index
    %505 = vector.load %arg10[%c18_241, %c0_242] : memref<104x128xf32, #tpu.memory_space<vmem>>, vector<1x128xf32>
    %cst_243 = arith.constant 0.899999976 : f32
    %506 = vector.broadcast %cst_243 : f32 to vector<1x128xf32>
    %507 = arith.mulf %506, %499 : vector<1x128xf32>
    %508 = arith.addf %507, %505 : vector<1x128xf32>
    %509 = arith.subf %508, %503 : vector<1x128xf32>
    %cst_244 = arith.constant 1.000000e+00 : f32
    %510 = vector.broadcast %cst_244 : f32 to vector<1x128xf32>
    %511 = arith.cmpf ogt, %509, %510 : vector<1x128xf32>
    %512 = arith.extui %511 : vector<1x128xi1> to vector<1x128xi32>
    %513 = arith.sitofp %512 : vector<1x128xi32> to vector<1x128xf32>
    %c18_245 = arith.constant 18 : index
    %c0_246 = arith.constant 0 : index
    %514 = vector.load %arg9[%c18_245, %c0_246] : memref<104x128xf32, #tpu.memory_space<vmem>>, vector<1x128xf32>
    tpu.vector_store %arg9[%c18_245, %c0_246], %513 {strides = array<i32>} : memref<104x128xf32, #tpu.memory_space<vmem>>, vector<1x128xf32>,
    %c19_247 = arith.constant 19 : index
    %c0_248 = arith.constant 0 : index
    %515 = vector.load %arg10[%c19_247, %c0_248] : memref<104x128xf32, #tpu.memory_space<vmem>>, vector<1x128xf32>
    %cst_249 = arith.constant 0.899999976 : f32
    %516 = vector.broadcast %cst_249 : f32 to vector<1x128xf32>
    %517 = arith.mulf %516, %509 : vector<1x128xf32>
    %518 = arith.addf %517, %515 : vector<1x128xf32>
    %519 = arith.subf %518, %513 : vector<1x128xf32>
    %cst_250 = arith.constant 1.000000e+00 : f32
    %520 = vector.broadcast %cst_250 : f32 to vector<1x128xf32>
    %521 = arith.cmpf ogt, %519, %520 : vector<1x128xf32>
    %522 = arith.extui %521 : vector<1x128xi1> to vector<1x128xi32>
    %523 = arith.sitofp %522 : vector<1x128xi32> to vector<1x128xf32>
    %c19_251 = arith.constant 19 : index
    %c0_252 = arith.constant 0 : index
    %524 = vector.load %arg9[%c19_251, %c0_252] : memref<104x128xf32, #tpu.memory_space<vmem>>, vector<1x128xf32>
    tpu.vector_store %arg9[%c19_251, %c0_252], %523 {strides = array<i32>} : memref<104x128xf32, #tpu.memory_space<vmem>>, vector<1x128xf32>,
    %c20_253 = arith.constant 20 : index
    %c0_254 = arith.constant 0 : index
    %525 = vector.load %arg10[%c20_253, %c0_254] : memref<104x128xf32, #tpu.memory_space<vmem>>, vector<1x128xf32>
    %cst_255 = arith.constant 0.899999976 : f32
    %526 = vector.broadcast %cst_255 : f32 to vector<1x128xf32>
    %527 = arith.mulf %526, %519 : vector<1x128xf32>
    %528 = arith.addf %527, %525 : vector<1x128xf32>
    %529 = arith.subf %528, %523 : vector<1x128xf32>
    %cst_256 = arith.constant 1.000000e+00 : f32
    %530 = vector.broadcast %cst_256 : f32 to vector<1x128xf32>
    %531 = arith.cmpf ogt, %529, %530 : vector<1x128xf32>
    %532 = arith.extui %531 : vector<1x128xi1> to vector<1x128xi32>
    %533 = arith.sitofp %532 : vector<1x128xi32> to vector<1x128xf32>
    %c20_257 = arith.constant 20 : index
    %c0_258 = arith.constant 0 : index
    %534 = vector.load %arg9[%c20_257, %c0_258] : memref<104x128xf32, #tpu.memory_space<vmem>>, vector<1x128xf32>
    tpu.vector_store %arg9[%c20_257, %c0_258], %533 {strides = array<i32>} : memref<104x128xf32, #tpu.memory_space<vmem>>, vector<1x128xf32>,
    %c21_259 = arith.constant 21 : index
    %c0_260 = arith.constant 0 : index
    %535 = vector.load %arg10[%c21_259, %c0_260] : memref<104x128xf32, #tpu.memory_space<vmem>>, vector<1x128xf32>
    %cst_261 = arith.constant 0.899999976 : f32
    %536 = vector.broadcast %cst_261 : f32 to vector<1x128xf32>
    %537 = arith.mulf %536, %529 : vector<1x128xf32>
    %538 = arith.addf %537, %535 : vector<1x128xf32>
    %539 = arith.subf %538, %533 : vector<1x128xf32>
    %cst_262 = arith.constant 1.000000e+00 : f32
    %540 = vector.broadcast %cst_262 : f32 to vector<1x128xf32>
    %541 = arith.cmpf ogt, %539, %540 : vector<1x128xf32>
    %542 = arith.extui %541 : vector<1x128xi1> to vector<1x128xi32>
    %543 = arith.sitofp %542 : vector<1x128xi32> to vector<1x128xf32>
    %c21_263 = arith.constant 21 : index
    %c0_264 = arith.constant 0 : index
    %544 = vector.load %arg9[%c21_263, %c0_264] : memref<104x128xf32, #tpu.memory_space<vmem>>, vector<1x128xf32>
    tpu.vector_store %arg9[%c21_263, %c0_264], %543 {strides = array<i32>} : memref<104x128xf32, #tpu.memory_space<vmem>>, vector<1x128xf32>,
    %c22_265 = arith.constant 22 : index
    %c0_266 = arith.constant 0 : index
    %545 = vector.load %arg10[%c22_265, %c0_266] : memref<104x128xf32, #tpu.memory_space<vmem>>, vector<1x128xf32>
    %cst_267 = arith.constant 0.899999976 : f32
    %546 = vector.broadcast %cst_267 : f32 to vector<1x128xf32>
    %547 = arith.mulf %546, %539 : vector<1x128xf32>
    %548 = arith.addf %547, %545 : vector<1x128xf32>
    %549 = arith.subf %548, %543 : vector<1x128xf32>
    %cst_268 = arith.constant 1.000000e+00 : f32
    %550 = vector.broadcast %cst_268 : f32 to vector<1x128xf32>
    %551 = arith.cmpf ogt, %549, %550 : vector<1x128xf32>
    %552 = arith.extui %551 : vector<1x128xi1> to vector<1x128xi32>
    %553 = arith.sitofp %552 : vector<1x128xi32> to vector<1x128xf32>
    %c22_269 = arith.constant 22 : index
    %c0_270 = arith.constant 0 : index
    %554 = vector.load %arg9[%c22_269, %c0_270] : memref<104x128xf32, #tpu.memory_space<vmem>>, vector<1x128xf32>
    tpu.vector_store %arg9[%c22_269, %c0_270], %553 {strides = array<i32>} : memref<104x128xf32, #tpu.memory_space<vmem>>, vector<1x128xf32>,
    %c23_271 = arith.constant 23 : index
    %c0_272 = arith.constant 0 : index
    %555 = vector.load %arg10[%c23_271, %c0_272] : memref<104x128xf32, #tpu.memory_space<vmem>>, vector<1x128xf32>
    %cst_273 = arith.constant 0.899999976 : f32
    %556 = vector.broadcast %cst_273 : f32 to vector<1x128xf32>
    %557 = arith.mulf %556, %549 : vector<1x128xf32>
    %558 = arith.addf %557, %555 : vector<1x128xf32>
    %559 = arith.subf %558, %553 : vector<1x128xf32>
    %cst_274 = arith.constant 1.000000e+00 : f32
    %560 = vector.broadcast %cst_274 : f32 to vector<1x128xf32>
    %561 = arith.cmpf ogt, %559, %560 : vector<1x128xf32>
    %562 = arith.extui %561 : vector<1x128xi1> to vector<1x128xi32>
    %563 = arith.sitofp %562 : vector<1x128xi32> to vector<1x128xf32>
    %c23_275 = arith.constant 23 : index
    %c0_276 = arith.constant 0 : index
    %564 = vector.load %arg9[%c23_275, %c0_276] : memref<104x128xf32, #tpu.memory_space<vmem>>, vector<1x128xf32>
    tpu.vector_store %arg9[%c23_275, %c0_276], %563 {strides = array<i32>} : memref<104x128xf32, #tpu.memory_space<vmem>>, vector<1x128xf32>,
    %cst_277 = arith.constant 0.899999976 : f32
    %565 = vector.broadcast %cst_277 : f32 to vector<1x128xf32>
    %566 = arith.mulf %565, %474 : vector<1x128xf32>
    %567 = arith.addf %566, %10 : vector<1x128xf32>
    %568 = arith.subf %567, %478 : vector<1x128xf32>
    %cst_278 = arith.constant 1.000000e+00 : f32
    %569 = vector.broadcast %cst_278 : f32 to vector<1x128xf32>
    %570 = arith.cmpf ogt, %568, %569 : vector<1x128xf32>
    %571 = arith.extui %570 : vector<1x128xi1> to vector<1x128xi32>
    %572 = arith.sitofp %571 : vector<1x128xi32> to vector<1x128xf32>
    %c32 = arith.constant 32 : index
    %c0_279 = arith.constant 0 : index
    %573 = vector.load %arg8[%c32, %c0_279] : memref<104x128xf32, #tpu.memory_space<vmem>>, vector<1x128xf32>
    tpu.vector_store %arg8[%c32, %c0_279], %572 {strides = array<i32>} : memref<104x128xf32, #tpu.memory_space<vmem>>, vector<1x128xf32>,
    %cst_280 = arith.constant 0.899999976 : f32
    %574 = vector.broadcast %cst_280 : f32 to vector<1x128xf32>
    %575 = arith.mulf %574, %568 : vector<1x128xf32>
    %576 = arith.addf %575, %10 : vector<1x128xf32>
    %577 = arith.subf %576, %572 : vector<1x128xf32>
    %cst_281 = arith.constant 1.000000e+00 : f32
    %578 = vector.broadcast %cst_281 : f32 to vector<1x128xf32>
    %579 = arith.cmpf ogt, %577, %578 : vector<1x128xf32>
    %580 = arith.extui %579 : vector<1x128xi1> to vector<1x128xi32>
    %581 = arith.sitofp %580 : vector<1x128xi32> to vector<1x128xf32>
    %c33 = arith.constant 33 : index
    %c0_282 = arith.constant 0 : index
    %582 = vector.load %arg8[%c33, %c0_282] : memref<104x128xf32, #tpu.memory_space<vmem>>, vector<1x128xf32>
    tpu.vector_store %arg8[%c33, %c0_282], %581 {strides = array<i32>} : memref<104x128xf32, #tpu.memory_space<vmem>>, vector<1x128xf32>,
    %cst_283 = arith.constant 0.899999976 : f32
    %583 = vector.broadcast %cst_283 : f32 to vector<1x128xf32>
    %584 = arith.mulf %583, %577 : vector<1x128xf32>
    %585 = arith.addf %584, %10 : vector<1x128xf32>
    %586 = arith.subf %585, %581 : vector<1x128xf32>
    %cst_284 = arith.constant 1.000000e+00 : f32
    %587 = vector.broadcast %cst_284 : f32 to vector<1x128xf32>
    %588 = arith.cmpf ogt, %586, %587 : vector<1x128xf32>
    %589 = arith.extui %588 : vector<1x128xi1> to vector<1x128xi32>
    %590 = arith.sitofp %589 : vector<1x128xi32> to vector<1x128xf32>
    %c34 = arith.constant 34 : index
    %c0_285 = arith.constant 0 : index
    %591 = vector.load %arg8[%c34, %c0_285] : memref<104x128xf32, #tpu.memory_space<vmem>>, vector<1x128xf32>
    tpu.vector_store %arg8[%c34, %c0_285], %590 {strides = array<i32>} : memref<104x128xf32, #tpu.memory_space<vmem>>, vector<1x128xf32>,
    %cst_286 = arith.constant 0.899999976 : f32
    %592 = vector.broadcast %cst_286 : f32 to vector<1x128xf32>
    %593 = arith.mulf %592, %586 : vector<1x128xf32>
    %594 = arith.addf %593, %10 : vector<1x128xf32>
    %595 = arith.subf %594, %590 : vector<1x128xf32>
    %cst_287 = arith.constant 1.000000e+00 : f32
    %596 = vector.broadcast %cst_287 : f32 to vector<1x128xf32>
    %597 = arith.cmpf ogt, %595, %596 : vector<1x128xf32>
    %598 = arith.extui %597 : vector<1x128xi1> to vector<1x128xi32>
    %599 = arith.sitofp %598 : vector<1x128xi32> to vector<1x128xf32>
    %c35 = arith.constant 35 : index
    %c0_288 = arith.constant 0 : index
    %600 = vector.load %arg8[%c35, %c0_288] : memref<104x128xf32, #tpu.memory_space<vmem>>, vector<1x128xf32>
    tpu.vector_store %arg8[%c35, %c0_288], %599 {strides = array<i32>} : memref<104x128xf32, #tpu.memory_space<vmem>>, vector<1x128xf32>,
    %cst_289 = arith.constant 0.899999976 : f32
    %601 = vector.broadcast %cst_289 : f32 to vector<1x128xf32>
    %602 = arith.mulf %601, %595 : vector<1x128xf32>
    %603 = arith.addf %602, %10 : vector<1x128xf32>
    %604 = arith.subf %603, %599 : vector<1x128xf32>
    %cst_290 = arith.constant 1.000000e+00 : f32
    %605 = vector.broadcast %cst_290 : f32 to vector<1x128xf32>
    %606 = arith.cmpf ogt, %604, %605 : vector<1x128xf32>
    %607 = arith.extui %606 : vector<1x128xi1> to vector<1x128xi32>
    %608 = arith.sitofp %607 : vector<1x128xi32> to vector<1x128xf32>
    %c36 = arith.constant 36 : index
    %c0_291 = arith.constant 0 : index
    %609 = vector.load %arg8[%c36, %c0_291] : memref<104x128xf32, #tpu.memory_space<vmem>>, vector<1x128xf32>
    tpu.vector_store %arg8[%c36, %c0_291], %608 {strides = array<i32>} : memref<104x128xf32, #tpu.memory_space<vmem>>, vector<1x128xf32>,
    %cst_292 = arith.constant 0.899999976 : f32
    %610 = vector.broadcast %cst_292 : f32 to vector<1x128xf32>
    %611 = arith.mulf %610, %604 : vector<1x128xf32>
    %612 = arith.addf %611, %10 : vector<1x128xf32>
    %613 = arith.subf %612, %608 : vector<1x128xf32>
    %cst_293 = arith.constant 1.000000e+00 : f32
    %614 = vector.broadcast %cst_293 : f32 to vector<1x128xf32>
    %615 = arith.cmpf ogt, %613, %614 : vector<1x128xf32>
    %616 = arith.extui %615 : vector<1x128xi1> to vector<1x128xi32>
    %617 = arith.sitofp %616 : vector<1x128xi32> to vector<1x128xf32>
    %c37 = arith.constant 37 : index
    %c0_294 = arith.constant 0 : index
    %618 = vector.load %arg8[%c37, %c0_294] : memref<104x128xf32, #tpu.memory_space<vmem>>, vector<1x128xf32>
    tpu.vector_store %arg8[%c37, %c0_294], %617 {strides = array<i32>} : memref<104x128xf32, #tpu.memory_space<vmem>>, vector<1x128xf32>,
    %cst_295 = arith.constant 0.899999976 : f32
    %619 = vector.broadcast %cst_295 : f32 to vector<1x128xf32>
    %620 = arith.mulf %619, %613 : vector<1x128xf32>
    %621 = arith.addf %620, %10 : vector<1x128xf32>
    %622 = arith.subf %621, %617 : vector<1x128xf32>
    %cst_296 = arith.constant 1.000000e+00 : f32
    %623 = vector.broadcast %cst_296 : f32 to vector<1x128xf32>
    %624 = arith.cmpf ogt, %622, %623 : vector<1x128xf32>
    %625 = arith.extui %624 : vector<1x128xi1> to vector<1x128xi32>
    %626 = arith.sitofp %625 : vector<1x128xi32> to vector<1x128xf32>
    %c38 = arith.constant 38 : index
    %c0_297 = arith.constant 0 : index
    %627 = vector.load %arg8[%c38, %c0_297] : memref<104x128xf32, #tpu.memory_space<vmem>>, vector<1x128xf32>
    tpu.vector_store %arg8[%c38, %c0_297], %626 {strides = array<i32>} : memref<104x128xf32, #tpu.memory_space<vmem>>, vector<1x128xf32>,
    %cst_298 = arith.constant 0.899999976 : f32
    %628 = vector.broadcast %cst_298 : f32 to vector<1x128xf32>
    %629 = arith.mulf %628, %622 : vector<1x128xf32>
    %630 = arith.addf %629, %10 : vector<1x128xf32>
    %631 = arith.subf %630, %626 : vector<1x128xf32>
    %cst_299 = arith.constant 1.000000e+00 : f32
    %632 = vector.broadcast %cst_299 : f32 to vector<1x128xf32>
    %633 = arith.cmpf ogt, %631, %632 : vector<1x128xf32>
    %634 = arith.extui %633 : vector<1x128xi1> to vector<1x128xi32>
    %635 = arith.sitofp %634 : vector<1x128xi32> to vector<1x128xf32>
    %c39 = arith.constant 39 : index
    %c0_300 = arith.constant 0 : index
    %636 = vector.load %arg8[%c39, %c0_300] : memref<104x128xf32, #tpu.memory_space<vmem>>, vector<1x128xf32>
    tpu.vector_store %arg8[%c39, %c0_300], %635 {strides = array<i32>} : memref<104x128xf32, #tpu.memory_space<vmem>>, vector<1x128xf32>,
    %c32_301 = arith.constant 32 : index
    %c0_302 = arith.constant 0 : index
    %637 = vector.load %arg8[%c32_301, %c0_302] : memref<104x128xf32, #tpu.memory_space<vmem>>, vector<8x128xf32>
    %cst_303 = arith.constant dense<0.000000e+00> : vector<8x128xf32>
    %638 = tpu.matmul %637, %11, %cst_303 {dimension_numbers = #tpu.dot_dimension_numbers<[1], [0], [0], [1], [0, 0, 1, 1], [], []>} : vector<8x128xf32>, vector<128x128xf32>, vector<8x128xf32> -> vector<8x128xf32>
    %639 = vector.broadcast %12 : vector<1x128xf32> to vector<8x128xf32>
    %640 = arith.addf %638, %639 : vector<8x128xf32>
    %c32_304 = arith.constant 32 : index
    %c0_305 = arith.constant 0 : index
    %641 = vector.load %arg10[%c32_304, %c0_305] : memref<104x128xf32, #tpu.memory_space<vmem>>, vector<8x128xf32>
    tpu.vector_store %arg10[%c32_304, %c0_305], %640 {strides = array<i32>} : memref<104x128xf32, #tpu.memory_space<vmem>>, vector<8x128xf32>,
    %c24_306 = arith.constant 24 : index
    %c0_307 = arith.constant 0 : index
    %642 = vector.load %arg10[%c24_306, %c0_307] : memref<104x128xf32, #tpu.memory_space<vmem>>, vector<1x128xf32>
    %cst_308 = arith.constant 0.899999976 : f32
    %643 = vector.broadcast %cst_308 : f32 to vector<1x128xf32>
    %644 = arith.mulf %643, %559 : vector<1x128xf32>
    %645 = arith.addf %644, %642 : vector<1x128xf32>
    %646 = arith.subf %645, %563 : vector<1x128xf32>
    %cst_309 = arith.constant 1.000000e+00 : f32
    %647 = vector.broadcast %cst_309 : f32 to vector<1x128xf32>
    %648 = arith.cmpf ogt, %646, %647 : vector<1x128xf32>
    %649 = arith.extui %648 : vector<1x128xi1> to vector<1x128xi32>
    %650 = arith.sitofp %649 : vector<1x128xi32> to vector<1x128xf32>
    %c24_310 = arith.constant 24 : index
    %c0_311 = arith.constant 0 : index
    %651 = vector.load %arg9[%c24_310, %c0_311] : memref<104x128xf32, #tpu.memory_space<vmem>>, vector<1x128xf32>
    tpu.vector_store %arg9[%c24_310, %c0_311], %650 {strides = array<i32>} : memref<104x128xf32, #tpu.memory_space<vmem>>, vector<1x128xf32>,
    %c25_312 = arith.constant 25 : index
    %c0_313 = arith.constant 0 : index
    %652 = vector.load %arg10[%c25_312, %c0_313] : memref<104x128xf32, #tpu.memory_space<vmem>>, vector<1x128xf32>
    %cst_314 = arith.constant 0.899999976 : f32
    %653 = vector.broadcast %cst_314 : f32 to vector<1x128xf32>
    %654 = arith.mulf %653, %646 : vector<1x128xf32>
    %655 = arith.addf %654, %652 : vector<1x128xf32>
    %656 = arith.subf %655, %650 : vector<1x128xf32>
    %cst_315 = arith.constant 1.000000e+00 : f32
    %657 = vector.broadcast %cst_315 : f32 to vector<1x128xf32>
    %658 = arith.cmpf ogt, %656, %657 : vector<1x128xf32>
    %659 = arith.extui %658 : vector<1x128xi1> to vector<1x128xi32>
    %660 = arith.sitofp %659 : vector<1x128xi32> to vector<1x128xf32>
    %c25_316 = arith.constant 25 : index
    %c0_317 = arith.constant 0 : index
    %661 = vector.load %arg9[%c25_316, %c0_317] : memref<104x128xf32, #tpu.memory_space<vmem>>, vector<1x128xf32>
    tpu.vector_store %arg9[%c25_316, %c0_317], %660 {strides = array<i32>} : memref<104x128xf32, #tpu.memory_space<vmem>>, vector<1x128xf32>,
    %c26_318 = arith.constant 26 : index
    %c0_319 = arith.constant 0 : index
    %662 = vector.load %arg10[%c26_318, %c0_319] : memref<104x128xf32, #tpu.memory_space<vmem>>, vector<1x128xf32>
    %cst_320 = arith.constant 0.899999976 : f32
    %663 = vector.broadcast %cst_320 : f32 to vector<1x128xf32>
    %664 = arith.mulf %663, %656 : vector<1x128xf32>
    %665 = arith.addf %664, %662 : vector<1x128xf32>
    %666 = arith.subf %665, %660 : vector<1x128xf32>
    %cst_321 = arith.constant 1.000000e+00 : f32
    %667 = vector.broadcast %cst_321 : f32 to vector<1x128xf32>
    %668 = arith.cmpf ogt, %666, %667 : vector<1x128xf32>
    %669 = arith.extui %668 : vector<1x128xi1> to vector<1x128xi32>
    %670 = arith.sitofp %669 : vector<1x128xi32> to vector<1x128xf32>
    %c26_322 = arith.constant 26 : index
    %c0_323 = arith.constant 0 : index
    %671 = vector.load %arg9[%c26_322, %c0_323] : memref<104x128xf32, #tpu.memory_space<vmem>>, vector<1x128xf32>
    tpu.vector_store %arg9[%c26_322, %c0_323], %670 {strides = array<i32>} : memref<104x128xf32, #tpu.memory_space<vmem>>, vector<1x128xf32>,
    %c27_324 = arith.constant 27 : index
    %c0_325 = arith.constant 0 : index
    %672 = vector.load %arg10[%c27_324, %c0_325] : memref<104x128xf32, #tpu.memory_space<vmem>>, vector<1x128xf32>
    %cst_326 = arith.constant 0.899999976 : f32
    %673 = vector.broadcast %cst_326 : f32 to vector<1x128xf32>
    %674 = arith.mulf %673, %666 : vector<1x128xf32>
    %675 = arith.addf %674, %672 : vector<1x128xf32>
    %676 = arith.subf %675, %670 : vector<1x128xf32>
    %cst_327 = arith.constant 1.000000e+00 : f32
    %677 = vector.broadcast %cst_327 : f32 to vector<1x128xf32>
    %678 = arith.cmpf ogt, %676, %677 : vector<1x128xf32>
    %679 = arith.extui %678 : vector<1x128xi1> to vector<1x128xi32>
    %680 = arith.sitofp %679 : vector<1x128xi32> to vector<1x128xf32>
    %c27_328 = arith.constant 27 : index
    %c0_329 = arith.constant 0 : index
    %681 = vector.load %arg9[%c27_328, %c0_329] : memref<104x128xf32, #tpu.memory_space<vmem>>, vector<1x128xf32>
    tpu.vector_store %arg9[%c27_328, %c0_329], %680 {strides = array<i32>} : memref<104x128xf32, #tpu.memory_space<vmem>>, vector<1x128xf32>,
    %c28_330 = arith.constant 28 : index
    %c0_331 = arith.constant 0 : index
    %682 = vector.load %arg10[%c28_330, %c0_331] : memref<104x128xf32, #tpu.memory_space<vmem>>, vector<1x128xf32>
    %cst_332 = arith.constant 0.899999976 : f32
    %683 = vector.broadcast %cst_332 : f32 to vector<1x128xf32>
    %684 = arith.mulf %683, %676 : vector<1x128xf32>
    %685 = arith.addf %684, %682 : vector<1x128xf32>
    %686 = arith.subf %685, %680 : vector<1x128xf32>
    %cst_333 = arith.constant 1.000000e+00 : f32
    %687 = vector.broadcast %cst_333 : f32 to vector<1x128xf32>
    %688 = arith.cmpf ogt, %686, %687 : vector<1x128xf32>
    %689 = arith.extui %688 : vector<1x128xi1> to vector<1x128xi32>
    %690 = arith.sitofp %689 : vector<1x128xi32> to vector<1x128xf32>
    %c28_334 = arith.constant 28 : index
    %c0_335 = arith.constant 0 : index
    %691 = vector.load %arg9[%c28_334, %c0_335] : memref<104x128xf32, #tpu.memory_space<vmem>>, vector<1x128xf32>
    tpu.vector_store %arg9[%c28_334, %c0_335], %690 {strides = array<i32>} : memref<104x128xf32, #tpu.memory_space<vmem>>, vector<1x128xf32>,
    %c29_336 = arith.constant 29 : index
    %c0_337 = arith.constant 0 : index
    %692 = vector.load %arg10[%c29_336, %c0_337] : memref<104x128xf32, #tpu.memory_space<vmem>>, vector<1x128xf32>
    %cst_338 = arith.constant 0.899999976 : f32
    %693 = vector.broadcast %cst_338 : f32 to vector<1x128xf32>
    %694 = arith.mulf %693, %686 : vector<1x128xf32>
    %695 = arith.addf %694, %692 : vector<1x128xf32>
    %696 = arith.subf %695, %690 : vector<1x128xf32>
    %cst_339 = arith.constant 1.000000e+00 : f32
    %697 = vector.broadcast %cst_339 : f32 to vector<1x128xf32>
    %698 = arith.cmpf ogt, %696, %697 : vector<1x128xf32>
    %699 = arith.extui %698 : vector<1x128xi1> to vector<1x128xi32>
    %700 = arith.sitofp %699 : vector<1x128xi32> to vector<1x128xf32>
    %c29_340 = arith.constant 29 : index
    %c0_341 = arith.constant 0 : index
    %701 = vector.load %arg9[%c29_340, %c0_341] : memref<104x128xf32, #tpu.memory_space<vmem>>, vector<1x128xf32>
    tpu.vector_store %arg9[%c29_340, %c0_341], %700 {strides = array<i32>} : memref<104x128xf32, #tpu.memory_space<vmem>>, vector<1x128xf32>,
    %c30_342 = arith.constant 30 : index
    %c0_343 = arith.constant 0 : index
    %702 = vector.load %arg10[%c30_342, %c0_343] : memref<104x128xf32, #tpu.memory_space<vmem>>, vector<1x128xf32>
    %cst_344 = arith.constant 0.899999976 : f32
    %703 = vector.broadcast %cst_344 : f32 to vector<1x128xf32>
    %704 = arith.mulf %703, %696 : vector<1x128xf32>
    %705 = arith.addf %704, %702 : vector<1x128xf32>
    %706 = arith.subf %705, %700 : vector<1x128xf32>
    %cst_345 = arith.constant 1.000000e+00 : f32
    %707 = vector.broadcast %cst_345 : f32 to vector<1x128xf32>
    %708 = arith.cmpf ogt, %706, %707 : vector<1x128xf32>
    %709 = arith.extui %708 : vector<1x128xi1> to vector<1x128xi32>
    %710 = arith.sitofp %709 : vector<1x128xi32> to vector<1x128xf32>
    %c30_346 = arith.constant 30 : index
    %c0_347 = arith.constant 0 : index
    %711 = vector.load %arg9[%c30_346, %c0_347] : memref<104x128xf32, #tpu.memory_space<vmem>>, vector<1x128xf32>
    tpu.vector_store %arg9[%c30_346, %c0_347], %710 {strides = array<i32>} : memref<104x128xf32, #tpu.memory_space<vmem>>, vector<1x128xf32>,
    %c31_348 = arith.constant 31 : index
    %c0_349 = arith.constant 0 : index
    %712 = vector.load %arg10[%c31_348, %c0_349] : memref<104x128xf32, #tpu.memory_space<vmem>>, vector<1x128xf32>
    %cst_350 = arith.constant 0.899999976 : f32
    %713 = vector.broadcast %cst_350 : f32 to vector<1x128xf32>
    %714 = arith.mulf %713, %706 : vector<1x128xf32>
    %715 = arith.addf %714, %712 : vector<1x128xf32>
    %716 = arith.subf %715, %710 : vector<1x128xf32>
    %cst_351 = arith.constant 1.000000e+00 : f32
    %717 = vector.broadcast %cst_351 : f32 to vector<1x128xf32>
    %718 = arith.cmpf ogt, %716, %717 : vector<1x128xf32>
    %719 = arith.extui %718 : vector<1x128xi1> to vector<1x128xi32>
    %720 = arith.sitofp %719 : vector<1x128xi32> to vector<1x128xf32>
    %c31_352 = arith.constant 31 : index
    %c0_353 = arith.constant 0 : index
    %721 = vector.load %arg9[%c31_352, %c0_353] : memref<104x128xf32, #tpu.memory_space<vmem>>, vector<1x128xf32>
    tpu.vector_store %arg9[%c31_352, %c0_353], %720 {strides = array<i32>} : memref<104x128xf32, #tpu.memory_space<vmem>>, vector<1x128xf32>,
    %cst_354 = arith.constant 0.899999976 : f32
    %722 = vector.broadcast %cst_354 : f32 to vector<1x128xf32>
    %723 = arith.mulf %722, %631 : vector<1x128xf32>
    %724 = arith.addf %723, %10 : vector<1x128xf32>
    %725 = arith.subf %724, %635 : vector<1x128xf32>
    %cst_355 = arith.constant 1.000000e+00 : f32
    %726 = vector.broadcast %cst_355 : f32 to vector<1x128xf32>
    %727 = arith.cmpf ogt, %725, %726 : vector<1x128xf32>
    %728 = arith.extui %727 : vector<1x128xi1> to vector<1x128xi32>
    %729 = arith.sitofp %728 : vector<1x128xi32> to vector<1x128xf32>
    %c40 = arith.constant 40 : index
    %c0_356 = arith.constant 0 : index
    %730 = vector.load %arg8[%c40, %c0_356] : memref<104x128xf32, #tpu.memory_space<vmem>>, vector<1x128xf32>
    tpu.vector_store %arg8[%c40, %c0_356], %729 {strides = array<i32>} : memref<104x128xf32, #tpu.memory_space<vmem>>, vector<1x128xf32>,
    %cst_357 = arith.constant 0.899999976 : f32
    %731 = vector.broadcast %cst_357 : f32 to vector<1x128xf32>
    %732 = arith.mulf %731, %725 : vector<1x128xf32>
    %733 = arith.addf %732, %10 : vector<1x128xf32>
    %734 = arith.subf %733, %729 : vector<1x128xf32>
    %cst_358 = arith.constant 1.000000e+00 : f32
    %735 = vector.broadcast %cst_358 : f32 to vector<1x128xf32>
    %736 = arith.cmpf ogt, %734, %735 : vector<1x128xf32>
    %737 = arith.extui %736 : vector<1x128xi1> to vector<1x128xi32>
    %738 = arith.sitofp %737 : vector<1x128xi32> to vector<1x128xf32>
    %c41 = arith.constant 41 : index
    %c0_359 = arith.constant 0 : index
    %739 = vector.load %arg8[%c41, %c0_359] : memref<104x128xf32, #tpu.memory_space<vmem>>, vector<1x128xf32>
    tpu.vector_store %arg8[%c41, %c0_359], %738 {strides = array<i32>} : memref<104x128xf32, #tpu.memory_space<vmem>>, vector<1x128xf32>,
    %cst_360 = arith.constant 0.899999976 : f32
    %740 = vector.broadcast %cst_360 : f32 to vector<1x128xf32>
    %741 = arith.mulf %740, %734 : vector<1x128xf32>
    %742 = arith.addf %741, %10 : vector<1x128xf32>
    %743 = arith.subf %742, %738 : vector<1x128xf32>
    %cst_361 = arith.constant 1.000000e+00 : f32
    %744 = vector.broadcast %cst_361 : f32 to vector<1x128xf32>
    %745 = arith.cmpf ogt, %743, %744 : vector<1x128xf32>
    %746 = arith.extui %745 : vector<1x128xi1> to vector<1x128xi32>
    %747 = arith.sitofp %746 : vector<1x128xi32> to vector<1x128xf32>
    %c42 = arith.constant 42 : index
    %c0_362 = arith.constant 0 : index
    %748 = vector.load %arg8[%c42, %c0_362] : memref<104x128xf32, #tpu.memory_space<vmem>>, vector<1x128xf32>
    tpu.vector_store %arg8[%c42, %c0_362], %747 {strides = array<i32>} : memref<104x128xf32, #tpu.memory_space<vmem>>, vector<1x128xf32>,
    %cst_363 = arith.constant 0.899999976 : f32
    %749 = vector.broadcast %cst_363 : f32 to vector<1x128xf32>
    %750 = arith.mulf %749, %743 : vector<1x128xf32>
    %751 = arith.addf %750, %10 : vector<1x128xf32>
    %752 = arith.subf %751, %747 : vector<1x128xf32>
    %cst_364 = arith.constant 1.000000e+00 : f32
    %753 = vector.broadcast %cst_364 : f32 to vector<1x128xf32>
    %754 = arith.cmpf ogt, %752, %753 : vector<1x128xf32>
    %755 = arith.extui %754 : vector<1x128xi1> to vector<1x128xi32>
    %756 = arith.sitofp %755 : vector<1x128xi32> to vector<1x128xf32>
    %c43 = arith.constant 43 : index
    %c0_365 = arith.constant 0 : index
    %757 = vector.load %arg8[%c43, %c0_365] : memref<104x128xf32, #tpu.memory_space<vmem>>, vector<1x128xf32>
    tpu.vector_store %arg8[%c43, %c0_365], %756 {strides = array<i32>} : memref<104x128xf32, #tpu.memory_space<vmem>>, vector<1x128xf32>,
    %cst_366 = arith.constant 0.899999976 : f32
    %758 = vector.broadcast %cst_366 : f32 to vector<1x128xf32>
    %759 = arith.mulf %758, %752 : vector<1x128xf32>
    %760 = arith.addf %759, %10 : vector<1x128xf32>
    %761 = arith.subf %760, %756 : vector<1x128xf32>
    %cst_367 = arith.constant 1.000000e+00 : f32
    %762 = vector.broadcast %cst_367 : f32 to vector<1x128xf32>
    %763 = arith.cmpf ogt, %761, %762 : vector<1x128xf32>
    %764 = arith.extui %763 : vector<1x128xi1> to vector<1x128xi32>
    %765 = arith.sitofp %764 : vector<1x128xi32> to vector<1x128xf32>
    %c44 = arith.constant 44 : index
    %c0_368 = arith.constant 0 : index
    %766 = vector.load %arg8[%c44, %c0_368] : memref<104x128xf32, #tpu.memory_space<vmem>>, vector<1x128xf32>
    tpu.vector_store %arg8[%c44, %c0_368], %765 {strides = array<i32>} : memref<104x128xf32, #tpu.memory_space<vmem>>, vector<1x128xf32>,
    %cst_369 = arith.constant 0.899999976 : f32
    %767 = vector.broadcast %cst_369 : f32 to vector<1x128xf32>
    %768 = arith.mulf %767, %761 : vector<1x128xf32>
    %769 = arith.addf %768, %10 : vector<1x128xf32>
    %770 = arith.subf %769, %765 : vector<1x128xf32>
    %cst_370 = arith.constant 1.000000e+00 : f32
    %771 = vector.broadcast %cst_370 : f32 to vector<1x128xf32>
    %772 = arith.cmpf ogt, %770, %771 : vector<1x128xf32>
    %773 = arith.extui %772 : vector<1x128xi1> to vector<1x128xi32>
    %774 = arith.sitofp %773 : vector<1x128xi32> to vector<1x128xf32>
    %c45 = arith.constant 45 : index
    %c0_371 = arith.constant 0 : index
    %775 = vector.load %arg8[%c45, %c0_371] : memref<104x128xf32, #tpu.memory_space<vmem>>, vector<1x128xf32>
    tpu.vector_store %arg8[%c45, %c0_371], %774 {strides = array<i32>} : memref<104x128xf32, #tpu.memory_space<vmem>>, vector<1x128xf32>,
    %cst_372 = arith.constant 0.899999976 : f32
    %776 = vector.broadcast %cst_372 : f32 to vector<1x128xf32>
    %777 = arith.mulf %776, %770 : vector<1x128xf32>
    %778 = arith.addf %777, %10 : vector<1x128xf32>
    %779 = arith.subf %778, %774 : vector<1x128xf32>
    %cst_373 = arith.constant 1.000000e+00 : f32
    %780 = vector.broadcast %cst_373 : f32 to vector<1x128xf32>
    %781 = arith.cmpf ogt, %779, %780 : vector<1x128xf32>
    %782 = arith.extui %781 : vector<1x128xi1> to vector<1x128xi32>
    %783 = arith.sitofp %782 : vector<1x128xi32> to vector<1x128xf32>
    %c46 = arith.constant 46 : index
    %c0_374 = arith.constant 0 : index
    %784 = vector.load %arg8[%c46, %c0_374] : memref<104x128xf32, #tpu.memory_space<vmem>>, vector<1x128xf32>
    tpu.vector_store %arg8[%c46, %c0_374], %783 {strides = array<i32>} : memref<104x128xf32, #tpu.memory_space<vmem>>, vector<1x128xf32>,
    %cst_375 = arith.constant 0.899999976 : f32
    %785 = vector.broadcast %cst_375 : f32 to vector<1x128xf32>
    %786 = arith.mulf %785, %779 : vector<1x128xf32>
    %787 = arith.addf %786, %10 : vector<1x128xf32>
    %788 = arith.subf %787, %783 : vector<1x128xf32>
    %cst_376 = arith.constant 1.000000e+00 : f32
    %789 = vector.broadcast %cst_376 : f32 to vector<1x128xf32>
    %790 = arith.cmpf ogt, %788, %789 : vector<1x128xf32>
    %791 = arith.extui %790 : vector<1x128xi1> to vector<1x128xi32>
    %792 = arith.sitofp %791 : vector<1x128xi32> to vector<1x128xf32>
    %c47 = arith.constant 47 : index
    %c0_377 = arith.constant 0 : index
    %793 = vector.load %arg8[%c47, %c0_377] : memref<104x128xf32, #tpu.memory_space<vmem>>, vector<1x128xf32>
    tpu.vector_store %arg8[%c47, %c0_377], %792 {strides = array<i32>} : memref<104x128xf32, #tpu.memory_space<vmem>>, vector<1x128xf32>,
    %c40_378 = arith.constant 40 : index
    %c0_379 = arith.constant 0 : index
    %794 = vector.load %arg8[%c40_378, %c0_379] : memref<104x128xf32, #tpu.memory_space<vmem>>, vector<8x128xf32>
    %cst_380 = arith.constant dense<0.000000e+00> : vector<8x128xf32>
    %795 = tpu.matmul %794, %11, %cst_380 {dimension_numbers = #tpu.dot_dimension_numbers<[1], [0], [0], [1], [0, 0, 1, 1], [], []>} : vector<8x128xf32>, vector<128x128xf32>, vector<8x128xf32> -> vector<8x128xf32>
    %796 = vector.broadcast %12 : vector<1x128xf32> to vector<8x128xf32>
    %797 = arith.addf %795, %796 : vector<8x128xf32>
    %c40_381 = arith.constant 40 : index
    %c0_382 = arith.constant 0 : index
    %798 = vector.load %arg10[%c40_381, %c0_382] : memref<104x128xf32, #tpu.memory_space<vmem>>, vector<8x128xf32>
    tpu.vector_store %arg10[%c40_381, %c0_382], %797 {strides = array<i32>} : memref<104x128xf32, #tpu.memory_space<vmem>>, vector<8x128xf32>,
    %c32_383 = arith.constant 32 : index
    %c0_384 = arith.constant 0 : index
    %799 = vector.load %arg10[%c32_383, %c0_384] : memref<104x128xf32, #tpu.memory_space<vmem>>, vector<1x128xf32>
    %cst_385 = arith.constant 0.899999976 : f32
    %800 = vector.broadcast %cst_385 : f32 to vector<1x128xf32>
    %801 = arith.mulf %800, %716 : vector<1x128xf32>
    %802 = arith.addf %801, %799 : vector<1x128xf32>
    %803 = arith.subf %802, %720 : vector<1x128xf32>
    %cst_386 = arith.constant 1.000000e+00 : f32
    %804 = vector.broadcast %cst_386 : f32 to vector<1x128xf32>
    %805 = arith.cmpf ogt, %803, %804 : vector<1x128xf32>
    %806 = arith.extui %805 : vector<1x128xi1> to vector<1x128xi32>
    %807 = arith.sitofp %806 : vector<1x128xi32> to vector<1x128xf32>
    %c32_387 = arith.constant 32 : index
    %c0_388 = arith.constant 0 : index
    %808 = vector.load %arg9[%c32_387, %c0_388] : memref<104x128xf32, #tpu.memory_space<vmem>>, vector<1x128xf32>
    tpu.vector_store %arg9[%c32_387, %c0_388], %807 {strides = array<i32>} : memref<104x128xf32, #tpu.memory_space<vmem>>, vector<1x128xf32>,
    %c33_389 = arith.constant 33 : index
    %c0_390 = arith.constant 0 : index
    %809 = vector.load %arg10[%c33_389, %c0_390] : memref<104x128xf32, #tpu.memory_space<vmem>>, vector<1x128xf32>
    %cst_391 = arith.constant 0.899999976 : f32
    %810 = vector.broadcast %cst_391 : f32 to vector<1x128xf32>
    %811 = arith.mulf %810, %803 : vector<1x128xf32>
    %812 = arith.addf %811, %809 : vector<1x128xf32>
    %813 = arith.subf %812, %807 : vector<1x128xf32>
    %cst_392 = arith.constant 1.000000e+00 : f32
    %814 = vector.broadcast %cst_392 : f32 to vector<1x128xf32>
    %815 = arith.cmpf ogt, %813, %814 : vector<1x128xf32>
    %816 = arith.extui %815 : vector<1x128xi1> to vector<1x128xi32>
    %817 = arith.sitofp %816 : vector<1x128xi32> to vector<1x128xf32>
    %c33_393 = arith.constant 33 : index
    %c0_394 = arith.constant 0 : index
    %818 = vector.load %arg9[%c33_393, %c0_394] : memref<104x128xf32, #tpu.memory_space<vmem>>, vector<1x128xf32>
    tpu.vector_store %arg9[%c33_393, %c0_394], %817 {strides = array<i32>} : memref<104x128xf32, #tpu.memory_space<vmem>>, vector<1x128xf32>,
    %c34_395 = arith.constant 34 : index
    %c0_396 = arith.constant 0 : index
    %819 = vector.load %arg10[%c34_395, %c0_396] : memref<104x128xf32, #tpu.memory_space<vmem>>, vector<1x128xf32>
    %cst_397 = arith.constant 0.899999976 : f32
    %820 = vector.broadcast %cst_397 : f32 to vector<1x128xf32>
    %821 = arith.mulf %820, %813 : vector<1x128xf32>
    %822 = arith.addf %821, %819 : vector<1x128xf32>
    %823 = arith.subf %822, %817 : vector<1x128xf32>
    %cst_398 = arith.constant 1.000000e+00 : f32
    %824 = vector.broadcast %cst_398 : f32 to vector<1x128xf32>
    %825 = arith.cmpf ogt, %823, %824 : vector<1x128xf32>
    %826 = arith.extui %825 : vector<1x128xi1> to vector<1x128xi32>
    %827 = arith.sitofp %826 : vector<1x128xi32> to vector<1x128xf32>
    %c34_399 = arith.constant 34 : index
    %c0_400 = arith.constant 0 : index
    %828 = vector.load %arg9[%c34_399, %c0_400] : memref<104x128xf32, #tpu.memory_space<vmem>>, vector<1x128xf32>
    tpu.vector_store %arg9[%c34_399, %c0_400], %827 {strides = array<i32>} : memref<104x128xf32, #tpu.memory_space<vmem>>, vector<1x128xf32>,
    %c35_401 = arith.constant 35 : index
    %c0_402 = arith.constant 0 : index
    %829 = vector.load %arg10[%c35_401, %c0_402] : memref<104x128xf32, #tpu.memory_space<vmem>>, vector<1x128xf32>
    %cst_403 = arith.constant 0.899999976 : f32
    %830 = vector.broadcast %cst_403 : f32 to vector<1x128xf32>
    %831 = arith.mulf %830, %823 : vector<1x128xf32>
    %832 = arith.addf %831, %829 : vector<1x128xf32>
    %833 = arith.subf %832, %827 : vector<1x128xf32>
    %cst_404 = arith.constant 1.000000e+00 : f32
    %834 = vector.broadcast %cst_404 : f32 to vector<1x128xf32>
    %835 = arith.cmpf ogt, %833, %834 : vector<1x128xf32>
    %836 = arith.extui %835 : vector<1x128xi1> to vector<1x128xi32>
    %837 = arith.sitofp %836 : vector<1x128xi32> to vector<1x128xf32>
    %c35_405 = arith.constant 35 : index
    %c0_406 = arith.constant 0 : index
    %838 = vector.load %arg9[%c35_405, %c0_406] : memref<104x128xf32, #tpu.memory_space<vmem>>, vector<1x128xf32>
    tpu.vector_store %arg9[%c35_405, %c0_406], %837 {strides = array<i32>} : memref<104x128xf32, #tpu.memory_space<vmem>>, vector<1x128xf32>,
    %c36_407 = arith.constant 36 : index
    %c0_408 = arith.constant 0 : index
    %839 = vector.load %arg10[%c36_407, %c0_408] : memref<104x128xf32, #tpu.memory_space<vmem>>, vector<1x128xf32>
    %cst_409 = arith.constant 0.899999976 : f32
    %840 = vector.broadcast %cst_409 : f32 to vector<1x128xf32>
    %841 = arith.mulf %840, %833 : vector<1x128xf32>
    %842 = arith.addf %841, %839 : vector<1x128xf32>
    %843 = arith.subf %842, %837 : vector<1x128xf32>
    %cst_410 = arith.constant 1.000000e+00 : f32
    %844 = vector.broadcast %cst_410 : f32 to vector<1x128xf32>
    %845 = arith.cmpf ogt, %843, %844 : vector<1x128xf32>
    %846 = arith.extui %845 : vector<1x128xi1> to vector<1x128xi32>
    %847 = arith.sitofp %846 : vector<1x128xi32> to vector<1x128xf32>
    %c36_411 = arith.constant 36 : index
    %c0_412 = arith.constant 0 : index
    %848 = vector.load %arg9[%c36_411, %c0_412] : memref<104x128xf32, #tpu.memory_space<vmem>>, vector<1x128xf32>
    tpu.vector_store %arg9[%c36_411, %c0_412], %847 {strides = array<i32>} : memref<104x128xf32, #tpu.memory_space<vmem>>, vector<1x128xf32>,
    %c37_413 = arith.constant 37 : index
    %c0_414 = arith.constant 0 : index
    %849 = vector.load %arg10[%c37_413, %c0_414] : memref<104x128xf32, #tpu.memory_space<vmem>>, vector<1x128xf32>
    %cst_415 = arith.constant 0.899999976 : f32
    %850 = vector.broadcast %cst_415 : f32 to vector<1x128xf32>
    %851 = arith.mulf %850, %843 : vector<1x128xf32>
    %852 = arith.addf %851, %849 : vector<1x128xf32>
    %853 = arith.subf %852, %847 : vector<1x128xf32>
    %cst_416 = arith.constant 1.000000e+00 : f32
    %854 = vector.broadcast %cst_416 : f32 to vector<1x128xf32>
    %855 = arith.cmpf ogt, %853, %854 : vector<1x128xf32>
    %856 = arith.extui %855 : vector<1x128xi1> to vector<1x128xi32>
    %857 = arith.sitofp %856 : vector<1x128xi32> to vector<1x128xf32>
    %c37_417 = arith.constant 37 : index
    %c0_418 = arith.constant 0 : index
    %858 = vector.load %arg9[%c37_417, %c0_418] : memref<104x128xf32, #tpu.memory_space<vmem>>, vector<1x128xf32>
    tpu.vector_store %arg9[%c37_417, %c0_418], %857 {strides = array<i32>} : memref<104x128xf32, #tpu.memory_space<vmem>>, vector<1x128xf32>,
    %c38_419 = arith.constant 38 : index
    %c0_420 = arith.constant 0 : index
    %859 = vector.load %arg10[%c38_419, %c0_420] : memref<104x128xf32, #tpu.memory_space<vmem>>, vector<1x128xf32>
    %cst_421 = arith.constant 0.899999976 : f32
    %860 = vector.broadcast %cst_421 : f32 to vector<1x128xf32>
    %861 = arith.mulf %860, %853 : vector<1x128xf32>
    %862 = arith.addf %861, %859 : vector<1x128xf32>
    %863 = arith.subf %862, %857 : vector<1x128xf32>
    %cst_422 = arith.constant 1.000000e+00 : f32
    %864 = vector.broadcast %cst_422 : f32 to vector<1x128xf32>
    %865 = arith.cmpf ogt, %863, %864 : vector<1x128xf32>
    %866 = arith.extui %865 : vector<1x128xi1> to vector<1x128xi32>
    %867 = arith.sitofp %866 : vector<1x128xi32> to vector<1x128xf32>
    %c38_423 = arith.constant 38 : index
    %c0_424 = arith.constant 0 : index
    %868 = vector.load %arg9[%c38_423, %c0_424] : memref<104x128xf32, #tpu.memory_space<vmem>>, vector<1x128xf32>
    tpu.vector_store %arg9[%c38_423, %c0_424], %867 {strides = array<i32>} : memref<104x128xf32, #tpu.memory_space<vmem>>, vector<1x128xf32>,
    %c39_425 = arith.constant 39 : index
    %c0_426 = arith.constant 0 : index
    %869 = vector.load %arg10[%c39_425, %c0_426] : memref<104x128xf32, #tpu.memory_space<vmem>>, vector<1x128xf32>
    %cst_427 = arith.constant 0.899999976 : f32
    %870 = vector.broadcast %cst_427 : f32 to vector<1x128xf32>
    %871 = arith.mulf %870, %863 : vector<1x128xf32>
    %872 = arith.addf %871, %869 : vector<1x128xf32>
    %873 = arith.subf %872, %867 : vector<1x128xf32>
    %cst_428 = arith.constant 1.000000e+00 : f32
    %874 = vector.broadcast %cst_428 : f32 to vector<1x128xf32>
    %875 = arith.cmpf ogt, %873, %874 : vector<1x128xf32>
    %876 = arith.extui %875 : vector<1x128xi1> to vector<1x128xi32>
    %877 = arith.sitofp %876 : vector<1x128xi32> to vector<1x128xf32>
    %c39_429 = arith.constant 39 : index
    %c0_430 = arith.constant 0 : index
    %878 = vector.load %arg9[%c39_429, %c0_430] : memref<104x128xf32, #tpu.memory_space<vmem>>, vector<1x128xf32>
    tpu.vector_store %arg9[%c39_429, %c0_430], %877 {strides = array<i32>} : memref<104x128xf32, #tpu.memory_space<vmem>>, vector<1x128xf32>,
    %cst_431 = arith.constant 0.899999976 : f32
    %879 = vector.broadcast %cst_431 : f32 to vector<1x128xf32>
    %880 = arith.mulf %879, %788 : vector<1x128xf32>
    %881 = arith.addf %880, %10 : vector<1x128xf32>
    %882 = arith.subf %881, %792 : vector<1x128xf32>
    %cst_432 = arith.constant 1.000000e+00 : f32
    %883 = vector.broadcast %cst_432 : f32 to vector<1x128xf32>
    %884 = arith.cmpf ogt, %882, %883 : vector<1x128xf32>
    %885 = arith.extui %884 : vector<1x128xi1> to vector<1x128xi32>
    %886 = arith.sitofp %885 : vector<1x128xi32> to vector<1x128xf32>
    %c48 = arith.constant 48 : index
    %c0_433 = arith.constant 0 : index
    %887 = vector.load %arg8[%c48, %c0_433] : memref<104x128xf32, #tpu.memory_space<vmem>>, vector<1x128xf32>
    tpu.vector_store %arg8[%c48, %c0_433], %886 {strides = array<i32>} : memref<104x128xf32, #tpu.memory_space<vmem>>, vector<1x128xf32>,
    %cst_434 = arith.constant 0.899999976 : f32
    %888 = vector.broadcast %cst_434 : f32 to vector<1x128xf32>
    %889 = arith.mulf %888, %882 : vector<1x128xf32>
    %890 = arith.addf %889, %10 : vector<1x128xf32>
    %891 = arith.subf %890, %886 : vector<1x128xf32>
    %cst_435 = arith.constant 1.000000e+00 : f32
    %892 = vector.broadcast %cst_435 : f32 to vector<1x128xf32>
    %893 = arith.cmpf ogt, %891, %892 : vector<1x128xf32>
    %894 = arith.extui %893 : vector<1x128xi1> to vector<1x128xi32>
    %895 = arith.sitofp %894 : vector<1x128xi32> to vector<1x128xf32>
    %c49 = arith.constant 49 : index
    %c0_436 = arith.constant 0 : index
    %896 = vector.load %arg8[%c49, %c0_436] : memref<104x128xf32, #tpu.memory_space<vmem>>, vector<1x128xf32>
    tpu.vector_store %arg8[%c49, %c0_436], %895 {strides = array<i32>} : memref<104x128xf32, #tpu.memory_space<vmem>>, vector<1x128xf32>,
    %cst_437 = arith.constant 0.899999976 : f32
    %897 = vector.broadcast %cst_437 : f32 to vector<1x128xf32>
    %898 = arith.mulf %897, %891 : vector<1x128xf32>
    %899 = arith.addf %898, %10 : vector<1x128xf32>
    %900 = arith.subf %899, %895 : vector<1x128xf32>
    %cst_438 = arith.constant 1.000000e+00 : f32
    %901 = vector.broadcast %cst_438 : f32 to vector<1x128xf32>
    %902 = arith.cmpf ogt, %900, %901 : vector<1x128xf32>
    %903 = arith.extui %902 : vector<1x128xi1> to vector<1x128xi32>
    %904 = arith.sitofp %903 : vector<1x128xi32> to vector<1x128xf32>
    %c50 = arith.constant 50 : index
    %c0_439 = arith.constant 0 : index
    %905 = vector.load %arg8[%c50, %c0_439] : memref<104x128xf32, #tpu.memory_space<vmem>>, vector<1x128xf32>
    tpu.vector_store %arg8[%c50, %c0_439], %904 {strides = array<i32>} : memref<104x128xf32, #tpu.memory_space<vmem>>, vector<1x128xf32>,
    %cst_440 = arith.constant 0.899999976 : f32
    %906 = vector.broadcast %cst_440 : f32 to vector<1x128xf32>
    %907 = arith.mulf %906, %900 : vector<1x128xf32>
    %908 = arith.addf %907, %10 : vector<1x128xf32>
    %909 = arith.subf %908, %904 : vector<1x128xf32>
    %cst_441 = arith.constant 1.000000e+00 : f32
    %910 = vector.broadcast %cst_441 : f32 to vector<1x128xf32>
    %911 = arith.cmpf ogt, %909, %910 : vector<1x128xf32>
    %912 = arith.extui %911 : vector<1x128xi1> to vector<1x128xi32>
    %913 = arith.sitofp %912 : vector<1x128xi32> to vector<1x128xf32>
    %c51 = arith.constant 51 : index
    %c0_442 = arith.constant 0 : index
    %914 = vector.load %arg8[%c51, %c0_442] : memref<104x128xf32, #tpu.memory_space<vmem>>, vector<1x128xf32>
    tpu.vector_store %arg8[%c51, %c0_442], %913 {strides = array<i32>} : memref<104x128xf32, #tpu.memory_space<vmem>>, vector<1x128xf32>,
    %cst_443 = arith.constant 0.899999976 : f32
    %915 = vector.broadcast %cst_443 : f32 to vector<1x128xf32>
    %916 = arith.mulf %915, %909 : vector<1x128xf32>
    %917 = arith.addf %916, %10 : vector<1x128xf32>
    %918 = arith.subf %917, %913 : vector<1x128xf32>
    %cst_444 = arith.constant 1.000000e+00 : f32
    %919 = vector.broadcast %cst_444 : f32 to vector<1x128xf32>
    %920 = arith.cmpf ogt, %918, %919 : vector<1x128xf32>
    %921 = arith.extui %920 : vector<1x128xi1> to vector<1x128xi32>
    %922 = arith.sitofp %921 : vector<1x128xi32> to vector<1x128xf32>
    %c52 = arith.constant 52 : index
    %c0_445 = arith.constant 0 : index
    %923 = vector.load %arg8[%c52, %c0_445] : memref<104x128xf32, #tpu.memory_space<vmem>>, vector<1x128xf32>
    tpu.vector_store %arg8[%c52, %c0_445], %922 {strides = array<i32>} : memref<104x128xf32, #tpu.memory_space<vmem>>, vector<1x128xf32>,
    %cst_446 = arith.constant 0.899999976 : f32
    %924 = vector.broadcast %cst_446 : f32 to vector<1x128xf32>
    %925 = arith.mulf %924, %918 : vector<1x128xf32>
    %926 = arith.addf %925, %10 : vector<1x128xf32>
    %927 = arith.subf %926, %922 : vector<1x128xf32>
    %cst_447 = arith.constant 1.000000e+00 : f32
    %928 = vector.broadcast %cst_447 : f32 to vector<1x128xf32>
    %929 = arith.cmpf ogt, %927, %928 : vector<1x128xf32>
    %930 = arith.extui %929 : vector<1x128xi1> to vector<1x128xi32>
    %931 = arith.sitofp %930 : vector<1x128xi32> to vector<1x128xf32>
    %c53 = arith.constant 53 : index
    %c0_448 = arith.constant 0 : index
    %932 = vector.load %arg8[%c53, %c0_448] : memref<104x128xf32, #tpu.memory_space<vmem>>, vector<1x128xf32>
    tpu.vector_store %arg8[%c53, %c0_448], %931 {strides = array<i32>} : memref<104x128xf32, #tpu.memory_space<vmem>>, vector<1x128xf32>,
    %cst_449 = arith.constant 0.899999976 : f32
    %933 = vector.broadcast %cst_449 : f32 to vector<1x128xf32>
    %934 = arith.mulf %933, %927 : vector<1x128xf32>
    %935 = arith.addf %934, %10 : vector<1x128xf32>
    %936 = arith.subf %935, %931 : vector<1x128xf32>
    %cst_450 = arith.constant 1.000000e+00 : f32
    %937 = vector.broadcast %cst_450 : f32 to vector<1x128xf32>
    %938 = arith.cmpf ogt, %936, %937 : vector<1x128xf32>
    %939 = arith.extui %938 : vector<1x128xi1> to vector<1x128xi32>
    %940 = arith.sitofp %939 : vector<1x128xi32> to vector<1x128xf32>
    %c54 = arith.constant 54 : index
    %c0_451 = arith.constant 0 : index
    %941 = vector.load %arg8[%c54, %c0_451] : memref<104x128xf32, #tpu.memory_space<vmem>>, vector<1x128xf32>
    tpu.vector_store %arg8[%c54, %c0_451], %940 {strides = array<i32>} : memref<104x128xf32, #tpu.memory_space<vmem>>, vector<1x128xf32>,
    %cst_452 = arith.constant 0.899999976 : f32
    %942 = vector.broadcast %cst_452 : f32 to vector<1x128xf32>
    %943 = arith.mulf %942, %936 : vector<1x128xf32>
    %944 = arith.addf %943, %10 : vector<1x128xf32>
    %945 = arith.subf %944, %940 : vector<1x128xf32>
    %cst_453 = arith.constant 1.000000e+00 : f32
    %946 = vector.broadcast %cst_453 : f32 to vector<1x128xf32>
    %947 = arith.cmpf ogt, %945, %946 : vector<1x128xf32>
    %948 = arith.extui %947 : vector<1x128xi1> to vector<1x128xi32>
    %949 = arith.sitofp %948 : vector<1x128xi32> to vector<1x128xf32>
    %c55 = arith.constant 55 : index
    %c0_454 = arith.constant 0 : index
    %950 = vector.load %arg8[%c55, %c0_454] : memref<104x128xf32, #tpu.memory_space<vmem>>, vector<1x128xf32>
    tpu.vector_store %arg8[%c55, %c0_454], %949 {strides = array<i32>} : memref<104x128xf32, #tpu.memory_space<vmem>>, vector<1x128xf32>,
    %c48_455 = arith.constant 48 : index
    %c0_456 = arith.constant 0 : index
    %951 = vector.load %arg8[%c48_455, %c0_456] : memref<104x128xf32, #tpu.memory_space<vmem>>, vector<8x128xf32>
    %cst_457 = arith.constant dense<0.000000e+00> : vector<8x128xf32>
    %952 = tpu.matmul %951, %11, %cst_457 {dimension_numbers = #tpu.dot_dimension_numbers<[1], [0], [0], [1], [0, 0, 1, 1], [], []>} : vector<8x128xf32>, vector<128x128xf32>, vector<8x128xf32> -> vector<8x128xf32>
    %953 = vector.broadcast %12 : vector<1x128xf32> to vector<8x128xf32>
    %954 = arith.addf %952, %953 : vector<8x128xf32>
    %c48_458 = arith.constant 48 : index
    %c0_459 = arith.constant 0 : index
    %955 = vector.load %arg10[%c48_458, %c0_459] : memref<104x128xf32, #tpu.memory_space<vmem>>, vector<8x128xf32>
    tpu.vector_store %arg10[%c48_458, %c0_459], %954 {strides = array<i32>} : memref<104x128xf32, #tpu.memory_space<vmem>>, vector<8x128xf32>,
    %c40_460 = arith.constant 40 : index
    %c0_461 = arith.constant 0 : index
    %956 = vector.load %arg10[%c40_460, %c0_461] : memref<104x128xf32, #tpu.memory_space<vmem>>, vector<1x128xf32>
    %cst_462 = arith.constant 0.899999976 : f32
    %957 = vector.broadcast %cst_462 : f32 to vector<1x128xf32>
    %958 = arith.mulf %957, %873 : vector<1x128xf32>
    %959 = arith.addf %958, %956 : vector<1x128xf32>
    %960 = arith.subf %959, %877 : vector<1x128xf32>
    %cst_463 = arith.constant 1.000000e+00 : f32
    %961 = vector.broadcast %cst_463 : f32 to vector<1x128xf32>
    %962 = arith.cmpf ogt, %960, %961 : vector<1x128xf32>
    %963 = arith.extui %962 : vector<1x128xi1> to vector<1x128xi32>
    %964 = arith.sitofp %963 : vector<1x128xi32> to vector<1x128xf32>
    %c40_464 = arith.constant 40 : index
    %c0_465 = arith.constant 0 : index
    %965 = vector.load %arg9[%c40_464, %c0_465] : memref<104x128xf32, #tpu.memory_space<vmem>>, vector<1x128xf32>
    tpu.vector_store %arg9[%c40_464, %c0_465], %964 {strides = array<i32>} : memref<104x128xf32, #tpu.memory_space<vmem>>, vector<1x128xf32>,
    %c41_466 = arith.constant 41 : index
    %c0_467 = arith.constant 0 : index
    %966 = vector.load %arg10[%c41_466, %c0_467] : memref<104x128xf32, #tpu.memory_space<vmem>>, vector<1x128xf32>
    %cst_468 = arith.constant 0.899999976 : f32
    %967 = vector.broadcast %cst_468 : f32 to vector<1x128xf32>
    %968 = arith.mulf %967, %960 : vector<1x128xf32>
    %969 = arith.addf %968, %966 : vector<1x128xf32>
    %970 = arith.subf %969, %964 : vector<1x128xf32>
    %cst_469 = arith.constant 1.000000e+00 : f32
    %971 = vector.broadcast %cst_469 : f32 to vector<1x128xf32>
    %972 = arith.cmpf ogt, %970, %971 : vector<1x128xf32>
    %973 = arith.extui %972 : vector<1x128xi1> to vector<1x128xi32>
    %974 = arith.sitofp %973 : vector<1x128xi32> to vector<1x128xf32>
    %c41_470 = arith.constant 41 : index
    %c0_471 = arith.constant 0 : index
    %975 = vector.load %arg9[%c41_470, %c0_471] : memref<104x128xf32, #tpu.memory_space<vmem>>, vector<1x128xf32>
    tpu.vector_store %arg9[%c41_470, %c0_471], %974 {strides = array<i32>} : memref<104x128xf32, #tpu.memory_space<vmem>>, vector<1x128xf32>,
    %c42_472 = arith.constant 42 : index
    %c0_473 = arith.constant 0 : index
    %976 = vector.load %arg10[%c42_472, %c0_473] : memref<104x128xf32, #tpu.memory_space<vmem>>, vector<1x128xf32>
    %cst_474 = arith.constant 0.899999976 : f32
    %977 = vector.broadcast %cst_474 : f32 to vector<1x128xf32>
    %978 = arith.mulf %977, %970 : vector<1x128xf32>
    %979 = arith.addf %978, %976 : vector<1x128xf32>
    %980 = arith.subf %979, %974 : vector<1x128xf32>
    %cst_475 = arith.constant 1.000000e+00 : f32
    %981 = vector.broadcast %cst_475 : f32 to vector<1x128xf32>
    %982 = arith.cmpf ogt, %980, %981 : vector<1x128xf32>
    %983 = arith.extui %982 : vector<1x128xi1> to vector<1x128xi32>
    %984 = arith.sitofp %983 : vector<1x128xi32> to vector<1x128xf32>
    %c42_476 = arith.constant 42 : index
    %c0_477 = arith.constant 0 : index
    %985 = vector.load %arg9[%c42_476, %c0_477] : memref<104x128xf32, #tpu.memory_space<vmem>>, vector<1x128xf32>
    tpu.vector_store %arg9[%c42_476, %c0_477], %984 {strides = array<i32>} : memref<104x128xf32, #tpu.memory_space<vmem>>, vector<1x128xf32>,
    %c43_478 = arith.constant 43 : index
    %c0_479 = arith.constant 0 : index
    %986 = vector.load %arg10[%c43_478, %c0_479] : memref<104x128xf32, #tpu.memory_space<vmem>>, vector<1x128xf32>
    %cst_480 = arith.constant 0.899999976 : f32
    %987 = vector.broadcast %cst_480 : f32 to vector<1x128xf32>
    %988 = arith.mulf %987, %980 : vector<1x128xf32>
    %989 = arith.addf %988, %986 : vector<1x128xf32>
    %990 = arith.subf %989, %984 : vector<1x128xf32>
    %cst_481 = arith.constant 1.000000e+00 : f32
    %991 = vector.broadcast %cst_481 : f32 to vector<1x128xf32>
    %992 = arith.cmpf ogt, %990, %991 : vector<1x128xf32>
    %993 = arith.extui %992 : vector<1x128xi1> to vector<1x128xi32>
    %994 = arith.sitofp %993 : vector<1x128xi32> to vector<1x128xf32>
    %c43_482 = arith.constant 43 : index
    %c0_483 = arith.constant 0 : index
    %995 = vector.load %arg9[%c43_482, %c0_483] : memref<104x128xf32, #tpu.memory_space<vmem>>, vector<1x128xf32>
    tpu.vector_store %arg9[%c43_482, %c0_483], %994 {strides = array<i32>} : memref<104x128xf32, #tpu.memory_space<vmem>>, vector<1x128xf32>,
    %c44_484 = arith.constant 44 : index
    %c0_485 = arith.constant 0 : index
    %996 = vector.load %arg10[%c44_484, %c0_485] : memref<104x128xf32, #tpu.memory_space<vmem>>, vector<1x128xf32>
    %cst_486 = arith.constant 0.899999976 : f32
    %997 = vector.broadcast %cst_486 : f32 to vector<1x128xf32>
    %998 = arith.mulf %997, %990 : vector<1x128xf32>
    %999 = arith.addf %998, %996 : vector<1x128xf32>
    %1000 = arith.subf %999, %994 : vector<1x128xf32>
    %cst_487 = arith.constant 1.000000e+00 : f32
    %1001 = vector.broadcast %cst_487 : f32 to vector<1x128xf32>
    %1002 = arith.cmpf ogt, %1000, %1001 : vector<1x128xf32>
    %1003 = arith.extui %1002 : vector<1x128xi1> to vector<1x128xi32>
    %1004 = arith.sitofp %1003 : vector<1x128xi32> to vector<1x128xf32>
    %c44_488 = arith.constant 44 : index
    %c0_489 = arith.constant 0 : index
    %1005 = vector.load %arg9[%c44_488, %c0_489] : memref<104x128xf32, #tpu.memory_space<vmem>>, vector<1x128xf32>
    tpu.vector_store %arg9[%c44_488, %c0_489], %1004 {strides = array<i32>} : memref<104x128xf32, #tpu.memory_space<vmem>>, vector<1x128xf32>,
    %c45_490 = arith.constant 45 : index
    %c0_491 = arith.constant 0 : index
    %1006 = vector.load %arg10[%c45_490, %c0_491] : memref<104x128xf32, #tpu.memory_space<vmem>>, vector<1x128xf32>
    %cst_492 = arith.constant 0.899999976 : f32
    %1007 = vector.broadcast %cst_492 : f32 to vector<1x128xf32>
    %1008 = arith.mulf %1007, %1000 : vector<1x128xf32>
    %1009 = arith.addf %1008, %1006 : vector<1x128xf32>
    %1010 = arith.subf %1009, %1004 : vector<1x128xf32>
    %cst_493 = arith.constant 1.000000e+00 : f32
    %1011 = vector.broadcast %cst_493 : f32 to vector<1x128xf32>
    %1012 = arith.cmpf ogt, %1010, %1011 : vector<1x128xf32>
    %1013 = arith.extui %1012 : vector<1x128xi1> to vector<1x128xi32>
    %1014 = arith.sitofp %1013 : vector<1x128xi32> to vector<1x128xf32>
    %c45_494 = arith.constant 45 : index
    %c0_495 = arith.constant 0 : index
    %1015 = vector.load %arg9[%c45_494, %c0_495] : memref<104x128xf32, #tpu.memory_space<vmem>>, vector<1x128xf32>
    tpu.vector_store %arg9[%c45_494, %c0_495], %1014 {strides = array<i32>} : memref<104x128xf32, #tpu.memory_space<vmem>>, vector<1x128xf32>,
    %c46_496 = arith.constant 46 : index
    %c0_497 = arith.constant 0 : index
    %1016 = vector.load %arg10[%c46_496, %c0_497] : memref<104x128xf32, #tpu.memory_space<vmem>>, vector<1x128xf32>
    %cst_498 = arith.constant 0.899999976 : f32
    %1017 = vector.broadcast %cst_498 : f32 to vector<1x128xf32>
    %1018 = arith.mulf %1017, %1010 : vector<1x128xf32>
    %1019 = arith.addf %1018, %1016 : vector<1x128xf32>
    %1020 = arith.subf %1019, %1014 : vector<1x128xf32>
    %cst_499 = arith.constant 1.000000e+00 : f32
    %1021 = vector.broadcast %cst_499 : f32 to vector<1x128xf32>
    %1022 = arith.cmpf ogt, %1020, %1021 : vector<1x128xf32>
    %1023 = arith.extui %1022 : vector<1x128xi1> to vector<1x128xi32>
    %1024 = arith.sitofp %1023 : vector<1x128xi32> to vector<1x128xf32>
    %c46_500 = arith.constant 46 : index
    %c0_501 = arith.constant 0 : index
    %1025 = vector.load %arg9[%c46_500, %c0_501] : memref<104x128xf32, #tpu.memory_space<vmem>>, vector<1x128xf32>
    tpu.vector_store %arg9[%c46_500, %c0_501], %1024 {strides = array<i32>} : memref<104x128xf32, #tpu.memory_space<vmem>>, vector<1x128xf32>,
    %c47_502 = arith.constant 47 : index
    %c0_503 = arith.constant 0 : index
    %1026 = vector.load %arg10[%c47_502, %c0_503] : memref<104x128xf32, #tpu.memory_space<vmem>>, vector<1x128xf32>
    %cst_504 = arith.constant 0.899999976 : f32
    %1027 = vector.broadcast %cst_504 : f32 to vector<1x128xf32>
    %1028 = arith.mulf %1027, %1020 : vector<1x128xf32>
    %1029 = arith.addf %1028, %1026 : vector<1x128xf32>
    %1030 = arith.subf %1029, %1024 : vector<1x128xf32>
    %cst_505 = arith.constant 1.000000e+00 : f32
    %1031 = vector.broadcast %cst_505 : f32 to vector<1x128xf32>
    %1032 = arith.cmpf ogt, %1030, %1031 : vector<1x128xf32>
    %1033 = arith.extui %1032 : vector<1x128xi1> to vector<1x128xi32>
    %1034 = arith.sitofp %1033 : vector<1x128xi32> to vector<1x128xf32>
    %c47_506 = arith.constant 47 : index
    %c0_507 = arith.constant 0 : index
    %1035 = vector.load %arg9[%c47_506, %c0_507] : memref<104x128xf32, #tpu.memory_space<vmem>>, vector<1x128xf32>
    tpu.vector_store %arg9[%c47_506, %c0_507], %1034 {strides = array<i32>} : memref<104x128xf32, #tpu.memory_space<vmem>>, vector<1x128xf32>,
    %cst_508 = arith.constant 0.899999976 : f32
    %1036 = vector.broadcast %cst_508 : f32 to vector<1x128xf32>
    %1037 = arith.mulf %1036, %945 : vector<1x128xf32>
    %1038 = arith.addf %1037, %10 : vector<1x128xf32>
    %1039 = arith.subf %1038, %949 : vector<1x128xf32>
    %cst_509 = arith.constant 1.000000e+00 : f32
    %1040 = vector.broadcast %cst_509 : f32 to vector<1x128xf32>
    %1041 = arith.cmpf ogt, %1039, %1040 : vector<1x128xf32>
    %1042 = arith.extui %1041 : vector<1x128xi1> to vector<1x128xi32>
    %1043 = arith.sitofp %1042 : vector<1x128xi32> to vector<1x128xf32>
    %c56 = arith.constant 56 : index
    %c0_510 = arith.constant 0 : index
    %1044 = vector.load %arg8[%c56, %c0_510] : memref<104x128xf32, #tpu.memory_space<vmem>>, vector<1x128xf32>
    tpu.vector_store %arg8[%c56, %c0_510], %1043 {strides = array<i32>} : memref<104x128xf32, #tpu.memory_space<vmem>>, vector<1x128xf32>,
    %cst_511 = arith.constant 0.899999976 : f32
    %1045 = vector.broadcast %cst_511 : f32 to vector<1x128xf32>
    %1046 = arith.mulf %1045, %1039 : vector<1x128xf32>
    %1047 = arith.addf %1046, %10 : vector<1x128xf32>
    %1048 = arith.subf %1047, %1043 : vector<1x128xf32>
    %cst_512 = arith.constant 1.000000e+00 : f32
    %1049 = vector.broadcast %cst_512 : f32 to vector<1x128xf32>
    %1050 = arith.cmpf ogt, %1048, %1049 : vector<1x128xf32>
    %1051 = arith.extui %1050 : vector<1x128xi1> to vector<1x128xi32>
    %1052 = arith.sitofp %1051 : vector<1x128xi32> to vector<1x128xf32>
    %c57 = arith.constant 57 : index
    %c0_513 = arith.constant 0 : index
    %1053 = vector.load %arg8[%c57, %c0_513] : memref<104x128xf32, #tpu.memory_space<vmem>>, vector<1x128xf32>
    tpu.vector_store %arg8[%c57, %c0_513], %1052 {strides = array<i32>} : memref<104x128xf32, #tpu.memory_space<vmem>>, vector<1x128xf32>,
    %cst_514 = arith.constant 0.899999976 : f32
    %1054 = vector.broadcast %cst_514 : f32 to vector<1x128xf32>
    %1055 = arith.mulf %1054, %1048 : vector<1x128xf32>
    %1056 = arith.addf %1055, %10 : vector<1x128xf32>
    %1057 = arith.subf %1056, %1052 : vector<1x128xf32>
    %cst_515 = arith.constant 1.000000e+00 : f32
    %1058 = vector.broadcast %cst_515 : f32 to vector<1x128xf32>
    %1059 = arith.cmpf ogt, %1057, %1058 : vector<1x128xf32>
    %1060 = arith.extui %1059 : vector<1x128xi1> to vector<1x128xi32>
    %1061 = arith.sitofp %1060 : vector<1x128xi32> to vector<1x128xf32>
    %c58 = arith.constant 58 : index
    %c0_516 = arith.constant 0 : index
    %1062 = vector.load %arg8[%c58, %c0_516] : memref<104x128xf32, #tpu.memory_space<vmem>>, vector<1x128xf32>
    tpu.vector_store %arg8[%c58, %c0_516], %1061 {strides = array<i32>} : memref<104x128xf32, #tpu.memory_space<vmem>>, vector<1x128xf32>,
    %cst_517 = arith.constant 0.899999976 : f32
    %1063 = vector.broadcast %cst_517 : f32 to vector<1x128xf32>
    %1064 = arith.mulf %1063, %1057 : vector<1x128xf32>
    %1065 = arith.addf %1064, %10 : vector<1x128xf32>
    %1066 = arith.subf %1065, %1061 : vector<1x128xf32>
    %cst_518 = arith.constant 1.000000e+00 : f32
    %1067 = vector.broadcast %cst_518 : f32 to vector<1x128xf32>
    %1068 = arith.cmpf ogt, %1066, %1067 : vector<1x128xf32>
    %1069 = arith.extui %1068 : vector<1x128xi1> to vector<1x128xi32>
    %1070 = arith.sitofp %1069 : vector<1x128xi32> to vector<1x128xf32>
    %c59 = arith.constant 59 : index
    %c0_519 = arith.constant 0 : index
    %1071 = vector.load %arg8[%c59, %c0_519] : memref<104x128xf32, #tpu.memory_space<vmem>>, vector<1x128xf32>
    tpu.vector_store %arg8[%c59, %c0_519], %1070 {strides = array<i32>} : memref<104x128xf32, #tpu.memory_space<vmem>>, vector<1x128xf32>,
    %cst_520 = arith.constant 0.899999976 : f32
    %1072 = vector.broadcast %cst_520 : f32 to vector<1x128xf32>
    %1073 = arith.mulf %1072, %1066 : vector<1x128xf32>
    %1074 = arith.addf %1073, %10 : vector<1x128xf32>
    %1075 = arith.subf %1074, %1070 : vector<1x128xf32>
    %cst_521 = arith.constant 1.000000e+00 : f32
    %1076 = vector.broadcast %cst_521 : f32 to vector<1x128xf32>
    %1077 = arith.cmpf ogt, %1075, %1076 : vector<1x128xf32>
    %1078 = arith.extui %1077 : vector<1x128xi1> to vector<1x128xi32>
    %1079 = arith.sitofp %1078 : vector<1x128xi32> to vector<1x128xf32>
    %c60 = arith.constant 60 : index
    %c0_522 = arith.constant 0 : index
    %1080 = vector.load %arg8[%c60, %c0_522] : memref<104x128xf32, #tpu.memory_space<vmem>>, vector<1x128xf32>
    tpu.vector_store %arg8[%c60, %c0_522], %1079 {strides = array<i32>} : memref<104x128xf32, #tpu.memory_space<vmem>>, vector<1x128xf32>,
    %cst_523 = arith.constant 0.899999976 : f32
    %1081 = vector.broadcast %cst_523 : f32 to vector<1x128xf32>
    %1082 = arith.mulf %1081, %1075 : vector<1x128xf32>
    %1083 = arith.addf %1082, %10 : vector<1x128xf32>
    %1084 = arith.subf %1083, %1079 : vector<1x128xf32>
    %cst_524 = arith.constant 1.000000e+00 : f32
    %1085 = vector.broadcast %cst_524 : f32 to vector<1x128xf32>
    %1086 = arith.cmpf ogt, %1084, %1085 : vector<1x128xf32>
    %1087 = arith.extui %1086 : vector<1x128xi1> to vector<1x128xi32>
    %1088 = arith.sitofp %1087 : vector<1x128xi32> to vector<1x128xf32>
    %c61 = arith.constant 61 : index
    %c0_525 = arith.constant 0 : index
    %1089 = vector.load %arg8[%c61, %c0_525] : memref<104x128xf32, #tpu.memory_space<vmem>>, vector<1x128xf32>
    tpu.vector_store %arg8[%c61, %c0_525], %1088 {strides = array<i32>} : memref<104x128xf32, #tpu.memory_space<vmem>>, vector<1x128xf32>,
    %cst_526 = arith.constant 0.899999976 : f32
    %1090 = vector.broadcast %cst_526 : f32 to vector<1x128xf32>
    %1091 = arith.mulf %1090, %1084 : vector<1x128xf32>
    %1092 = arith.addf %1091, %10 : vector<1x128xf32>
    %1093 = arith.subf %1092, %1088 : vector<1x128xf32>
    %cst_527 = arith.constant 1.000000e+00 : f32
    %1094 = vector.broadcast %cst_527 : f32 to vector<1x128xf32>
    %1095 = arith.cmpf ogt, %1093, %1094 : vector<1x128xf32>
    %1096 = arith.extui %1095 : vector<1x128xi1> to vector<1x128xi32>
    %1097 = arith.sitofp %1096 : vector<1x128xi32> to vector<1x128xf32>
    %c62 = arith.constant 62 : index
    %c0_528 = arith.constant 0 : index
    %1098 = vector.load %arg8[%c62, %c0_528] : memref<104x128xf32, #tpu.memory_space<vmem>>, vector<1x128xf32>
    tpu.vector_store %arg8[%c62, %c0_528], %1097 {strides = array<i32>} : memref<104x128xf32, #tpu.memory_space<vmem>>, vector<1x128xf32>,
    %cst_529 = arith.constant 0.899999976 : f32
    %1099 = vector.broadcast %cst_529 : f32 to vector<1x128xf32>
    %1100 = arith.mulf %1099, %1093 : vector<1x128xf32>
    %1101 = arith.addf %1100, %10 : vector<1x128xf32>
    %1102 = arith.subf %1101, %1097 : vector<1x128xf32>
    %cst_530 = arith.constant 1.000000e+00 : f32
    %1103 = vector.broadcast %cst_530 : f32 to vector<1x128xf32>
    %1104 = arith.cmpf ogt, %1102, %1103 : vector<1x128xf32>
    %1105 = arith.extui %1104 : vector<1x128xi1> to vector<1x128xi32>
    %1106 = arith.sitofp %1105 : vector<1x128xi32> to vector<1x128xf32>
    %c63 = arith.constant 63 : index
    %c0_531 = arith.constant 0 : index
    %1107 = vector.load %arg8[%c63, %c0_531] : memref<104x128xf32, #tpu.memory_space<vmem>>, vector<1x128xf32>
    tpu.vector_store %arg8[%c63, %c0_531], %1106 {strides = array<i32>} : memref<104x128xf32, #tpu.memory_space<vmem>>, vector<1x128xf32>,
    %c56_532 = arith.constant 56 : index
    %c0_533 = arith.constant 0 : index
    %1108 = vector.load %arg8[%c56_532, %c0_533] : memref<104x128xf32, #tpu.memory_space<vmem>>, vector<8x128xf32>
    %cst_534 = arith.constant dense<0.000000e+00> : vector<8x128xf32>
    %1109 = tpu.matmul %1108, %11, %cst_534 {dimension_numbers = #tpu.dot_dimension_numbers<[1], [0], [0], [1], [0, 0, 1, 1], [], []>} : vector<8x128xf32>, vector<128x128xf32>, vector<8x128xf32> -> vector<8x128xf32>
    %1110 = vector.broadcast %12 : vector<1x128xf32> to vector<8x128xf32>
    %1111 = arith.addf %1109, %1110 : vector<8x128xf32>
    %c56_535 = arith.constant 56 : index
    %c0_536 = arith.constant 0 : index
    %1112 = vector.load %arg10[%c56_535, %c0_536] : memref<104x128xf32, #tpu.memory_space<vmem>>, vector<8x128xf32>
    tpu.vector_store %arg10[%c56_535, %c0_536], %1111 {strides = array<i32>} : memref<104x128xf32, #tpu.memory_space<vmem>>, vector<8x128xf32>,
    %c48_537 = arith.constant 48 : index
    %c0_538 = arith.constant 0 : index
    %1113 = vector.load %arg10[%c48_537, %c0_538] : memref<104x128xf32, #tpu.memory_space<vmem>>, vector<1x128xf32>
    %cst_539 = arith.constant 0.899999976 : f32
    %1114 = vector.broadcast %cst_539 : f32 to vector<1x128xf32>
    %1115 = arith.mulf %1114, %1030 : vector<1x128xf32>
    %1116 = arith.addf %1115, %1113 : vector<1x128xf32>
    %1117 = arith.subf %1116, %1034 : vector<1x128xf32>
    %cst_540 = arith.constant 1.000000e+00 : f32
    %1118 = vector.broadcast %cst_540 : f32 to vector<1x128xf32>
    %1119 = arith.cmpf ogt, %1117, %1118 : vector<1x128xf32>
    %1120 = arith.extui %1119 : vector<1x128xi1> to vector<1x128xi32>
    %1121 = arith.sitofp %1120 : vector<1x128xi32> to vector<1x128xf32>
    %c48_541 = arith.constant 48 : index
    %c0_542 = arith.constant 0 : index
    %1122 = vector.load %arg9[%c48_541, %c0_542] : memref<104x128xf32, #tpu.memory_space<vmem>>, vector<1x128xf32>
    tpu.vector_store %arg9[%c48_541, %c0_542], %1121 {strides = array<i32>} : memref<104x128xf32, #tpu.memory_space<vmem>>, vector<1x128xf32>,
    %c49_543 = arith.constant 49 : index
    %c0_544 = arith.constant 0 : index
    %1123 = vector.load %arg10[%c49_543, %c0_544] : memref<104x128xf32, #tpu.memory_space<vmem>>, vector<1x128xf32>
    %cst_545 = arith.constant 0.899999976 : f32
    %1124 = vector.broadcast %cst_545 : f32 to vector<1x128xf32>
    %1125 = arith.mulf %1124, %1117 : vector<1x128xf32>
    %1126 = arith.addf %1125, %1123 : vector<1x128xf32>
    %1127 = arith.subf %1126, %1121 : vector<1x128xf32>
    %cst_546 = arith.constant 1.000000e+00 : f32
    %1128 = vector.broadcast %cst_546 : f32 to vector<1x128xf32>
    %1129 = arith.cmpf ogt, %1127, %1128 : vector<1x128xf32>
    %1130 = arith.extui %1129 : vector<1x128xi1> to vector<1x128xi32>
    %1131 = arith.sitofp %1130 : vector<1x128xi32> to vector<1x128xf32>
    %c49_547 = arith.constant 49 : index
    %c0_548 = arith.constant 0 : index
    %1132 = vector.load %arg9[%c49_547, %c0_548] : memref<104x128xf32, #tpu.memory_space<vmem>>, vector<1x128xf32>
    tpu.vector_store %arg9[%c49_547, %c0_548], %1131 {strides = array<i32>} : memref<104x128xf32, #tpu.memory_space<vmem>>, vector<1x128xf32>,
    %c50_549 = arith.constant 50 : index
    %c0_550 = arith.constant 0 : index
    %1133 = vector.load %arg10[%c50_549, %c0_550] : memref<104x128xf32, #tpu.memory_space<vmem>>, vector<1x128xf32>
    %cst_551 = arith.constant 0.899999976 : f32
    %1134 = vector.broadcast %cst_551 : f32 to vector<1x128xf32>
    %1135 = arith.mulf %1134, %1127 : vector<1x128xf32>
    %1136 = arith.addf %1135, %1133 : vector<1x128xf32>
    %1137 = arith.subf %1136, %1131 : vector<1x128xf32>
    %cst_552 = arith.constant 1.000000e+00 : f32
    %1138 = vector.broadcast %cst_552 : f32 to vector<1x128xf32>
    %1139 = arith.cmpf ogt, %1137, %1138 : vector<1x128xf32>
    %1140 = arith.extui %1139 : vector<1x128xi1> to vector<1x128xi32>
    %1141 = arith.sitofp %1140 : vector<1x128xi32> to vector<1x128xf32>
    %c50_553 = arith.constant 50 : index
    %c0_554 = arith.constant 0 : index
    %1142 = vector.load %arg9[%c50_553, %c0_554] : memref<104x128xf32, #tpu.memory_space<vmem>>, vector<1x128xf32>
    tpu.vector_store %arg9[%c50_553, %c0_554], %1141 {strides = array<i32>} : memref<104x128xf32, #tpu.memory_space<vmem>>, vector<1x128xf32>,
    %c51_555 = arith.constant 51 : index
    %c0_556 = arith.constant 0 : index
    %1143 = vector.load %arg10[%c51_555, %c0_556] : memref<104x128xf32, #tpu.memory_space<vmem>>, vector<1x128xf32>
    %cst_557 = arith.constant 0.899999976 : f32
    %1144 = vector.broadcast %cst_557 : f32 to vector<1x128xf32>
    %1145 = arith.mulf %1144, %1137 : vector<1x128xf32>
    %1146 = arith.addf %1145, %1143 : vector<1x128xf32>
    %1147 = arith.subf %1146, %1141 : vector<1x128xf32>
    %cst_558 = arith.constant 1.000000e+00 : f32
    %1148 = vector.broadcast %cst_558 : f32 to vector<1x128xf32>
    %1149 = arith.cmpf ogt, %1147, %1148 : vector<1x128xf32>
    %1150 = arith.extui %1149 : vector<1x128xi1> to vector<1x128xi32>
    %1151 = arith.sitofp %1150 : vector<1x128xi32> to vector<1x128xf32>
    %c51_559 = arith.constant 51 : index
    %c0_560 = arith.constant 0 : index
    %1152 = vector.load %arg9[%c51_559, %c0_560] : memref<104x128xf32, #tpu.memory_space<vmem>>, vector<1x128xf32>
    tpu.vector_store %arg9[%c51_559, %c0_560], %1151 {strides = array<i32>} : memref<104x128xf32, #tpu.memory_space<vmem>>, vector<1x128xf32>,
    %c52_561 = arith.constant 52 : index
    %c0_562 = arith.constant 0 : index
    %1153 = vector.load %arg10[%c52_561, %c0_562] : memref<104x128xf32, #tpu.memory_space<vmem>>, vector<1x128xf32>
    %cst_563 = arith.constant 0.899999976 : f32
    %1154 = vector.broadcast %cst_563 : f32 to vector<1x128xf32>
    %1155 = arith.mulf %1154, %1147 : vector<1x128xf32>
    %1156 = arith.addf %1155, %1153 : vector<1x128xf32>
    %1157 = arith.subf %1156, %1151 : vector<1x128xf32>
    %cst_564 = arith.constant 1.000000e+00 : f32
    %1158 = vector.broadcast %cst_564 : f32 to vector<1x128xf32>
    %1159 = arith.cmpf ogt, %1157, %1158 : vector<1x128xf32>
    %1160 = arith.extui %1159 : vector<1x128xi1> to vector<1x128xi32>
    %1161 = arith.sitofp %1160 : vector<1x128xi32> to vector<1x128xf32>
    %c52_565 = arith.constant 52 : index
    %c0_566 = arith.constant 0 : index
    %1162 = vector.load %arg9[%c52_565, %c0_566] : memref<104x128xf32, #tpu.memory_space<vmem>>, vector<1x128xf32>
    tpu.vector_store %arg9[%c52_565, %c0_566], %1161 {strides = array<i32>} : memref<104x128xf32, #tpu.memory_space<vmem>>, vector<1x128xf32>,
    %c53_567 = arith.constant 53 : index
    %c0_568 = arith.constant 0 : index
    %1163 = vector.load %arg10[%c53_567, %c0_568] : memref<104x128xf32, #tpu.memory_space<vmem>>, vector<1x128xf32>
    %cst_569 = arith.constant 0.899999976 : f32
    %1164 = vector.broadcast %cst_569 : f32 to vector<1x128xf32>
    %1165 = arith.mulf %1164, %1157 : vector<1x128xf32>
    %1166 = arith.addf %1165, %1163 : vector<1x128xf32>
    %1167 = arith.subf %1166, %1161 : vector<1x128xf32>
    %cst_570 = arith.constant 1.000000e+00 : f32
    %1168 = vector.broadcast %cst_570 : f32 to vector<1x128xf32>
    %1169 = arith.cmpf ogt, %1167, %1168 : vector<1x128xf32>
    %1170 = arith.extui %1169 : vector<1x128xi1> to vector<1x128xi32>
    %1171 = arith.sitofp %1170 : vector<1x128xi32> to vector<1x128xf32>
    %c53_571 = arith.constant 53 : index
    %c0_572 = arith.constant 0 : index
    %1172 = vector.load %arg9[%c53_571, %c0_572] : memref<104x128xf32, #tpu.memory_space<vmem>>, vector<1x128xf32>
    tpu.vector_store %arg9[%c53_571, %c0_572], %1171 {strides = array<i32>} : memref<104x128xf32, #tpu.memory_space<vmem>>, vector<1x128xf32>,
    %c54_573 = arith.constant 54 : index
    %c0_574 = arith.constant 0 : index
    %1173 = vector.load %arg10[%c54_573, %c0_574] : memref<104x128xf32, #tpu.memory_space<vmem>>, vector<1x128xf32>
    %cst_575 = arith.constant 0.899999976 : f32
    %1174 = vector.broadcast %cst_575 : f32 to vector<1x128xf32>
    %1175 = arith.mulf %1174, %1167 : vector<1x128xf32>
    %1176 = arith.addf %1175, %1173 : vector<1x128xf32>
    %1177 = arith.subf %1176, %1171 : vector<1x128xf32>
    %cst_576 = arith.constant 1.000000e+00 : f32
    %1178 = vector.broadcast %cst_576 : f32 to vector<1x128xf32>
    %1179 = arith.cmpf ogt, %1177, %1178 : vector<1x128xf32>
    %1180 = arith.extui %1179 : vector<1x128xi1> to vector<1x128xi32>
    %1181 = arith.sitofp %1180 : vector<1x128xi32> to vector<1x128xf32>
    %c54_577 = arith.constant 54 : index
    %c0_578 = arith.constant 0 : index
    %1182 = vector.load %arg9[%c54_577, %c0_578] : memref<104x128xf32, #tpu.memory_space<vmem>>, vector<1x128xf32>
    tpu.vector_store %arg9[%c54_577, %c0_578], %1181 {strides = array<i32>} : memref<104x128xf32, #tpu.memory_space<vmem>>, vector<1x128xf32>,
    %c55_579 = arith.constant 55 : index
    %c0_580 = arith.constant 0 : index
    %1183 = vector.load %arg10[%c55_579, %c0_580] : memref<104x128xf32, #tpu.memory_space<vmem>>, vector<1x128xf32>
    %cst_581 = arith.constant 0.899999976 : f32
    %1184 = vector.broadcast %cst_581 : f32 to vector<1x128xf32>
    %1185 = arith.mulf %1184, %1177 : vector<1x128xf32>
    %1186 = arith.addf %1185, %1183 : vector<1x128xf32>
    %1187 = arith.subf %1186, %1181 : vector<1x128xf32>
    %cst_582 = arith.constant 1.000000e+00 : f32
    %1188 = vector.broadcast %cst_582 : f32 to vector<1x128xf32>
    %1189 = arith.cmpf ogt, %1187, %1188 : vector<1x128xf32>
    %1190 = arith.extui %1189 : vector<1x128xi1> to vector<1x128xi32>
    %1191 = arith.sitofp %1190 : vector<1x128xi32> to vector<1x128xf32>
    %c55_583 = arith.constant 55 : index
    %c0_584 = arith.constant 0 : index
    %1192 = vector.load %arg9[%c55_583, %c0_584] : memref<104x128xf32, #tpu.memory_space<vmem>>, vector<1x128xf32>
    tpu.vector_store %arg9[%c55_583, %c0_584], %1191 {strides = array<i32>} : memref<104x128xf32, #tpu.memory_space<vmem>>, vector<1x128xf32>,
    %cst_585 = arith.constant 0.899999976 : f32
    %1193 = vector.broadcast %cst_585 : f32 to vector<1x128xf32>
    %1194 = arith.mulf %1193, %1102 : vector<1x128xf32>
    %1195 = arith.addf %1194, %10 : vector<1x128xf32>
    %1196 = arith.subf %1195, %1106 : vector<1x128xf32>
    %cst_586 = arith.constant 1.000000e+00 : f32
    %1197 = vector.broadcast %cst_586 : f32 to vector<1x128xf32>
    %1198 = arith.cmpf ogt, %1196, %1197 : vector<1x128xf32>
    %1199 = arith.extui %1198 : vector<1x128xi1> to vector<1x128xi32>
    %1200 = arith.sitofp %1199 : vector<1x128xi32> to vector<1x128xf32>
    %c64 = arith.constant 64 : index
    %c0_587 = arith.constant 0 : index
    %1201 = vector.load %arg8[%c64, %c0_587] : memref<104x128xf32, #tpu.memory_space<vmem>>, vector<1x128xf32>
    tpu.vector_store %arg8[%c64, %c0_587], %1200 {strides = array<i32>} : memref<104x128xf32, #tpu.memory_space<vmem>>, vector<1x128xf32>,
    %cst_588 = arith.constant 0.899999976 : f32
    %1202 = vector.broadcast %cst_588 : f32 to vector<1x128xf32>
    %1203 = arith.mulf %1202, %1196 : vector<1x128xf32>
    %1204 = arith.addf %1203, %10 : vector<1x128xf32>
    %1205 = arith.subf %1204, %1200 : vector<1x128xf32>
    %cst_589 = arith.constant 1.000000e+00 : f32
    %1206 = vector.broadcast %cst_589 : f32 to vector<1x128xf32>
    %1207 = arith.cmpf ogt, %1205, %1206 : vector<1x128xf32>
    %1208 = arith.extui %1207 : vector<1x128xi1> to vector<1x128xi32>
    %1209 = arith.sitofp %1208 : vector<1x128xi32> to vector<1x128xf32>
    %c65 = arith.constant 65 : index
    %c0_590 = arith.constant 0 : index
    %1210 = vector.load %arg8[%c65, %c0_590] : memref<104x128xf32, #tpu.memory_space<vmem>>, vector<1x128xf32>
    tpu.vector_store %arg8[%c65, %c0_590], %1209 {strides = array<i32>} : memref<104x128xf32, #tpu.memory_space<vmem>>, vector<1x128xf32>,
    %cst_591 = arith.constant 0.899999976 : f32
    %1211 = vector.broadcast %cst_591 : f32 to vector<1x128xf32>
    %1212 = arith.mulf %1211, %1205 : vector<1x128xf32>
    %1213 = arith.addf %1212, %10 : vector<1x128xf32>
    %1214 = arith.subf %1213, %1209 : vector<1x128xf32>
    %cst_592 = arith.constant 1.000000e+00 : f32
    %1215 = vector.broadcast %cst_592 : f32 to vector<1x128xf32>
    %1216 = arith.cmpf ogt, %1214, %1215 : vector<1x128xf32>
    %1217 = arith.extui %1216 : vector<1x128xi1> to vector<1x128xi32>
    %1218 = arith.sitofp %1217 : vector<1x128xi32> to vector<1x128xf32>
    %c66 = arith.constant 66 : index
    %c0_593 = arith.constant 0 : index
    %1219 = vector.load %arg8[%c66, %c0_593] : memref<104x128xf32, #tpu.memory_space<vmem>>, vector<1x128xf32>
    tpu.vector_store %arg8[%c66, %c0_593], %1218 {strides = array<i32>} : memref<104x128xf32, #tpu.memory_space<vmem>>, vector<1x128xf32>,
    %cst_594 = arith.constant 0.899999976 : f32
    %1220 = vector.broadcast %cst_594 : f32 to vector<1x128xf32>
    %1221 = arith.mulf %1220, %1214 : vector<1x128xf32>
    %1222 = arith.addf %1221, %10 : vector<1x128xf32>
    %1223 = arith.subf %1222, %1218 : vector<1x128xf32>
    %cst_595 = arith.constant 1.000000e+00 : f32
    %1224 = vector.broadcast %cst_595 : f32 to vector<1x128xf32>
    %1225 = arith.cmpf ogt, %1223, %1224 : vector<1x128xf32>
    %1226 = arith.extui %1225 : vector<1x128xi1> to vector<1x128xi32>
    %1227 = arith.sitofp %1226 : vector<1x128xi32> to vector<1x128xf32>
    %c67 = arith.constant 67 : index
    %c0_596 = arith.constant 0 : index
    %1228 = vector.load %arg8[%c67, %c0_596] : memref<104x128xf32, #tpu.memory_space<vmem>>, vector<1x128xf32>
    tpu.vector_store %arg8[%c67, %c0_596], %1227 {strides = array<i32>} : memref<104x128xf32, #tpu.memory_space<vmem>>, vector<1x128xf32>,
    %cst_597 = arith.constant 0.899999976 : f32
    %1229 = vector.broadcast %cst_597 : f32 to vector<1x128xf32>
    %1230 = arith.mulf %1229, %1223 : vector<1x128xf32>
    %1231 = arith.addf %1230, %10 : vector<1x128xf32>
    %1232 = arith.subf %1231, %1227 : vector<1x128xf32>
    %cst_598 = arith.constant 1.000000e+00 : f32
    %1233 = vector.broadcast %cst_598 : f32 to vector<1x128xf32>
    %1234 = arith.cmpf ogt, %1232, %1233 : vector<1x128xf32>
    %1235 = arith.extui %1234 : vector<1x128xi1> to vector<1x128xi32>
    %1236 = arith.sitofp %1235 : vector<1x128xi32> to vector<1x128xf32>
    %c68 = arith.constant 68 : index
    %c0_599 = arith.constant 0 : index
    %1237 = vector.load %arg8[%c68, %c0_599] : memref<104x128xf32, #tpu.memory_space<vmem>>, vector<1x128xf32>
    tpu.vector_store %arg8[%c68, %c0_599], %1236 {strides = array<i32>} : memref<104x128xf32, #tpu.memory_space<vmem>>, vector<1x128xf32>,
    %cst_600 = arith.constant 0.899999976 : f32
    %1238 = vector.broadcast %cst_600 : f32 to vector<1x128xf32>
    %1239 = arith.mulf %1238, %1232 : vector<1x128xf32>
    %1240 = arith.addf %1239, %10 : vector<1x128xf32>
    %1241 = arith.subf %1240, %1236 : vector<1x128xf32>
    %cst_601 = arith.constant 1.000000e+00 : f32
    %1242 = vector.broadcast %cst_601 : f32 to vector<1x128xf32>
    %1243 = arith.cmpf ogt, %1241, %1242 : vector<1x128xf32>
    %1244 = arith.extui %1243 : vector<1x128xi1> to vector<1x128xi32>
    %1245 = arith.sitofp %1244 : vector<1x128xi32> to vector<1x128xf32>
    %c69 = arith.constant 69 : index
    %c0_602 = arith.constant 0 : index
    %1246 = vector.load %arg8[%c69, %c0_602] : memref<104x128xf32, #tpu.memory_space<vmem>>, vector<1x128xf32>
    tpu.vector_store %arg8[%c69, %c0_602], %1245 {strides = array<i32>} : memref<104x128xf32, #tpu.memory_space<vmem>>, vector<1x128xf32>,
    %cst_603 = arith.constant 0.899999976 : f32
    %1247 = vector.broadcast %cst_603 : f32 to vector<1x128xf32>
    %1248 = arith.mulf %1247, %1241 : vector<1x128xf32>
    %1249 = arith.addf %1248, %10 : vector<1x128xf32>
    %1250 = arith.subf %1249, %1245 : vector<1x128xf32>
    %cst_604 = arith.constant 1.000000e+00 : f32
    %1251 = vector.broadcast %cst_604 : f32 to vector<1x128xf32>
    %1252 = arith.cmpf ogt, %1250, %1251 : vector<1x128xf32>
    %1253 = arith.extui %1252 : vector<1x128xi1> to vector<1x128xi32>
    %1254 = arith.sitofp %1253 : vector<1x128xi32> to vector<1x128xf32>
    %c70 = arith.constant 70 : index
    %c0_605 = arith.constant 0 : index
    %1255 = vector.load %arg8[%c70, %c0_605] : memref<104x128xf32, #tpu.memory_space<vmem>>, vector<1x128xf32>
    tpu.vector_store %arg8[%c70, %c0_605], %1254 {strides = array<i32>} : memref<104x128xf32, #tpu.memory_space<vmem>>, vector<1x128xf32>,
    %cst_606 = arith.constant 0.899999976 : f32
    %1256 = vector.broadcast %cst_606 : f32 to vector<1x128xf32>
    %1257 = arith.mulf %1256, %1250 : vector<1x128xf32>
    %1258 = arith.addf %1257, %10 : vector<1x128xf32>
    %1259 = arith.subf %1258, %1254 : vector<1x128xf32>
    %cst_607 = arith.constant 1.000000e+00 : f32
    %1260 = vector.broadcast %cst_607 : f32 to vector<1x128xf32>
    %1261 = arith.cmpf ogt, %1259, %1260 : vector<1x128xf32>
    %1262 = arith.extui %1261 : vector<1x128xi1> to vector<1x128xi32>
    %1263 = arith.sitofp %1262 : vector<1x128xi32> to vector<1x128xf32>
    %c71 = arith.constant 71 : index
    %c0_608 = arith.constant 0 : index
    %1264 = vector.load %arg8[%c71, %c0_608] : memref<104x128xf32, #tpu.memory_space<vmem>>, vector<1x128xf32>
    tpu.vector_store %arg8[%c71, %c0_608], %1263 {strides = array<i32>} : memref<104x128xf32, #tpu.memory_space<vmem>>, vector<1x128xf32>,
    %c64_609 = arith.constant 64 : index
    %c0_610 = arith.constant 0 : index
    %1265 = vector.load %arg8[%c64_609, %c0_610] : memref<104x128xf32, #tpu.memory_space<vmem>>, vector<8x128xf32>
    %cst_611 = arith.constant dense<0.000000e+00> : vector<8x128xf32>
    %1266 = tpu.matmul %1265, %11, %cst_611 {dimension_numbers = #tpu.dot_dimension_numbers<[1], [0], [0], [1], [0, 0, 1, 1], [], []>} : vector<8x128xf32>, vector<128x128xf32>, vector<8x128xf32> -> vector<8x128xf32>
    %1267 = vector.broadcast %12 : vector<1x128xf32> to vector<8x128xf32>
    %1268 = arith.addf %1266, %1267 : vector<8x128xf32>
    %c64_612 = arith.constant 64 : index
    %c0_613 = arith.constant 0 : index
    %1269 = vector.load %arg10[%c64_612, %c0_613] : memref<104x128xf32, #tpu.memory_space<vmem>>, vector<8x128xf32>
    tpu.vector_store %arg10[%c64_612, %c0_613], %1268 {strides = array<i32>} : memref<104x128xf32, #tpu.memory_space<vmem>>, vector<8x128xf32>,
    %c56_614 = arith.constant 56 : index
    %c0_615 = arith.constant 0 : index
    %1270 = vector.load %arg10[%c56_614, %c0_615] : memref<104x128xf32, #tpu.memory_space<vmem>>, vector<1x128xf32>
    %cst_616 = arith.constant 0.899999976 : f32
    %1271 = vector.broadcast %cst_616 : f32 to vector<1x128xf32>
    %1272 = arith.mulf %1271, %1187 : vector<1x128xf32>
    %1273 = arith.addf %1272, %1270 : vector<1x128xf32>
    %1274 = arith.subf %1273, %1191 : vector<1x128xf32>
    %cst_617 = arith.constant 1.000000e+00 : f32
    %1275 = vector.broadcast %cst_617 : f32 to vector<1x128xf32>
    %1276 = arith.cmpf ogt, %1274, %1275 : vector<1x128xf32>
    %1277 = arith.extui %1276 : vector<1x128xi1> to vector<1x128xi32>
    %1278 = arith.sitofp %1277 : vector<1x128xi32> to vector<1x128xf32>
    %c56_618 = arith.constant 56 : index
    %c0_619 = arith.constant 0 : index
    %1279 = vector.load %arg9[%c56_618, %c0_619] : memref<104x128xf32, #tpu.memory_space<vmem>>, vector<1x128xf32>
    tpu.vector_store %arg9[%c56_618, %c0_619], %1278 {strides = array<i32>} : memref<104x128xf32, #tpu.memory_space<vmem>>, vector<1x128xf32>,
    %c57_620 = arith.constant 57 : index
    %c0_621 = arith.constant 0 : index
    %1280 = vector.load %arg10[%c57_620, %c0_621] : memref<104x128xf32, #tpu.memory_space<vmem>>, vector<1x128xf32>
    %cst_622 = arith.constant 0.899999976 : f32
    %1281 = vector.broadcast %cst_622 : f32 to vector<1x128xf32>
    %1282 = arith.mulf %1281, %1274 : vector<1x128xf32>
    %1283 = arith.addf %1282, %1280 : vector<1x128xf32>
    %1284 = arith.subf %1283, %1278 : vector<1x128xf32>
    %cst_623 = arith.constant 1.000000e+00 : f32
    %1285 = vector.broadcast %cst_623 : f32 to vector<1x128xf32>
    %1286 = arith.cmpf ogt, %1284, %1285 : vector<1x128xf32>
    %1287 = arith.extui %1286 : vector<1x128xi1> to vector<1x128xi32>
    %1288 = arith.sitofp %1287 : vector<1x128xi32> to vector<1x128xf32>
    %c57_624 = arith.constant 57 : index
    %c0_625 = arith.constant 0 : index
    %1289 = vector.load %arg9[%c57_624, %c0_625] : memref<104x128xf32, #tpu.memory_space<vmem>>, vector<1x128xf32>
    tpu.vector_store %arg9[%c57_624, %c0_625], %1288 {strides = array<i32>} : memref<104x128xf32, #tpu.memory_space<vmem>>, vector<1x128xf32>,
    %c58_626 = arith.constant 58 : index
    %c0_627 = arith.constant 0 : index
    %1290 = vector.load %arg10[%c58_626, %c0_627] : memref<104x128xf32, #tpu.memory_space<vmem>>, vector<1x128xf32>
    %cst_628 = arith.constant 0.899999976 : f32
    %1291 = vector.broadcast %cst_628 : f32 to vector<1x128xf32>
    %1292 = arith.mulf %1291, %1284 : vector<1x128xf32>
    %1293 = arith.addf %1292, %1290 : vector<1x128xf32>
    %1294 = arith.subf %1293, %1288 : vector<1x128xf32>
    %cst_629 = arith.constant 1.000000e+00 : f32
    %1295 = vector.broadcast %cst_629 : f32 to vector<1x128xf32>
    %1296 = arith.cmpf ogt, %1294, %1295 : vector<1x128xf32>
    %1297 = arith.extui %1296 : vector<1x128xi1> to vector<1x128xi32>
    %1298 = arith.sitofp %1297 : vector<1x128xi32> to vector<1x128xf32>
    %c58_630 = arith.constant 58 : index
    %c0_631 = arith.constant 0 : index
    %1299 = vector.load %arg9[%c58_630, %c0_631] : memref<104x128xf32, #tpu.memory_space<vmem>>, vector<1x128xf32>
    tpu.vector_store %arg9[%c58_630, %c0_631], %1298 {strides = array<i32>} : memref<104x128xf32, #tpu.memory_space<vmem>>, vector<1x128xf32>,
    %c59_632 = arith.constant 59 : index
    %c0_633 = arith.constant 0 : index
    %1300 = vector.load %arg10[%c59_632, %c0_633] : memref<104x128xf32, #tpu.memory_space<vmem>>, vector<1x128xf32>
    %cst_634 = arith.constant 0.899999976 : f32
    %1301 = vector.broadcast %cst_634 : f32 to vector<1x128xf32>
    %1302 = arith.mulf %1301, %1294 : vector<1x128xf32>
    %1303 = arith.addf %1302, %1300 : vector<1x128xf32>
    %1304 = arith.subf %1303, %1298 : vector<1x128xf32>
    %cst_635 = arith.constant 1.000000e+00 : f32
    %1305 = vector.broadcast %cst_635 : f32 to vector<1x128xf32>
    %1306 = arith.cmpf ogt, %1304, %1305 : vector<1x128xf32>
    %1307 = arith.extui %1306 : vector<1x128xi1> to vector<1x128xi32>
    %1308 = arith.sitofp %1307 : vector<1x128xi32> to vector<1x128xf32>
    %c59_636 = arith.constant 59 : index
    %c0_637 = arith.constant 0 : index
    %1309 = vector.load %arg9[%c59_636, %c0_637] : memref<104x128xf32, #tpu.memory_space<vmem>>, vector<1x128xf32>
    tpu.vector_store %arg9[%c59_636, %c0_637], %1308 {strides = array<i32>} : memref<104x128xf32, #tpu.memory_space<vmem>>, vector<1x128xf32>,
    %c60_638 = arith.constant 60 : index
    %c0_639 = arith.constant 0 : index
    %1310 = vector.load %arg10[%c60_638, %c0_639] : memref<104x128xf32, #tpu.memory_space<vmem>>, vector<1x128xf32>
    %cst_640 = arith.constant 0.899999976 : f32
    %1311 = vector.broadcast %cst_640 : f32 to vector<1x128xf32>
    %1312 = arith.mulf %1311, %1304 : vector<1x128xf32>
    %1313 = arith.addf %1312, %1310 : vector<1x128xf32>
    %1314 = arith.subf %1313, %1308 : vector<1x128xf32>
    %cst_641 = arith.constant 1.000000e+00 : f32
    %1315 = vector.broadcast %cst_641 : f32 to vector<1x128xf32>
    %1316 = arith.cmpf ogt, %1314, %1315 : vector<1x128xf32>
    %1317 = arith.extui %1316 : vector<1x128xi1> to vector<1x128xi32>
    %1318 = arith.sitofp %1317 : vector<1x128xi32> to vector<1x128xf32>
    %c60_642 = arith.constant 60 : index
    %c0_643 = arith.constant 0 : index
    %1319 = vector.load %arg9[%c60_642, %c0_643] : memref<104x128xf32, #tpu.memory_space<vmem>>, vector<1x128xf32>
    tpu.vector_store %arg9[%c60_642, %c0_643], %1318 {strides = array<i32>} : memref<104x128xf32, #tpu.memory_space<vmem>>, vector<1x128xf32>,
    %c61_644 = arith.constant 61 : index
    %c0_645 = arith.constant 0 : index
    %1320 = vector.load %arg10[%c61_644, %c0_645] : memref<104x128xf32, #tpu.memory_space<vmem>>, vector<1x128xf32>
    %cst_646 = arith.constant 0.899999976 : f32
    %1321 = vector.broadcast %cst_646 : f32 to vector<1x128xf32>
    %1322 = arith.mulf %1321, %1314 : vector<1x128xf32>
    %1323 = arith.addf %1322, %1320 : vector<1x128xf32>
    %1324 = arith.subf %1323, %1318 : vector<1x128xf32>
    %cst_647 = arith.constant 1.000000e+00 : f32
    %1325 = vector.broadcast %cst_647 : f32 to vector<1x128xf32>
    %1326 = arith.cmpf ogt, %1324, %1325 : vector<1x128xf32>
    %1327 = arith.extui %1326 : vector<1x128xi1> to vector<1x128xi32>
    %1328 = arith.sitofp %1327 : vector<1x128xi32> to vector<1x128xf32>
    %c61_648 = arith.constant 61 : index
    %c0_649 = arith.constant 0 : index
    %1329 = vector.load %arg9[%c61_648, %c0_649] : memref<104x128xf32, #tpu.memory_space<vmem>>, vector<1x128xf32>
    tpu.vector_store %arg9[%c61_648, %c0_649], %1328 {strides = array<i32>} : memref<104x128xf32, #tpu.memory_space<vmem>>, vector<1x128xf32>,
    %c62_650 = arith.constant 62 : index
    %c0_651 = arith.constant 0 : index
    %1330 = vector.load %arg10[%c62_650, %c0_651] : memref<104x128xf32, #tpu.memory_space<vmem>>, vector<1x128xf32>
    %cst_652 = arith.constant 0.899999976 : f32
    %1331 = vector.broadcast %cst_652 : f32 to vector<1x128xf32>
    %1332 = arith.mulf %1331, %1324 : vector<1x128xf32>
    %1333 = arith.addf %1332, %1330 : vector<1x128xf32>
    %1334 = arith.subf %1333, %1328 : vector<1x128xf32>
    %cst_653 = arith.constant 1.000000e+00 : f32
    %1335 = vector.broadcast %cst_653 : f32 to vector<1x128xf32>
    %1336 = arith.cmpf ogt, %1334, %1335 : vector<1x128xf32>
    %1337 = arith.extui %1336 : vector<1x128xi1> to vector<1x128xi32>
    %1338 = arith.sitofp %1337 : vector<1x128xi32> to vector<1x128xf32>
    %c62_654 = arith.constant 62 : index
    %c0_655 = arith.constant 0 : index
    %1339 = vector.load %arg9[%c62_654, %c0_655] : memref<104x128xf32, #tpu.memory_space<vmem>>, vector<1x128xf32>
    tpu.vector_store %arg9[%c62_654, %c0_655], %1338 {strides = array<i32>} : memref<104x128xf32, #tpu.memory_space<vmem>>, vector<1x128xf32>,
    %c63_656 = arith.constant 63 : index
    %c0_657 = arith.constant 0 : index
    %1340 = vector.load %arg10[%c63_656, %c0_657] : memref<104x128xf32, #tpu.memory_space<vmem>>, vector<1x128xf32>
    %cst_658 = arith.constant 0.899999976 : f32
    %1341 = vector.broadcast %cst_658 : f32 to vector<1x128xf32>
    %1342 = arith.mulf %1341, %1334 : vector<1x128xf32>
    %1343 = arith.addf %1342, %1340 : vector<1x128xf32>
    %1344 = arith.subf %1343, %1338 : vector<1x128xf32>
    %cst_659 = arith.constant 1.000000e+00 : f32
    %1345 = vector.broadcast %cst_659 : f32 to vector<1x128xf32>
    %1346 = arith.cmpf ogt, %1344, %1345 : vector<1x128xf32>
    %1347 = arith.extui %1346 : vector<1x128xi1> to vector<1x128xi32>
    %1348 = arith.sitofp %1347 : vector<1x128xi32> to vector<1x128xf32>
    %c63_660 = arith.constant 63 : index
    %c0_661 = arith.constant 0 : index
    %1349 = vector.load %arg9[%c63_660, %c0_661] : memref<104x128xf32, #tpu.memory_space<vmem>>, vector<1x128xf32>
    tpu.vector_store %arg9[%c63_660, %c0_661], %1348 {strides = array<i32>} : memref<104x128xf32, #tpu.memory_space<vmem>>, vector<1x128xf32>,
    %cst_662 = arith.constant 0.899999976 : f32
    %1350 = vector.broadcast %cst_662 : f32 to vector<1x128xf32>
    %1351 = arith.mulf %1350, %1259 : vector<1x128xf32>
    %1352 = arith.addf %1351, %10 : vector<1x128xf32>
    %1353 = arith.subf %1352, %1263 : vector<1x128xf32>
    %cst_663 = arith.constant 1.000000e+00 : f32
    %1354 = vector.broadcast %cst_663 : f32 to vector<1x128xf32>
    %1355 = arith.cmpf ogt, %1353, %1354 : vector<1x128xf32>
    %1356 = arith.extui %1355 : vector<1x128xi1> to vector<1x128xi32>
    %1357 = arith.sitofp %1356 : vector<1x128xi32> to vector<1x128xf32>
    %c72 = arith.constant 72 : index
    %c0_664 = arith.constant 0 : index
    %1358 = vector.load %arg8[%c72, %c0_664] : memref<104x128xf32, #tpu.memory_space<vmem>>, vector<1x128xf32>
    tpu.vector_store %arg8[%c72, %c0_664], %1357 {strides = array<i32>} : memref<104x128xf32, #tpu.memory_space<vmem>>, vector<1x128xf32>,
    %cst_665 = arith.constant 0.899999976 : f32
    %1359 = vector.broadcast %cst_665 : f32 to vector<1x128xf32>
    %1360 = arith.mulf %1359, %1353 : vector<1x128xf32>
    %1361 = arith.addf %1360, %10 : vector<1x128xf32>
    %1362 = arith.subf %1361, %1357 : vector<1x128xf32>
    %cst_666 = arith.constant 1.000000e+00 : f32
    %1363 = vector.broadcast %cst_666 : f32 to vector<1x128xf32>
    %1364 = arith.cmpf ogt, %1362, %1363 : vector<1x128xf32>
    %1365 = arith.extui %1364 : vector<1x128xi1> to vector<1x128xi32>
    %1366 = arith.sitofp %1365 : vector<1x128xi32> to vector<1x128xf32>
    %c73 = arith.constant 73 : index
    %c0_667 = arith.constant 0 : index
    %1367 = vector.load %arg8[%c73, %c0_667] : memref<104x128xf32, #tpu.memory_space<vmem>>, vector<1x128xf32>
    tpu.vector_store %arg8[%c73, %c0_667], %1366 {strides = array<i32>} : memref<104x128xf32, #tpu.memory_space<vmem>>, vector<1x128xf32>,
    %cst_668 = arith.constant 0.899999976 : f32
    %1368 = vector.broadcast %cst_668 : f32 to vector<1x128xf32>
    %1369 = arith.mulf %1368, %1362 : vector<1x128xf32>
    %1370 = arith.addf %1369, %10 : vector<1x128xf32>
    %1371 = arith.subf %1370, %1366 : vector<1x128xf32>
    %cst_669 = arith.constant 1.000000e+00 : f32
    %1372 = vector.broadcast %cst_669 : f32 to vector<1x128xf32>
    %1373 = arith.cmpf ogt, %1371, %1372 : vector<1x128xf32>
    %1374 = arith.extui %1373 : vector<1x128xi1> to vector<1x128xi32>
    %1375 = arith.sitofp %1374 : vector<1x128xi32> to vector<1x128xf32>
    %c74 = arith.constant 74 : index
    %c0_670 = arith.constant 0 : index
    %1376 = vector.load %arg8[%c74, %c0_670] : memref<104x128xf32, #tpu.memory_space<vmem>>, vector<1x128xf32>
    tpu.vector_store %arg8[%c74, %c0_670], %1375 {strides = array<i32>} : memref<104x128xf32, #tpu.memory_space<vmem>>, vector<1x128xf32>,
    %cst_671 = arith.constant 0.899999976 : f32
    %1377 = vector.broadcast %cst_671 : f32 to vector<1x128xf32>
    %1378 = arith.mulf %1377, %1371 : vector<1x128xf32>
    %1379 = arith.addf %1378, %10 : vector<1x128xf32>
    %1380 = arith.subf %1379, %1375 : vector<1x128xf32>
    %cst_672 = arith.constant 1.000000e+00 : f32
    %1381 = vector.broadcast %cst_672 : f32 to vector<1x128xf32>
    %1382 = arith.cmpf ogt, %1380, %1381 : vector<1x128xf32>
    %1383 = arith.extui %1382 : vector<1x128xi1> to vector<1x128xi32>
    %1384 = arith.sitofp %1383 : vector<1x128xi32> to vector<1x128xf32>
    %c75 = arith.constant 75 : index
    %c0_673 = arith.constant 0 : index
    %1385 = vector.load %arg8[%c75, %c0_673] : memref<104x128xf32, #tpu.memory_space<vmem>>, vector<1x128xf32>
    tpu.vector_store %arg8[%c75, %c0_673], %1384 {strides = array<i32>} : memref<104x128xf32, #tpu.memory_space<vmem>>, vector<1x128xf32>,
    %cst_674 = arith.constant 0.899999976 : f32
    %1386 = vector.broadcast %cst_674 : f32 to vector<1x128xf32>
    %1387 = arith.mulf %1386, %1380 : vector<1x128xf32>
    %1388 = arith.addf %1387, %10 : vector<1x128xf32>
    %1389 = arith.subf %1388, %1384 : vector<1x128xf32>
    %cst_675 = arith.constant 1.000000e+00 : f32
    %1390 = vector.broadcast %cst_675 : f32 to vector<1x128xf32>
    %1391 = arith.cmpf ogt, %1389, %1390 : vector<1x128xf32>
    %1392 = arith.extui %1391 : vector<1x128xi1> to vector<1x128xi32>
    %1393 = arith.sitofp %1392 : vector<1x128xi32> to vector<1x128xf32>
    %c76 = arith.constant 76 : index
    %c0_676 = arith.constant 0 : index
    %1394 = vector.load %arg8[%c76, %c0_676] : memref<104x128xf32, #tpu.memory_space<vmem>>, vector<1x128xf32>
    tpu.vector_store %arg8[%c76, %c0_676], %1393 {strides = array<i32>} : memref<104x128xf32, #tpu.memory_space<vmem>>, vector<1x128xf32>,
    %cst_677 = arith.constant 0.899999976 : f32
    %1395 = vector.broadcast %cst_677 : f32 to vector<1x128xf32>
    %1396 = arith.mulf %1395, %1389 : vector<1x128xf32>
    %1397 = arith.addf %1396, %10 : vector<1x128xf32>
    %1398 = arith.subf %1397, %1393 : vector<1x128xf32>
    %cst_678 = arith.constant 1.000000e+00 : f32
    %1399 = vector.broadcast %cst_678 : f32 to vector<1x128xf32>
    %1400 = arith.cmpf ogt, %1398, %1399 : vector<1x128xf32>
    %1401 = arith.extui %1400 : vector<1x128xi1> to vector<1x128xi32>
    %1402 = arith.sitofp %1401 : vector<1x128xi32> to vector<1x128xf32>
    %c77 = arith.constant 77 : index
    %c0_679 = arith.constant 0 : index
    %1403 = vector.load %arg8[%c77, %c0_679] : memref<104x128xf32, #tpu.memory_space<vmem>>, vector<1x128xf32>
    tpu.vector_store %arg8[%c77, %c0_679], %1402 {strides = array<i32>} : memref<104x128xf32, #tpu.memory_space<vmem>>, vector<1x128xf32>,
    %cst_680 = arith.constant 0.899999976 : f32
    %1404 = vector.broadcast %cst_680 : f32 to vector<1x128xf32>
    %1405 = arith.mulf %1404, %1398 : vector<1x128xf32>
    %1406 = arith.addf %1405, %10 : vector<1x128xf32>
    %1407 = arith.subf %1406, %1402 : vector<1x128xf32>
    %cst_681 = arith.constant 1.000000e+00 : f32
    %1408 = vector.broadcast %cst_681 : f32 to vector<1x128xf32>
    %1409 = arith.cmpf ogt, %1407, %1408 : vector<1x128xf32>
    %1410 = arith.extui %1409 : vector<1x128xi1> to vector<1x128xi32>
    %1411 = arith.sitofp %1410 : vector<1x128xi32> to vector<1x128xf32>
    %c78 = arith.constant 78 : index
    %c0_682 = arith.constant 0 : index
    %1412 = vector.load %arg8[%c78, %c0_682] : memref<104x128xf32, #tpu.memory_space<vmem>>, vector<1x128xf32>
    tpu.vector_store %arg8[%c78, %c0_682], %1411 {strides = array<i32>} : memref<104x128xf32, #tpu.memory_space<vmem>>, vector<1x128xf32>,
    %cst_683 = arith.constant 0.899999976 : f32
    %1413 = vector.broadcast %cst_683 : f32 to vector<1x128xf32>
    %1414 = arith.mulf %1413, %1407 : vector<1x128xf32>
    %1415 = arith.addf %1414, %10 : vector<1x128xf32>
    %1416 = arith.subf %1415, %1411 : vector<1x128xf32>
    %cst_684 = arith.constant 1.000000e+00 : f32
    %1417 = vector.broadcast %cst_684 : f32 to vector<1x128xf32>
    %1418 = arith.cmpf ogt, %1416, %1417 : vector<1x128xf32>
    %1419 = arith.extui %1418 : vector<1x128xi1> to vector<1x128xi32>
    %1420 = arith.sitofp %1419 : vector<1x128xi32> to vector<1x128xf32>
    %c79 = arith.constant 79 : index
    %c0_685 = arith.constant 0 : index
    %1421 = vector.load %arg8[%c79, %c0_685] : memref<104x128xf32, #tpu.memory_space<vmem>>, vector<1x128xf32>
    tpu.vector_store %arg8[%c79, %c0_685], %1420 {strides = array<i32>} : memref<104x128xf32, #tpu.memory_space<vmem>>, vector<1x128xf32>,
    %c72_686 = arith.constant 72 : index
    %c0_687 = arith.constant 0 : index
    %1422 = vector.load %arg8[%c72_686, %c0_687] : memref<104x128xf32, #tpu.memory_space<vmem>>, vector<8x128xf32>
    %cst_688 = arith.constant dense<0.000000e+00> : vector<8x128xf32>
    %1423 = tpu.matmul %1422, %11, %cst_688 {dimension_numbers = #tpu.dot_dimension_numbers<[1], [0], [0], [1], [0, 0, 1, 1], [], []>} : vector<8x128xf32>, vector<128x128xf32>, vector<8x128xf32> -> vector<8x128xf32>
    %1424 = vector.broadcast %12 : vector<1x128xf32> to vector<8x128xf32>
    %1425 = arith.addf %1423, %1424 : vector<8x128xf32>
    %c72_689 = arith.constant 72 : index
    %c0_690 = arith.constant 0 : index
    %1426 = vector.load %arg10[%c72_689, %c0_690] : memref<104x128xf32, #tpu.memory_space<vmem>>, vector<8x128xf32>
    tpu.vector_store %arg10[%c72_689, %c0_690], %1425 {strides = array<i32>} : memref<104x128xf32, #tpu.memory_space<vmem>>, vector<8x128xf32>,
    %c64_691 = arith.constant 64 : index
    %c0_692 = arith.constant 0 : index
    %1427 = vector.load %arg10[%c64_691, %c0_692] : memref<104x128xf32, #tpu.memory_space<vmem>>, vector<1x128xf32>
    %cst_693 = arith.constant 0.899999976 : f32
    %1428 = vector.broadcast %cst_693 : f32 to vector<1x128xf32>
    %1429 = arith.mulf %1428, %1344 : vector<1x128xf32>
    %1430 = arith.addf %1429, %1427 : vector<1x128xf32>
    %1431 = arith.subf %1430, %1348 : vector<1x128xf32>
    %cst_694 = arith.constant 1.000000e+00 : f32
    %1432 = vector.broadcast %cst_694 : f32 to vector<1x128xf32>
    %1433 = arith.cmpf ogt, %1431, %1432 : vector<1x128xf32>
    %1434 = arith.extui %1433 : vector<1x128xi1> to vector<1x128xi32>
    %1435 = arith.sitofp %1434 : vector<1x128xi32> to vector<1x128xf32>
    %c64_695 = arith.constant 64 : index
    %c0_696 = arith.constant 0 : index
    %1436 = vector.load %arg9[%c64_695, %c0_696] : memref<104x128xf32, #tpu.memory_space<vmem>>, vector<1x128xf32>
    tpu.vector_store %arg9[%c64_695, %c0_696], %1435 {strides = array<i32>} : memref<104x128xf32, #tpu.memory_space<vmem>>, vector<1x128xf32>,
    %c65_697 = arith.constant 65 : index
    %c0_698 = arith.constant 0 : index
    %1437 = vector.load %arg10[%c65_697, %c0_698] : memref<104x128xf32, #tpu.memory_space<vmem>>, vector<1x128xf32>
    %cst_699 = arith.constant 0.899999976 : f32
    %1438 = vector.broadcast %cst_699 : f32 to vector<1x128xf32>
    %1439 = arith.mulf %1438, %1431 : vector<1x128xf32>
    %1440 = arith.addf %1439, %1437 : vector<1x128xf32>
    %1441 = arith.subf %1440, %1435 : vector<1x128xf32>
    %cst_700 = arith.constant 1.000000e+00 : f32
    %1442 = vector.broadcast %cst_700 : f32 to vector<1x128xf32>
    %1443 = arith.cmpf ogt, %1441, %1442 : vector<1x128xf32>
    %1444 = arith.extui %1443 : vector<1x128xi1> to vector<1x128xi32>
    %1445 = arith.sitofp %1444 : vector<1x128xi32> to vector<1x128xf32>
    %c65_701 = arith.constant 65 : index
    %c0_702 = arith.constant 0 : index
    %1446 = vector.load %arg9[%c65_701, %c0_702] : memref<104x128xf32, #tpu.memory_space<vmem>>, vector<1x128xf32>
    tpu.vector_store %arg9[%c65_701, %c0_702], %1445 {strides = array<i32>} : memref<104x128xf32, #tpu.memory_space<vmem>>, vector<1x128xf32>,
    %c66_703 = arith.constant 66 : index
    %c0_704 = arith.constant 0 : index
    %1447 = vector.load %arg10[%c66_703, %c0_704] : memref<104x128xf32, #tpu.memory_space<vmem>>, vector<1x128xf32>
    %cst_705 = arith.constant 0.899999976 : f32
    %1448 = vector.broadcast %cst_705 : f32 to vector<1x128xf32>
    %1449 = arith.mulf %1448, %1441 : vector<1x128xf32>
    %1450 = arith.addf %1449, %1447 : vector<1x128xf32>
    %1451 = arith.subf %1450, %1445 : vector<1x128xf32>
    %cst_706 = arith.constant 1.000000e+00 : f32
    %1452 = vector.broadcast %cst_706 : f32 to vector<1x128xf32>
    %1453 = arith.cmpf ogt, %1451, %1452 : vector<1x128xf32>
    %1454 = arith.extui %1453 : vector<1x128xi1> to vector<1x128xi32>
    %1455 = arith.sitofp %1454 : vector<1x128xi32> to vector<1x128xf32>
    %c66_707 = arith.constant 66 : index
    %c0_708 = arith.constant 0 : index
    %1456 = vector.load %arg9[%c66_707, %c0_708] : memref<104x128xf32, #tpu.memory_space<vmem>>, vector<1x128xf32>
    tpu.vector_store %arg9[%c66_707, %c0_708], %1455 {strides = array<i32>} : memref<104x128xf32, #tpu.memory_space<vmem>>, vector<1x128xf32>,
    %c67_709 = arith.constant 67 : index
    %c0_710 = arith.constant 0 : index
    %1457 = vector.load %arg10[%c67_709, %c0_710] : memref<104x128xf32, #tpu.memory_space<vmem>>, vector<1x128xf32>
    %cst_711 = arith.constant 0.899999976 : f32
    %1458 = vector.broadcast %cst_711 : f32 to vector<1x128xf32>
    %1459 = arith.mulf %1458, %1451 : vector<1x128xf32>
    %1460 = arith.addf %1459, %1457 : vector<1x128xf32>
    %1461 = arith.subf %1460, %1455 : vector<1x128xf32>
    %cst_712 = arith.constant 1.000000e+00 : f32
    %1462 = vector.broadcast %cst_712 : f32 to vector<1x128xf32>
    %1463 = arith.cmpf ogt, %1461, %1462 : vector<1x128xf32>
    %1464 = arith.extui %1463 : vector<1x128xi1> to vector<1x128xi32>
    %1465 = arith.sitofp %1464 : vector<1x128xi32> to vector<1x128xf32>
    %c67_713 = arith.constant 67 : index
    %c0_714 = arith.constant 0 : index
    %1466 = vector.load %arg9[%c67_713, %c0_714] : memref<104x128xf32, #tpu.memory_space<vmem>>, vector<1x128xf32>
    tpu.vector_store %arg9[%c67_713, %c0_714], %1465 {strides = array<i32>} : memref<104x128xf32, #tpu.memory_space<vmem>>, vector<1x128xf32>,
    %c68_715 = arith.constant 68 : index
    %c0_716 = arith.constant 0 : index
    %1467 = vector.load %arg10[%c68_715, %c0_716] : memref<104x128xf32, #tpu.memory_space<vmem>>, vector<1x128xf32>
    %cst_717 = arith.constant 0.899999976 : f32
    %1468 = vector.broadcast %cst_717 : f32 to vector<1x128xf32>
    %1469 = arith.mulf %1468, %1461 : vector<1x128xf32>
    %1470 = arith.addf %1469, %1467 : vector<1x128xf32>
    %1471 = arith.subf %1470, %1465 : vector<1x128xf32>
    %cst_718 = arith.constant 1.000000e+00 : f32
    %1472 = vector.broadcast %cst_718 : f32 to vector<1x128xf32>
    %1473 = arith.cmpf ogt, %1471, %1472 : vector<1x128xf32>
    %1474 = arith.extui %1473 : vector<1x128xi1> to vector<1x128xi32>
    %1475 = arith.sitofp %1474 : vector<1x128xi32> to vector<1x128xf32>
    %c68_719 = arith.constant 68 : index
    %c0_720 = arith.constant 0 : index
    %1476 = vector.load %arg9[%c68_719, %c0_720] : memref<104x128xf32, #tpu.memory_space<vmem>>, vector<1x128xf32>
    tpu.vector_store %arg9[%c68_719, %c0_720], %1475 {strides = array<i32>} : memref<104x128xf32, #tpu.memory_space<vmem>>, vector<1x128xf32>,
    %c69_721 = arith.constant 69 : index
    %c0_722 = arith.constant 0 : index
    %1477 = vector.load %arg10[%c69_721, %c0_722] : memref<104x128xf32, #tpu.memory_space<vmem>>, vector<1x128xf32>
    %cst_723 = arith.constant 0.899999976 : f32
    %1478 = vector.broadcast %cst_723 : f32 to vector<1x128xf32>
    %1479 = arith.mulf %1478, %1471 : vector<1x128xf32>
    %1480 = arith.addf %1479, %1477 : vector<1x128xf32>
    %1481 = arith.subf %1480, %1475 : vector<1x128xf32>
    %cst_724 = arith.constant 1.000000e+00 : f32
    %1482 = vector.broadcast %cst_724 : f32 to vector<1x128xf32>
    %1483 = arith.cmpf ogt, %1481, %1482 : vector<1x128xf32>
    %1484 = arith.extui %1483 : vector<1x128xi1> to vector<1x128xi32>
    %1485 = arith.sitofp %1484 : vector<1x128xi32> to vector<1x128xf32>
    %c69_725 = arith.constant 69 : index
    %c0_726 = arith.constant 0 : index
    %1486 = vector.load %arg9[%c69_725, %c0_726] : memref<104x128xf32, #tpu.memory_space<vmem>>, vector<1x128xf32>
    tpu.vector_store %arg9[%c69_725, %c0_726], %1485 {strides = array<i32>} : memref<104x128xf32, #tpu.memory_space<vmem>>, vector<1x128xf32>,
    %c70_727 = arith.constant 70 : index
    %c0_728 = arith.constant 0 : index
    %1487 = vector.load %arg10[%c70_727, %c0_728] : memref<104x128xf32, #tpu.memory_space<vmem>>, vector<1x128xf32>
    %cst_729 = arith.constant 0.899999976 : f32
    %1488 = vector.broadcast %cst_729 : f32 to vector<1x128xf32>
    %1489 = arith.mulf %1488, %1481 : vector<1x128xf32>
    %1490 = arith.addf %1489, %1487 : vector<1x128xf32>
    %1491 = arith.subf %1490, %1485 : vector<1x128xf32>
    %cst_730 = arith.constant 1.000000e+00 : f32
    %1492 = vector.broadcast %cst_730 : f32 to vector<1x128xf32>
    %1493 = arith.cmpf ogt, %1491, %1492 : vector<1x128xf32>
    %1494 = arith.extui %1493 : vector<1x128xi1> to vector<1x128xi32>
    %1495 = arith.sitofp %1494 : vector<1x128xi32> to vector<1x128xf32>
    %c70_731 = arith.constant 70 : index
    %c0_732 = arith.constant 0 : index
    %1496 = vector.load %arg9[%c70_731, %c0_732] : memref<104x128xf32, #tpu.memory_space<vmem>>, vector<1x128xf32>
    tpu.vector_store %arg9[%c70_731, %c0_732], %1495 {strides = array<i32>} : memref<104x128xf32, #tpu.memory_space<vmem>>, vector<1x128xf32>,
    %c71_733 = arith.constant 71 : index
    %c0_734 = arith.constant 0 : index
    %1497 = vector.load %arg10[%c71_733, %c0_734] : memref<104x128xf32, #tpu.memory_space<vmem>>, vector<1x128xf32>
    %cst_735 = arith.constant 0.899999976 : f32
    %1498 = vector.broadcast %cst_735 : f32 to vector<1x128xf32>
    %1499 = arith.mulf %1498, %1491 : vector<1x128xf32>
    %1500 = arith.addf %1499, %1497 : vector<1x128xf32>
    %1501 = arith.subf %1500, %1495 : vector<1x128xf32>
    %cst_736 = arith.constant 1.000000e+00 : f32
    %1502 = vector.broadcast %cst_736 : f32 to vector<1x128xf32>
    %1503 = arith.cmpf ogt, %1501, %1502 : vector<1x128xf32>
    %1504 = arith.extui %1503 : vector<1x128xi1> to vector<1x128xi32>
    %1505 = arith.sitofp %1504 : vector<1x128xi32> to vector<1x128xf32>
    %c71_737 = arith.constant 71 : index
    %c0_738 = arith.constant 0 : index
    %1506 = vector.load %arg9[%c71_737, %c0_738] : memref<104x128xf32, #tpu.memory_space<vmem>>, vector<1x128xf32>
    tpu.vector_store %arg9[%c71_737, %c0_738], %1505 {strides = array<i32>} : memref<104x128xf32, #tpu.memory_space<vmem>>, vector<1x128xf32>,
    %cst_739 = arith.constant 0.899999976 : f32
    %1507 = vector.broadcast %cst_739 : f32 to vector<1x128xf32>
    %1508 = arith.mulf %1507, %1416 : vector<1x128xf32>
    %1509 = arith.addf %1508, %10 : vector<1x128xf32>
    %1510 = arith.subf %1509, %1420 : vector<1x128xf32>
    %cst_740 = arith.constant 1.000000e+00 : f32
    %1511 = vector.broadcast %cst_740 : f32 to vector<1x128xf32>
    %1512 = arith.cmpf ogt, %1510, %1511 : vector<1x128xf32>
    %1513 = arith.extui %1512 : vector<1x128xi1> to vector<1x128xi32>
    %1514 = arith.sitofp %1513 : vector<1x128xi32> to vector<1x128xf32>
    %c80 = arith.constant 80 : index
    %c0_741 = arith.constant 0 : index
    %1515 = vector.load %arg8[%c80, %c0_741] : memref<104x128xf32, #tpu.memory_space<vmem>>, vector<1x128xf32>
    tpu.vector_store %arg8[%c80, %c0_741], %1514 {strides = array<i32>} : memref<104x128xf32, #tpu.memory_space<vmem>>, vector<1x128xf32>,
    %cst_742 = arith.constant 0.899999976 : f32
    %1516 = vector.broadcast %cst_742 : f32 to vector<1x128xf32>
    %1517 = arith.mulf %1516, %1510 : vector<1x128xf32>
    %1518 = arith.addf %1517, %10 : vector<1x128xf32>
    %1519 = arith.subf %1518, %1514 : vector<1x128xf32>
    %cst_743 = arith.constant 1.000000e+00 : f32
    %1520 = vector.broadcast %cst_743 : f32 to vector<1x128xf32>
    %1521 = arith.cmpf ogt, %1519, %1520 : vector<1x128xf32>
    %1522 = arith.extui %1521 : vector<1x128xi1> to vector<1x128xi32>
    %1523 = arith.sitofp %1522 : vector<1x128xi32> to vector<1x128xf32>
    %c81 = arith.constant 81 : index
    %c0_744 = arith.constant 0 : index
    %1524 = vector.load %arg8[%c81, %c0_744] : memref<104x128xf32, #tpu.memory_space<vmem>>, vector<1x128xf32>
    tpu.vector_store %arg8[%c81, %c0_744], %1523 {strides = array<i32>} : memref<104x128xf32, #tpu.memory_space<vmem>>, vector<1x128xf32>,
    %cst_745 = arith.constant 0.899999976 : f32
    %1525 = vector.broadcast %cst_745 : f32 to vector<1x128xf32>
    %1526 = arith.mulf %1525, %1519 : vector<1x128xf32>
    %1527 = arith.addf %1526, %10 : vector<1x128xf32>
    %1528 = arith.subf %1527, %1523 : vector<1x128xf32>
    %cst_746 = arith.constant 1.000000e+00 : f32
    %1529 = vector.broadcast %cst_746 : f32 to vector<1x128xf32>
    %1530 = arith.cmpf ogt, %1528, %1529 : vector<1x128xf32>
    %1531 = arith.extui %1530 : vector<1x128xi1> to vector<1x128xi32>
    %1532 = arith.sitofp %1531 : vector<1x128xi32> to vector<1x128xf32>
    %c82 = arith.constant 82 : index
    %c0_747 = arith.constant 0 : index
    %1533 = vector.load %arg8[%c82, %c0_747] : memref<104x128xf32, #tpu.memory_space<vmem>>, vector<1x128xf32>
    tpu.vector_store %arg8[%c82, %c0_747], %1532 {strides = array<i32>} : memref<104x128xf32, #tpu.memory_space<vmem>>, vector<1x128xf32>,
    %cst_748 = arith.constant 0.899999976 : f32
    %1534 = vector.broadcast %cst_748 : f32 to vector<1x128xf32>
    %1535 = arith.mulf %1534, %1528 : vector<1x128xf32>
    %1536 = arith.addf %1535, %10 : vector<1x128xf32>
    %1537 = arith.subf %1536, %1532 : vector<1x128xf32>
    %cst_749 = arith.constant 1.000000e+00 : f32
    %1538 = vector.broadcast %cst_749 : f32 to vector<1x128xf32>
    %1539 = arith.cmpf ogt, %1537, %1538 : vector<1x128xf32>
    %1540 = arith.extui %1539 : vector<1x128xi1> to vector<1x128xi32>
    %1541 = arith.sitofp %1540 : vector<1x128xi32> to vector<1x128xf32>
    %c83 = arith.constant 83 : index
    %c0_750 = arith.constant 0 : index
    %1542 = vector.load %arg8[%c83, %c0_750] : memref<104x128xf32, #tpu.memory_space<vmem>>, vector<1x128xf32>
    tpu.vector_store %arg8[%c83, %c0_750], %1541 {strides = array<i32>} : memref<104x128xf32, #tpu.memory_space<vmem>>, vector<1x128xf32>,
    %cst_751 = arith.constant 0.899999976 : f32
    %1543 = vector.broadcast %cst_751 : f32 to vector<1x128xf32>
    %1544 = arith.mulf %1543, %1537 : vector<1x128xf32>
    %1545 = arith.addf %1544, %10 : vector<1x128xf32>
    %1546 = arith.subf %1545, %1541 : vector<1x128xf32>
    %cst_752 = arith.constant 1.000000e+00 : f32
    %1547 = vector.broadcast %cst_752 : f32 to vector<1x128xf32>
    %1548 = arith.cmpf ogt, %1546, %1547 : vector<1x128xf32>
    %1549 = arith.extui %1548 : vector<1x128xi1> to vector<1x128xi32>
    %1550 = arith.sitofp %1549 : vector<1x128xi32> to vector<1x128xf32>
    %c84 = arith.constant 84 : index
    %c0_753 = arith.constant 0 : index
    %1551 = vector.load %arg8[%c84, %c0_753] : memref<104x128xf32, #tpu.memory_space<vmem>>, vector<1x128xf32>
    tpu.vector_store %arg8[%c84, %c0_753], %1550 {strides = array<i32>} : memref<104x128xf32, #tpu.memory_space<vmem>>, vector<1x128xf32>,
    %cst_754 = arith.constant 0.899999976 : f32
    %1552 = vector.broadcast %cst_754 : f32 to vector<1x128xf32>
    %1553 = arith.mulf %1552, %1546 : vector<1x128xf32>
    %1554 = arith.addf %1553, %10 : vector<1x128xf32>
    %1555 = arith.subf %1554, %1550 : vector<1x128xf32>
    %cst_755 = arith.constant 1.000000e+00 : f32
    %1556 = vector.broadcast %cst_755 : f32 to vector<1x128xf32>
    %1557 = arith.cmpf ogt, %1555, %1556 : vector<1x128xf32>
    %1558 = arith.extui %1557 : vector<1x128xi1> to vector<1x128xi32>
    %1559 = arith.sitofp %1558 : vector<1x128xi32> to vector<1x128xf32>
    %c85 = arith.constant 85 : index
    %c0_756 = arith.constant 0 : index
    %1560 = vector.load %arg8[%c85, %c0_756] : memref<104x128xf32, #tpu.memory_space<vmem>>, vector<1x128xf32>
    tpu.vector_store %arg8[%c85, %c0_756], %1559 {strides = array<i32>} : memref<104x128xf32, #tpu.memory_space<vmem>>, vector<1x128xf32>,
    %cst_757 = arith.constant 0.899999976 : f32
    %1561 = vector.broadcast %cst_757 : f32 to vector<1x128xf32>
    %1562 = arith.mulf %1561, %1555 : vector<1x128xf32>
    %1563 = arith.addf %1562, %10 : vector<1x128xf32>
    %1564 = arith.subf %1563, %1559 : vector<1x128xf32>
    %cst_758 = arith.constant 1.000000e+00 : f32
    %1565 = vector.broadcast %cst_758 : f32 to vector<1x128xf32>
    %1566 = arith.cmpf ogt, %1564, %1565 : vector<1x128xf32>
    %1567 = arith.extui %1566 : vector<1x128xi1> to vector<1x128xi32>
    %1568 = arith.sitofp %1567 : vector<1x128xi32> to vector<1x128xf32>
    %c86 = arith.constant 86 : index
    %c0_759 = arith.constant 0 : index
    %1569 = vector.load %arg8[%c86, %c0_759] : memref<104x128xf32, #tpu.memory_space<vmem>>, vector<1x128xf32>
    tpu.vector_store %arg8[%c86, %c0_759], %1568 {strides = array<i32>} : memref<104x128xf32, #tpu.memory_space<vmem>>, vector<1x128xf32>,
    %cst_760 = arith.constant 0.899999976 : f32
    %1570 = vector.broadcast %cst_760 : f32 to vector<1x128xf32>
    %1571 = arith.mulf %1570, %1564 : vector<1x128xf32>
    %1572 = arith.addf %1571, %10 : vector<1x128xf32>
    %1573 = arith.subf %1572, %1568 : vector<1x128xf32>
    %cst_761 = arith.constant 1.000000e+00 : f32
    %1574 = vector.broadcast %cst_761 : f32 to vector<1x128xf32>
    %1575 = arith.cmpf ogt, %1573, %1574 : vector<1x128xf32>
    %1576 = arith.extui %1575 : vector<1x128xi1> to vector<1x128xi32>
    %1577 = arith.sitofp %1576 : vector<1x128xi32> to vector<1x128xf32>
    %c87 = arith.constant 87 : index
    %c0_762 = arith.constant 0 : index
    %1578 = vector.load %arg8[%c87, %c0_762] : memref<104x128xf32, #tpu.memory_space<vmem>>, vector<1x128xf32>
    tpu.vector_store %arg8[%c87, %c0_762], %1577 {strides = array<i32>} : memref<104x128xf32, #tpu.memory_space<vmem>>, vector<1x128xf32>,
    %c80_763 = arith.constant 80 : index
    %c0_764 = arith.constant 0 : index
    %1579 = vector.load %arg8[%c80_763, %c0_764] : memref<104x128xf32, #tpu.memory_space<vmem>>, vector<8x128xf32>
    %cst_765 = arith.constant dense<0.000000e+00> : vector<8x128xf32>
    %1580 = tpu.matmul %1579, %11, %cst_765 {dimension_numbers = #tpu.dot_dimension_numbers<[1], [0], [0], [1], [0, 0, 1, 1], [], []>} : vector<8x128xf32>, vector<128x128xf32>, vector<8x128xf32> -> vector<8x128xf32>
    %1581 = vector.broadcast %12 : vector<1x128xf32> to vector<8x128xf32>
    %1582 = arith.addf %1580, %1581 : vector<8x128xf32>
    %c80_766 = arith.constant 80 : index
    %c0_767 = arith.constant 0 : index
    %1583 = vector.load %arg10[%c80_766, %c0_767] : memref<104x128xf32, #tpu.memory_space<vmem>>, vector<8x128xf32>
    tpu.vector_store %arg10[%c80_766, %c0_767], %1582 {strides = array<i32>} : memref<104x128xf32, #tpu.memory_space<vmem>>, vector<8x128xf32>,
    %c72_768 = arith.constant 72 : index
    %c0_769 = arith.constant 0 : index
    %1584 = vector.load %arg10[%c72_768, %c0_769] : memref<104x128xf32, #tpu.memory_space<vmem>>, vector<1x128xf32>
    %cst_770 = arith.constant 0.899999976 : f32
    %1585 = vector.broadcast %cst_770 : f32 to vector<1x128xf32>
    %1586 = arith.mulf %1585, %1501 : vector<1x128xf32>
    %1587 = arith.addf %1586, %1584 : vector<1x128xf32>
    %1588 = arith.subf %1587, %1505 : vector<1x128xf32>
    %cst_771 = arith.constant 1.000000e+00 : f32
    %1589 = vector.broadcast %cst_771 : f32 to vector<1x128xf32>
    %1590 = arith.cmpf ogt, %1588, %1589 : vector<1x128xf32>
    %1591 = arith.extui %1590 : vector<1x128xi1> to vector<1x128xi32>
    %1592 = arith.sitofp %1591 : vector<1x128xi32> to vector<1x128xf32>
    %c72_772 = arith.constant 72 : index
    %c0_773 = arith.constant 0 : index
    %1593 = vector.load %arg9[%c72_772, %c0_773] : memref<104x128xf32, #tpu.memory_space<vmem>>, vector<1x128xf32>
    tpu.vector_store %arg9[%c72_772, %c0_773], %1592 {strides = array<i32>} : memref<104x128xf32, #tpu.memory_space<vmem>>, vector<1x128xf32>,
    %c73_774 = arith.constant 73 : index
    %c0_775 = arith.constant 0 : index
    %1594 = vector.load %arg10[%c73_774, %c0_775] : memref<104x128xf32, #tpu.memory_space<vmem>>, vector<1x128xf32>
    %cst_776 = arith.constant 0.899999976 : f32
    %1595 = vector.broadcast %cst_776 : f32 to vector<1x128xf32>
    %1596 = arith.mulf %1595, %1588 : vector<1x128xf32>
    %1597 = arith.addf %1596, %1594 : vector<1x128xf32>
    %1598 = arith.subf %1597, %1592 : vector<1x128xf32>
    %cst_777 = arith.constant 1.000000e+00 : f32
    %1599 = vector.broadcast %cst_777 : f32 to vector<1x128xf32>
    %1600 = arith.cmpf ogt, %1598, %1599 : vector<1x128xf32>
    %1601 = arith.extui %1600 : vector<1x128xi1> to vector<1x128xi32>
    %1602 = arith.sitofp %1601 : vector<1x128xi32> to vector<1x128xf32>
    %c73_778 = arith.constant 73 : index
    %c0_779 = arith.constant 0 : index
    %1603 = vector.load %arg9[%c73_778, %c0_779] : memref<104x128xf32, #tpu.memory_space<vmem>>, vector<1x128xf32>
    tpu.vector_store %arg9[%c73_778, %c0_779], %1602 {strides = array<i32>} : memref<104x128xf32, #tpu.memory_space<vmem>>, vector<1x128xf32>,
    %c74_780 = arith.constant 74 : index
    %c0_781 = arith.constant 0 : index
    %1604 = vector.load %arg10[%c74_780, %c0_781] : memref<104x128xf32, #tpu.memory_space<vmem>>, vector<1x128xf32>
    %cst_782 = arith.constant 0.899999976 : f32
    %1605 = vector.broadcast %cst_782 : f32 to vector<1x128xf32>
    %1606 = arith.mulf %1605, %1598 : vector<1x128xf32>
    %1607 = arith.addf %1606, %1604 : vector<1x128xf32>
    %1608 = arith.subf %1607, %1602 : vector<1x128xf32>
    %cst_783 = arith.constant 1.000000e+00 : f32
    %1609 = vector.broadcast %cst_783 : f32 to vector<1x128xf32>
    %1610 = arith.cmpf ogt, %1608, %1609 : vector<1x128xf32>
    %1611 = arith.extui %1610 : vector<1x128xi1> to vector<1x128xi32>
    %1612 = arith.sitofp %1611 : vector<1x128xi32> to vector<1x128xf32>
    %c74_784 = arith.constant 74 : index
    %c0_785 = arith.constant 0 : index
    %1613 = vector.load %arg9[%c74_784, %c0_785] : memref<104x128xf32, #tpu.memory_space<vmem>>, vector<1x128xf32>
    tpu.vector_store %arg9[%c74_784, %c0_785], %1612 {strides = array<i32>} : memref<104x128xf32, #tpu.memory_space<vmem>>, vector<1x128xf32>,
    %c75_786 = arith.constant 75 : index
    %c0_787 = arith.constant 0 : index
    %1614 = vector.load %arg10[%c75_786, %c0_787] : memref<104x128xf32, #tpu.memory_space<vmem>>, vector<1x128xf32>
    %cst_788 = arith.constant 0.899999976 : f32
    %1615 = vector.broadcast %cst_788 : f32 to vector<1x128xf32>
    %1616 = arith.mulf %1615, %1608 : vector<1x128xf32>
    %1617 = arith.addf %1616, %1614 : vector<1x128xf32>
    %1618 = arith.subf %1617, %1612 : vector<1x128xf32>
    %cst_789 = arith.constant 1.000000e+00 : f32
    %1619 = vector.broadcast %cst_789 : f32 to vector<1x128xf32>
    %1620 = arith.cmpf ogt, %1618, %1619 : vector<1x128xf32>
    %1621 = arith.extui %1620 : vector<1x128xi1> to vector<1x128xi32>
    %1622 = arith.sitofp %1621 : vector<1x128xi32> to vector<1x128xf32>
    %c75_790 = arith.constant 75 : index
    %c0_791 = arith.constant 0 : index
    %1623 = vector.load %arg9[%c75_790, %c0_791] : memref<104x128xf32, #tpu.memory_space<vmem>>, vector<1x128xf32>
    tpu.vector_store %arg9[%c75_790, %c0_791], %1622 {strides = array<i32>} : memref<104x128xf32, #tpu.memory_space<vmem>>, vector<1x128xf32>,
    %c76_792 = arith.constant 76 : index
    %c0_793 = arith.constant 0 : index
    %1624 = vector.load %arg10[%c76_792, %c0_793] : memref<104x128xf32, #tpu.memory_space<vmem>>, vector<1x128xf32>
    %cst_794 = arith.constant 0.899999976 : f32
    %1625 = vector.broadcast %cst_794 : f32 to vector<1x128xf32>
    %1626 = arith.mulf %1625, %1618 : vector<1x128xf32>
    %1627 = arith.addf %1626, %1624 : vector<1x128xf32>
    %1628 = arith.subf %1627, %1622 : vector<1x128xf32>
    %cst_795 = arith.constant 1.000000e+00 : f32
    %1629 = vector.broadcast %cst_795 : f32 to vector<1x128xf32>
    %1630 = arith.cmpf ogt, %1628, %1629 : vector<1x128xf32>
    %1631 = arith.extui %1630 : vector<1x128xi1> to vector<1x128xi32>
    %1632 = arith.sitofp %1631 : vector<1x128xi32> to vector<1x128xf32>
    %c76_796 = arith.constant 76 : index
    %c0_797 = arith.constant 0 : index
    %1633 = vector.load %arg9[%c76_796, %c0_797] : memref<104x128xf32, #tpu.memory_space<vmem>>, vector<1x128xf32>
    tpu.vector_store %arg9[%c76_796, %c0_797], %1632 {strides = array<i32>} : memref<104x128xf32, #tpu.memory_space<vmem>>, vector<1x128xf32>,
    %c77_798 = arith.constant 77 : index
    %c0_799 = arith.constant 0 : index
    %1634 = vector.load %arg10[%c77_798, %c0_799] : memref<104x128xf32, #tpu.memory_space<vmem>>, vector<1x128xf32>
    %cst_800 = arith.constant 0.899999976 : f32
    %1635 = vector.broadcast %cst_800 : f32 to vector<1x128xf32>
    %1636 = arith.mulf %1635, %1628 : vector<1x128xf32>
    %1637 = arith.addf %1636, %1634 : vector<1x128xf32>
    %1638 = arith.subf %1637, %1632 : vector<1x128xf32>
    %cst_801 = arith.constant 1.000000e+00 : f32
    %1639 = vector.broadcast %cst_801 : f32 to vector<1x128xf32>
    %1640 = arith.cmpf ogt, %1638, %1639 : vector<1x128xf32>
    %1641 = arith.extui %1640 : vector<1x128xi1> to vector<1x128xi32>
    %1642 = arith.sitofp %1641 : vector<1x128xi32> to vector<1x128xf32>
    %c77_802 = arith.constant 77 : index
    %c0_803 = arith.constant 0 : index
    %1643 = vector.load %arg9[%c77_802, %c0_803] : memref<104x128xf32, #tpu.memory_space<vmem>>, vector<1x128xf32>
    tpu.vector_store %arg9[%c77_802, %c0_803], %1642 {strides = array<i32>} : memref<104x128xf32, #tpu.memory_space<vmem>>, vector<1x128xf32>,
    %c78_804 = arith.constant 78 : index
    %c0_805 = arith.constant 0 : index
    %1644 = vector.load %arg10[%c78_804, %c0_805] : memref<104x128xf32, #tpu.memory_space<vmem>>, vector<1x128xf32>
    %cst_806 = arith.constant 0.899999976 : f32
    %1645 = vector.broadcast %cst_806 : f32 to vector<1x128xf32>
    %1646 = arith.mulf %1645, %1638 : vector<1x128xf32>
    %1647 = arith.addf %1646, %1644 : vector<1x128xf32>
    %1648 = arith.subf %1647, %1642 : vector<1x128xf32>
    %cst_807 = arith.constant 1.000000e+00 : f32
    %1649 = vector.broadcast %cst_807 : f32 to vector<1x128xf32>
    %1650 = arith.cmpf ogt, %1648, %1649 : vector<1x128xf32>
    %1651 = arith.extui %1650 : vector<1x128xi1> to vector<1x128xi32>
    %1652 = arith.sitofp %1651 : vector<1x128xi32> to vector<1x128xf32>
    %c78_808 = arith.constant 78 : index
    %c0_809 = arith.constant 0 : index
    %1653 = vector.load %arg9[%c78_808, %c0_809] : memref<104x128xf32, #tpu.memory_space<vmem>>, vector<1x128xf32>
    tpu.vector_store %arg9[%c78_808, %c0_809], %1652 {strides = array<i32>} : memref<104x128xf32, #tpu.memory_space<vmem>>, vector<1x128xf32>,
    %c79_810 = arith.constant 79 : index
    %c0_811 = arith.constant 0 : index
    %1654 = vector.load %arg10[%c79_810, %c0_811] : memref<104x128xf32, #tpu.memory_space<vmem>>, vector<1x128xf32>
    %cst_812 = arith.constant 0.899999976 : f32
    %1655 = vector.broadcast %cst_812 : f32 to vector<1x128xf32>
    %1656 = arith.mulf %1655, %1648 : vector<1x128xf32>
    %1657 = arith.addf %1656, %1654 : vector<1x128xf32>
    %1658 = arith.subf %1657, %1652 : vector<1x128xf32>
    %cst_813 = arith.constant 1.000000e+00 : f32
    %1659 = vector.broadcast %cst_813 : f32 to vector<1x128xf32>
    %1660 = arith.cmpf ogt, %1658, %1659 : vector<1x128xf32>
    %1661 = arith.extui %1660 : vector<1x128xi1> to vector<1x128xi32>
    %1662 = arith.sitofp %1661 : vector<1x128xi32> to vector<1x128xf32>
    %c79_814 = arith.constant 79 : index
    %c0_815 = arith.constant 0 : index
    %1663 = vector.load %arg9[%c79_814, %c0_815] : memref<104x128xf32, #tpu.memory_space<vmem>>, vector<1x128xf32>
    tpu.vector_store %arg9[%c79_814, %c0_815], %1662 {strides = array<i32>} : memref<104x128xf32, #tpu.memory_space<vmem>>, vector<1x128xf32>,
    %cst_816 = arith.constant 0.899999976 : f32
    %1664 = vector.broadcast %cst_816 : f32 to vector<1x128xf32>
    %1665 = arith.mulf %1664, %1573 : vector<1x128xf32>
    %1666 = arith.addf %1665, %10 : vector<1x128xf32>
    %1667 = arith.subf %1666, %1577 : vector<1x128xf32>
    %cst_817 = arith.constant 1.000000e+00 : f32
    %1668 = vector.broadcast %cst_817 : f32 to vector<1x128xf32>
    %1669 = arith.cmpf ogt, %1667, %1668 : vector<1x128xf32>
    %1670 = arith.extui %1669 : vector<1x128xi1> to vector<1x128xi32>
    %1671 = arith.sitofp %1670 : vector<1x128xi32> to vector<1x128xf32>
    %c88 = arith.constant 88 : index
    %c0_818 = arith.constant 0 : index
    %1672 = vector.load %arg8[%c88, %c0_818] : memref<104x128xf32, #tpu.memory_space<vmem>>, vector<1x128xf32>
    tpu.vector_store %arg8[%c88, %c0_818], %1671 {strides = array<i32>} : memref<104x128xf32, #tpu.memory_space<vmem>>, vector<1x128xf32>,
    %cst_819 = arith.constant 0.899999976 : f32
    %1673 = vector.broadcast %cst_819 : f32 to vector<1x128xf32>
    %1674 = arith.mulf %1673, %1667 : vector<1x128xf32>
    %1675 = arith.addf %1674, %10 : vector<1x128xf32>
    %1676 = arith.subf %1675, %1671 : vector<1x128xf32>
    %cst_820 = arith.constant 1.000000e+00 : f32
    %1677 = vector.broadcast %cst_820 : f32 to vector<1x128xf32>
    %1678 = arith.cmpf ogt, %1676, %1677 : vector<1x128xf32>
    %1679 = arith.extui %1678 : vector<1x128xi1> to vector<1x128xi32>
    %1680 = arith.sitofp %1679 : vector<1x128xi32> to vector<1x128xf32>
    %c89 = arith.constant 89 : index
    %c0_821 = arith.constant 0 : index
    %1681 = vector.load %arg8[%c89, %c0_821] : memref<104x128xf32, #tpu.memory_space<vmem>>, vector<1x128xf32>
    tpu.vector_store %arg8[%c89, %c0_821], %1680 {strides = array<i32>} : memref<104x128xf32, #tpu.memory_space<vmem>>, vector<1x128xf32>,
    %cst_822 = arith.constant 0.899999976 : f32
    %1682 = vector.broadcast %cst_822 : f32 to vector<1x128xf32>
    %1683 = arith.mulf %1682, %1676 : vector<1x128xf32>
    %1684 = arith.addf %1683, %10 : vector<1x128xf32>
    %1685 = arith.subf %1684, %1680 : vector<1x128xf32>
    %cst_823 = arith.constant 1.000000e+00 : f32
    %1686 = vector.broadcast %cst_823 : f32 to vector<1x128xf32>
    %1687 = arith.cmpf ogt, %1685, %1686 : vector<1x128xf32>
    %1688 = arith.extui %1687 : vector<1x128xi1> to vector<1x128xi32>
    %1689 = arith.sitofp %1688 : vector<1x128xi32> to vector<1x128xf32>
    %c90 = arith.constant 90 : index
    %c0_824 = arith.constant 0 : index
    %1690 = vector.load %arg8[%c90, %c0_824] : memref<104x128xf32, #tpu.memory_space<vmem>>, vector<1x128xf32>
    tpu.vector_store %arg8[%c90, %c0_824], %1689 {strides = array<i32>} : memref<104x128xf32, #tpu.memory_space<vmem>>, vector<1x128xf32>,
    %cst_825 = arith.constant 0.899999976 : f32
    %1691 = vector.broadcast %cst_825 : f32 to vector<1x128xf32>
    %1692 = arith.mulf %1691, %1685 : vector<1x128xf32>
    %1693 = arith.addf %1692, %10 : vector<1x128xf32>
    %1694 = arith.subf %1693, %1689 : vector<1x128xf32>
    %cst_826 = arith.constant 1.000000e+00 : f32
    %1695 = vector.broadcast %cst_826 : f32 to vector<1x128xf32>
    %1696 = arith.cmpf ogt, %1694, %1695 : vector<1x128xf32>
    %1697 = arith.extui %1696 : vector<1x128xi1> to vector<1x128xi32>
    %1698 = arith.sitofp %1697 : vector<1x128xi32> to vector<1x128xf32>
    %c91 = arith.constant 91 : index
    %c0_827 = arith.constant 0 : index
    %1699 = vector.load %arg8[%c91, %c0_827] : memref<104x128xf32, #tpu.memory_space<vmem>>, vector<1x128xf32>
    tpu.vector_store %arg8[%c91, %c0_827], %1698 {strides = array<i32>} : memref<104x128xf32, #tpu.memory_space<vmem>>, vector<1x128xf32>,
    %cst_828 = arith.constant 0.899999976 : f32
    %1700 = vector.broadcast %cst_828 : f32 to vector<1x128xf32>
    %1701 = arith.mulf %1700, %1694 : vector<1x128xf32>
    %1702 = arith.addf %1701, %10 : vector<1x128xf32>
    %1703 = arith.subf %1702, %1698 : vector<1x128xf32>
    %cst_829 = arith.constant 1.000000e+00 : f32
    %1704 = vector.broadcast %cst_829 : f32 to vector<1x128xf32>
    %1705 = arith.cmpf ogt, %1703, %1704 : vector<1x128xf32>
    %1706 = arith.extui %1705 : vector<1x128xi1> to vector<1x128xi32>
    %1707 = arith.sitofp %1706 : vector<1x128xi32> to vector<1x128xf32>
    %c92 = arith.constant 92 : index
    %c0_830 = arith.constant 0 : index
    %1708 = vector.load %arg8[%c92, %c0_830] : memref<104x128xf32, #tpu.memory_space<vmem>>, vector<1x128xf32>
    tpu.vector_store %arg8[%c92, %c0_830], %1707 {strides = array<i32>} : memref<104x128xf32, #tpu.memory_space<vmem>>, vector<1x128xf32>,
    %cst_831 = arith.constant 0.899999976 : f32
    %1709 = vector.broadcast %cst_831 : f32 to vector<1x128xf32>
    %1710 = arith.mulf %1709, %1703 : vector<1x128xf32>
    %1711 = arith.addf %1710, %10 : vector<1x128xf32>
    %1712 = arith.subf %1711, %1707 : vector<1x128xf32>
    %cst_832 = arith.constant 1.000000e+00 : f32
    %1713 = vector.broadcast %cst_832 : f32 to vector<1x128xf32>
    %1714 = arith.cmpf ogt, %1712, %1713 : vector<1x128xf32>
    %1715 = arith.extui %1714 : vector<1x128xi1> to vector<1x128xi32>
    %1716 = arith.sitofp %1715 : vector<1x128xi32> to vector<1x128xf32>
    %c93 = arith.constant 93 : index
    %c0_833 = arith.constant 0 : index
    %1717 = vector.load %arg8[%c93, %c0_833] : memref<104x128xf32, #tpu.memory_space<vmem>>, vector<1x128xf32>
    tpu.vector_store %arg8[%c93, %c0_833], %1716 {strides = array<i32>} : memref<104x128xf32, #tpu.memory_space<vmem>>, vector<1x128xf32>,
    %cst_834 = arith.constant 0.899999976 : f32
    %1718 = vector.broadcast %cst_834 : f32 to vector<1x128xf32>
    %1719 = arith.mulf %1718, %1712 : vector<1x128xf32>
    %1720 = arith.addf %1719, %10 : vector<1x128xf32>
    %1721 = arith.subf %1720, %1716 : vector<1x128xf32>
    %cst_835 = arith.constant 1.000000e+00 : f32
    %1722 = vector.broadcast %cst_835 : f32 to vector<1x128xf32>
    %1723 = arith.cmpf ogt, %1721, %1722 : vector<1x128xf32>
    %1724 = arith.extui %1723 : vector<1x128xi1> to vector<1x128xi32>
    %1725 = arith.sitofp %1724 : vector<1x128xi32> to vector<1x128xf32>
    %c94 = arith.constant 94 : index
    %c0_836 = arith.constant 0 : index
    %1726 = vector.load %arg8[%c94, %c0_836] : memref<104x128xf32, #tpu.memory_space<vmem>>, vector<1x128xf32>
    tpu.vector_store %arg8[%c94, %c0_836], %1725 {strides = array<i32>} : memref<104x128xf32, #tpu.memory_space<vmem>>, vector<1x128xf32>,
    %cst_837 = arith.constant 0.899999976 : f32
    %1727 = vector.broadcast %cst_837 : f32 to vector<1x128xf32>
    %1728 = arith.mulf %1727, %1721 : vector<1x128xf32>
    %1729 = arith.addf %1728, %10 : vector<1x128xf32>
    %1730 = arith.subf %1729, %1725 : vector<1x128xf32>
    %cst_838 = arith.constant 1.000000e+00 : f32
    %1731 = vector.broadcast %cst_838 : f32 to vector<1x128xf32>
    %1732 = arith.cmpf ogt, %1730, %1731 : vector<1x128xf32>
    %1733 = arith.extui %1732 : vector<1x128xi1> to vector<1x128xi32>
    %1734 = arith.sitofp %1733 : vector<1x128xi32> to vector<1x128xf32>
    %c95 = arith.constant 95 : index
    %c0_839 = arith.constant 0 : index
    %1735 = vector.load %arg8[%c95, %c0_839] : memref<104x128xf32, #tpu.memory_space<vmem>>, vector<1x128xf32>
    tpu.vector_store %arg8[%c95, %c0_839], %1734 {strides = array<i32>} : memref<104x128xf32, #tpu.memory_space<vmem>>, vector<1x128xf32>,
    %c88_840 = arith.constant 88 : index
    %c0_841 = arith.constant 0 : index
    %1736 = vector.load %arg8[%c88_840, %c0_841] : memref<104x128xf32, #tpu.memory_space<vmem>>, vector<8x128xf32>
    %cst_842 = arith.constant dense<0.000000e+00> : vector<8x128xf32>
    %1737 = tpu.matmul %1736, %11, %cst_842 {dimension_numbers = #tpu.dot_dimension_numbers<[1], [0], [0], [1], [0, 0, 1, 1], [], []>} : vector<8x128xf32>, vector<128x128xf32>, vector<8x128xf32> -> vector<8x128xf32>
    %1738 = vector.broadcast %12 : vector<1x128xf32> to vector<8x128xf32>
    %1739 = arith.addf %1737, %1738 : vector<8x128xf32>
    %c88_843 = arith.constant 88 : index
    %c0_844 = arith.constant 0 : index
    %1740 = vector.load %arg10[%c88_843, %c0_844] : memref<104x128xf32, #tpu.memory_space<vmem>>, vector<8x128xf32>
    tpu.vector_store %arg10[%c88_843, %c0_844], %1739 {strides = array<i32>} : memref<104x128xf32, #tpu.memory_space<vmem>>, vector<8x128xf32>,
    %c80_845 = arith.constant 80 : index
    %c0_846 = arith.constant 0 : index
    %1741 = vector.load %arg10[%c80_845, %c0_846] : memref<104x128xf32, #tpu.memory_space<vmem>>, vector<1x128xf32>
    %cst_847 = arith.constant 0.899999976 : f32
    %1742 = vector.broadcast %cst_847 : f32 to vector<1x128xf32>
    %1743 = arith.mulf %1742, %1658 : vector<1x128xf32>
    %1744 = arith.addf %1743, %1741 : vector<1x128xf32>
    %1745 = arith.subf %1744, %1662 : vector<1x128xf32>
    %cst_848 = arith.constant 1.000000e+00 : f32
    %1746 = vector.broadcast %cst_848 : f32 to vector<1x128xf32>
    %1747 = arith.cmpf ogt, %1745, %1746 : vector<1x128xf32>
    %1748 = arith.extui %1747 : vector<1x128xi1> to vector<1x128xi32>
    %1749 = arith.sitofp %1748 : vector<1x128xi32> to vector<1x128xf32>
    %c80_849 = arith.constant 80 : index
    %c0_850 = arith.constant 0 : index
    %1750 = vector.load %arg9[%c80_849, %c0_850] : memref<104x128xf32, #tpu.memory_space<vmem>>, vector<1x128xf32>
    tpu.vector_store %arg9[%c80_849, %c0_850], %1749 {strides = array<i32>} : memref<104x128xf32, #tpu.memory_space<vmem>>, vector<1x128xf32>,
    %c81_851 = arith.constant 81 : index
    %c0_852 = arith.constant 0 : index
    %1751 = vector.load %arg10[%c81_851, %c0_852] : memref<104x128xf32, #tpu.memory_space<vmem>>, vector<1x128xf32>
    %cst_853 = arith.constant 0.899999976 : f32
    %1752 = vector.broadcast %cst_853 : f32 to vector<1x128xf32>
    %1753 = arith.mulf %1752, %1745 : vector<1x128xf32>
    %1754 = arith.addf %1753, %1751 : vector<1x128xf32>
    %1755 = arith.subf %1754, %1749 : vector<1x128xf32>
    %cst_854 = arith.constant 1.000000e+00 : f32
    %1756 = vector.broadcast %cst_854 : f32 to vector<1x128xf32>
    %1757 = arith.cmpf ogt, %1755, %1756 : vector<1x128xf32>
    %1758 = arith.extui %1757 : vector<1x128xi1> to vector<1x128xi32>
    %1759 = arith.sitofp %1758 : vector<1x128xi32> to vector<1x128xf32>
    %c81_855 = arith.constant 81 : index
    %c0_856 = arith.constant 0 : index
    %1760 = vector.load %arg9[%c81_855, %c0_856] : memref<104x128xf32, #tpu.memory_space<vmem>>, vector<1x128xf32>
    tpu.vector_store %arg9[%c81_855, %c0_856], %1759 {strides = array<i32>} : memref<104x128xf32, #tpu.memory_space<vmem>>, vector<1x128xf32>,
    %c82_857 = arith.constant 82 : index
    %c0_858 = arith.constant 0 : index
    %1761 = vector.load %arg10[%c82_857, %c0_858] : memref<104x128xf32, #tpu.memory_space<vmem>>, vector<1x128xf32>
    %cst_859 = arith.constant 0.899999976 : f32
    %1762 = vector.broadcast %cst_859 : f32 to vector<1x128xf32>
    %1763 = arith.mulf %1762, %1755 : vector<1x128xf32>
    %1764 = arith.addf %1763, %1761 : vector<1x128xf32>
    %1765 = arith.subf %1764, %1759 : vector<1x128xf32>
    %cst_860 = arith.constant 1.000000e+00 : f32
    %1766 = vector.broadcast %cst_860 : f32 to vector<1x128xf32>
    %1767 = arith.cmpf ogt, %1765, %1766 : vector<1x128xf32>
    %1768 = arith.extui %1767 : vector<1x128xi1> to vector<1x128xi32>
    %1769 = arith.sitofp %1768 : vector<1x128xi32> to vector<1x128xf32>
    %c82_861 = arith.constant 82 : index
    %c0_862 = arith.constant 0 : index
    %1770 = vector.load %arg9[%c82_861, %c0_862] : memref<104x128xf32, #tpu.memory_space<vmem>>, vector<1x128xf32>
    tpu.vector_store %arg9[%c82_861, %c0_862], %1769 {strides = array<i32>} : memref<104x128xf32, #tpu.memory_space<vmem>>, vector<1x128xf32>,
    %c83_863 = arith.constant 83 : index
    %c0_864 = arith.constant 0 : index
    %1771 = vector.load %arg10[%c83_863, %c0_864] : memref<104x128xf32, #tpu.memory_space<vmem>>, vector<1x128xf32>
    %cst_865 = arith.constant 0.899999976 : f32
    %1772 = vector.broadcast %cst_865 : f32 to vector<1x128xf32>
    %1773 = arith.mulf %1772, %1765 : vector<1x128xf32>
    %1774 = arith.addf %1773, %1771 : vector<1x128xf32>
    %1775 = arith.subf %1774, %1769 : vector<1x128xf32>
    %cst_866 = arith.constant 1.000000e+00 : f32
    %1776 = vector.broadcast %cst_866 : f32 to vector<1x128xf32>
    %1777 = arith.cmpf ogt, %1775, %1776 : vector<1x128xf32>
    %1778 = arith.extui %1777 : vector<1x128xi1> to vector<1x128xi32>
    %1779 = arith.sitofp %1778 : vector<1x128xi32> to vector<1x128xf32>
    %c83_867 = arith.constant 83 : index
    %c0_868 = arith.constant 0 : index
    %1780 = vector.load %arg9[%c83_867, %c0_868] : memref<104x128xf32, #tpu.memory_space<vmem>>, vector<1x128xf32>
    tpu.vector_store %arg9[%c83_867, %c0_868], %1779 {strides = array<i32>} : memref<104x128xf32, #tpu.memory_space<vmem>>, vector<1x128xf32>,
    %c84_869 = arith.constant 84 : index
    %c0_870 = arith.constant 0 : index
    %1781 = vector.load %arg10[%c84_869, %c0_870] : memref<104x128xf32, #tpu.memory_space<vmem>>, vector<1x128xf32>
    %cst_871 = arith.constant 0.899999976 : f32
    %1782 = vector.broadcast %cst_871 : f32 to vector<1x128xf32>
    %1783 = arith.mulf %1782, %1775 : vector<1x128xf32>
    %1784 = arith.addf %1783, %1781 : vector<1x128xf32>
    %1785 = arith.subf %1784, %1779 : vector<1x128xf32>
    %cst_872 = arith.constant 1.000000e+00 : f32
    %1786 = vector.broadcast %cst_872 : f32 to vector<1x128xf32>
    %1787 = arith.cmpf ogt, %1785, %1786 : vector<1x128xf32>
    %1788 = arith.extui %1787 : vector<1x128xi1> to vector<1x128xi32>
    %1789 = arith.sitofp %1788 : vector<1x128xi32> to vector<1x128xf32>
    %c84_873 = arith.constant 84 : index
    %c0_874 = arith.constant 0 : index
    %1790 = vector.load %arg9[%c84_873, %c0_874] : memref<104x128xf32, #tpu.memory_space<vmem>>, vector<1x128xf32>
    tpu.vector_store %arg9[%c84_873, %c0_874], %1789 {strides = array<i32>} : memref<104x128xf32, #tpu.memory_space<vmem>>, vector<1x128xf32>,
    %c85_875 = arith.constant 85 : index
    %c0_876 = arith.constant 0 : index
    %1791 = vector.load %arg10[%c85_875, %c0_876] : memref<104x128xf32, #tpu.memory_space<vmem>>, vector<1x128xf32>
    %cst_877 = arith.constant 0.899999976 : f32
    %1792 = vector.broadcast %cst_877 : f32 to vector<1x128xf32>
    %1793 = arith.mulf %1792, %1785 : vector<1x128xf32>
    %1794 = arith.addf %1793, %1791 : vector<1x128xf32>
    %1795 = arith.subf %1794, %1789 : vector<1x128xf32>
    %cst_878 = arith.constant 1.000000e+00 : f32
    %1796 = vector.broadcast %cst_878 : f32 to vector<1x128xf32>
    %1797 = arith.cmpf ogt, %1795, %1796 : vector<1x128xf32>
    %1798 = arith.extui %1797 : vector<1x128xi1> to vector<1x128xi32>
    %1799 = arith.sitofp %1798 : vector<1x128xi32> to vector<1x128xf32>
    %c85_879 = arith.constant 85 : index
    %c0_880 = arith.constant 0 : index
    %1800 = vector.load %arg9[%c85_879, %c0_880] : memref<104x128xf32, #tpu.memory_space<vmem>>, vector<1x128xf32>
    tpu.vector_store %arg9[%c85_879, %c0_880], %1799 {strides = array<i32>} : memref<104x128xf32, #tpu.memory_space<vmem>>, vector<1x128xf32>,
    %c86_881 = arith.constant 86 : index
    %c0_882 = arith.constant 0 : index
    %1801 = vector.load %arg10[%c86_881, %c0_882] : memref<104x128xf32, #tpu.memory_space<vmem>>, vector<1x128xf32>
    %cst_883 = arith.constant 0.899999976 : f32
    %1802 = vector.broadcast %cst_883 : f32 to vector<1x128xf32>
    %1803 = arith.mulf %1802, %1795 : vector<1x128xf32>
    %1804 = arith.addf %1803, %1801 : vector<1x128xf32>
    %1805 = arith.subf %1804, %1799 : vector<1x128xf32>
    %cst_884 = arith.constant 1.000000e+00 : f32
    %1806 = vector.broadcast %cst_884 : f32 to vector<1x128xf32>
    %1807 = arith.cmpf ogt, %1805, %1806 : vector<1x128xf32>
    %1808 = arith.extui %1807 : vector<1x128xi1> to vector<1x128xi32>
    %1809 = arith.sitofp %1808 : vector<1x128xi32> to vector<1x128xf32>
    %c86_885 = arith.constant 86 : index
    %c0_886 = arith.constant 0 : index
    %1810 = vector.load %arg9[%c86_885, %c0_886] : memref<104x128xf32, #tpu.memory_space<vmem>>, vector<1x128xf32>
    tpu.vector_store %arg9[%c86_885, %c0_886], %1809 {strides = array<i32>} : memref<104x128xf32, #tpu.memory_space<vmem>>, vector<1x128xf32>,
    %c87_887 = arith.constant 87 : index
    %c0_888 = arith.constant 0 : index
    %1811 = vector.load %arg10[%c87_887, %c0_888] : memref<104x128xf32, #tpu.memory_space<vmem>>, vector<1x128xf32>
    %cst_889 = arith.constant 0.899999976 : f32
    %1812 = vector.broadcast %cst_889 : f32 to vector<1x128xf32>
    %1813 = arith.mulf %1812, %1805 : vector<1x128xf32>
    %1814 = arith.addf %1813, %1811 : vector<1x128xf32>
    %1815 = arith.subf %1814, %1809 : vector<1x128xf32>
    %cst_890 = arith.constant 1.000000e+00 : f32
    %1816 = vector.broadcast %cst_890 : f32 to vector<1x128xf32>
    %1817 = arith.cmpf ogt, %1815, %1816 : vector<1x128xf32>
    %1818 = arith.extui %1817 : vector<1x128xi1> to vector<1x128xi32>
    %1819 = arith.sitofp %1818 : vector<1x128xi32> to vector<1x128xf32>
    %c87_891 = arith.constant 87 : index
    %c0_892 = arith.constant 0 : index
    %1820 = vector.load %arg9[%c87_891, %c0_892] : memref<104x128xf32, #tpu.memory_space<vmem>>, vector<1x128xf32>
    tpu.vector_store %arg9[%c87_891, %c0_892], %1819 {strides = array<i32>} : memref<104x128xf32, #tpu.memory_space<vmem>>, vector<1x128xf32>,
    %cst_893 = arith.constant 0.899999976 : f32
    %1821 = vector.broadcast %cst_893 : f32 to vector<1x128xf32>
    %1822 = arith.mulf %1821, %1730 : vector<1x128xf32>
    %1823 = arith.addf %1822, %10 : vector<1x128xf32>
    %1824 = arith.subf %1823, %1734 : vector<1x128xf32>
    %cst_894 = arith.constant 1.000000e+00 : f32
    %1825 = vector.broadcast %cst_894 : f32 to vector<1x128xf32>
    %1826 = arith.cmpf ogt, %1824, %1825 : vector<1x128xf32>
    %1827 = arith.extui %1826 : vector<1x128xi1> to vector<1x128xi32>
    %1828 = arith.sitofp %1827 : vector<1x128xi32> to vector<1x128xf32>
    %c96 = arith.constant 96 : index
    %c0_895 = arith.constant 0 : index
    %1829 = vector.load %arg8[%c96, %c0_895] : memref<104x128xf32, #tpu.memory_space<vmem>>, vector<1x128xf32>
    tpu.vector_store %arg8[%c96, %c0_895], %1828 {strides = array<i32>} : memref<104x128xf32, #tpu.memory_space<vmem>>, vector<1x128xf32>,
    %cst_896 = arith.constant 0.899999976 : f32
    %1830 = vector.broadcast %cst_896 : f32 to vector<1x128xf32>
    %1831 = arith.mulf %1830, %1824 : vector<1x128xf32>
    %1832 = arith.addf %1831, %10 : vector<1x128xf32>
    %1833 = arith.subf %1832, %1828 : vector<1x128xf32>
    %cst_897 = arith.constant 1.000000e+00 : f32
    %1834 = vector.broadcast %cst_897 : f32 to vector<1x128xf32>
    %1835 = arith.cmpf ogt, %1833, %1834 : vector<1x128xf32>
    %1836 = arith.extui %1835 : vector<1x128xi1> to vector<1x128xi32>
    %1837 = arith.sitofp %1836 : vector<1x128xi32> to vector<1x128xf32>
    %c97 = arith.constant 97 : index
    %c0_898 = arith.constant 0 : index
    %1838 = vector.load %arg8[%c97, %c0_898] : memref<104x128xf32, #tpu.memory_space<vmem>>, vector<1x128xf32>
    tpu.vector_store %arg8[%c97, %c0_898], %1837 {strides = array<i32>} : memref<104x128xf32, #tpu.memory_space<vmem>>, vector<1x128xf32>,
    %cst_899 = arith.constant 0.899999976 : f32
    %1839 = vector.broadcast %cst_899 : f32 to vector<1x128xf32>
    %1840 = arith.mulf %1839, %1833 : vector<1x128xf32>
    %1841 = arith.addf %1840, %10 : vector<1x128xf32>
    %1842 = arith.subf %1841, %1837 : vector<1x128xf32>
    %cst_900 = arith.constant 1.000000e+00 : f32
    %1843 = vector.broadcast %cst_900 : f32 to vector<1x128xf32>
    %1844 = arith.cmpf ogt, %1842, %1843 : vector<1x128xf32>
    %1845 = arith.extui %1844 : vector<1x128xi1> to vector<1x128xi32>
    %1846 = arith.sitofp %1845 : vector<1x128xi32> to vector<1x128xf32>
    %c98 = arith.constant 98 : index
    %c0_901 = arith.constant 0 : index
    %1847 = vector.load %arg8[%c98, %c0_901] : memref<104x128xf32, #tpu.memory_space<vmem>>, vector<1x128xf32>
    tpu.vector_store %arg8[%c98, %c0_901], %1846 {strides = array<i32>} : memref<104x128xf32, #tpu.memory_space<vmem>>, vector<1x128xf32>,
    %cst_902 = arith.constant 0.899999976 : f32
    %1848 = vector.broadcast %cst_902 : f32 to vector<1x128xf32>
    %1849 = arith.mulf %1848, %1842 : vector<1x128xf32>
    %1850 = arith.addf %1849, %10 : vector<1x128xf32>
    %1851 = arith.subf %1850, %1846 : vector<1x128xf32>
    %cst_903 = arith.constant 1.000000e+00 : f32
    %1852 = vector.broadcast %cst_903 : f32 to vector<1x128xf32>
    %1853 = arith.cmpf ogt, %1851, %1852 : vector<1x128xf32>
    %1854 = arith.extui %1853 : vector<1x128xi1> to vector<1x128xi32>
    %1855 = arith.sitofp %1854 : vector<1x128xi32> to vector<1x128xf32>
    %c99 = arith.constant 99 : index
    %c0_904 = arith.constant 0 : index
    %1856 = vector.load %arg8[%c99, %c0_904] : memref<104x128xf32, #tpu.memory_space<vmem>>, vector<1x128xf32>
    tpu.vector_store %arg8[%c99, %c0_904], %1855 {strides = array<i32>} : memref<104x128xf32, #tpu.memory_space<vmem>>, vector<1x128xf32>,
    %cst_905 = arith.constant 0.899999976 : f32
    %1857 = vector.broadcast %cst_905 : f32 to vector<1x128xf32>
    %1858 = arith.mulf %1857, %1851 : vector<1x128xf32>
    %1859 = arith.addf %1858, %10 : vector<1x128xf32>
    %1860 = arith.subf %1859, %1855 : vector<1x128xf32>
    %cst_906 = arith.constant 1.000000e+00 : f32
    %1861 = vector.broadcast %cst_906 : f32 to vector<1x128xf32>
    %1862 = arith.cmpf ogt, %1860, %1861 : vector<1x128xf32>
    %1863 = arith.extui %1862 : vector<1x128xi1> to vector<1x128xi32>
    %1864 = arith.sitofp %1863 : vector<1x128xi32> to vector<1x128xf32>
    %c100 = arith.constant 100 : index
    %c0_907 = arith.constant 0 : index
    %1865 = vector.load %arg8[%c100, %c0_907] : memref<104x128xf32, #tpu.memory_space<vmem>>, vector<1x128xf32>
    tpu.vector_store %arg8[%c100, %c0_907], %1864 {strides = array<i32>} : memref<104x128xf32, #tpu.memory_space<vmem>>, vector<1x128xf32>,
    %cst_908 = arith.constant 0.899999976 : f32
    %1866 = vector.broadcast %cst_908 : f32 to vector<1x128xf32>
    %1867 = arith.mulf %1866, %1860 : vector<1x128xf32>
    %1868 = arith.addf %1867, %10 : vector<1x128xf32>
    %1869 = arith.subf %1868, %1864 : vector<1x128xf32>
    %cst_909 = arith.constant 1.000000e+00 : f32
    %1870 = vector.broadcast %cst_909 : f32 to vector<1x128xf32>
    %1871 = arith.cmpf ogt, %1869, %1870 : vector<1x128xf32>
    %1872 = arith.extui %1871 : vector<1x128xi1> to vector<1x128xi32>
    %1873 = arith.sitofp %1872 : vector<1x128xi32> to vector<1x128xf32>
    %c101 = arith.constant 101 : index
    %c0_910 = arith.constant 0 : index
    %1874 = vector.load %arg8[%c101, %c0_910] : memref<104x128xf32, #tpu.memory_space<vmem>>, vector<1x128xf32>
    tpu.vector_store %arg8[%c101, %c0_910], %1873 {strides = array<i32>} : memref<104x128xf32, #tpu.memory_space<vmem>>, vector<1x128xf32>,
    %cst_911 = arith.constant 0.899999976 : f32
    %1875 = vector.broadcast %cst_911 : f32 to vector<1x128xf32>
    %1876 = arith.mulf %1875, %1869 : vector<1x128xf32>
    %1877 = arith.addf %1876, %10 : vector<1x128xf32>
    %1878 = arith.subf %1877, %1873 : vector<1x128xf32>
    %cst_912 = arith.constant 1.000000e+00 : f32
    %1879 = vector.broadcast %cst_912 : f32 to vector<1x128xf32>
    %1880 = arith.cmpf ogt, %1878, %1879 : vector<1x128xf32>
    %1881 = arith.extui %1880 : vector<1x128xi1> to vector<1x128xi32>
    %1882 = arith.sitofp %1881 : vector<1x128xi32> to vector<1x128xf32>
    %c102 = arith.constant 102 : index
    %c0_913 = arith.constant 0 : index
    %1883 = vector.load %arg8[%c102, %c0_913] : memref<104x128xf32, #tpu.memory_space<vmem>>, vector<1x128xf32>
    tpu.vector_store %arg8[%c102, %c0_913], %1882 {strides = array<i32>} : memref<104x128xf32, #tpu.memory_space<vmem>>, vector<1x128xf32>,
    %cst_914 = arith.constant 0.899999976 : f32
    %1884 = vector.broadcast %cst_914 : f32 to vector<1x128xf32>
    %1885 = arith.mulf %1884, %1878 : vector<1x128xf32>
    %1886 = arith.addf %1885, %10 : vector<1x128xf32>
    %1887 = arith.subf %1886, %1882 : vector<1x128xf32>
    %cst_915 = arith.constant 1.000000e+00 : f32
    %1888 = vector.broadcast %cst_915 : f32 to vector<1x128xf32>
    %1889 = arith.cmpf ogt, %1887, %1888 : vector<1x128xf32>
    %1890 = arith.extui %1889 : vector<1x128xi1> to vector<1x128xi32>
    %1891 = arith.sitofp %1890 : vector<1x128xi32> to vector<1x128xf32>
    %c103 = arith.constant 103 : index
    %c0_916 = arith.constant 0 : index
    %1892 = vector.load %arg8[%c103, %c0_916] : memref<104x128xf32, #tpu.memory_space<vmem>>, vector<1x128xf32>
    tpu.vector_store %arg8[%c103, %c0_916], %1891 {strides = array<i32>} : memref<104x128xf32, #tpu.memory_space<vmem>>, vector<1x128xf32>,
    %c96_917 = arith.constant 96 : index
    %c0_918 = arith.constant 0 : index
    %1893 = vector.load %arg8[%c96_917, %c0_918] : memref<104x128xf32, #tpu.memory_space<vmem>>, vector<8x128xf32>
    %cst_919 = arith.constant dense<0.000000e+00> : vector<8x128xf32>
    %1894 = tpu.matmul %1893, %11, %cst_919 {dimension_numbers = #tpu.dot_dimension_numbers<[1], [0], [0], [1], [0, 0, 1, 1], [], []>} : vector<8x128xf32>, vector<128x128xf32>, vector<8x128xf32> -> vector<8x128xf32>
    %1895 = vector.broadcast %12 : vector<1x128xf32> to vector<8x128xf32>
    %1896 = arith.addf %1894, %1895 : vector<8x128xf32>
    %c96_920 = arith.constant 96 : index
    %c0_921 = arith.constant 0 : index
    %1897 = vector.load %arg10[%c96_920, %c0_921] : memref<104x128xf32, #tpu.memory_space<vmem>>, vector<8x128xf32>
    tpu.vector_store %arg10[%c96_920, %c0_921], %1896 {strides = array<i32>} : memref<104x128xf32, #tpu.memory_space<vmem>>, vector<8x128xf32>,
    %c88_922 = arith.constant 88 : index
    %c0_923 = arith.constant 0 : index
    %1898 = vector.load %arg10[%c88_922, %c0_923] : memref<104x128xf32, #tpu.memory_space<vmem>>, vector<1x128xf32>
    %cst_924 = arith.constant 0.899999976 : f32
    %1899 = vector.broadcast %cst_924 : f32 to vector<1x128xf32>
    %1900 = arith.mulf %1899, %1815 : vector<1x128xf32>
    %1901 = arith.addf %1900, %1898 : vector<1x128xf32>
    %1902 = arith.subf %1901, %1819 : vector<1x128xf32>
    %cst_925 = arith.constant 1.000000e+00 : f32
    %1903 = vector.broadcast %cst_925 : f32 to vector<1x128xf32>
    %1904 = arith.cmpf ogt, %1902, %1903 : vector<1x128xf32>
    %1905 = arith.extui %1904 : vector<1x128xi1> to vector<1x128xi32>
    %1906 = arith.sitofp %1905 : vector<1x128xi32> to vector<1x128xf32>
    %c88_926 = arith.constant 88 : index
    %c0_927 = arith.constant 0 : index
    %1907 = vector.load %arg9[%c88_926, %c0_927] : memref<104x128xf32, #tpu.memory_space<vmem>>, vector<1x128xf32>
    tpu.vector_store %arg9[%c88_926, %c0_927], %1906 {strides = array<i32>} : memref<104x128xf32, #tpu.memory_space<vmem>>, vector<1x128xf32>,
    %c89_928 = arith.constant 89 : index
    %c0_929 = arith.constant 0 : index
    %1908 = vector.load %arg10[%c89_928, %c0_929] : memref<104x128xf32, #tpu.memory_space<vmem>>, vector<1x128xf32>
    %cst_930 = arith.constant 0.899999976 : f32
    %1909 = vector.broadcast %cst_930 : f32 to vector<1x128xf32>
    %1910 = arith.mulf %1909, %1902 : vector<1x128xf32>
    %1911 = arith.addf %1910, %1908 : vector<1x128xf32>
    %1912 = arith.subf %1911, %1906 : vector<1x128xf32>
    %cst_931 = arith.constant 1.000000e+00 : f32
    %1913 = vector.broadcast %cst_931 : f32 to vector<1x128xf32>
    %1914 = arith.cmpf ogt, %1912, %1913 : vector<1x128xf32>
    %1915 = arith.extui %1914 : vector<1x128xi1> to vector<1x128xi32>
    %1916 = arith.sitofp %1915 : vector<1x128xi32> to vector<1x128xf32>
    %c89_932 = arith.constant 89 : index
    %c0_933 = arith.constant 0 : index
    %1917 = vector.load %arg9[%c89_932, %c0_933] : memref<104x128xf32, #tpu.memory_space<vmem>>, vector<1x128xf32>
    tpu.vector_store %arg9[%c89_932, %c0_933], %1916 {strides = array<i32>} : memref<104x128xf32, #tpu.memory_space<vmem>>, vector<1x128xf32>,
    %c90_934 = arith.constant 90 : index
    %c0_935 = arith.constant 0 : index
    %1918 = vector.load %arg10[%c90_934, %c0_935] : memref<104x128xf32, #tpu.memory_space<vmem>>, vector<1x128xf32>
    %cst_936 = arith.constant 0.899999976 : f32
    %1919 = vector.broadcast %cst_936 : f32 to vector<1x128xf32>
    %1920 = arith.mulf %1919, %1912 : vector<1x128xf32>
    %1921 = arith.addf %1920, %1918 : vector<1x128xf32>
    %1922 = arith.subf %1921, %1916 : vector<1x128xf32>
    %cst_937 = arith.constant 1.000000e+00 : f32
    %1923 = vector.broadcast %cst_937 : f32 to vector<1x128xf32>
    %1924 = arith.cmpf ogt, %1922, %1923 : vector<1x128xf32>
    %1925 = arith.extui %1924 : vector<1x128xi1> to vector<1x128xi32>
    %1926 = arith.sitofp %1925 : vector<1x128xi32> to vector<1x128xf32>
    %c90_938 = arith.constant 90 : index
    %c0_939 = arith.constant 0 : index
    %1927 = vector.load %arg9[%c90_938, %c0_939] : memref<104x128xf32, #tpu.memory_space<vmem>>, vector<1x128xf32>
    tpu.vector_store %arg9[%c90_938, %c0_939], %1926 {strides = array<i32>} : memref<104x128xf32, #tpu.memory_space<vmem>>, vector<1x128xf32>,
    %c91_940 = arith.constant 91 : index
    %c0_941 = arith.constant 0 : index
    %1928 = vector.load %arg10[%c91_940, %c0_941] : memref<104x128xf32, #tpu.memory_space<vmem>>, vector<1x128xf32>
    %cst_942 = arith.constant 0.899999976 : f32
    %1929 = vector.broadcast %cst_942 : f32 to vector<1x128xf32>
    %1930 = arith.mulf %1929, %1922 : vector<1x128xf32>
    %1931 = arith.addf %1930, %1928 : vector<1x128xf32>
    %1932 = arith.subf %1931, %1926 : vector<1x128xf32>
    %cst_943 = arith.constant 1.000000e+00 : f32
    %1933 = vector.broadcast %cst_943 : f32 to vector<1x128xf32>
    %1934 = arith.cmpf ogt, %1932, %1933 : vector<1x128xf32>
    %1935 = arith.extui %1934 : vector<1x128xi1> to vector<1x128xi32>
    %1936 = arith.sitofp %1935 : vector<1x128xi32> to vector<1x128xf32>
    %c91_944 = arith.constant 91 : index
    %c0_945 = arith.constant 0 : index
    %1937 = vector.load %arg9[%c91_944, %c0_945] : memref<104x128xf32, #tpu.memory_space<vmem>>, vector<1x128xf32>
    tpu.vector_store %arg9[%c91_944, %c0_945], %1936 {strides = array<i32>} : memref<104x128xf32, #tpu.memory_space<vmem>>, vector<1x128xf32>,
    %c92_946 = arith.constant 92 : index
    %c0_947 = arith.constant 0 : index
    %1938 = vector.load %arg10[%c92_946, %c0_947] : memref<104x128xf32, #tpu.memory_space<vmem>>, vector<1x128xf32>
    %cst_948 = arith.constant 0.899999976 : f32
    %1939 = vector.broadcast %cst_948 : f32 to vector<1x128xf32>
    %1940 = arith.mulf %1939, %1932 : vector<1x128xf32>
    %1941 = arith.addf %1940, %1938 : vector<1x128xf32>
    %1942 = arith.subf %1941, %1936 : vector<1x128xf32>
    %cst_949 = arith.constant 1.000000e+00 : f32
    %1943 = vector.broadcast %cst_949 : f32 to vector<1x128xf32>
    %1944 = arith.cmpf ogt, %1942, %1943 : vector<1x128xf32>
    %1945 = arith.extui %1944 : vector<1x128xi1> to vector<1x128xi32>
    %1946 = arith.sitofp %1945 : vector<1x128xi32> to vector<1x128xf32>
    %c92_950 = arith.constant 92 : index
    %c0_951 = arith.constant 0 : index
    %1947 = vector.load %arg9[%c92_950, %c0_951] : memref<104x128xf32, #tpu.memory_space<vmem>>, vector<1x128xf32>
    tpu.vector_store %arg9[%c92_950, %c0_951], %1946 {strides = array<i32>} : memref<104x128xf32, #tpu.memory_space<vmem>>, vector<1x128xf32>,
    %c93_952 = arith.constant 93 : index
    %c0_953 = arith.constant 0 : index
    %1948 = vector.load %arg10[%c93_952, %c0_953] : memref<104x128xf32, #tpu.memory_space<vmem>>, vector<1x128xf32>
    %cst_954 = arith.constant 0.899999976 : f32
    %1949 = vector.broadcast %cst_954 : f32 to vector<1x128xf32>
    %1950 = arith.mulf %1949, %1942 : vector<1x128xf32>
    %1951 = arith.addf %1950, %1948 : vector<1x128xf32>
    %1952 = arith.subf %1951, %1946 : vector<1x128xf32>
    %cst_955 = arith.constant 1.000000e+00 : f32
    %1953 = vector.broadcast %cst_955 : f32 to vector<1x128xf32>
    %1954 = arith.cmpf ogt, %1952, %1953 : vector<1x128xf32>
    %1955 = arith.extui %1954 : vector<1x128xi1> to vector<1x128xi32>
    %1956 = arith.sitofp %1955 : vector<1x128xi32> to vector<1x128xf32>
    %c93_956 = arith.constant 93 : index
    %c0_957 = arith.constant 0 : index
    %1957 = vector.load %arg9[%c93_956, %c0_957] : memref<104x128xf32, #tpu.memory_space<vmem>>, vector<1x128xf32>
    tpu.vector_store %arg9[%c93_956, %c0_957], %1956 {strides = array<i32>} : memref<104x128xf32, #tpu.memory_space<vmem>>, vector<1x128xf32>,
    %c94_958 = arith.constant 94 : index
    %c0_959 = arith.constant 0 : index
    %1958 = vector.load %arg10[%c94_958, %c0_959] : memref<104x128xf32, #tpu.memory_space<vmem>>, vector<1x128xf32>
    %cst_960 = arith.constant 0.899999976 : f32
    %1959 = vector.broadcast %cst_960 : f32 to vector<1x128xf32>
    %1960 = arith.mulf %1959, %1952 : vector<1x128xf32>
    %1961 = arith.addf %1960, %1958 : vector<1x128xf32>
    %1962 = arith.subf %1961, %1956 : vector<1x128xf32>
    %cst_961 = arith.constant 1.000000e+00 : f32
    %1963 = vector.broadcast %cst_961 : f32 to vector<1x128xf32>
    %1964 = arith.cmpf ogt, %1962, %1963 : vector<1x128xf32>
    %1965 = arith.extui %1964 : vector<1x128xi1> to vector<1x128xi32>
    %1966 = arith.sitofp %1965 : vector<1x128xi32> to vector<1x128xf32>
    %c94_962 = arith.constant 94 : index
    %c0_963 = arith.constant 0 : index
    %1967 = vector.load %arg9[%c94_962, %c0_963] : memref<104x128xf32, #tpu.memory_space<vmem>>, vector<1x128xf32>
    tpu.vector_store %arg9[%c94_962, %c0_963], %1966 {strides = array<i32>} : memref<104x128xf32, #tpu.memory_space<vmem>>, vector<1x128xf32>,
    %c95_964 = arith.constant 95 : index
    %c0_965 = arith.constant 0 : index
    %1968 = vector.load %arg10[%c95_964, %c0_965] : memref<104x128xf32, #tpu.memory_space<vmem>>, vector<1x128xf32>
    %cst_966 = arith.constant 0.899999976 : f32
    %1969 = vector.broadcast %cst_966 : f32 to vector<1x128xf32>
    %1970 = arith.mulf %1969, %1962 : vector<1x128xf32>
    %1971 = arith.addf %1970, %1968 : vector<1x128xf32>
    %1972 = arith.subf %1971, %1966 : vector<1x128xf32>
    %cst_967 = arith.constant 1.000000e+00 : f32
    %1973 = vector.broadcast %cst_967 : f32 to vector<1x128xf32>
    %1974 = arith.cmpf ogt, %1972, %1973 : vector<1x128xf32>
    %1975 = arith.extui %1974 : vector<1x128xi1> to vector<1x128xi32>
    %1976 = arith.sitofp %1975 : vector<1x128xi32> to vector<1x128xf32>
    %c95_968 = arith.constant 95 : index
    %c0_969 = arith.constant 0 : index
    %1977 = vector.load %arg9[%c95_968, %c0_969] : memref<104x128xf32, #tpu.memory_space<vmem>>, vector<1x128xf32>
    tpu.vector_store %arg9[%c95_968, %c0_969], %1976 {strides = array<i32>} : memref<104x128xf32, #tpu.memory_space<vmem>>, vector<1x128xf32>,
    %c96_970 = arith.constant 96 : index
    %c0_971 = arith.constant 0 : index
    %1978 = vector.load %arg10[%c96_970, %c0_971] : memref<104x128xf32, #tpu.memory_space<vmem>>, vector<1x128xf32>
    %cst_972 = arith.constant 0.899999976 : f32
    %1979 = vector.broadcast %cst_972 : f32 to vector<1x128xf32>
    %1980 = arith.mulf %1979, %1972 : vector<1x128xf32>
    %1981 = arith.addf %1980, %1978 : vector<1x128xf32>
    %1982 = arith.subf %1981, %1976 : vector<1x128xf32>
    %cst_973 = arith.constant 1.000000e+00 : f32
    %1983 = vector.broadcast %cst_973 : f32 to vector<1x128xf32>
    %1984 = arith.cmpf ogt, %1982, %1983 : vector<1x128xf32>
    %1985 = arith.extui %1984 : vector<1x128xi1> to vector<1x128xi32>
    %1986 = arith.sitofp %1985 : vector<1x128xi32> to vector<1x128xf32>
    %c96_974 = arith.constant 96 : index
    %c0_975 = arith.constant 0 : index
    %1987 = vector.load %arg9[%c96_974, %c0_975] : memref<104x128xf32, #tpu.memory_space<vmem>>, vector<1x128xf32>
    tpu.vector_store %arg9[%c96_974, %c0_975], %1986 {strides = array<i32>} : memref<104x128xf32, #tpu.memory_space<vmem>>, vector<1x128xf32>,
    %c97_976 = arith.constant 97 : index
    %c0_977 = arith.constant 0 : index
    %1988 = vector.load %arg10[%c97_976, %c0_977] : memref<104x128xf32, #tpu.memory_space<vmem>>, vector<1x128xf32>
    %cst_978 = arith.constant 0.899999976 : f32
    %1989 = vector.broadcast %cst_978 : f32 to vector<1x128xf32>
    %1990 = arith.mulf %1989, %1982 : vector<1x128xf32>
    %1991 = arith.addf %1990, %1988 : vector<1x128xf32>
    %1992 = arith.subf %1991, %1986 : vector<1x128xf32>
    %cst_979 = arith.constant 1.000000e+00 : f32
    %1993 = vector.broadcast %cst_979 : f32 to vector<1x128xf32>
    %1994 = arith.cmpf ogt, %1992, %1993 : vector<1x128xf32>
    %1995 = arith.extui %1994 : vector<1x128xi1> to vector<1x128xi32>
    %1996 = arith.sitofp %1995 : vector<1x128xi32> to vector<1x128xf32>
    %c97_980 = arith.constant 97 : index
    %c0_981 = arith.constant 0 : index
    %1997 = vector.load %arg9[%c97_980, %c0_981] : memref<104x128xf32, #tpu.memory_space<vmem>>, vector<1x128xf32>
    tpu.vector_store %arg9[%c97_980, %c0_981], %1996 {strides = array<i32>} : memref<104x128xf32, #tpu.memory_space<vmem>>, vector<1x128xf32>,
    %c98_982 = arith.constant 98 : index
    %c0_983 = arith.constant 0 : index
    %1998 = vector.load %arg10[%c98_982, %c0_983] : memref<104x128xf32, #tpu.memory_space<vmem>>, vector<1x128xf32>
    %cst_984 = arith.constant 0.899999976 : f32
    %1999 = vector.broadcast %cst_984 : f32 to vector<1x128xf32>
    %2000 = arith.mulf %1999, %1992 : vector<1x128xf32>
    %2001 = arith.addf %2000, %1998 : vector<1x128xf32>
    %2002 = arith.subf %2001, %1996 : vector<1x128xf32>
    %cst_985 = arith.constant 1.000000e+00 : f32
    %2003 = vector.broadcast %cst_985 : f32 to vector<1x128xf32>
    %2004 = arith.cmpf ogt, %2002, %2003 : vector<1x128xf32>
    %2005 = arith.extui %2004 : vector<1x128xi1> to vector<1x128xi32>
    %2006 = arith.sitofp %2005 : vector<1x128xi32> to vector<1x128xf32>
    %c98_986 = arith.constant 98 : index
    %c0_987 = arith.constant 0 : index
    %2007 = vector.load %arg9[%c98_986, %c0_987] : memref<104x128xf32, #tpu.memory_space<vmem>>, vector<1x128xf32>
    tpu.vector_store %arg9[%c98_986, %c0_987], %2006 {strides = array<i32>} : memref<104x128xf32, #tpu.memory_space<vmem>>, vector<1x128xf32>,
    %c99_988 = arith.constant 99 : index
    %c0_989 = arith.constant 0 : index
    %2008 = vector.load %arg10[%c99_988, %c0_989] : memref<104x128xf32, #tpu.memory_space<vmem>>, vector<1x128xf32>
    %cst_990 = arith.constant 0.899999976 : f32
    %2009 = vector.broadcast %cst_990 : f32 to vector<1x128xf32>
    %2010 = arith.mulf %2009, %2002 : vector<1x128xf32>
    %2011 = arith.addf %2010, %2008 : vector<1x128xf32>
    %2012 = arith.subf %2011, %2006 : vector<1x128xf32>
    %cst_991 = arith.constant 1.000000e+00 : f32
    %2013 = vector.broadcast %cst_991 : f32 to vector<1x128xf32>
    %2014 = arith.cmpf ogt, %2012, %2013 : vector<1x128xf32>
    %2015 = arith.extui %2014 : vector<1x128xi1> to vector<1x128xi32>
    %2016 = arith.sitofp %2015 : vector<1x128xi32> to vector<1x128xf32>
    %c99_992 = arith.constant 99 : index
    %c0_993 = arith.constant 0 : index
    %2017 = vector.load %arg9[%c99_992, %c0_993] : memref<104x128xf32, #tpu.memory_space<vmem>>, vector<1x128xf32>
    tpu.vector_store %arg9[%c99_992, %c0_993], %2016 {strides = array<i32>} : memref<104x128xf32, #tpu.memory_space<vmem>>, vector<1x128xf32>,
    %c100_994 = arith.constant 100 : index
    %c0_995 = arith.constant 0 : index
    %2018 = vector.load %arg10[%c100_994, %c0_995] : memref<104x128xf32, #tpu.memory_space<vmem>>, vector<1x128xf32>
    %cst_996 = arith.constant 0.899999976 : f32
    %2019 = vector.broadcast %cst_996 : f32 to vector<1x128xf32>
    %2020 = arith.mulf %2019, %2012 : vector<1x128xf32>
    %2021 = arith.addf %2020, %2018 : vector<1x128xf32>
    %2022 = arith.subf %2021, %2016 : vector<1x128xf32>
    %cst_997 = arith.constant 1.000000e+00 : f32
    %2023 = vector.broadcast %cst_997 : f32 to vector<1x128xf32>
    %2024 = arith.cmpf ogt, %2022, %2023 : vector<1x128xf32>
    %2025 = arith.extui %2024 : vector<1x128xi1> to vector<1x128xi32>
    %2026 = arith.sitofp %2025 : vector<1x128xi32> to vector<1x128xf32>
    %c100_998 = arith.constant 100 : index
    %c0_999 = arith.constant 0 : index
    %2027 = vector.load %arg9[%c100_998, %c0_999] : memref<104x128xf32, #tpu.memory_space<vmem>>, vector<1x128xf32>
    tpu.vector_store %arg9[%c100_998, %c0_999], %2026 {strides = array<i32>} : memref<104x128xf32, #tpu.memory_space<vmem>>, vector<1x128xf32>,
    %c101_1000 = arith.constant 101 : index
    %c0_1001 = arith.constant 0 : index
    %2028 = vector.load %arg10[%c101_1000, %c0_1001] : memref<104x128xf32, #tpu.memory_space<vmem>>, vector<1x128xf32>
    %cst_1002 = arith.constant 0.899999976 : f32
    %2029 = vector.broadcast %cst_1002 : f32 to vector<1x128xf32>
    %2030 = arith.mulf %2029, %2022 : vector<1x128xf32>
    %2031 = arith.addf %2030, %2028 : vector<1x128xf32>
    %2032 = arith.subf %2031, %2026 : vector<1x128xf32>
    %cst_1003 = arith.constant 1.000000e+00 : f32
    %2033 = vector.broadcast %cst_1003 : f32 to vector<1x128xf32>
    %2034 = arith.cmpf ogt, %2032, %2033 : vector<1x128xf32>
    %2035 = arith.extui %2034 : vector<1x128xi1> to vector<1x128xi32>
    %2036 = arith.sitofp %2035 : vector<1x128xi32> to vector<1x128xf32>
    %c101_1004 = arith.constant 101 : index
    %c0_1005 = arith.constant 0 : index
    %2037 = vector.load %arg9[%c101_1004, %c0_1005] : memref<104x128xf32, #tpu.memory_space<vmem>>, vector<1x128xf32>
    tpu.vector_store %arg9[%c101_1004, %c0_1005], %2036 {strides = array<i32>} : memref<104x128xf32, #tpu.memory_space<vmem>>, vector<1x128xf32>,
    %c102_1006 = arith.constant 102 : index
    %c0_1007 = arith.constant 0 : index
    %2038 = vector.load %arg10[%c102_1006, %c0_1007] : memref<104x128xf32, #tpu.memory_space<vmem>>, vector<1x128xf32>
    %cst_1008 = arith.constant 0.899999976 : f32
    %2039 = vector.broadcast %cst_1008 : f32 to vector<1x128xf32>
    %2040 = arith.mulf %2039, %2032 : vector<1x128xf32>
    %2041 = arith.addf %2040, %2038 : vector<1x128xf32>
    %2042 = arith.subf %2041, %2036 : vector<1x128xf32>
    %cst_1009 = arith.constant 1.000000e+00 : f32
    %2043 = vector.broadcast %cst_1009 : f32 to vector<1x128xf32>
    %2044 = arith.cmpf ogt, %2042, %2043 : vector<1x128xf32>
    %2045 = arith.extui %2044 : vector<1x128xi1> to vector<1x128xi32>
    %2046 = arith.sitofp %2045 : vector<1x128xi32> to vector<1x128xf32>
    %c102_1010 = arith.constant 102 : index
    %c0_1011 = arith.constant 0 : index
    %2047 = vector.load %arg9[%c102_1010, %c0_1011] : memref<104x128xf32, #tpu.memory_space<vmem>>, vector<1x128xf32>
    tpu.vector_store %arg9[%c102_1010, %c0_1011], %2046 {strides = array<i32>} : memref<104x128xf32, #tpu.memory_space<vmem>>, vector<1x128xf32>,
    %c103_1012 = arith.constant 103 : index
    %c0_1013 = arith.constant 0 : index
    %2048 = vector.load %arg10[%c103_1012, %c0_1013] : memref<104x128xf32, #tpu.memory_space<vmem>>, vector<1x128xf32>
    %cst_1014 = arith.constant 0.899999976 : f32
    %2049 = vector.broadcast %cst_1014 : f32 to vector<1x128xf32>
    %2050 = arith.mulf %2049, %2042 : vector<1x128xf32>
    %2051 = arith.addf %2050, %2048 : vector<1x128xf32>
    %2052 = arith.subf %2051, %2046 : vector<1x128xf32>
    %cst_1015 = arith.constant 1.000000e+00 : f32
    %2053 = vector.broadcast %cst_1015 : f32 to vector<1x128xf32>
    %2054 = arith.cmpf ogt, %2052, %2053 : vector<1x128xf32>
    %2055 = arith.extui %2054 : vector<1x128xi1> to vector<1x128xi32>
    %2056 = arith.sitofp %2055 : vector<1x128xi32> to vector<1x128xf32>
    %c103_1016 = arith.constant 103 : index
    %c0_1017 = arith.constant 0 : index
    %2057 = vector.load %arg9[%c103_1016, %c0_1017] : memref<104x128xf32, #tpu.memory_space<vmem>>, vector<1x128xf32>
    tpu.vector_store %arg9[%c103_1016, %c0_1017], %2056 {strides = array<i32>} : memref<104x128xf32, #tpu.memory_space<vmem>>, vector<1x128xf32>,
    %c0_1018 = arith.constant 0 : index
    %c0_1019 = arith.constant 0 : index
    %2058 = vector.load %arg5[%c0_1018, %c0_1019] : memref<1x128xf32, #tpu.memory_space<vmem>>, vector<1x128xf32>
    %2059 = arith.mulf %2016, %2058 : vector<1x128xf32>
    %cst_1020 = arith.constant dense<0.000000e+00> : vector<1xf32>
    %2060 = vector.multi_reduction <add>, %2059, %cst_1020 [1] : vector<1x128xf32> to vector<1xf32>
    %2061 = vector.shape_cast %2060 : vector<1xf32> to vector<1x1xf32>
    %c0_1021 = arith.constant 0 : index
    %c0_1022 = arith.constant 0 : index
    %2062 = vector.load %arg6[%c0_1021, %c0_1022] : memref<1x128xf32, #tpu.memory_space<vmem>>, vector<1x128xf32>
    %2063 = vector.broadcast %2061 : vector<1x1xf32> to vector<1x128xf32>
    %2064 = arith.addf %2063, %2062 : vector<1x128xf32>
    %c0_1023 = arith.constant 0 : index
    %c0_1024 = arith.constant 0 : index
    %2065 = vector.load %arg7[%c0_1023, %c0_1024] : memref<1x128xf32, #tpu.memory_space<vmem>>, vector<1x128xf32>
    tpu.vector_store %arg7[%c0_1023, %c0_1024], %2064 {strides = array<i32>} : memref<1x128xf32, #tpu.memory_space<vmem>>, vector<1x128xf32>,
    return
  }
}

</mosaic_0001>

<bundles_post_ra>
// kernel: snn_forward.1
= control target key start
LH: loop header
LB: loop body
LE: loop exit
PB: predicated region body
PF: predicated region fallthrough
CT: control target
= control target key end

     0   :  { %15 = vsyncpa [#allocation6], 0  ;;  %s5254_s0 = inlined_call_operand.hbm [shape: f32[1,2], index: 0, kind: input, shape index: {}]   ;;  %s5255_s1 = inlined_call_operand.hbm [shape: f32[2,128], index: 1, kind: input, shape index: {}]   ;;  %s5256_s2 = inlined_call_operand.vmem [shape: f32[1,128], index: 2, kind: input, shape index: {}]   ;;  %s5257_s3 = inlined_call_operand.hbm [shape: f32[128,128], index: 3, kind: input, shape index: {}]   ;;  %s5258_s4 = inlined_call_operand.vmem [shape: f32[1,128], index: 4, kind: input, shape index: {}]   ;;  %s5259_s5 = inlined_call_operand.vmem [shape: f32[1,128], index: 5, kind: input, shape index: {}]   ;;  %s5260_s6 = inlined_call_operand.vmem [shape: f32[1,128], index: 6, kind: input, shape index: {}]   ;;  %s5261_s7 = inlined_call_operand.hbm [shape: f32[1,128], index: 7, kind: output, shape index: {0}]   ;;  %s5262_s8 = inlined_call_operand.vmem [shape: f32[104,128], index: 8, kind: output, shape index: {1}]   ;;  %s5263_s9 = inlined_call_operand.vmem [shape: f32[104,128], index: 9, kind: output, shape index: {2}]  }
   0x1   :  { %16 = vsyncpa [#allocation4], 0 }
   0x2   :  { %17 = vsyncpa [#allocation9], 0 }
   0x3   :  { %18 = vsyncpa [#allocation5], 0  ;;  %s3631_s30 = smov [#allocation3]   ;;  %s3632_s12 = smov [#allocation7]  }
   0x4   :  { %26 = dma.hbm_to_smem %s5254_s0, 16, %s3631_s30, [#allocation6]  }
   0x5   :  { %s33_s13 = sshll.u32 %s3632_s12, 4  ;;  %s3633_s14 = smov [#allocation8]   ;;  %s34_s13 = int_to_ptr.vmem [resolvable:$true] %s33_s13 }
   0x6   :  { %s44_s15 = sshll.u32 %s3633_s14, 4  ;;  %s3571_s16 = scalar_lea.vmem %s34_s13, 32  ;;  %s45_s15 = int_to_ptr.vmem [resolvable:$true] %s44_s15 }
   0x7   :  { %p3572_p0 = scmp.ne.s32.totalorder %s34_s13, %s3571_s16  ;;  %p3576_p1 = scmp.lt.s32.totalorder %s34_s13, %s34_s13 }
   0x8   :  { %p3577_p2 = scmp.lt.s32.totalorder %s3571_s16, %s3571_s16 }
   0xa   :  { %p3578_p3 = por %p3577_p2, %p3576_p1 }
   0xc   :  { %p3579_p4 = pnand %p3578_p3, %p3572_p0 }
   0xe   :  { %3582 = shalt.err (!%p3579_p4)
}
   0xf   :  { %36 = dma.hbm_to_vmem [thread:$0]  %s5255_s1, 32, %s34_s13, [#allocation4]  }
  0x10   :  { %s3591_s19 = scalar_lea.vmem %s45_s15, 2048  ;;  %p3596_p6 = scmp.lt.s32.totalorder %s45_s15, %s45_s15 }
  0x11   :  { %p3592_p5 = scmp.ne.s32.totalorder %s45_s15, %s3591_s19  ;;  %p3597_p7 = scmp.lt.s32.totalorder %s3591_s19, %s3591_s19 }
  0x13   :  { %p3598_p8 = por %p3597_p7, %p3596_p6 }
  0x15   :  { %p3599_p9 = pnand %p3598_p8, %p3592_p5 }
  0x17   :  { %3602 = shalt.err (!%p3599_p9)
}
  0x18   :  { %s3634_s0 = smov 128   ;;  %s3635_s20 = smov 8  }
  0x19   :  { %50 = dma.hbm_to_vmem [thread:$0]  %s5257_s3, 2048, %s45_s15, [#allocation9], %s3634_s0, %s3634_s0, %s3635_s20  }
  0x1a   :  { %3623 = dma.done.wait [#allocation6], 16  }
  0x1b   :  { %3624 = vsyncadd [#allocation6], 4294967280 }
  0x1c   :  { %3625 = dma.done.wait [#allocation4], 32  }
  0x1d   :  { %3626 = vsyncadd [#allocation4], 4294967264 }
  0x1e   :  { %3627 = dma.done.wait [#allocation9], 2048  }
  0x1f   :  { %3628 = vsyncadd [#allocation9], 4294965248 }
  0x20   :  { %66 = sfence }
  0x21   :  { %v3698_v0 = vld [vmem:[#allocation8 + $0x78] sm:$0xff]  ;;  %v3636_v1 = vmov 0.0   ;;  %v3701_v2 = vld [vmem:[#allocation8 + $0x70] sm:$0xff]  ;;  %vm3637_vm0 = vmmov 0   ;;  %s67_s1 = sld [smem:[#allocation3]]  ;;  %v3708_v3 = vld [vmem:[#allocation8 + $0x68] sm:$0xff] }
  0x22   :  { %3058 = vmatprep.subr.mxu0 %v3636_v1  ;;  %3090 = vmatprep.mubr.msk.f32.mxu0 %vm3637_vm0, %v3636_v1  ;;  %s2627_s3 = sld [smem:[#allocation3 + $0x1]]  ;;  %v3714_v4 = vld [vmem:[#allocation8 + $0x60] sm:$0xff]  ;;  %v68_v5 = vld [vmem:[#allocation7] sm:$0x1]  ;;  %v72_v6 = vld [vmem:[#allocation7 + $0x1] sm:$0x1] }
  0x23   :  { %3059 = vmatpush3.msra.mxu0 %v3698_v0  ;;  %3093 = vmatprep.subr.mxu1 %v3636_v1  ;;  %v3720_v7 = vld [vmem:[#allocation8 + $0x58] sm:$0xff]  ;;  %v3726_v11 = vld [vmem:[#allocation8 + $0x50] sm:$0xff]  ;;  %v3735_v14 = vld [vmem:[#allocation8 + $0x48] sm:$0xff]  ;;  %s3638_s20 = smov [#allocation10]  }
  0x24   :  { %3060 = vmatprep.subr.mxu0 %v3636_v1  ;;  %3094 = vmatpush3.msra.mxu1 %v3698_v0  ;;  %v76_v13 = vld [vmem:[%s5256_s2] sm:$0x1]  ;;  %v3741_v16 = vld [vmem:[#allocation8 + $0x40] sm:$0xff]  ;;  %v3749_v18 = vld [vmem:[#allocation8 + $0x38] sm:$0xff]  ;;  %s2608_s21 = sshll.u32 %s3638_s20, 4  ;;  %s2609_s21 = int_to_ptr.vmem [resolvable:$true] %s2608_s21 }
  0x25   :  { %3061 = vmatpush3.msra.mxu0 %v3701_v2  ;;  %3095 = vmatprep.subr.mxu1 %v3636_v1  ;;  %v3758_v21 = vld [vmem:[#allocation8 + $0x30] sm:$0xff]  ;;  %v3768_v23 = vld [vmem:[#allocation8 + $0x28] sm:$0xff]  ;;  %v3774_v25 = vld [vmem:[#allocation8 + $0x20] sm:$0xff]  ;;  %s3603_s22 = scalar_lea.vmem %s2609_s21, 16  ;;  %p3608_p11 = scmp.lt.s32.totalorder %s2609_s21, %s2609_s21 }
  0x26   :  { %3062 = vmatprep.subr.mxu0 %v3636_v1  ;;  %3096 = vmatpush3.msra.mxu1 %v3701_v2  ;;  %v3781_v28 = vld [vmem:[#allocation8 + $0x18] sm:$0xff]  ;;  %v3791_v30 = vld [vmem:[#allocation8 + $0x10] sm:$0xff]  ;;  %v3797_v32 = vld [vmem:[#allocation8 + $0x8] sm:$0xff]  ;;  %p3604_p10 = scmp.ne.s32.totalorder %s2609_s21, %s3603_s22 }
  0x27   :  { %3063 = vmatpush3.msra.mxu0 %v3708_v3  ;;  %3097 = vmatprep.subr.mxu1 %v3636_v1  ;;  %v69_v8 = vstv %s67_s1  ;;  %v3804_v35 = vld [vmem:[#allocation8] sm:$0xff]  ;;  %s3607_s1 = scalar_lea.vmem %s2609_s21, 32 }
  0x28   :  { %3064 = vmatprep.subr.mxu0 %v3636_v1  ;;  %3098 = vmatpush3.msra.mxu1 %v3708_v3  ;;  %v70_v9 = vmul.f32 %v69_v8, %v68_v5  ;;  %v73_v10 = vstv %s2627_s3  ;;  %p3609_p12 = scmp.lt.s32.totalorder %s3607_s1, %s3603_s22 }
  0x29   :  { %3065 = vmatpush3.msra.mxu0 %v3714_v4  ;;  %3099 = vmatprep.subr.mxu1 %v3636_v1  ;;  %v74_v12 = vmul.f32 %v73_v10, %v72_v6 }
  0x2a   :  { %3066 = vmatprep.subr.mxu0 %v3636_v1  ;;  %3100 = vmatpush3.msra.mxu1 %v3714_v4  ;;  %p3610_p13 = por %p3609_p12, %p3608_p11 }
  0x2b   :  { %3067 = vmatpush3.msra.mxu0 %v3720_v7  ;;  %3101 = vmatprep.subr.mxu1 %v3636_v1  ;;  %v75_v15 = vadd.f32 %v74_v12, %v70_v9 }
  0x2c   :  { %3068 = vmatprep.subr.mxu0 %v3636_v1  ;;  %3102 = vmatpush3.msra.mxu1 %v3720_v7  ;;  %p3611_p0 = pnand %p3610_p13, %p3604_p10 }
  0x2d   :  { %3069 = vmatpush3.msra.mxu0 %v3726_v11  ;;  %3103 = vmatprep.subr.mxu1 %v3636_v1  ;;  %v3743_v17 = vadd.f32 %v76_v13, %v75_v15 }
  0x2e   :  { %3070 = vmatprep.subr.mxu0 %v3636_v1  ;;  %3104 = vmatpush3.msra.mxu1 %v3726_v11 }
  0x2f   :  { %3071 = vmatpush3.msra.mxu0 %v3735_v14  ;;  %3105 = vmatprep.subr.mxu1 %v3636_v1  ;;  %vm96_vm1 = vcmp.gt.f32.partialorder %v3743_v17, 1.0  ;;  %v100_v19 = vmul.f32 0.9, %v3743_v17 }
  0x30   :  { %3072 = vmatprep.subr.mxu0 %v3636_v1  ;;  %3106 = vmatpush3.msra.mxu1 %v3735_v14  ;;  %v2628_v20 = vsel %vm96_vm1, 1.0, %v3636_v1 }
  0x31   :  { %3073 = vmatpush3.msra.mxu0 %v3741_v16  ;;  %3107 = vmatprep.subr.mxu1 %v3636_v1  ;;  %99 = vst [vmem:[%s5262_s8] sm:$0x1] %v2628_v20  ;;  %v101_v22 = vadd.f32 %v100_v19, %v3743_v17 }
  0x32   :  { %3074 = vmatprep.subr.mxu0 %v3636_v1  ;;  %3108 = vmatpush3.msra.mxu1 %v3741_v16 }
  0x33   :  { %3075 = vmatpush3.msra.mxu0 %v3749_v18  ;;  %3109 = vmatprep.subr.mxu1 %v3636_v1  ;;  %v102_v24 = vsub.f32 %v101_v22, %v2628_v20 }
  0x34   :  { %3076 = vmatprep.subr.mxu0 %v3636_v1  ;;  %3110 = vmatpush3.msra.mxu1 %v3749_v18 }
  0x35   :  { %3077 = vmatpush3.msra.mxu0 %v3758_v21  ;;  %3111 = vmatprep.subr.mxu1 %v3636_v1  ;;  %vm103_vm2 = vcmp.gt.f32.partialorder %v102_v24, 1.0  ;;  %v107_v26 = vmul.f32 0.9, %v102_v24 }
  0x36   :  { %3078 = vmatprep.subr.mxu0 %v3636_v1  ;;  %3112 = vmatpush3.msra.mxu1 %v3758_v21  ;;  %v2629_v27 = vsel %vm103_vm2, 1.0, %v3636_v1 }
  0x37   :  { %3079 = vmatpush3.msra.mxu0 %v3768_v23  ;;  %3113 = vmatprep.subr.mxu1 %v3636_v1  ;;  %106 = vst [vmem:[%s5262_s8 + $0x1] sm:$0x1] %v2629_v27  ;;  %v108_v29 = vadd.f32 %v107_v26, %v3743_v17 }
  0x38   :  { %3080 = vmatprep.subr.mxu0 %v3636_v1  ;;  %3114 = vmatpush3.msra.mxu1 %v3768_v23 }
  0x39   :  { %3081 = vmatpush3.msra.mxu0 %v3774_v25  ;;  %3115 = vmatprep.subr.mxu1 %v3636_v1  ;;  %v109_v31 = vsub.f32 %v108_v29, %v2629_v27 }
  0x3a   :  { %3082 = vmatprep.subr.mxu0 %v3636_v1  ;;  %3116 = vmatpush3.msra.mxu1 %v3774_v25 }
  0x3b   :  { %3083 = vmatpush3.msra.mxu0 %v3781_v28  ;;  %3117 = vmatprep.subr.mxu1 %v3636_v1  ;;  %vm110_vm3 = vcmp.gt.f32.partialorder %v109_v31, 1.0  ;;  %v114_v33 = vmul.f32 0.9, %v109_v31 }
  0x3c   :  { %3084 = vmatprep.subr.mxu0 %v3636_v1  ;;  %3118 = vmatpush3.msra.mxu1 %v3781_v28  ;;  %v2630_v34 = vsel %vm110_vm3, 1.0, %v3636_v1 }
  0x3d   :  { %3085 = vmatpush3.msra.mxu0 %v3791_v30  ;;  %3119 = vmatprep.subr.mxu1 %v3636_v1  ;;  %113 = vst [vmem:[%s5262_s8 + $0x2] sm:$0x1] %v2630_v34  ;;  %v115_v36 = vadd.f32 %v114_v33, %v3743_v17 }
  0x3e   :  { %3086 = vmatprep.subr.mxu0 %v3636_v1  ;;  %3120 = vmatpush3.msra.mxu1 %v3791_v30 }
  0x3f   :  { %3087 = vmatpush3.msra.mxu0 %v3797_v32  ;;  %3121 = vmatprep.subr.mxu1 %v3636_v1  ;;  %v116_v37 = vsub.f32 %v115_v36, %v2630_v34 }
  0x40   :  { %3088 = vmatprep.subr.mxu0 %v3636_v1  ;;  %3122 = vmatpush3.msra.mxu1 %v3797_v32 }
  0x41   :  { %3089 = vmatpush3.msra.mxu0 %v3804_v35  ;;  %3123 = vmatprep.subr.mxu1 %v3636_v1  ;;  %vm117_vm4 = vcmp.gt.f32.partialorder %v116_v37, 1.0  ;;  %v121_v38 = vmul.f32 0.9, %v116_v37 }
  0x42   :  { %3124 = vmatpush3.msra.mxu1 %v3804_v35  ;;  %3125 = vmatprep.mubr.msk.f32.mxu1 %vm3637_vm0, %v3636_v1  ;;  %v2631_v39 = vsel %vm117_vm4, 1.0, %v3636_v1 }
  0x43   :  { %3128 = vmatprep.subr.mxu0 %v3636_v1  ;;  %3163 = vmatprep.subr.mxu1 %v3636_v1  ;;  %120 = vst [vmem:[%s5262_s8 + $0x3] sm:$0x1] %v2631_v39  ;;  %v122_v40 = vadd.f32 %v121_v38, %v3743_v17 }
  0x45   :  { %v123_v41 = vsub.f32 %v122_v40, %v2631_v39 }
  0x47   :  { %vm124_vm5 = vcmp.gt.f32.partialorder %v123_v41, 1.0  ;;  %v128_v42 = vmul.f32 0.9, %v123_v41 }
  0x48   :  { %v2632_v43 = vsel %vm124_vm5, 1.0, %v3636_v1 }
  0x49   :  { %127 = vst [vmem:[%s5262_s8 + $0x4] sm:$0x1] %v2632_v43  ;;  %v129_v44 = vadd.f32 %v128_v42, %v3743_v17 }
  0x4b   :  { %v130_v45 = vsub.f32 %v129_v44, %v2632_v43 }
  0x4d   :  { %vm131_vm6 = vcmp.gt.f32.partialorder %v130_v45, 1.0  ;;  %v135_v46 = vmul.f32 0.9, %v130_v45 }
  0x4e   :  { %v2633_v47 = vsel %vm131_vm6, 1.0, %v3636_v1 }
  0x4f   :  { %134 = vst [vmem:[%s5262_s8 + $0x5] sm:$0x1] %v2633_v47  ;;  %v136_v48 = vadd.f32 %v135_v46, %v3743_v17 }
  0x51   :  { %v137_v49 = vsub.f32 %v136_v48, %v2633_v47 }
  0x53   :  { %vm138_vm7 = vcmp.gt.f32.partialorder %v137_v49, 1.0  ;;  %v142_v50 = vmul.f32 0.9, %v137_v49 }
  0x54   :  { %v2634_v51 = vsel %vm138_vm7, 1.0, %v3636_v1 }
  0x55   :  { %141 = vst [vmem:[%s5262_s8 + $0x6] sm:$0x1] %v2634_v51  ;;  %v143_v52 = vadd.f32 %v142_v50, %v3743_v17 }
  0x57   :  { %v144_v53 = vsub.f32 %v143_v52, %v2634_v51 }
  0x59   :  { %vm145_vm8 = vcmp.gt.f32.partialorder %v144_v53, 1.0  ;;  %v227_v54 = vmul.f32 0.9, %v144_v53 }
  0x5a   :  { %v2635_v55 = vsel %vm145_vm8, 1.0, %v3636_v1 }
  0x5b   :  { %148 = vst [vmem:[%s5262_s8 + $0x7] sm:$0x1] %v2635_v55  ;;  %v228_v56 = vadd.f32 %v227_v54, %v3743_v17 }
  0x5d   :  { %v229_v57 = vsub.f32 %v228_v56, %v2635_v55 }
  0x5f   :  { %v234_v58 = vmul.f32 0.9, %v229_v57  ;;  %vm230_vm9 = vcmp.gt.f32.partialorder %v229_v57, 1.0 }
  0x60   :  { %v2637_v59 = vsel %vm230_vm9, 1.0, %v3636_v1 }
  0x61   :  { %233 = vst [vmem:[%s5262_s8 + $0x8] sm:$0x1] %v2637_v59  ;;  %v235_v60 = vadd.f32 %v234_v58, %v3743_v17 }
  0x62   :  { %v149_v61 = vld [vmem:[%s5262_s8] sm:$0xff] }
  0x63   :  { %3091 = vmatmul.mubr.f32.vlgmr.msra.gmra.mxu0 %v149_v61  ;;  %v236_v62 = vsub.f32 %v235_v60, %v2637_v59 }
  0x64   :  { %3129 = vmatpush3.msra.mxu0 %v3698_v0  ;;  %3160 = vmatprep.mubr.msk.f32.mxu0 %vm3637_vm0, %v3636_v1 }
  0x65   :  { %vm237_vm10 = vcmp.gt.f32.partialorder %v236_v62, 1.0  ;;  %v241_v63 = vmul.f32 0.9, %v236_v62  ;;  %3130 = vmatprep.subr.mxu0 %v3636_v1 }
  0x66   :  { %v2638_v5 = vsel %vm237_vm10, 1.0, %v3636_v1  ;;  %3131 = vmatpush3.msra.mxu0 %v3701_v2 }
  0x67   :  { %240 = vst [vmem:[%s5262_s8 + $0x9] sm:$0x1] %v2638_v5  ;;  %v242_v6 = vadd.f32 %v241_v63, %v3743_v17  ;;  %3132 = vmatprep.subr.mxu0 %v3636_v1 }
  0x68   :  { %3133 = vmatpush3.msra.mxu0 %v3708_v3 }
  0x69   :  { %v243_v8 = vsub.f32 %v242_v6, %v2638_v5  ;;  %3134 = vmatprep.subr.mxu0 %v3636_v1 }
  0x6a   :  { %3135 = vmatpush3.msra.mxu0 %v3714_v4 }
  0x6b   :  { %vm244_vm11 = vcmp.gt.f32.partialorder %v243_v8, 1.0  ;;  %v248_v9 = vmul.f32 0.9, %v243_v8  ;;  %3136 = vmatprep.subr.mxu0 %v3636_v1 }
  0x6c   :  { %v2639_v10 = vsel %vm244_vm11, 1.0, %v3636_v1  ;;  %3137 = vmatpush3.msra.mxu0 %v3720_v7 }
  0x6d   :  { %247 = vst [vmem:[%s5262_s8 + $0xa] sm:$0x1] %v2639_v10  ;;  %v249_v12 = vadd.f32 %v248_v9, %v3743_v17  ;;  %3138 = vmatprep.subr.mxu0 %v3636_v1 }
  0x6e   :  { %3139 = vmatpush3.msra.mxu0 %v3726_v11 }
  0x6f   :  { %v250_v13 = vsub.f32 %v249_v12, %v2639_v10  ;;  %3140 = vmatprep.subr.mxu0 %v3636_v1 }
  0x70   :  { %3141 = vmatpush3.msra.mxu0 %v3735_v14 }
  0x71   :  { %vm251_vm12 = vcmp.gt.f32.partialorder %v250_v13, 1.0  ;;  %v255_v15 = vmul.f32 0.9, %v250_v13  ;;  %3142 = vmatprep.subr.mxu0 %v3636_v1 }
  0x72   :  { %v2640_v19 = vsel %vm251_vm12, 1.0, %v3636_v1  ;;  %3143 = vmatpush3.msra.mxu0 %v3741_v16 }
  0x73   :  { %254 = vst [vmem:[%s5262_s8 + $0xb] sm:$0x1] %v2640_v19  ;;  %v256_v20 = vadd.f32 %v255_v15, %v3743_v17  ;;  %3144 = vmatprep.subr.mxu0 %v3636_v1 }
  0x74   :  { %3145 = vmatpush3.msra.mxu0 %v3749_v18 }
  0x75   :  { %v257_v22 = vsub.f32 %v256_v20, %v2640_v19  ;;  %3146 = vmatprep.subr.mxu0 %v3636_v1 }
  0x76   :  { %3147 = vmatpush3.msra.mxu0 %v3758_v21 }
  0x77   :  { %vm258_vm13 = vcmp.gt.f32.partialorder %v257_v22, 1.0  ;;  %v262_v24 = vmul.f32 0.9, %v257_v22  ;;  %3148 = vmatprep.subr.mxu0 %v3636_v1 }
  0x78   :  { %v2641_v26 = vsel %vm258_vm13, 1.0, %v3636_v1  ;;  %3149 = vmatpush3.msra.mxu0 %v3768_v23 }
  0x79   :  { %261 = vst [vmem:[%s5262_s8 + $0xc] sm:$0x1] %v2641_v26  ;;  %v263_v27 = vadd.f32 %v262_v24, %v3743_v17  ;;  %3150 = vmatprep.subr.mxu0 %v3636_v1 }
  0x7a   :  { %3151 = vmatpush3.msra.mxu0 %v3774_v25 }
  0x7b   :  { %v264_v29 = vsub.f32 %v263_v27, %v2641_v26  ;;  %3152 = vmatprep.subr.mxu0 %v3636_v1 }
  0x7c   :  { %3153 = vmatpush3.msra.mxu0 %v3781_v28 }
  0x7d   :  { %vm265_vm14 = vcmp.gt.f32.partialorder %v264_v29, 1.0  ;;  %v269_v31 = vmul.f32 0.9, %v264_v29  ;;  %3154 = vmatprep.subr.mxu0 %v3636_v1 }
  0x7e   :  { %v2642_v33 = vsel %vm265_vm14, 1.0, %v3636_v1  ;;  %3155 = vmatpush3.msra.mxu0 %v3791_v30 }
  0x7f   :  { %268 = vst [vmem:[%s5262_s8 + $0xd] sm:$0x1] %v2642_v33  ;;  %v270_v34 = vadd.f32 %v269_v31, %v3743_v17  ;;  %3156 = vmatprep.subr.mxu0 %v3636_v1 }
  0x80   :  { %3157 = vmatpush3.msra.mxu0 %v3797_v32 }
  0x81   :  { %v271_v36 = vsub.f32 %v270_v34, %v2642_v33  ;;  %3158 = vmatprep.subr.mxu0 %v3636_v1 }
  0x82   :  { %3159 = vmatpush3.msra.mxu0 %v3804_v35 }
  0x83   :  { %vm272_vm15 = vcmp.gt.f32.partialorder %v271_v36, 1.0  ;;  %v276_v37 = vmul.f32 0.9, %v271_v36  ;;  %3198 = vmatprep.subr.mxu0 %v3636_v1 }
  0x84   :  { %v2643_v38 = vsel %vm272_vm15, 1.0, %v3636_v1 }
  0x85   :  { %275 = vst [vmem:[%s5262_s8 + $0xe] sm:$0x1] %v2643_v38  ;;  %v277_v39 = vadd.f32 %v276_v37, %v3743_v17 }
  0x87   :  { %v278_v40 = vsub.f32 %v277_v39, %v2643_v38 }
  0x89   :  { %vm279_vm1 = vcmp.gt.f32.partialorder %v278_v40, 1.0  ;;  %v417_v41 = vmul.f32 0.9, %v278_v40 }
  0x8a   :  { %v2644_v42 = vsel %vm279_vm1, 1.0, %v3636_v1 }
  0x8b   :  { %282 = vst [vmem:[%s5262_s8 + $0xf] sm:$0x1] %v2644_v42  ;;  %v418_v43 = vadd.f32 %v417_v41, %v3743_v17 }
  0x8d   :  { %v419_v44 = vsub.f32 %v418_v43, %v2644_v42 }
  0x8f   :  { %v424_v45 = vmul.f32 0.9, %v419_v44  ;;  %vm420_vm2 = vcmp.gt.f32.partialorder %v419_v44, 1.0 }
  0x90   :  { %v2653_v46 = vsel %vm420_vm2, 1.0, %v3636_v1 }
  0x91   :  { %423 = vst [vmem:[%s5262_s8 + $0x10] sm:$0x1] %v2653_v46  ;;  %v425_v47 = vadd.f32 %v424_v45, %v3743_v17 }
  0x92   :  { %v283_v48 = vld [vmem:[%s5262_s8 + $0x8] sm:$0xff] }
  0x93   :  { %3126 = vmatmul.mubr.f32.vlgmr.msra.gmra.mxu1 %v283_v48  ;;  %v426_v49 = vsub.f32 %v425_v47, %v2653_v46 }
  0x94   :  { %3164 = vmatpush3.msra.mxu1 %v3698_v0  ;;  %3195 = vmatprep.mubr.msk.f32.mxu1 %vm3637_vm0, %v3636_v1 }
  0x95   :  { %vm427_vm3 = vcmp.gt.f32.partialorder %v426_v49, 1.0  ;;  %v431_v50 = vmul.f32 0.9, %v426_v49  ;;  %3165 = vmatprep.subr.mxu1 %v3636_v1 }
  0x96   :  { %v2654_v51 = vsel %vm427_vm3, 1.0, %v3636_v1  ;;  %3166 = vmatpush3.msra.mxu1 %v3701_v2 }
  0x97   :  { %430 = vst [vmem:[%s5262_s8 + $0x11] sm:$0x1] %v2654_v51  ;;  %v432_v52 = vadd.f32 %v431_v50, %v3743_v17  ;;  %3167 = vmatprep.subr.mxu1 %v3636_v1 }
  0x98   :  { %3168 = vmatpush3.msra.mxu1 %v3708_v3 }
  0x99   :  { %v433_v53 = vsub.f32 %v432_v52, %v2654_v51  ;;  %3169 = vmatprep.subr.mxu1 %v3636_v1 }
  0x9a   :  { %3170 = vmatpush3.msra.mxu1 %v3714_v4 }
  0x9b   :  { %vm434_vm4 = vcmp.gt.f32.partialorder %v433_v53, 1.0  ;;  %v438_v54 = vmul.f32 0.9, %v433_v53  ;;  %3171 = vmatprep.subr.mxu1 %v3636_v1 }
  0x9c   :  { %v2655_v55 = vsel %vm434_vm4, 1.0, %v3636_v1  ;;  %3172 = vmatpush3.msra.mxu1 %v3720_v7 }
  0x9d   :  { %437 = vst [vmem:[%s5262_s8 + $0x12] sm:$0x1] %v2655_v55  ;;  %v439_v56 = vadd.f32 %v438_v54, %v3743_v17  ;;  %3173 = vmatprep.subr.mxu1 %v3636_v1 }
  0x9e   :  { %3174 = vmatpush3.msra.mxu1 %v3726_v11 }
  0x9f   :  { %v440_v57 = vsub.f32 %v439_v56, %v2655_v55  ;;  %3175 = vmatprep.subr.mxu1 %v3636_v1 }
  0xa0   :  { %3176 = vmatpush3.msra.mxu1 %v3735_v14 }
  0xa1   :  { %vm441_vm5 = vcmp.gt.f32.partialorder %v440_v57, 1.0  ;;  %v445_v58 = vmul.f32 0.9, %v440_v57  ;;  %3177 = vmatprep.subr.mxu1 %v3636_v1 }
  0xa2   :  { %v2656_v59 = vsel %vm441_vm5, 1.0, %v3636_v1  ;;  %3178 = vmatpush3.msra.mxu1 %v3741_v16 }
  0xa3   :  { %444 = vst [vmem:[%s5262_s8 + $0x13] sm:$0x1] %v2656_v59  ;;  %v446_v60 = vadd.f32 %v445_v58, %v3743_v17  ;;  %3179 = vmatprep.subr.mxu1 %v3636_v1 }
  0xa4   :  { %3180 = vmatpush3.msra.mxu1 %v3749_v18 }
  0xa5   :  { %v447_v61 = vsub.f32 %v446_v60, %v2656_v59  ;;  %3181 = vmatprep.subr.mxu1 %v3636_v1 }
  0xa6   :  { %3182 = vmatpush3.msra.mxu1 %v3758_v21 }
  0xa7   :  { %vm448_vm6 = vcmp.gt.f32.partialorder %v447_v61, 1.0  ;;  %v452_v62 = vmul.f32 0.9, %v447_v61  ;;  %3183 = vmatprep.subr.mxu1 %v3636_v1 }
  0xa8   :  { %v2657_v63 = vsel %vm448_vm6, 1.0, %v3636_v1  ;;  %3184 = vmatpush3.msra.mxu1 %v3768_v23 }
  0xa9   :  { %451 = vst [vmem:[%s5262_s8 + $0x14] sm:$0x1] %v2657_v63  ;;  %v453_v5 = vadd.f32 %v452_v62, %v3743_v17  ;;  %3185 = vmatprep.subr.mxu1 %v3636_v1 }
  0xaa   :  { %3186 = vmatpush3.msra.mxu1 %v3774_v25 }
  0xab   :  { %v454_v6 = vsub.f32 %v453_v5, %v2657_v63  ;;  %3187 = vmatprep.subr.mxu1 %v3636_v1 }
  0xac   :  { %3188 = vmatpush3.msra.mxu1 %v3781_v28 }
  0xad   :  { %vm455_vm7 = vcmp.gt.f32.partialorder %v454_v6, 1.0  ;;  %v459_v8 = vmul.f32 0.9, %v454_v6  ;;  %3189 = vmatprep.subr.mxu1 %v3636_v1 }
  0xae   :  { %v2658_v9 = vsel %vm455_vm7, 1.0, %v3636_v1  ;;  %3190 = vmatpush3.msra.mxu1 %v3791_v30 }
  0xaf   :  { %458 = vst [vmem:[%s5262_s8 + $0x15] sm:$0x1] %v2658_v9  ;;  %v460_v10 = vadd.f32 %v459_v8, %v3743_v17  ;;  %3191 = vmatprep.subr.mxu1 %v3636_v1 }
  0xb0   :  { %3192 = vmatpush3.msra.mxu1 %v3797_v32 }
  0xb1   :  { %v461_v12 = vsub.f32 %v460_v10, %v2658_v9  ;;  %3193 = vmatprep.subr.mxu1 %v3636_v1 }
  0xb2   :  { %3194 = vmatpush3.msra.mxu1 %v3804_v35 }
  0xb3   :  { %vm462_vm8 = vcmp.gt.f32.partialorder %v461_v12, 1.0  ;;  %v466_v13 = vmul.f32 0.9, %v461_v12  ;;  %3233 = vmatprep.subr.mxu1 %v3636_v1 }
  0xb4   :  { %v2659_v15 = vsel %vm462_vm8, 1.0, %v3636_v1 }
  0xb5   :  { %465 = vst [vmem:[%s5262_s8 + $0x16] sm:$0x1] %v2659_v15  ;;  %v467_v19 = vadd.f32 %v466_v13, %v3743_v17 }
  0xb7   :  { %v468_v20 = vsub.f32 %v467_v19, %v2659_v15 }
  0xb9   :  { %vm469_vm9 = vcmp.gt.f32.partialorder %v468_v20, 1.0  ;;  %v609_v22 = vmul.f32 0.9, %v468_v20 }
  0xba   :  { %v2660_v24 = vsel %vm469_vm9, 1.0, %v3636_v1 }
  0xbb   :  { %472 = vst [vmem:[%s5262_s8 + $0x17] sm:$0x1] %v2660_v24  ;;  %v610_v26 = vadd.f32 %v609_v22, %v3743_v17 }
  0xbd   :  { %v611_v27 = vsub.f32 %v610_v26, %v2660_v24 }
  0xbf   :  { %v616_v29 = vmul.f32 0.9, %v611_v27  ;;  %vm612_vm10 = vcmp.gt.f32.partialorder %v611_v27, 1.0 }
  0xc0   :  { %v2669_v31 = vsel %vm612_vm10, 1.0, %v3636_v1 }
  0xc1   :  { %615 = vst [vmem:[%s5262_s8 + $0x18] sm:$0x1] %v2669_v31  ;;  %v617_v33 = vadd.f32 %v616_v29, %v3743_v17 }
  0xc2   :  { %v473_v34 = vld [vmem:[%s5262_s8 + $0x10] sm:$0xff] }
  0xc3   :  { %3161 = vmatmul.mubr.f32.vlgmr.msra.gmra.mxu0 %v473_v34  ;;  %v618_v36 = vsub.f32 %v617_v33, %v2669_v31 }
  0xc4   :  { %3199 = vmatpush3.msra.mxu0 %v3698_v0  ;;  %3230 = vmatprep.mubr.msk.f32.mxu0 %vm3637_vm0, %v3636_v1 }
  0xc5   :  { %vm619_vm11 = vcmp.gt.f32.partialorder %v618_v36, 1.0  ;;  %v623_v37 = vmul.f32 0.9, %v618_v36  ;;  %3200 = vmatprep.subr.mxu0 %v3636_v1 }
  0xc6   :  { %v2670_v38 = vsel %vm619_vm11, 1.0, %v3636_v1  ;;  %3201 = vmatpush3.msra.mxu0 %v3701_v2 }
  0xc7   :  { %622 = vst [vmem:[%s5262_s8 + $0x19] sm:$0x1] %v2670_v38  ;;  %v624_v39 = vadd.f32 %v623_v37, %v3743_v17  ;;  %3202 = vmatprep.subr.mxu0 %v3636_v1 }
  0xc8   :  { %3203 = vmatpush3.msra.mxu0 %v3708_v3 }
  0xc9   :  { %v625_v40 = vsub.f32 %v624_v39, %v2670_v38  ;;  %3204 = vmatprep.subr.mxu0 %v3636_v1 }
  0xca   :  { %3205 = vmatpush3.msra.mxu0 %v3714_v4 }
  0xcb   :  { %vm626_vm12 = vcmp.gt.f32.partialorder %v625_v40, 1.0  ;;  %v630_v41 = vmul.f32 0.9, %v625_v40  ;;  %3206 = vmatprep.subr.mxu0 %v3636_v1 }
  0xcc   :  { %v2671_v42 = vsel %vm626_vm12, 1.0, %v3636_v1  ;;  %3207 = vmatpush3.msra.mxu0 %v3720_v7 }
  0xcd   :  { %629 = vst [vmem:[%s5262_s8 + $0x1a] sm:$0x1] %v2671_v42  ;;  %v631_v43 = vadd.f32 %v630_v41, %v3743_v17  ;;  %3208 = vmatprep.subr.mxu0 %v3636_v1 }
  0xce   :  { %3209 = vmatpush3.msra.mxu0 %v3726_v11 }
  0xcf   :  { %v632_v44 = vsub.f32 %v631_v43, %v2671_v42  ;;  %3210 = vmatprep.subr.mxu0 %v3636_v1 }
  0xd0   :  { %3211 = vmatpush3.msra.mxu0 %v3735_v14 }
  0xd1   :  { %vm633_vm13 = vcmp.gt.f32.partialorder %v632_v44, 1.0  ;;  %v637_v45 = vmul.f32 0.9, %v632_v44  ;;  %3212 = vmatprep.subr.mxu0 %v3636_v1 }
  0xd2   :  { %v2672_v46 = vsel %vm633_vm13, 1.0, %v3636_v1  ;;  %3213 = vmatpush3.msra.mxu0 %v3741_v16 }
  0xd3   :  { %636 = vst [vmem:[%s5262_s8 + $0x1b] sm:$0x1] %v2672_v46  ;;  %v638_v47 = vadd.f32 %v637_v45, %v3743_v17  ;;  %3214 = vmatprep.subr.mxu0 %v3636_v1 }
  0xd4   :  { %3215 = vmatpush3.msra.mxu0 %v3749_v18 }
  0xd5   :  { %v639_v48 = vsub.f32 %v638_v47, %v2672_v46  ;;  %3216 = vmatprep.subr.mxu0 %v3636_v1 }
  0xd6   :  { %3217 = vmatpush3.msra.mxu0 %v3758_v21 }
  0xd7   :  { %vm640_vm14 = vcmp.gt.f32.partialorder %v639_v48, 1.0  ;;  %v644_v49 = vmul.f32 0.9, %v639_v48  ;;  %3218 = vmatprep.subr.mxu0 %v3636_v1 }
  0xd8   :  { %v2673_v50 = vsel %vm640_vm14, 1.0, %v3636_v1  ;;  %3219 = vmatpush3.msra.mxu0 %v3768_v23 }
  0xd9   :  { %643 = vst [vmem:[%s5262_s8 + $0x1c] sm:$0x1] %v2673_v50  ;;  %v645_v51 = vadd.f32 %v644_v49, %v3743_v17  ;;  %3220 = vmatprep.subr.mxu0 %v3636_v1 }
  0xda   :  { %3221 = vmatpush3.msra.mxu0 %v3774_v25 }
  0xdb   :  { %v646_v52 = vsub.f32 %v645_v51, %v2673_v50  ;;  %3222 = vmatprep.subr.mxu0 %v3636_v1 }
  0xdc   :  { %3223 = vmatpush3.msra.mxu0 %v3781_v28 }
  0xdd   :  { %vm647_vm15 = vcmp.gt.f32.partialorder %v646_v52, 1.0  ;;  %v651_v53 = vmul.f32 0.9, %v646_v52  ;;  %3224 = vmatprep.subr.mxu0 %v3636_v1 }
  0xde   :  { %v2674_v54 = vsel %vm647_vm15, 1.0, %v3636_v1  ;;  %3225 = vmatpush3.msra.mxu0 %v3791_v30 }
  0xdf   :  { %650 = vst [vmem:[%s5262_s8 + $0x1d] sm:$0x1] %v2674_v54  ;;  %v652_v55 = vadd.f32 %v651_v53, %v3743_v17  ;;  %3226 = vmatprep.subr.mxu0 %v3636_v1 }
  0xe0   :  { %3227 = vmatpush3.msra.mxu0 %v3797_v32 }
  0xe1   :  { %v653_v56 = vsub.f32 %v652_v55, %v2674_v54  ;;  %3228 = vmatprep.subr.mxu0 %v3636_v1  ;;  %v4159_v54 = vld [vmem:[%s5258_s4] ss:$0 sm:$0xff] }
  0xe2   :  { %3229 = vmatpush3.msra.mxu0 %v3804_v35 }
  0xe3   :  { %vm654_vm1 = vcmp.gt.f32.partialorder %v653_v56, 1.0  ;;  %v658_v57 = vmul.f32 0.9, %v653_v56  ;;  %3268 = vmatprep.subr.mxu0 %v3636_v1 }
  0xe4   :  { %v2675_v58 = vsel %vm654_vm1, 1.0, %v3636_v1 }
  0xe5   :  { %657 = vst [vmem:[%s5262_s8 + $0x1e] sm:$0x1] %v2675_v58  ;;  %v659_v59 = vadd.f32 %v658_v57, %v3743_v17 }
  0xe7   :  { %v660_v60 = vsub.f32 %v659_v59, %v2675_v58 }
  0xe9   :  { %vm661_vm2 = vcmp.gt.f32.partialorder %v660_v60, 1.0  ;;  %v801_v61 = vmul.f32 0.9, %v660_v60 }
  0xea   :  { %v2676_v62 = vsel %vm661_vm2, 1.0, %v3636_v1 }
  0xeb   :  { %664 = vst [vmem:[%s5262_s8 + $0x1f] sm:$0x1] %v2676_v62  ;;  %v802_v63 = vadd.f32 %v801_v61, %v3743_v17 }
  0xed   :  { %v803_v5 = vsub.f32 %v802_v63, %v2676_v62 }
  0xef   :  { %v808_v6 = vmul.f32 0.9, %v803_v5  ;;  %vm804_vm3 = vcmp.gt.f32.partialorder %v803_v5, 1.0 }
  0xf0   :  { %v2685_v8 = vsel %vm804_vm3, 1.0, %v3636_v1 }
  0xf1   :  { %807 = vst [vmem:[%s5262_s8 + $0x20] sm:$0x1] %v2685_v8  ;;  %v809_v9 = vadd.f32 %v808_v6, %v3743_v17 }
  0xf2   :  { %v665_v10 = vld [vmem:[%s5262_s8 + $0x18] sm:$0xff] }
  0xf3   :  { %3196 = vmatmul.mubr.f32.vlgmr.msra.gmra.mxu1 %v665_v10  ;;  %v810_v12 = vsub.f32 %v809_v9, %v2685_v8 }
  0xf4   :  { %3234 = vmatpush3.msra.mxu1 %v3698_v0  ;;  %3265 = vmatprep.mubr.msk.f32.mxu1 %vm3637_vm0, %v3636_v1 }
  0xf5   :  { %vm811_vm4 = vcmp.gt.f32.partialorder %v810_v12, 1.0  ;;  %v815_v13 = vmul.f32 0.9, %v810_v12  ;;  %3235 = vmatprep.subr.mxu1 %v3636_v1 }
  0xf6   :  { %v2686_v15 = vsel %vm811_vm4, 1.0, %v3636_v1  ;;  %3236 = vmatpush3.msra.mxu1 %v3701_v2 }
  0xf7   :  { %814 = vst [vmem:[%s5262_s8 + $0x21] sm:$0x1] %v2686_v15  ;;  %v816_v19 = vadd.f32 %v815_v13, %v3743_v17  ;;  %3237 = vmatprep.subr.mxu1 %v3636_v1 }
  0xf8   :  { %3238 = vmatpush3.msra.mxu1 %v3708_v3 }
  0xf9   :  { %v817_v20 = vsub.f32 %v816_v19, %v2686_v15  ;;  %3239 = vmatprep.subr.mxu1 %v3636_v1 }
  0xfa   :  { %3240 = vmatpush3.msra.mxu1 %v3714_v4 }
  0xfb   :  { %vm818_vm5 = vcmp.gt.f32.partialorder %v817_v20, 1.0  ;;  %v822_v22 = vmul.f32 0.9, %v817_v20  ;;  %3241 = vmatprep.subr.mxu1 %v3636_v1 }
  0xfc   :  { %v2687_v24 = vsel %vm818_vm5, 1.0, %v3636_v1  ;;  %3242 = vmatpush3.msra.mxu1 %v3720_v7 }
  0xfd   :  { %821 = vst [vmem:[%s5262_s8 + $0x22] sm:$0x1] %v2687_v24  ;;  %v823_v26 = vadd.f32 %v822_v22, %v3743_v17  ;;  %3243 = vmatprep.subr.mxu1 %v3636_v1 }
  0xfe   :  { %3244 = vmatpush3.msra.mxu1 %v3726_v11 }
  0xff   :  { %v824_v27 = vsub.f32 %v823_v26, %v2687_v24  ;;  %3245 = vmatprep.subr.mxu1 %v3636_v1 }
 0x100   :  { %3246 = vmatpush3.msra.mxu1 %v3735_v14 }
 0x101   :  { %vm825_vm6 = vcmp.gt.f32.partialorder %v824_v27, 1.0  ;;  %v829_v29 = vmul.f32 0.9, %v824_v27  ;;  %3247 = vmatprep.subr.mxu1 %v3636_v1 }
 0x102   :  { %v2688_v31 = vsel %vm825_vm6, 1.0, %v3636_v1  ;;  %3248 = vmatpush3.msra.mxu1 %v3741_v16 }
 0x103   :  { %828 = vst [vmem:[%s5262_s8 + $0x23] sm:$0x1] %v2688_v31  ;;  %v830_v33 = vadd.f32 %v829_v29, %v3743_v17  ;;  %3249 = vmatprep.subr.mxu1 %v3636_v1 }
 0x104   :  { %3250 = vmatpush3.msra.mxu1 %v3749_v18 }
 0x105   :  { %v831_v34 = vsub.f32 %v830_v33, %v2688_v31  ;;  %3251 = vmatprep.subr.mxu1 %v3636_v1 }
 0x106   :  { %3252 = vmatpush3.msra.mxu1 %v3758_v21 }
 0x107   :  { %vm832_vm7 = vcmp.gt.f32.partialorder %v831_v34, 1.0  ;;  %v836_v36 = vmul.f32 0.9, %v831_v34  ;;  %3253 = vmatprep.subr.mxu1 %v3636_v1 }
 0x108   :  { %v2689_v37 = vsel %vm832_vm7, 1.0, %v3636_v1  ;;  %3254 = vmatpush3.msra.mxu1 %v3768_v23 }
 0x109   :  { %835 = vst [vmem:[%s5262_s8 + $0x24] sm:$0x1] %v2689_v37  ;;  %v837_v38 = vadd.f32 %v836_v36, %v3743_v17  ;;  %3255 = vmatprep.subr.mxu1 %v3636_v1 }
 0x10a   :  { %3256 = vmatpush3.msra.mxu1 %v3774_v25 }
 0x10b   :  { %v838_v39 = vsub.f32 %v837_v38, %v2689_v37  ;;  %3257 = vmatprep.subr.mxu1 %v3636_v1 }
 0x10c   :  { %3258 = vmatpush3.msra.mxu1 %v3781_v28 }
 0x10d   :  { %vm839_vm8 = vcmp.gt.f32.partialorder %v838_v39, 1.0  ;;  %v843_v40 = vmul.f32 0.9, %v838_v39  ;;  %3259 = vmatprep.subr.mxu1 %v3636_v1 }
 0x10e   :  { %v2690_v41 = vsel %vm839_vm8, 1.0, %v3636_v1  ;;  %3260 = vmatpush3.msra.mxu1 %v3791_v30 }
 0x10f   :  { %842 = vst [vmem:[%s5262_s8 + $0x25] sm:$0x1] %v2690_v41  ;;  %v844_v42 = vadd.f32 %v843_v40, %v3743_v17  ;;  %3261 = vmatprep.subr.mxu1 %v3636_v1 }
 0x110   :  { %3262 = vmatpush3.msra.mxu1 %v3797_v32 }
 0x111   :  { %v845_v43 = vsub.f32 %v844_v42, %v2690_v41  ;;  %3263 = vmatprep.subr.mxu1 %v3636_v1 }
 0x112   :  { %3264 = vmatpush3.msra.mxu1 %v3804_v35 }
 0x113   :  { %vm846_vm9 = vcmp.gt.f32.partialorder %v845_v43, 1.0  ;;  %v850_v44 = vmul.f32 0.9, %v845_v43  ;;  %3303 = vmatprep.subr.mxu1 %v3636_v1 }
 0x114   :  { %v2691_v45 = vsel %vm846_vm9, 1.0, %v3636_v1 }
 0x115   :  { %849 = vst [vmem:[%s5262_s8 + $0x26] sm:$0x1] %v2691_v45  ;;  %v851_v46 = vadd.f32 %v850_v44, %v3743_v17 }
 0x117   :  { %v852_v47 = vsub.f32 %v851_v46, %v2691_v45 }
 0x119   :  { %vm853_vm10 = vcmp.gt.f32.partialorder %v852_v47, 1.0  ;;  %v993_v48 = vmul.f32 0.9, %v852_v47 }
 0x11a   :  { %v2692_v49 = vsel %vm853_vm10, 1.0, %v3636_v1 }
 0x11b   :  { %856 = vst [vmem:[%s5262_s8 + $0x27] sm:$0x1] %v2692_v49  ;;  %v994_v50 = vadd.f32 %v993_v48, %v3743_v17 }
 0x11d   :  { %v995_v51 = vsub.f32 %v994_v50, %v2692_v49 }
 0x11f   :  { %v1000_v52 = vmul.f32 0.9, %v995_v51  ;;  %vm996_vm11 = vcmp.gt.f32.partialorder %v995_v51, 1.0 }
 0x120   :  { %v2701_v53 = vsel %vm996_vm11, 1.0, %v3636_v1 }
 0x121   :  { %999 = vst [vmem:[%s5262_s8 + $0x28] sm:$0x1] %v2701_v53  ;;  %v1001_v55 = vadd.f32 %v1000_v52, %v3743_v17 }
 0x122   :  { %v857_v56 = vld [vmem:[%s5262_s8 + $0x20] sm:$0xff] }
 0x123   :  { %v222_v57 = vpop.f32.mrf.mxu0  ;;  %3231 = vmatmul.mubr.f32.vlgmr.msra.gmra.mxu0 %v857_v56  ;;  %v1002_v58 = vsub.f32 %v1001_v55, %v2701_v53 }
 0x124   :  { %v223_v59 = vadd.f32 %v4159_v54, %v222_v57  ;;  %3269 = vmatpush3.msra.mxu0 %v3698_v0  ;;  %3300 = vmatprep.mubr.msk.f32.mxu0 %vm3637_vm0, %v3636_v1 }
 0x125   :  { %v3092_v60 = vpop.f32.mrf.mxu0  ;;  %vm1003_vm12 = vcmp.gt.f32.partialorder %v1002_v58, 1.0  ;;  %v1007_v61 = vmul.f32 0.9, %v1002_v58  ;;  %3270 = vmatprep.subr.mxu0 %v3636_v1 }
 0x126   :  { %226 = vst [vmem:[#allocation2] sm:$0xff] %v223_v59  ;;  %v2702_v62 = vsel %vm1003_vm12, 1.0, %v3636_v1  ;;  %3271 = vmatpush3.msra.mxu0 %v3701_v2 }
 0x127   :  { %1006 = vst [vmem:[%s5262_s8 + $0x29] sm:$0x1] %v2702_v62  ;;  %v1008_v63 = vadd.f32 %v1007_v61, %v3743_v17  ;;  %3272 = vmatprep.subr.mxu0 %v3636_v1 }
 0x128   :  { %3273 = vmatpush3.msra.mxu0 %v3708_v3 }
 0x129   :  { %v1009_v0 = vsub.f32 %v1008_v63, %v2702_v62  ;;  %3274 = vmatprep.subr.mxu0 %v3636_v1 }
 0x12a   :  { %3275 = vmatpush3.msra.mxu0 %v3714_v4 }
 0x12b   :  { %vm1010_vm13 = vcmp.gt.f32.partialorder %v1009_v0, 1.0  ;;  %v1014_v5 = vmul.f32 0.9, %v1009_v0  ;;  %3276 = vmatprep.subr.mxu0 %v3636_v1 }
 0x12c   :  { %v2703_v2 = vsel %vm1010_vm13, 1.0, %v3636_v1  ;;  %3277 = vmatpush3.msra.mxu0 %v3720_v7 }
 0x12d   :  { %v355_v6 = vld [vmem:[#allocation2] sm:$0x1]  ;;  %v361_v8 = vld [vmem:[#allocation2 + $0x1] sm:$0x1]  ;;  %1013 = vst [vmem:[%s5262_s8 + $0x2a] sm:$0x1] %v2703_v2  ;;  %v1015_v3 = vadd.f32 %v1014_v5, %v3743_v17  ;;  %3278 = vmatprep.subr.mxu0 %v3636_v1 }
 0x12e   :  { %vm357_vm14 = vcmp.gt.f32.partialorder %v355_v6, 1.0  ;;  %v362_v4 = vmul.f32 0.9, %v355_v6  ;;  %3279 = vmatpush3.msra.mxu0 %v3726_v11  ;;  %v369_v20 = vld [vmem:[#allocation2 + $0x2] sm:$0x1] }
 0x12f   :  { %v2645_v9 = vsel %vm357_vm14, 1.0, %v3636_v1  ;;  %v1016_v10 = vsub.f32 %v1015_v3, %v2703_v2  ;;  %3280 = vmatprep.subr.mxu0 %v3636_v1  ;;  %v377_v31 = vld [vmem:[#allocation2 + $0x3] sm:$0x1]  ;;  %v385_v39 = vld [vmem:[#allocation2 + $0x4] sm:$0x1] }
 0x130   :  { %360 = vst [vmem:[%s5263_s9] sm:$0x1] %v2645_v9  ;;  %v363_v7 = vadd.f32 %v362_v4, %v361_v8  ;;  %3281 = vmatpush3.msra.mxu0 %v3735_v14  ;;  %v393_v46 = vld [vmem:[#allocation2 + $0x5] sm:$0x1]  ;;  %v401_v55 = vld [vmem:[#allocation2 + $0x6] sm:$0x1] }
 0x131   :  { %vm1017_vm15 = vcmp.gt.f32.partialorder %v1016_v10, 1.0  ;;  %v1021_v12 = vmul.f32 0.9, %v1016_v10  ;;  %3282 = vmatprep.subr.mxu0 %v3636_v1  ;;  %v409_v5 = vld [vmem:[#allocation2 + $0x7] sm:$0x1] }
 0x132   :  { %v364_v13 = vsub.f32 %v363_v7, %v2645_v9  ;;  %v2704_v15 = vsel %vm1017_vm15, 1.0, %v3636_v1  ;;  %3283 = vmatpush3.msra.mxu0 %v3741_v16  ;;  %v4275_v4 = vld [vmem:[#allocation8 + $0x78] sm:$0xff] }
 0x133   :  { %1020 = vst [vmem:[%s5262_s8 + $0x2b] sm:$0x1] %v2704_v15  ;;  %v1022_v11 = vadd.f32 %v1021_v12, %v3743_v17  ;;  %3284 = vmatprep.subr.mxu0 %v3636_v1 }
 0x134   :  { %vm365_vm1 = vcmp.gt.f32.partialorder %v364_v13, 1.0  ;;  %v370_v19 = vmul.f32 0.9, %v364_v13  ;;  %3285 = vmatpush3.msra.mxu0 %v3749_v18  ;;  %v4282_v13 = vld [vmem:[#allocation8 + $0x70] sm:$0xff] }
 0x135   :  { %v2646_v14 = vsel %vm365_vm1, 1.0, %v3636_v1  ;;  %v1023_v22 = vsub.f32 %v1022_v11, %v2704_v15  ;;  %3286 = vmatprep.subr.mxu0 %v3636_v1  ;;  %v4290_v11 = vld [vmem:[#allocation8 + $0x68] sm:$0xff] }
 0x136   :  { %368 = vst [vmem:[%s5263_s9 + $0x1] sm:$0x1] %v2646_v14  ;;  %v371_v16 = vadd.f32 %v370_v19, %v369_v20  ;;  %3287 = vmatpush3.msra.mxu0 %v3758_v21  ;;  %v4298_v20 = vld [vmem:[#allocation8 + $0x60] sm:$0xff] }
 0x137   :  { %vm1024_vm2 = vcmp.gt.f32.partialorder %v1023_v22, 1.0  ;;  %v1028_v24 = vmul.f32 0.9, %v1023_v22  ;;  %3288 = vmatprep.subr.mxu0 %v3636_v1 }
 0x138   :  { %v372_v26 = vsub.f32 %v371_v16, %v2646_v14  ;;  %v2705_v18 = vsel %vm1024_vm2, 1.0, %v3636_v1  ;;  %3289 = vmatpush3.msra.mxu0 %v3768_v23 }
 0x139   :  { %1027 = vst [vmem:[%s5262_s8 + $0x2c] sm:$0x1] %v2705_v18  ;;  %v1029_v27 = vadd.f32 %v1028_v24, %v3743_v17  ;;  %3290 = vmatprep.subr.mxu0 %v3636_v1 }
 0x13a   :  { %vm373_vm3 = vcmp.gt.f32.partialorder %v372_v26, 1.0  ;;  %v378_v29 = vmul.f32 0.9, %v372_v26  ;;  %3291 = vmatpush3.msra.mxu0 %v3774_v25  ;;  %v4303_v26 = vld [vmem:[#allocation8 + $0x58] sm:$0xff] }
 0x13b   :  { %v2647_v21 = vsel %vm373_vm3, 1.0, %v3636_v1  ;;  %v1030_v33 = vsub.f32 %v1029_v27, %v2705_v18  ;;  %3292 = vmatprep.subr.mxu0 %v3636_v1 }
 0x13c   :  { %376 = vst [vmem:[%s5263_s9 + $0x2] sm:$0x1] %v2647_v21  ;;  %v379_v23 = vadd.f32 %v378_v29, %v377_v31  ;;  %3293 = vmatpush3.msra.mxu0 %v3781_v28 }
 0x13d   :  { %vm1031_vm4 = vcmp.gt.f32.partialorder %v1030_v33, 1.0  ;;  %v1035_v34 = vmul.f32 0.9, %v1030_v33  ;;  %3294 = vmatprep.subr.mxu0 %v3636_v1 }
 0x13e   :  { %v380_v36 = vsub.f32 %v379_v23, %v2647_v21  ;;  %v2706_v25 = vsel %vm1031_vm4, 1.0, %v3636_v1  ;;  %3295 = vmatpush3.msra.mxu0 %v3791_v30  ;;  %v4311_v21 = vld [vmem:[#allocation8 + $0x50] sm:$0xff]  ;;  %v4315_v23 = vld [vmem:[#allocation8 + $0x48] sm:$0xff] }
 0x13f   :  { %1034 = vst [vmem:[%s5262_s8 + $0x2d] sm:$0x1] %v2706_v25  ;;  %v1036_v37 = vadd.f32 %v1035_v34, %v3743_v17  ;;  %3296 = vmatprep.subr.mxu0 %v3636_v1 }
 0x140   :  { %vm381_vm5 = vcmp.gt.f32.partialorder %v380_v36, 1.0  ;;  %v386_v38 = vmul.f32 0.9, %v380_v36  ;;  %3297 = vmatpush3.msra.mxu0 %v3797_v32 }
 0x141   :  { %v2648_v28 = vsel %vm381_vm5, 1.0, %v3636_v1  ;;  %v1037_v40 = vsub.f32 %v1036_v37, %v2706_v25  ;;  %3298 = vmatprep.subr.mxu0 %v3636_v1  ;;  %v4320_v37 = vld [vmem:[#allocation8 + $0x40] sm:$0xff] }
 0x142   :  { %384 = vst [vmem:[%s5263_s9 + $0x3] sm:$0x1] %v2648_v28  ;;  %v387_v30 = vadd.f32 %v386_v38, %v385_v39  ;;  %3299 = vmatpush3.msra.mxu0 %v3804_v35 }
 0x143   :  { %vm1038_vm6 = vcmp.gt.f32.partialorder %v1037_v40, 1.0  ;;  %v1042_v41 = vmul.f32 0.9, %v1037_v40  ;;  %3338 = vmatprep.subr.mxu0 %v3636_v1 }
 0x144   :  { %v388_v42 = vsub.f32 %v387_v30, %v2648_v28  ;;  %v2707_v32 = vsel %vm1038_vm6, 1.0, %v3636_v1  ;;  %v4332_v30 = vld [vmem:[#allocation8 + $0x38] sm:$0xff] }
 0x145   :  { %1041 = vst [vmem:[%s5262_s8 + $0x2e] sm:$0x1] %v2707_v32  ;;  %v1043_v43 = vadd.f32 %v1042_v41, %v3743_v17 }
 0x146   :  { %vm389_vm7 = vcmp.gt.f32.partialorder %v388_v42, 1.0  ;;  %v394_v44 = vmul.f32 0.9, %v388_v42 }
 0x147   :  { %v2649_v45 = vsel %vm389_vm7, 1.0, %v3636_v1  ;;  %v1044_v47 = vsub.f32 %v1043_v43, %v2707_v32  ;;  %v4336_v32 = vld [vmem:[#allocation8 + $0x30] sm:$0xff] }
 0x148   :  { %392 = vst [vmem:[%s5263_s9 + $0x4] sm:$0x1] %v2649_v45  ;;  %v395_v35 = vadd.f32 %v394_v44, %v393_v46  ;;  %v4341_v46 = vld [vmem:[#allocation8 + $0x28] sm:$0xff] }
 0x149   :  { %vm1045_vm8 = vcmp.gt.f32.partialorder %v1044_v47, 1.0  ;;  %v1185_v48 = vmul.f32 0.9, %v1044_v47 }
 0x14a   :  { %v396_v49 = vsub.f32 %v395_v35, %v2649_v45  ;;  %v2708_v50 = vsel %vm1045_vm8, 1.0, %v3636_v1 }
 0x14b   :  { %1048 = vst [vmem:[%s5262_s8 + $0x2f] sm:$0x1] %v2708_v50  ;;  %v1186_v51 = vadd.f32 %v1185_v48, %v3743_v17 }
 0x14c   :  { %vm397_vm9 = vcmp.gt.f32.partialorder %v396_v49, 1.0  ;;  %v402_v52 = vmul.f32 0.9, %v396_v49 }
 0x14d   :  { %v2650_v53 = vsel %vm397_vm9, 1.0, %v3636_v1  ;;  %v1187_v56 = vsub.f32 %v1186_v51, %v2708_v50  ;;  %v4353_v50 = vld [vmem:[#allocation8 + $0x20] sm:$0xff] }
 0x14e   :  { %400 = vst [vmem:[%s5263_s9 + $0x5] sm:$0x1] %v2650_v53  ;;  %v403_v57 = vadd.f32 %v402_v52, %v401_v55 }
 0x14f   :  { %v1192_v58 = vmul.f32 0.9, %v1187_v56  ;;  %vm1188_vm10 = vcmp.gt.f32.partialorder %v1187_v56, 1.0 }
 0x150   :  { %v404_v59 = vsub.f32 %v403_v57, %v2650_v53  ;;  %v2717_v60 = vsel %vm1188_vm10, 1.0, %v3636_v1  ;;  %v4357_v53 = vld [vmem:[#allocation8 + $0x18] sm:$0xff] }
 0x151   :  { %1191 = vst [vmem:[%s5262_s8 + $0x30] sm:$0x1] %v2717_v60  ;;  %v1193_v61 = vadd.f32 %v1192_v58, %v3743_v17  ;;  %v4362_v58 = vld [vmem:[#allocation8 + $0x10] sm:$0xff] }
 0x152   :  { %vm405_vm11 = vcmp.gt.f32.partialorder %v404_v59, 1.0  ;;  %v410_v62 = vmul.f32 0.9, %v404_v59  ;;  %v1049_v63 = vld [vmem:[%s5262_s8 + $0x28] sm:$0xff] }
 0x153   :  { %v2651_v0 = vsel %vm405_vm11, 1.0, %v3636_v1  ;;  %v350_v2 = vpop.f32.mrf.mxu1  ;;  %3266 = vmatmul.mubr.f32.vlgmr.msra.gmra.mxu1 %v1049_v63  ;;  %v1194_v6 = vsub.f32 %v1193_v61, %v2717_v60  ;;  %v4374_v63 = vld [vmem:[#allocation8 + $0x8] sm:$0xff] }
 0x154   :  { %408 = vst [vmem:[%s5263_s9 + $0x6] sm:$0x1] %v2651_v0  ;;  %v411_v8 = vadd.f32 %v410_v62, %v409_v5  ;;  %v351_v3 = vadd.f32 %v4159_v54, %v350_v2  ;;  %3304 = vmatpush3.msra.mxu1 %v4275_v4  ;;  %3335 = vmatprep.mubr.msk.f32.mxu1 %vm3637_vm0, %v3636_v1  ;;  %v4378_v2 = vld [vmem:[#allocation8] sm:$0xff] }
 0x155   :  { %v3127_v9 = vpop.f32.mrf.mxu1  ;;  %vm1195_vm12 = vcmp.gt.f32.partialorder %v1194_v6, 1.0  ;;  %v1199_v10 = vmul.f32 0.9, %v1194_v6  ;;  %3305 = vmatprep.subr.mxu1 %v3636_v1 }
 0x156   :  { %v412_v7 = vsub.f32 %v411_v8, %v2651_v0  ;;  %354 = vst [vmem:[#allocation2 + $0x8] sm:$0xff] %v351_v3  ;;  %v2718_v12 = vsel %vm1195_vm12, 1.0, %v3636_v1  ;;  %3306 = vmatpush3.msra.mxu1 %v4282_v13 }
 0x157   :  { %1198 = vst [vmem:[%s5262_s8 + $0x31] sm:$0x1] %v2718_v12  ;;  %v1200_v15 = vadd.f32 %v1199_v10, %v3743_v17  ;;  %3307 = vmatprep.subr.mxu1 %v3636_v1 }
 0x158   :  { %vm413_vm13 = vcmp.gt.f32.partialorder %v412_v7, 1.0  ;;  %3308 = vmatpush3.msra.mxu1 %v4290_v11  ;;  %v546_v16 = vmul.f32 0.9, %v412_v7 }
 0x159   :  { %v2652_v19 = vsel %vm413_vm13, 1.0, %v3636_v1  ;;  %v1201_v14 = vsub.f32 %v1200_v15, %v2718_v12  ;;  %3309 = vmatprep.subr.mxu1 %v3636_v1 }
 0x15a   :  { %416 = vst [vmem:[%s5263_s9 + $0x7] sm:$0x1] %v2652_v19  ;;  %3310 = vmatpush3.msra.mxu1 %v4298_v20 }
 0x15b   :  { %vm1202_vm14 = vcmp.gt.f32.partialorder %v1201_v14, 1.0  ;;  %v1206_v22 = vmul.f32 0.9, %v1201_v14  ;;  %3311 = vmatprep.subr.mxu1 %v3636_v1 }
 0x15c   :  { %v2719_v24 = vsel %vm1202_vm14, 1.0, %v3636_v1  ;;  %3312 = vmatpush3.msra.mxu1 %v4303_v26 }
 0x15d   :  { %v545_v18 = vld [vmem:[#allocation2 + $0x8] sm:$0x1]  ;;  %1205 = vst [vmem:[%s5262_s8 + $0x32] sm:$0x1] %v2719_v24  ;;  %v1207_v27 = vadd.f32 %v1206_v22, %v3743_v17  ;;  %3313 = vmatprep.subr.mxu1 %v3636_v1  ;;  %v553_v28 = vld [vmem:[#allocation2 + $0x9] sm:$0x1] }
 0x15e   :  { %v547_v29 = vadd.f32 %v546_v16, %v545_v18  ;;  %3314 = vmatpush3.msra.mxu1 %v4311_v21  ;;  %v561_v35 = vld [vmem:[#allocation2 + $0xa] sm:$0x1]  ;;  %v569_v60 = vld [vmem:[#allocation2 + $0xb] sm:$0x1]  ;;  %v577_v10 = vld [vmem:[#allocation2 + $0xc] sm:$0x1] }
 0x15f   :  { %v1208_v31 = vsub.f32 %v1207_v27, %v2719_v24  ;;  %3315 = vmatprep.subr.mxu1 %v3636_v1  ;;  %v585_v18 = vld [vmem:[#allocation2 + $0xd] sm:$0x1] }
 0x160   :  { %v548_v33 = vsub.f32 %v547_v29, %v2652_v19  ;;  %3316 = vmatpush3.msra.mxu1 %v4315_v23 }
 0x161   :  { %vm1209_vm15 = vcmp.gt.f32.partialorder %v1208_v31, 1.0  ;;  %v1213_v34 = vmul.f32 0.9, %v1208_v31  ;;  %3317 = vmatprep.subr.mxu1 %v3636_v1 }
 0x162   :  { %vm549_vm1 = vcmp.gt.f32.partialorder %v548_v33, 1.0  ;;  %v554_v36 = vmul.f32 0.9, %v548_v33  ;;  %v2720_v25 = vsel %vm1209_vm15, 1.0, %v3636_v1  ;;  %3318 = vmatpush3.msra.mxu1 %v4320_v37 }
 0x163   :  { %v2661_v38 = vsel %vm549_vm1, 1.0, %v3636_v1  ;;  %1212 = vst [vmem:[%s5262_s8 + $0x33] sm:$0x1] %v2720_v25  ;;  %v1214_v39 = vadd.f32 %v1213_v34, %v3743_v17  ;;  %3319 = vmatprep.subr.mxu1 %v3636_v1 }
 0x164   :  { %552 = vst [vmem:[%s5263_s9 + $0x8] sm:$0x1] %v2661_v38  ;;  %v555_v40 = vadd.f32 %v554_v36, %v553_v28  ;;  %3320 = vmatpush3.msra.mxu1 %v4332_v30  ;;  %v593_v28 = vld [vmem:[#allocation2 + $0xe] sm:$0x1] }
 0x165   :  { %v1215_v41 = vsub.f32 %v1214_v39, %v2720_v25  ;;  %3321 = vmatprep.subr.mxu1 %v3636_v1 }
 0x166   :  { %v556_v42 = vsub.f32 %v555_v40, %v2661_v38  ;;  %3322 = vmatpush3.msra.mxu1 %v4336_v32 }
 0x167   :  { %vm1216_vm2 = vcmp.gt.f32.partialorder %v1215_v41, 1.0  ;;  %v1220_v43 = vmul.f32 0.9, %v1215_v41  ;;  %3323 = vmatprep.subr.mxu1 %v3636_v1 }
 0x168   :  { %vm557_vm3 = vcmp.gt.f32.partialorder %v556_v42, 1.0  ;;  %v562_v44 = vmul.f32 0.9, %v556_v42  ;;  %v2721_v45 = vsel %vm1216_vm2, 1.0, %v3636_v1  ;;  %3324 = vmatpush3.msra.mxu1 %v4341_v46 }
 0x169   :  { %v2662_v47 = vsel %vm557_vm3, 1.0, %v3636_v1  ;;  %1219 = vst [vmem:[%s5262_s8 + $0x34] sm:$0x1] %v2721_v45  ;;  %v1221_v48 = vadd.f32 %v1220_v43, %v3743_v17  ;;  %3325 = vmatprep.subr.mxu1 %v3636_v1 }
 0x16a   :  { %560 = vst [vmem:[%s5263_s9 + $0x9] sm:$0x1] %v2662_v47  ;;  %v563_v49 = vadd.f32 %v562_v44, %v561_v35  ;;  %3326 = vmatpush3.msra.mxu1 %v4353_v50 }
 0x16b   :  { %v1222_v51 = vsub.f32 %v1221_v48, %v2721_v45  ;;  %3327 = vmatprep.subr.mxu1 %v3636_v1 }
 0x16c   :  { %v564_v52 = vsub.f32 %v563_v49, %v2662_v47  ;;  %3328 = vmatpush3.msra.mxu1 %v4357_v53 }
 0x16d   :  { %vm1223_vm4 = vcmp.gt.f32.partialorder %v1222_v51, 1.0  ;;  %v1227_v55 = vmul.f32 0.9, %v1222_v51  ;;  %3329 = vmatprep.subr.mxu1 %v3636_v1 }
 0x16e   :  { %vm565_vm5 = vcmp.gt.f32.partialorder %v564_v52, 1.0  ;;  %v570_v56 = vmul.f32 0.9, %v564_v52  ;;  %v2722_v57 = vsel %vm1223_vm4, 1.0, %v3636_v1  ;;  %3330 = vmatpush3.msra.mxu1 %v4362_v58  ;;  %v601_v52 = vld [vmem:[#allocation2 + $0xf] sm:$0x1] }
 0x16f   :  { %v2663_v59 = vsel %vm565_vm5, 1.0, %v3636_v1  ;;  %1226 = vst [vmem:[%s5262_s8 + $0x35] sm:$0x1] %v2722_v57  ;;  %v1228_v61 = vadd.f32 %v1227_v55, %v3743_v17  ;;  %3331 = vmatprep.subr.mxu1 %v3636_v1 }
 0x170   :  { %568 = vst [vmem:[%s5263_s9 + $0xa] sm:$0x1] %v2663_v59  ;;  %v571_v62 = vadd.f32 %v570_v56, %v569_v60  ;;  %3332 = vmatpush3.msra.mxu1 %v4374_v63 }
 0x171   :  { %v1229_v0 = vsub.f32 %v1228_v61, %v2722_v57  ;;  %3333 = vmatprep.subr.mxu1 %v3636_v1 }
 0x172   :  { %v572_v5 = vsub.f32 %v571_v62, %v2663_v59  ;;  %3334 = vmatpush3.msra.mxu1 %v4378_v2 }
 0x173   :  { %vm1230_vm6 = vcmp.gt.f32.partialorder %v1229_v0, 1.0  ;;  %v1234_v6 = vmul.f32 0.9, %v1229_v0  ;;  %3373 = vmatprep.subr.mxu1 %v3636_v1 }
 0x174   :  { %vm573_vm7 = vcmp.gt.f32.partialorder %v572_v5, 1.0  ;;  %v578_v8 = vmul.f32 0.9, %v572_v5  ;;  %v2723_v3 = vsel %vm1230_vm6, 1.0, %v3636_v1 }
 0x175   :  { %v2664_v9 = vsel %vm573_vm7, 1.0, %v3636_v1  ;;  %1233 = vst [vmem:[%s5262_s8 + $0x36] sm:$0x1] %v2723_v3  ;;  %v1235_v7 = vadd.f32 %v1234_v6, %v3743_v17 }
 0x176   :  { %576 = vst [vmem:[%s5263_s9 + $0xb] sm:$0x1] %v2664_v9  ;;  %v579_v12 = vadd.f32 %v578_v8, %v577_v10 }
 0x177   :  { %v1236_v15 = vsub.f32 %v1235_v7, %v2723_v3 }
 0x178   :  { %v580_v19 = vsub.f32 %v579_v12, %v2664_v9 }
 0x179   :  { %vm1237_vm8 = vcmp.gt.f32.partialorder %v1236_v15, 1.0  ;;  %v1377_v14 = vmul.f32 0.9, %v1236_v15 }
 0x17a   :  { %vm581_vm9 = vcmp.gt.f32.partialorder %v580_v19, 1.0  ;;  %v586_v22 = vmul.f32 0.9, %v580_v19  ;;  %v2724_v16 = vsel %vm1237_vm8, 1.0, %v3636_v1 }
 0x17b   :  { %v2665_v24 = vsel %vm581_vm9, 1.0, %v3636_v1  ;;  %1240 = vst [vmem:[%s5262_s8 + $0x37] sm:$0x1] %v2724_v16  ;;  %v1378_v27 = vadd.f32 %v1377_v14, %v3743_v17 }
 0x17c   :  { %584 = vst [vmem:[%s5263_s9 + $0xc] sm:$0x1] %v2665_v24  ;;  %v587_v29 = vadd.f32 %v586_v22, %v585_v18 }
 0x17d   :  { %v1379_v31 = vsub.f32 %v1378_v27, %v2724_v16 }
 0x17e   :  { %v588_v33 = vsub.f32 %v587_v29, %v2665_v24 }
 0x17f   :  { %v1384_v34 = vmul.f32 0.9, %v1379_v31  ;;  %vm1380_vm10 = vcmp.gt.f32.partialorder %v1379_v31, 1.0 }
 0x180   :  { %vm589_vm11 = vcmp.gt.f32.partialorder %v588_v33, 1.0  ;;  %v594_v36 = vmul.f32 0.9, %v588_v33  ;;  %v2733_v25 = vsel %vm1380_vm10, 1.0, %v3636_v1 }
 0x181   :  { %v2666_v38 = vsel %vm589_vm11, 1.0, %v3636_v1  ;;  %1383 = vst [vmem:[%s5262_s8 + $0x38] sm:$0x1] %v2733_v25  ;;  %v1385_v39 = vadd.f32 %v1384_v34, %v3743_v17 }
 0x182   :  { %592 = vst [vmem:[%s5263_s9 + $0xd] sm:$0x1] %v2666_v38  ;;  %v595_v40 = vadd.f32 %v594_v36, %v593_v28  ;;  %v1241_v41 = vld [vmem:[%s5262_s8 + $0x30] sm:$0xff] }
 0x183   :  { %v540_v42 = vpop.f32.mrf.mxu0  ;;  %3301 = vmatmul.mubr.f32.vlgmr.msra.gmra.mxu0 %v1241_v41  ;;  %v1386_v43 = vsub.f32 %v1385_v39, %v2733_v25 }
 0x184   :  { %v596_v44 = vsub.f32 %v595_v40, %v2666_v38  ;;  %v541_v45 = vadd.f32 %v4159_v54, %v540_v42  ;;  %3339 = vmatpush3.msra.mxu0 %v4275_v4  ;;  %3370 = vmatprep.mubr.msk.f32.mxu0 %vm3637_vm0, %v3636_v1 }
 0x185   :  { %v3162_v47 = vpop.f32.mrf.mxu0  ;;  %vm1387_vm12 = vcmp.gt.f32.partialorder %v1386_v43, 1.0  ;;  %v1391_v35 = vmul.f32 0.9, %v1386_v43  ;;  %3340 = vmatprep.subr.mxu0 %v3636_v1 }
 0x186   :  { %vm597_vm13 = vcmp.gt.f32.partialorder %v596_v44, 1.0  ;;  %v602_v48 = vmul.f32 0.9, %v596_v44  ;;  %544 = vst [vmem:[#allocation2 + $0x10] sm:$0xff] %v541_v45  ;;  %v2734_v49 = vsel %vm1387_vm12, 1.0, %v3636_v1  ;;  %3341 = vmatpush3.msra.mxu0 %v4282_v13 }
 0x187   :  { %v2667_v51 = vsel %vm597_vm13, 1.0, %v3636_v1  ;;  %1390 = vst [vmem:[%s5262_s8 + $0x39] sm:$0x1] %v2734_v49  ;;  %v1392_v55 = vadd.f32 %v1391_v35, %v3743_v17  ;;  %3342 = vmatprep.subr.mxu0 %v3636_v1 }
 0x188   :  { %600 = vst [vmem:[%s5263_s9 + $0xe] sm:$0x1] %v2667_v51  ;;  %v603_v56 = vadd.f32 %v602_v48, %v601_v52  ;;  %3343 = vmatpush3.msra.mxu0 %v4290_v11 }
 0x189   :  { %v1393_v57 = vsub.f32 %v1392_v55, %v2734_v49  ;;  %3344 = vmatprep.subr.mxu0 %v3636_v1 }
 0x18a   :  { %v604_v59 = vsub.f32 %v603_v56, %v2667_v51  ;;  %3345 = vmatpush3.msra.mxu0 %v4298_v20 }
 0x18b   :  { %vm1394_vm14 = vcmp.gt.f32.partialorder %v1393_v57, 1.0  ;;  %v1398_v60 = vmul.f32 0.9, %v1393_v57  ;;  %3346 = vmatprep.subr.mxu0 %v3636_v1 }
 0x18c   :  { %vm605_vm15 = vcmp.gt.f32.partialorder %v604_v59, 1.0  ;;  %v738_v61 = vmul.f32 0.9, %v604_v59  ;;  %v2735_v62 = vsel %vm1394_vm14, 1.0, %v3636_v1  ;;  %3347 = vmatpush3.msra.mxu0 %v4303_v26 }
 0x18d   :  { %v2668_v0 = vsel %vm605_vm15, 1.0, %v3636_v1  ;;  %v737_v5 = vld [vmem:[#allocation2 + $0x10] sm:$0x1]  ;;  %1397 = vst [vmem:[%s5262_s8 + $0x3a] sm:$0x1] %v2735_v62  ;;  %v1399_v6 = vadd.f32 %v1398_v60, %v3743_v17  ;;  %3348 = vmatprep.subr.mxu0 %v3636_v1 }
 0x18e   :  { %608 = vst [vmem:[%s5263_s9 + $0xf] sm:$0x1] %v2668_v0  ;;  %v739_v8 = vadd.f32 %v738_v61, %v737_v5  ;;  %3349 = vmatpush3.msra.mxu0 %v4311_v21  ;;  %v745_v19 = vld [vmem:[#allocation2 + $0x11] sm:$0x1]  ;;  %v753_v33 = vld [vmem:[#allocation2 + $0x12] sm:$0x1] }
 0x18f   :  { %v1400_v3 = vsub.f32 %v1399_v6, %v2735_v62  ;;  %3350 = vmatprep.subr.mxu0 %v3636_v1  ;;  %v761_v42 = vld [vmem:[#allocation2 + $0x13] sm:$0x1]  ;;  %v769_v52 = vld [vmem:[#allocation2 + $0x14] sm:$0x1]  ;;  %v777_v5 = vld [vmem:[#allocation2 + $0x15] sm:$0x1] }
 0x190   :  { %v740_v9 = vsub.f32 %v739_v8, %v2668_v0  ;;  %3351 = vmatpush3.msra.mxu0 %v4315_v23 }
 0x191   :  { %vm1401_vm1 = vcmp.gt.f32.partialorder %v1400_v3, 1.0  ;;  %v1405_v10 = vmul.f32 0.9, %v1400_v3  ;;  %3352 = vmatprep.subr.mxu0 %v3636_v1 }
 0x192   :  { %vm741_vm2 = vcmp.gt.f32.partialorder %v740_v9, 1.0  ;;  %v746_v7 = vmul.f32 0.9, %v740_v9  ;;  %v2736_v12 = vsel %vm1401_vm1, 1.0, %v3636_v1  ;;  %3353 = vmatpush3.msra.mxu0 %v4320_v37 }
 0x193   :  { %v2677_v15 = vsel %vm741_vm2, 1.0, %v3636_v1  ;;  %1404 = vst [vmem:[%s5262_s8 + $0x3b] sm:$0x1] %v2736_v12  ;;  %v1406_v14 = vadd.f32 %v1405_v10, %v3743_v17  ;;  %3354 = vmatprep.subr.mxu0 %v3636_v1 }
 0x194   :  { %744 = vst [vmem:[%s5263_s9 + $0x10] sm:$0x1] %v2677_v15  ;;  %v747_v22 = vadd.f32 %v746_v7, %v745_v19  ;;  %3355 = vmatpush3.msra.mxu0 %v4332_v30  ;;  %v785_v19 = vld [vmem:[#allocation2 + $0x16] sm:$0x1] }
 0x195   :  { %v1407_v16 = vsub.f32 %v1406_v14, %v2736_v12  ;;  %3356 = vmatprep.subr.mxu0 %v3636_v1 }
 0x196   :  { %v748_v24 = vsub.f32 %v747_v22, %v2677_v15  ;;  %3357 = vmatpush3.msra.mxu0 %v4336_v32 }
 0x197   :  { %vm1408_vm3 = vcmp.gt.f32.partialorder %v1407_v16, 1.0  ;;  %v1412_v18 = vmul.f32 0.9, %v1407_v16  ;;  %3358 = vmatprep.subr.mxu0 %v3636_v1 }
 0x198   :  { %vm749_vm4 = vcmp.gt.f32.partialorder %v748_v24, 1.0  ;;  %v754_v27 = vmul.f32 0.9, %v748_v24  ;;  %v2737_v29 = vsel %vm1408_vm3, 1.0, %v3636_v1  ;;  %3359 = vmatpush3.msra.mxu0 %v4341_v46 }
 0x199   :  { %v2678_v31 = vsel %vm749_vm4, 1.0, %v3636_v1  ;;  %1411 = vst [vmem:[%s5262_s8 + $0x3c] sm:$0x1] %v2737_v29  ;;  %v1413_v34 = vadd.f32 %v1412_v18, %v3743_v17  ;;  %3360 = vmatprep.subr.mxu0 %v3636_v1 }
 0x19a   :  { %752 = vst [vmem:[%s5263_s9 + $0x11] sm:$0x1] %v2678_v31  ;;  %v755_v36 = vadd.f32 %v754_v27, %v753_v33  ;;  %3361 = vmatpush3.msra.mxu0 %v4353_v50 }
 0x19b   :  { %v1414_v25 = vsub.f32 %v1413_v34, %v2737_v29  ;;  %3362 = vmatprep.subr.mxu0 %v3636_v1 }
 0x19c   :  { %v756_v38 = vsub.f32 %v755_v36, %v2678_v31  ;;  %3363 = vmatpush3.msra.mxu0 %v4357_v53 }
 0x19d   :  { %vm1415_vm5 = vcmp.gt.f32.partialorder %v1414_v25, 1.0  ;;  %v1419_v28 = vmul.f32 0.9, %v1414_v25  ;;  %3364 = vmatprep.subr.mxu0 %v3636_v1 }
 0x19e   :  { %vm757_vm6 = vcmp.gt.f32.partialorder %v756_v38, 1.0  ;;  %v762_v39 = vmul.f32 0.9, %v756_v38  ;;  %v2738_v40 = vsel %vm1415_vm5, 1.0, %v3636_v1  ;;  %3365 = vmatpush3.msra.mxu0 %v4362_v58 }
 0x19f   :  { %v2679_v41 = vsel %vm757_vm6, 1.0, %v3636_v1  ;;  %1418 = vst [vmem:[%s5262_s8 + $0x3d] sm:$0x1] %v2738_v40  ;;  %v1420_v43 = vadd.f32 %v1419_v28, %v3743_v17  ;;  %3366 = vmatprep.subr.mxu0 %v3636_v1 }
 0x1a0   :  { %760 = vst [vmem:[%s5263_s9 + $0x12] sm:$0x1] %v2679_v41  ;;  %v763_v44 = vadd.f32 %v762_v39, %v761_v42  ;;  %3367 = vmatpush3.msra.mxu0 %v4374_v63 }
 0x1a1   :  { %v1421_v45 = vsub.f32 %v1420_v43, %v2738_v40  ;;  %3368 = vmatprep.subr.mxu0 %v3636_v1 }
 0x1a2   :  { %v764_v47 = vsub.f32 %v763_v44, %v2679_v41  ;;  %3369 = vmatpush3.msra.mxu0 %v4378_v2 }
 0x1a3   :  { %vm1422_vm7 = vcmp.gt.f32.partialorder %v1421_v45, 1.0  ;;  %v1426_v35 = vmul.f32 0.9, %v1421_v45  ;;  %3408 = vmatprep.subr.mxu0 %v3636_v1 }
 0x1a4   :  { %vm765_vm8 = vcmp.gt.f32.partialorder %v764_v47, 1.0  ;;  %v770_v48 = vmul.f32 0.9, %v764_v47  ;;  %v2739_v49 = vsel %vm1422_vm7, 1.0, %v3636_v1 }
 0x1a5   :  { %v2680_v51 = vsel %vm765_vm8, 1.0, %v3636_v1  ;;  %1425 = vst [vmem:[%s5262_s8 + $0x3e] sm:$0x1] %v2739_v49  ;;  %v1427_v55 = vadd.f32 %v1426_v35, %v3743_v17 }
 0x1a6   :  { %768 = vst [vmem:[%s5263_s9 + $0x13] sm:$0x1] %v2680_v51  ;;  %v771_v56 = vadd.f32 %v770_v48, %v769_v52 }
 0x1a7   :  { %v1428_v57 = vsub.f32 %v1427_v55, %v2739_v49 }
 0x1a8   :  { %v772_v59 = vsub.f32 %v771_v56, %v2680_v51 }
 0x1a9   :  { %vm1429_vm9 = vcmp.gt.f32.partialorder %v1428_v57, 1.0  ;;  %v1569_v60 = vmul.f32 0.9, %v1428_v57 }
 0x1aa   :  { %vm773_vm10 = vcmp.gt.f32.partialorder %v772_v59, 1.0  ;;  %v778_v61 = vmul.f32 0.9, %v772_v59  ;;  %v2740_v62 = vsel %vm1429_vm9, 1.0, %v3636_v1 }
 0x1ab   :  { %v2681_v0 = vsel %vm773_vm10, 1.0, %v3636_v1  ;;  %1432 = vst [vmem:[%s5262_s8 + $0x3f] sm:$0x1] %v2740_v62  ;;  %v1570_v6 = vadd.f32 %v1569_v60, %v3743_v17 }
 0x1ac   :  { %776 = vst [vmem:[%s5263_s9 + $0x14] sm:$0x1] %v2681_v0  ;;  %v779_v8 = vadd.f32 %v778_v61, %v777_v5 }
 0x1ad   :  { %v1571_v3 = vsub.f32 %v1570_v6, %v2740_v62 }
 0x1ae   :  { %v780_v9 = vsub.f32 %v779_v8, %v2681_v0 }
 0x1af   :  { %v1576_v10 = vmul.f32 0.9, %v1571_v3  ;;  %vm1572_vm11 = vcmp.gt.f32.partialorder %v1571_v3, 1.0 }
 0x1b0   :  { %vm781_vm12 = vcmp.gt.f32.partialorder %v780_v9, 1.0  ;;  %v786_v7 = vmul.f32 0.9, %v780_v9  ;;  %v2749_v12 = vsel %vm1572_vm11, 1.0, %v3636_v1 }
 0x1b1   :  { %v2682_v15 = vsel %vm781_vm12, 1.0, %v3636_v1  ;;  %1575 = vst [vmem:[%s5262_s8 + $0x40] sm:$0x1] %v2749_v12  ;;  %v1577_v14 = vadd.f32 %v1576_v10, %v3743_v17 }
 0x1b2   :  { %784 = vst [vmem:[%s5263_s9 + $0x15] sm:$0x1] %v2682_v15  ;;  %v787_v22 = vadd.f32 %v786_v7, %v785_v19  ;;  %v1433_v16 = vld [vmem:[%s5262_s8 + $0x38] sm:$0xff] }
 0x1b3   :  { %v732_v24 = vpop.f32.mrf.mxu1  ;;  %3336 = vmatmul.mubr.f32.vlgmr.msra.gmra.mxu1 %v1433_v16  ;;  %v1578_v18 = vsub.f32 %v1577_v14, %v2749_v12 }
 0x1b4   :  { %v788_v27 = vsub.f32 %v787_v22, %v2682_v15  ;;  %v733_v29 = vadd.f32 %v4159_v54, %v732_v24  ;;  %3374 = vmatpush3.msra.mxu1 %v4275_v4  ;;  %3405 = vmatprep.mubr.msk.f32.mxu1 %vm3637_vm0, %v3636_v1  ;;  %v793_v54 = vld [vmem:[#allocation2 + $0x17] sm:$0x1] }
 0x1b5   :  { %v3197_v31 = vpop.f32.mrf.mxu1  ;;  %vm1579_vm13 = vcmp.gt.f32.partialorder %v1578_v18, 1.0  ;;  %v1583_v33 = vmul.f32 0.9, %v1578_v18  ;;  %3375 = vmatprep.subr.mxu1 %v3636_v1 }
 0x1b6   :  { %vm789_vm14 = vcmp.gt.f32.partialorder %v788_v27, 1.0  ;;  %v794_v34 = vmul.f32 0.9, %v788_v27  ;;  %736 = vst [vmem:[#allocation2 + $0x18] sm:$0xff] %v733_v29  ;;  %v2750_v36 = vsel %vm1579_vm13, 1.0, %v3636_v1  ;;  %3376 = vmatpush3.msra.mxu1 %v4282_v13 }
 0x1b7   :  { %v2683_v25 = vsel %vm789_vm14, 1.0, %v3636_v1  ;;  %1582 = vst [vmem:[%s5262_s8 + $0x41] sm:$0x1] %v2750_v36  ;;  %v1584_v38 = vadd.f32 %v1583_v33, %v3743_v17  ;;  %3377 = vmatprep.subr.mxu1 %v3636_v1 }
 0x1b8   :  { %792 = vst [vmem:[%s5263_s9 + $0x16] sm:$0x1] %v2683_v25  ;;  %v795_v28 = vadd.f32 %v794_v34, %v793_v54  ;;  %3378 = vmatpush3.msra.mxu1 %v4290_v11 }
 0x1b9   :  { %v1585_v39 = vsub.f32 %v1584_v38, %v2750_v36  ;;  %3379 = vmatprep.subr.mxu1 %v3636_v1 }
 0x1ba   :  { %v796_v40 = vsub.f32 %v795_v28, %v2683_v25  ;;  %3380 = vmatpush3.msra.mxu1 %v4298_v20 }
 0x1bb   :  { %vm1586_vm15 = vcmp.gt.f32.partialorder %v1585_v39, 1.0  ;;  %v1590_v41 = vmul.f32 0.9, %v1585_v39  ;;  %3381 = vmatprep.subr.mxu1 %v3636_v1 }
 0x1bc   :  { %vm797_vm1 = vcmp.gt.f32.partialorder %v796_v40, 1.0  ;;  %v930_v42 = vmul.f32 0.9, %v796_v40  ;;  %v2751_v43 = vsel %vm1586_vm15, 1.0, %v3636_v1  ;;  %3382 = vmatpush3.msra.mxu1 %v4303_v26 }
 0x1bd   :  { %v2684_v44 = vsel %vm797_vm1, 1.0, %v3636_v1  ;;  %v929_v45 = vld [vmem:[#allocation2 + $0x18] sm:$0x1]  ;;  %1589 = vst [vmem:[%s5262_s8 + $0x42] sm:$0x1] %v2751_v43  ;;  %v1591_v47 = vadd.f32 %v1590_v41, %v3743_v17  ;;  %3383 = vmatprep.subr.mxu1 %v3636_v1 }
 0x1be   :  { %800 = vst [vmem:[%s5263_s9 + $0x17] sm:$0x1] %v2684_v44  ;;  %v931_v35 = vadd.f32 %v930_v42, %v929_v45  ;;  %3384 = vmatpush3.msra.mxu1 %v4311_v21  ;;  %v937_v57 = vld [vmem:[#allocation2 + $0x19] sm:$0x1]  ;;  %v945_v3 = vld [vmem:[#allocation2 + $0x1a] sm:$0x1] }
 0x1bf   :  { %v1592_v48 = vsub.f32 %v1591_v47, %v2751_v43  ;;  %3385 = vmatprep.subr.mxu1 %v3636_v1  ;;  %v953_v16 = vld [vmem:[#allocation2 + $0x1b] sm:$0x1]  ;;  %v961_v25 = vld [vmem:[#allocation2 + $0x1c] sm:$0x1] }
 0x1c0   :  { %v932_v49 = vsub.f32 %v931_v35, %v2684_v44  ;;  %3386 = vmatpush3.msra.mxu1 %v4315_v23  ;;  %v969_v44 = vld [vmem:[#allocation2 + $0x1d] sm:$0x1] }
 0x1c1   :  { %vm1593_vm2 = vcmp.gt.f32.partialorder %v1592_v48, 1.0  ;;  %v1597_v51 = vmul.f32 0.9, %v1592_v48  ;;  %3387 = vmatprep.subr.mxu1 %v3636_v1 }
 0x1c2   :  { %vm933_vm3 = vcmp.gt.f32.partialorder %v932_v49, 1.0  ;;  %v938_v52 = vmul.f32 0.9, %v932_v49  ;;  %v2752_v55 = vsel %vm1593_vm2, 1.0, %v3636_v1  ;;  %3388 = vmatpush3.msra.mxu1 %v4320_v37 }
 0x1c3   :  { %v2693_v56 = vsel %vm933_vm3, 1.0, %v3636_v1  ;;  %1596 = vst [vmem:[%s5262_s8 + $0x43] sm:$0x1] %v2752_v55  ;;  %v1598_v59 = vadd.f32 %v1597_v51, %v3743_v17  ;;  %3389 = vmatprep.subr.mxu1 %v3636_v1 }
 0x1c4   :  { %936 = vst [vmem:[%s5263_s9 + $0x18] sm:$0x1] %v2693_v56  ;;  %v939_v60 = vadd.f32 %v938_v52, %v937_v57  ;;  %3390 = vmatpush3.msra.mxu1 %v4332_v30 }
 0x1c5   :  { %v1599_v61 = vsub.f32 %v1598_v59, %v2752_v55  ;;  %3391 = vmatprep.subr.mxu1 %v3636_v1 }
 0x1c6   :  { %v940_v62 = vsub.f32 %v939_v60, %v2693_v56  ;;  %3392 = vmatpush3.msra.mxu1 %v4336_v32  ;;  %v977_v56 = vld [vmem:[#allocation2 + $0x1e] sm:$0x1] }
 0x1c7   :  { %vm1600_vm4 = vcmp.gt.f32.partialorder %v1599_v61, 1.0  ;;  %v1604_v0 = vmul.f32 0.9, %v1599_v61  ;;  %3393 = vmatprep.subr.mxu1 %v3636_v1 }
 0x1c8   :  { %vm941_vm5 = vcmp.gt.f32.partialorder %v940_v62, 1.0  ;;  %v946_v5 = vmul.f32 0.9, %v940_v62  ;;  %v2753_v6 = vsel %vm1600_vm4, 1.0, %v3636_v1  ;;  %3394 = vmatpush3.msra.mxu1 %v4341_v46 }
 0x1c9   :  { %v2694_v8 = vsel %vm941_vm5, 1.0, %v3636_v1  ;;  %1603 = vst [vmem:[%s5262_s8 + $0x44] sm:$0x1] %v2753_v6  ;;  %v1605_v9 = vadd.f32 %v1604_v0, %v3743_v17  ;;  %3395 = vmatprep.subr.mxu1 %v3636_v1 }
 0x1ca   :  { %944 = vst [vmem:[%s5263_s9 + $0x19] sm:$0x1] %v2694_v8  ;;  %v947_v10 = vadd.f32 %v946_v5, %v945_v3  ;;  %3396 = vmatpush3.msra.mxu1 %v4353_v50  ;;  %v4635_v5 = vld [vmem:[%s5258_s4] ss:$0 sm:$0xff] }
 0x1cb   :  { %v1606_v7 = vsub.f32 %v1605_v9, %v2753_v6  ;;  %3397 = vmatprep.subr.mxu1 %v3636_v1 }
 0x1cc   :  { %v948_v12 = vsub.f32 %v947_v10, %v2694_v8  ;;  %3398 = vmatpush3.msra.mxu1 %v4357_v53 }
 0x1cd   :  { %vm1607_vm6 = vcmp.gt.f32.partialorder %v1606_v7, 1.0  ;;  %v1611_v15 = vmul.f32 0.9, %v1606_v7  ;;  %3399 = vmatprep.subr.mxu1 %v3636_v1 }
 0x1ce   :  { %vm949_vm7 = vcmp.gt.f32.partialorder %v948_v12, 1.0  ;;  %v954_v19 = vmul.f32 0.9, %v948_v12  ;;  %v2754_v14 = vsel %vm1607_vm6, 1.0, %v3636_v1  ;;  %3400 = vmatpush3.msra.mxu1 %v4362_v58  ;;  %v985_v12 = vld [vmem:[#allocation2 + $0x1f] sm:$0x1] }
 0x1cf   :  { %v2695_v22 = vsel %vm949_vm7, 1.0, %v3636_v1  ;;  %1610 = vst [vmem:[%s5262_s8 + $0x45] sm:$0x1] %v2754_v14  ;;  %v1612_v24 = vadd.f32 %v1611_v15, %v3743_v17  ;;  %3401 = vmatprep.subr.mxu1 %v3636_v1 }
 0x1d0   :  { %952 = vst [vmem:[%s5263_s9 + $0x1a] sm:$0x1] %v2695_v22  ;;  %v955_v18 = vadd.f32 %v954_v19, %v953_v16  ;;  %3402 = vmatpush3.msra.mxu1 %v4374_v63 }
 0x1d1   :  { %v1613_v27 = vsub.f32 %v1612_v24, %v2754_v14  ;;  %3403 = vmatprep.subr.mxu1 %v3636_v1 }
 0x1d2   :  { %v956_v29 = vsub.f32 %v955_v18, %v2695_v22  ;;  %3404 = vmatpush3.msra.mxu1 %v4378_v2 }
 0x1d3   :  { %vm1614_vm8 = vcmp.gt.f32.partialorder %v1613_v27, 1.0  ;;  %v1618_v31 = vmul.f32 0.9, %v1613_v27  ;;  %3443 = vmatprep.subr.mxu1 %v3636_v1 }
 0x1d4   :  { %vm957_vm9 = vcmp.gt.f32.partialorder %v956_v29, 1.0  ;;  %v962_v33 = vmul.f32 0.9, %v956_v29  ;;  %v2755_v34 = vsel %vm1614_vm8, 1.0, %v3636_v1 }
 0x1d5   :  { %v2696_v36 = vsel %vm957_vm9, 1.0, %v3636_v1  ;;  %1617 = vst [vmem:[%s5262_s8 + $0x46] sm:$0x1] %v2755_v34  ;;  %v1619_v54 = vadd.f32 %v1618_v31, %v3743_v17 }
 0x1d6   :  { %960 = vst [vmem:[%s5263_s9 + $0x1b] sm:$0x1] %v2696_v36  ;;  %v963_v38 = vadd.f32 %v962_v33, %v961_v25 }
 0x1d7   :  { %v1620_v28 = vsub.f32 %v1619_v54, %v2755_v34 }
 0x1d8   :  { %v964_v39 = vsub.f32 %v963_v38, %v2696_v36 }
 0x1d9   :  { %vm1621_vm10 = vcmp.gt.f32.partialorder %v1620_v28, 1.0  ;;  %v1761_v40 = vmul.f32 0.9, %v1620_v28 }
 0x1da   :  { %vm965_vm11 = vcmp.gt.f32.partialorder %v964_v39, 1.0  ;;  %v970_v41 = vmul.f32 0.9, %v964_v39  ;;  %v2756_v42 = vsel %vm1621_vm10, 1.0, %v3636_v1 }
 0x1db   :  { %v2697_v43 = vsel %vm965_vm11, 1.0, %v3636_v1  ;;  %1624 = vst [vmem:[%s5262_s8 + $0x47] sm:$0x1] %v2756_v42  ;;  %v1762_v45 = vadd.f32 %v1761_v40, %v3743_v17 }
 0x1dc   :  { %968 = vst [vmem:[%s5263_s9 + $0x1c] sm:$0x1] %v2697_v43  ;;  %v971_v47 = vadd.f32 %v970_v41, %v969_v44 }
 0x1dd   :  { %v1763_v35 = vsub.f32 %v1762_v45, %v2756_v42 }
 0x1de   :  { %v972_v48 = vsub.f32 %v971_v47, %v2697_v43 }
 0x1df   :  { %v1768_v49 = vmul.f32 0.9, %v1763_v35  ;;  %vm1764_vm12 = vcmp.gt.f32.partialorder %v1763_v35, 1.0 }
 0x1e0   :  { %vm973_vm13 = vcmp.gt.f32.partialorder %v972_v48, 1.0  ;;  %v978_v51 = vmul.f32 0.9, %v972_v48  ;;  %v2765_v52 = vsel %vm1764_vm12, 1.0, %v3636_v1 }
 0x1e1   :  { %v2698_v55 = vsel %vm973_vm13, 1.0, %v3636_v1  ;;  %1767 = vst [vmem:[%s5262_s8 + $0x48] sm:$0x1] %v2765_v52  ;;  %v1769_v57 = vadd.f32 %v1768_v49, %v3743_v17 }
 0x1e2   :  { %976 = vst [vmem:[%s5263_s9 + $0x1d] sm:$0x1] %v2698_v55  ;;  %v979_v59 = vadd.f32 %v978_v51, %v977_v56  ;;  %v1625_v60 = vld [vmem:[%s5262_s8 + $0x40] sm:$0xff] }
 0x1e3   :  { %v924_v61 = vpop.f32.mrf.mxu0  ;;  %3371 = vmatmul.mubr.f32.vlgmr.msra.gmra.mxu0 %v1625_v60  ;;  %v1770_v62 = vsub.f32 %v1769_v57, %v2765_v52 }
 0x1e4   :  { %v980_v0 = vsub.f32 %v979_v59, %v2698_v55  ;;  %v925_v6 = vadd.f32 %v4635_v5, %v924_v61  ;;  %3409 = vmatpush3.msra.mxu0 %v4275_v4  ;;  %3440 = vmatprep.mubr.msk.f32.mxu0 %vm3637_vm0, %v3636_v1 }
 0x1e5   :  { %v3232_v8 = vpop.f32.mrf.mxu0  ;;  %vm1771_vm14 = vcmp.gt.f32.partialorder %v1770_v62, 1.0  ;;  %v1775_v3 = vmul.f32 0.9, %v1770_v62  ;;  %3410 = vmatprep.subr.mxu0 %v3636_v1 }
 0x1e6   :  { %vm981_vm15 = vcmp.gt.f32.partialorder %v980_v0, 1.0  ;;  %v986_v9 = vmul.f32 0.9, %v980_v0  ;;  %928 = vst [vmem:[#allocation2 + $0x20] sm:$0xff] %v925_v6  ;;  %v2766_v10 = vsel %vm1771_vm14, 1.0, %v3636_v1  ;;  %3411 = vmatpush3.msra.mxu0 %v4282_v13 }
 0x1e7   :  { %v2699_v7 = vsel %vm981_vm15, 1.0, %v3636_v1  ;;  %1774 = vst [vmem:[%s5262_s8 + $0x49] sm:$0x1] %v2766_v10  ;;  %v1776_v4 = vadd.f32 %v1775_v3, %v3743_v17  ;;  %3412 = vmatprep.subr.mxu0 %v3636_v1 }
 0x1e8   :  { %984 = vst [vmem:[%s5263_s9 + $0x1e] sm:$0x1] %v2699_v7  ;;  %v987_v15 = vadd.f32 %v986_v9, %v985_v12  ;;  %3413 = vmatpush3.msra.mxu0 %v4290_v11 }
 0x1e9   :  { %v1777_v19 = vsub.f32 %v1776_v4, %v2766_v10  ;;  %3414 = vmatprep.subr.mxu0 %v3636_v1 }
 0x1ea   :  { %v988_v13 = vsub.f32 %v987_v15, %v2699_v7  ;;  %3415 = vmatpush3.msra.mxu0 %v4298_v20 }
 0x1eb   :  { %vm1778_vm1 = vcmp.gt.f32.partialorder %v1777_v19, 1.0  ;;  %v1782_v14 = vmul.f32 0.9, %v1777_v19  ;;  %3416 = vmatprep.subr.mxu0 %v3636_v1 }
 0x1ec   :  { %vm989_vm2 = vcmp.gt.f32.partialorder %v988_v13, 1.0  ;;  %v1122_v22 = vmul.f32 0.9, %v988_v13  ;;  %v2767_v16 = vsel %vm1778_vm1, 1.0, %v3636_v1  ;;  %3417 = vmatpush3.msra.mxu0 %v4303_v26 }
 0x1ed   :  { %v2700_v24 = vsel %vm989_vm2, 1.0, %v3636_v1  ;;  %v1121_v18 = vld [vmem:[#allocation2 + $0x20] sm:$0x1]  ;;  %1781 = vst [vmem:[%s5262_s8 + $0x4a] sm:$0x1] %v2767_v16  ;;  %v1783_v11 = vadd.f32 %v1782_v14, %v3743_v17  ;;  %3418 = vmatprep.subr.mxu0 %v3636_v1 }
 0x1ee   :  { %992 = vst [vmem:[%s5263_s9 + $0x1f] sm:$0x1] %v2700_v24  ;;  %v1123_v20 = vadd.f32 %v1122_v22, %v1121_v18  ;;  %3419 = vmatpush3.msra.mxu0 %v4311_v21  ;;  %v1129_v36 = vld [vmem:[#allocation2 + $0x21] sm:$0x1]  ;;  %v1137_v40 = vld [vmem:[#allocation2 + $0x22] sm:$0x1] }
 0x1ef   :  { %v1784_v27 = vsub.f32 %v1783_v11, %v2767_v16  ;;  %3420 = vmatprep.subr.mxu0 %v3636_v1  ;;  %v1145_v47 = vld [vmem:[#allocation2 + $0x23] sm:$0x1]  ;;  %v1153_v55 = vld [vmem:[#allocation2 + $0x24] sm:$0x1]  ;;  %v1161_v0 = vld [vmem:[#allocation2 + $0x25] sm:$0x1] }
 0x1f0   :  { %v1124_v26 = vsub.f32 %v1123_v20, %v2700_v24  ;;  %3421 = vmatpush3.msra.mxu0 %v4315_v23  ;;  %v1169_v15 = vld [vmem:[#allocation2 + $0x26] sm:$0x1] }
 0x1f1   :  { %vm1785_vm3 = vcmp.gt.f32.partialorder %v1784_v27, 1.0  ;;  %v1789_v29 = vmul.f32 0.9, %v1784_v27  ;;  %3422 = vmatprep.subr.mxu0 %v3636_v1  ;;  %v4748_v11 = vld [vmem:[#allocation8 + $0x78] sm:$0xff] }
 0x1f2   :  { %vm1125_vm4 = vcmp.gt.f32.partialorder %v1124_v26, 1.0  ;;  %v1130_v31 = vmul.f32 0.9, %v1124_v26  ;;  %v2768_v33 = vsel %vm1785_vm3, 1.0, %v3636_v1  ;;  %3423 = vmatpush3.msra.mxu0 %v4320_v37 }
 0x1f3   :  { %v2709_v34 = vsel %vm1125_vm4, 1.0, %v3636_v1  ;;  %1788 = vst [vmem:[%s5262_s8 + $0x4b] sm:$0x1] %v2768_v33  ;;  %v1790_v21 = vadd.f32 %v1789_v29, %v3743_v17  ;;  %3424 = vmatprep.subr.mxu0 %v3636_v1 }
 0x1f4   :  { %1128 = vst [vmem:[%s5263_s9 + $0x20] sm:$0x1] %v2709_v34  ;;  %v1131_v23 = vadd.f32 %v1130_v31, %v1129_v36  ;;  %3425 = vmatpush3.msra.mxu0 %v4332_v30  ;;  %v4755_v31 = vld [vmem:[#allocation8 + $0x70] sm:$0xff] }
 0x1f5   :  { %v1791_v25 = vsub.f32 %v1790_v21, %v2768_v33  ;;  %3426 = vmatprep.subr.mxu0 %v3636_v1 }
 0x1f6   :  { %v1132_v37 = vsub.f32 %v1131_v23, %v2709_v34  ;;  %3427 = vmatpush3.msra.mxu0 %v4336_v32  ;;  %v1177_v34 = vld [vmem:[#allocation2 + $0x27] sm:$0x1]  ;;  %v4767_v23 = vld [vmem:[#allocation8 + $0x68] sm:$0xff] }
 0x1f7   :  { %vm1792_vm5 = vcmp.gt.f32.partialorder %v1791_v25, 1.0  ;;  %v1796_v54 = vmul.f32 0.9, %v1791_v25  ;;  %3428 = vmatprep.subr.mxu0 %v3636_v1 }
 0x1f8   :  { %vm1133_vm6 = vcmp.gt.f32.partialorder %v1132_v37, 1.0  ;;  %v1138_v38 = vmul.f32 0.9, %v1132_v37  ;;  %v2769_v28 = vsel %vm1792_vm5, 1.0, %v3636_v1  ;;  %3429 = vmatpush3.msra.mxu0 %v4341_v46 }
 0x1f9   :  { %v2710_v39 = vsel %vm1133_vm6, 1.0, %v3636_v1  ;;  %1795 = vst [vmem:[%s5262_s8 + $0x4c] sm:$0x1] %v2769_v28  ;;  %v1797_v30 = vadd.f32 %v1796_v54, %v3743_v17  ;;  %3430 = vmatprep.subr.mxu0 %v3636_v1  ;;  %v4771_v54 = vld [vmem:[#allocation8 + $0x60] sm:$0xff] }
 0x1fa   :  { %1136 = vst [vmem:[%s5263_s9 + $0x21] sm:$0x1] %v2710_v39  ;;  %v1139_v32 = vadd.f32 %v1138_v38, %v1137_v40  ;;  %3431 = vmatpush3.msra.mxu0 %v4353_v50  ;;  %v4776_v40 = vld [vmem:[#allocation8 + $0x58] sm:$0xff] }
 0x1fb   :  { %v1798_v41 = vsub.f32 %v1797_v30, %v2769_v28  ;;  %3432 = vmatprep.subr.mxu0 %v3636_v1 }
 0x1fc   :  { %v1140_v46 = vsub.f32 %v1139_v32, %v2710_v39  ;;  %3433 = vmatpush3.msra.mxu0 %v4357_v53 }
 0x1fd   :  { %vm1799_vm7 = vcmp.gt.f32.partialorder %v1798_v41, 1.0  ;;  %v1803_v42 = vmul.f32 0.9, %v1798_v41  ;;  %3434 = vmatprep.subr.mxu0 %v3636_v1 }
 0x1fe   :  { %vm1141_vm8 = vcmp.gt.f32.partialorder %v1140_v46, 1.0  ;;  %v1146_v43 = vmul.f32 0.9, %v1140_v46  ;;  %v2770_v44 = vsel %vm1799_vm7, 1.0, %v3636_v1  ;;  %3435 = vmatpush3.msra.mxu0 %v4362_v58 }
 0x1ff   :  { %v2711_v45 = vsel %vm1141_vm8, 1.0, %v3636_v1  ;;  %1802 = vst [vmem:[%s5262_s8 + $0x4d] sm:$0x1] %v2770_v44  ;;  %v1804_v50 = vadd.f32 %v1803_v42, %v3743_v17  ;;  %3436 = vmatprep.subr.mxu0 %v3636_v1  ;;  %v4788_v42 = vld [vmem:[#allocation8 + $0x50] sm:$0xff] }
 0x200   :  { %1144 = vst [vmem:[%s5263_s9 + $0x22] sm:$0x1] %v2711_v45  ;;  %v1147_v53 = vadd.f32 %v1146_v43, %v1145_v47  ;;  %3437 = vmatpush3.msra.mxu0 %v4374_v63 }
 0x201   :  { %v1805_v35 = vsub.f32 %v1804_v50, %v2770_v44  ;;  %3438 = vmatprep.subr.mxu0 %v3636_v1 }
 0x202   :  { %v1148_v58 = vsub.f32 %v1147_v53, %v2711_v45  ;;  %3439 = vmatpush3.msra.mxu0 %v4378_v2  ;;  %v4792_v45 = vld [vmem:[#allocation8 + $0x48] sm:$0xff] }
 0x203   :  { %vm1806_vm9 = vcmp.gt.f32.partialorder %v1805_v35, 1.0  ;;  %v1810_v48 = vmul.f32 0.9, %v1805_v35  ;;  %3478 = vmatprep.subr.mxu0 %v3636_v1  ;;  %v4797_v35 = vld [vmem:[#allocation8 + $0x40] sm:$0xff] }
 0x204   :  { %vm1149_vm10 = vcmp.gt.f32.partialorder %v1148_v58, 1.0  ;;  %v1154_v49 = vmul.f32 0.9, %v1148_v58  ;;  %v2771_v51 = vsel %vm1806_vm9, 1.0, %v3636_v1 }
 0x205   :  { %v2712_v52 = vsel %vm1149_vm10, 1.0, %v3636_v1  ;;  %1809 = vst [vmem:[%s5262_s8 + $0x4e] sm:$0x1] %v2771_v51  ;;  %v1811_v63 = vadd.f32 %v1810_v48, %v3743_v17 }
 0x206   :  { %1152 = vst [vmem:[%s5263_s9 + $0x23] sm:$0x1] %v2712_v52  ;;  %v1155_v2 = vadd.f32 %v1154_v49, %v1153_v55 }
 0x207   :  { %v1812_v56 = vsub.f32 %v1811_v63, %v2771_v51 }
 0x208   :  { %v1156_v57 = vsub.f32 %v1155_v2, %v2712_v52  ;;  %v4809_v52 = vld [vmem:[#allocation8 + $0x38] sm:$0xff]  ;;  %v4813_v2 = vld [vmem:[#allocation8 + $0x30] sm:$0xff] }
 0x209   :  { %vm1813_vm11 = vcmp.gt.f32.partialorder %v1812_v56, 1.0  ;;  %v1953_v59 = vmul.f32 0.9, %v1812_v56 }
 0x20a   :  { %vm1157_vm12 = vcmp.gt.f32.partialorder %v1156_v57, 1.0  ;;  %v1162_v60 = vmul.f32 0.9, %v1156_v57  ;;  %v2772_v61 = vsel %vm1813_vm11, 1.0, %v3636_v1 }
 0x20b   :  { %v2713_v62 = vsel %vm1157_vm12, 1.0, %v3636_v1  ;;  %1816 = vst [vmem:[%s5262_s8 + $0x4f] sm:$0x1] %v2772_v61  ;;  %v1954_v6 = vadd.f32 %v1953_v59, %v3743_v17 }
 0x20c   :  { %1160 = vst [vmem:[%s5263_s9 + $0x24] sm:$0x1] %v2713_v62  ;;  %v1163_v8 = vadd.f32 %v1162_v60, %v1161_v0  ;;  %v4818_v60 = vld [vmem:[#allocation8 + $0x28] sm:$0xff] }
 0x20d   :  { %v1955_v3 = vsub.f32 %v1954_v6, %v2772_v61 }
 0x20e   :  { %v1164_v9 = vsub.f32 %v1163_v8, %v2713_v62  ;;  %v4830_v8 = vld [vmem:[#allocation8 + $0x20] sm:$0xff] }
 0x20f   :  { %v1960_v10 = vmul.f32 0.9, %v1955_v3  ;;  %vm1956_vm13 = vcmp.gt.f32.partialorder %v1955_v3, 1.0 }
 0x210   :  { %vm1165_vm14 = vcmp.gt.f32.partialorder %v1164_v9, 1.0  ;;  %v1170_v7 = vmul.f32 0.9, %v1164_v9  ;;  %v2781_v12 = vsel %vm1956_vm13, 1.0, %v3636_v1 }
 0x211   :  { %v2714_v4 = vsel %vm1165_vm14, 1.0, %v3636_v1  ;;  %1959 = vst [vmem:[%s5262_s8 + $0x50] sm:$0x1] %v2781_v12  ;;  %v1961_v19 = vadd.f32 %v1960_v10, %v3743_v17  ;;  %v4834_v10 = vld [vmem:[#allocation8 + $0x18] sm:$0xff] }
 0x212   :  { %1168 = vst [vmem:[%s5263_s9 + $0x25] sm:$0x1] %v2714_v4  ;;  %v1171_v13 = vadd.f32 %v1170_v7, %v1169_v15  ;;  %v1817_v14 = vld [vmem:[%s5262_s8 + $0x48] sm:$0xff]  ;;  %v4839_v15 = vld [vmem:[#allocation8 + $0x10] sm:$0xff] }
 0x213   :  { %v1116_v22 = vpop.f32.mrf.mxu1  ;;  %3406 = vmatmul.mubr.f32.vlgmr.msra.gmra.mxu1 %v1817_v14  ;;  %v1962_v16 = vsub.f32 %v1961_v19, %v2781_v12 }
 0x214   :  { %v1172_v24 = vsub.f32 %v1171_v13, %v2714_v4  ;;  %v1117_v18 = vadd.f32 %v4635_v5, %v1116_v22  ;;  %3444 = vmatpush3.msra.mxu1 %v4748_v11  ;;  %3475 = vmatprep.mubr.msk.f32.mxu1 %vm3637_vm0, %v3636_v1 }
 0x215   :  { %v3267_v20 = vpop.f32.mrf.mxu1  ;;  %vm1963_vm15 = vcmp.gt.f32.partialorder %v1962_v16, 1.0  ;;  %v1967_v27 = vmul.f32 0.9, %v1962_v16  ;;  %3445 = vmatprep.subr.mxu1 %v3636_v1  ;;  %v4851_v16 = vld [vmem:[#allocation8 + $0x8] sm:$0xff] }
 0x216   :  { %vm1173_vm1 = vcmp.gt.f32.partialorder %v1172_v24, 1.0  ;;  %v1178_v26 = vmul.f32 0.9, %v1172_v24  ;;  %1120 = vst [vmem:[#allocation2 + $0x28] sm:$0xff] %v1117_v18  ;;  %v2782_v29 = vsel %vm1963_vm15, 1.0, %v3636_v1  ;;  %3446 = vmatpush3.msra.mxu1 %v4755_v31  ;;  %v4855_v20 = vld [vmem:[#allocation8] sm:$0xff] }
 0x217   :  { %v2715_v33 = vsel %vm1173_vm1, 1.0, %v3636_v1  ;;  %1966 = vst [vmem:[%s5262_s8 + $0x51] sm:$0x1] %v2782_v29  ;;  %v1968_v36 = vadd.f32 %v1967_v27, %v3743_v17  ;;  %3447 = vmatprep.subr.mxu1 %v3636_v1 }
 0x218   :  { %1176 = vst [vmem:[%s5263_s9 + $0x26] sm:$0x1] %v2715_v33  ;;  %v1179_v21 = vadd.f32 %v1178_v26, %v1177_v34  ;;  %3448 = vmatpush3.msra.mxu1 %v4767_v23 }
 0x219   :  { %v1969_v25 = vsub.f32 %v1968_v36, %v2782_v29  ;;  %3449 = vmatprep.subr.mxu1 %v3636_v1 }
 0x21a   :  { %v1180_v37 = vsub.f32 %v1179_v21, %v2715_v33  ;;  %3450 = vmatpush3.msra.mxu1 %v4771_v54 }
 0x21b   :  { %vm1970_vm2 = vcmp.gt.f32.partialorder %v1969_v25, 1.0  ;;  %v1974_v38 = vmul.f32 0.9, %v1969_v25  ;;  %3451 = vmatprep.subr.mxu1 %v3636_v1 }
 0x21c   :  { %vm1181_vm3 = vcmp.gt.f32.partialorder %v1180_v37, 1.0  ;;  %v1314_v28 = vmul.f32 0.9, %v1180_v37  ;;  %v2783_v39 = vsel %vm1970_vm2, 1.0, %v3636_v1  ;;  %3452 = vmatpush3.msra.mxu1 %v4776_v40 }
 0x21d   :  { %v2716_v30 = vsel %vm1181_vm3, 1.0, %v3636_v1  ;;  %v1313_v32 = vld [vmem:[#allocation2 + $0x28] sm:$0x1]  ;;  %1973 = vst [vmem:[%s5262_s8 + $0x52] sm:$0x1] %v2783_v39  ;;  %v1975_v41 = vadd.f32 %v1974_v38, %v3743_v17  ;;  %3453 = vmatprep.subr.mxu1 %v3636_v1 }
 0x21e   :  { %1184 = vst [vmem:[%s5263_s9 + $0x27] sm:$0x1] %v2716_v30  ;;  %v1315_v46 = vadd.f32 %v1314_v28, %v1313_v32  ;;  %3454 = vmatpush3.msra.mxu1 %v4788_v42  ;;  %v1321_v48 = vld [vmem:[#allocation2 + $0x29] sm:$0x1]  ;;  %v1329_v62 = vld [vmem:[#allocation2 + $0x2a] sm:$0x1] }
 0x21f   :  { %v1976_v43 = vsub.f32 %v1975_v41, %v2783_v39  ;;  %3455 = vmatprep.subr.mxu1 %v3636_v1  ;;  %v1337_v13 = vld [vmem:[#allocation2 + $0x2b] sm:$0x1]  ;;  %v1345_v34 = vld [vmem:[#allocation2 + $0x2c] sm:$0x1]  ;;  %v1353_v32 = vld [vmem:[#allocation2 + $0x2d] sm:$0x1] }
 0x220   :  { %v1316_v44 = vsub.f32 %v1315_v46, %v2716_v30  ;;  %3456 = vmatpush3.msra.mxu1 %v4792_v45 }
 0x221   :  { %vm1977_vm4 = vcmp.gt.f32.partialorder %v1976_v43, 1.0  ;;  %v1981_v47 = vmul.f32 0.9, %v1976_v43  ;;  %3457 = vmatprep.subr.mxu1 %v3636_v1 }
 0x222   :  { %vm1317_vm5 = vcmp.gt.f32.partialorder %v1316_v44, 1.0  ;;  %v1322_v50 = vmul.f32 0.9, %v1316_v44  ;;  %v2784_v53 = vsel %vm1977_vm4, 1.0, %v3636_v1  ;;  %3458 = vmatpush3.msra.mxu1 %v4797_v35 }
 0x223   :  { %v2725_v58 = vsel %vm1317_vm5, 1.0, %v3636_v1  ;;  %1980 = vst [vmem:[%s5262_s8 + $0x53] sm:$0x1] %v2784_v53  ;;  %v1982_v49 = vadd.f32 %v1981_v47, %v3743_v17  ;;  %3459 = vmatprep.subr.mxu1 %v3636_v1 }
 0x224   :  { %1320 = vst [vmem:[%s5263_s9 + $0x28] sm:$0x1] %v2725_v58  ;;  %v1323_v51 = vadd.f32 %v1322_v50, %v1321_v48  ;;  %3460 = vmatpush3.msra.mxu1 %v4809_v52  ;;  %v1361_v48 = vld [vmem:[#allocation2 + $0x2e] sm:$0x1] }
 0x225   :  { %v1983_v55 = vsub.f32 %v1982_v49, %v2784_v53  ;;  %3461 = vmatprep.subr.mxu1 %v3636_v1 }
 0x226   :  { %v1324_v63 = vsub.f32 %v1323_v51, %v2725_v58  ;;  %3462 = vmatpush3.msra.mxu1 %v4813_v2 }
 0x227   :  { %vm1984_vm6 = vcmp.gt.f32.partialorder %v1983_v55, 1.0  ;;  %v1988_v56 = vmul.f32 0.9, %v1983_v55  ;;  %3463 = vmatprep.subr.mxu1 %v3636_v1 }
 0x228   :  { %vm1325_vm7 = vcmp.gt.f32.partialorder %v1324_v63, 1.0  ;;  %v1330_v57 = vmul.f32 0.9, %v1324_v63  ;;  %v2785_v59 = vsel %vm1984_vm6, 1.0, %v3636_v1  ;;  %3464 = vmatpush3.msra.mxu1 %v4818_v60 }
 0x229   :  { %v2726_v61 = vsel %vm1325_vm7, 1.0, %v3636_v1  ;;  %1987 = vst [vmem:[%s5262_s8 + $0x54] sm:$0x1] %v2785_v59  ;;  %v1989_v0 = vadd.f32 %v1988_v56, %v3743_v17  ;;  %3465 = vmatprep.subr.mxu1 %v3636_v1 }
 0x22a   :  { %1328 = vst [vmem:[%s5263_s9 + $0x29] sm:$0x1] %v2726_v61  ;;  %v1331_v6 = vadd.f32 %v1330_v57, %v1329_v62  ;;  %3466 = vmatpush3.msra.mxu1 %v4830_v8 }
 0x22b   :  { %v1990_v3 = vsub.f32 %v1989_v0, %v2785_v59  ;;  %3467 = vmatprep.subr.mxu1 %v3636_v1 }
 0x22c   :  { %v1332_v9 = vsub.f32 %v1331_v6, %v2726_v61  ;;  %3468 = vmatpush3.msra.mxu1 %v4834_v10 }
 0x22d   :  { %vm1991_vm8 = vcmp.gt.f32.partialorder %v1990_v3, 1.0  ;;  %v1995_v7 = vmul.f32 0.9, %v1990_v3  ;;  %3469 = vmatprep.subr.mxu1 %v3636_v1 }
 0x22e   :  { %vm1333_vm9 = vcmp.gt.f32.partialorder %v1332_v9, 1.0  ;;  %v1338_v12 = vmul.f32 0.9, %v1332_v9  ;;  %v2786_v4 = vsel %vm1991_vm8, 1.0, %v3636_v1  ;;  %3470 = vmatpush3.msra.mxu1 %v4839_v15  ;;  %v1369_v9 = vld [vmem:[#allocation2 + $0x2f] sm:$0x1] }
 0x22f   :  { %v2727_v19 = vsel %vm1333_vm9, 1.0, %v3636_v1  ;;  %1994 = vst [vmem:[%s5262_s8 + $0x55] sm:$0x1] %v2786_v4  ;;  %v1996_v14 = vadd.f32 %v1995_v7, %v3743_v17  ;;  %3471 = vmatprep.subr.mxu1 %v3636_v1 }
 0x230   :  { %1336 = vst [vmem:[%s5263_s9 + $0x2a] sm:$0x1] %v2727_v19  ;;  %v1339_v22 = vadd.f32 %v1338_v12, %v1337_v13  ;;  %3472 = vmatpush3.msra.mxu1 %v4851_v16 }
 0x231   :  { %v1997_v24 = vsub.f32 %v1996_v14, %v2786_v4  ;;  %3473 = vmatprep.subr.mxu1 %v3636_v1 }
 0x232   :  { %v1340_v18 = vsub.f32 %v1339_v22, %v2727_v19  ;;  %3474 = vmatpush3.msra.mxu1 %v4855_v20 }
 0x233   :  { %vm1998_vm10 = vcmp.gt.f32.partialorder %v1997_v24, 1.0  ;;  %v2002_v27 = vmul.f32 0.9, %v1997_v24 }
 0x234   :  { %vm1341_vm11 = vcmp.gt.f32.partialorder %v1340_v18, 1.0  ;;  %v1346_v26 = vmul.f32 0.9, %v1340_v18  ;;  %v2787_v29 = vsel %vm1998_vm10, 1.0, %v3636_v1 }
 0x235   :  { %v2728_v33 = vsel %vm1341_vm11, 1.0, %v3636_v1  ;;  %2001 = vst [vmem:[%s5262_s8 + $0x56] sm:$0x1] %v2787_v29  ;;  %v2003_v36 = vadd.f32 %v2002_v27, %v3743_v17 }
 0x236   :  { %1344 = vst [vmem:[%s5263_s9 + $0x2b] sm:$0x1] %v2728_v33  ;;  %v1347_v21 = vadd.f32 %v1346_v26, %v1345_v34 }
 0x237   :  { %v2004_v25 = vsub.f32 %v2003_v36, %v2787_v29 }
 0x238   :  { %v1348_v37 = vsub.f32 %v1347_v21, %v2728_v33 }
 0x239   :  { %vm2005_vm12 = vcmp.gt.f32.partialorder %v2004_v25, 1.0  ;;  %v2145_v38 = vmul.f32 0.9, %v2004_v25 }
 0x23a   :  { %vm1349_vm13 = vcmp.gt.f32.partialorder %v1348_v37, 1.0  ;;  %v1354_v28 = vmul.f32 0.9, %v1348_v37  ;;  %v2788_v39 = vsel %vm2005_vm12, 1.0, %v3636_v1 }
 0x23b   :  { %v2729_v30 = vsel %vm1349_vm13, 1.0, %v3636_v1  ;;  %2008 = vst [vmem:[%s5262_s8 + $0x57] sm:$0x1] %v2788_v39  ;;  %v2146_v41 = vadd.f32 %v2145_v38, %v3743_v17 }
 0x23c   :  { %1352 = vst [vmem:[%s5263_s9 + $0x2c] sm:$0x1] %v2729_v30  ;;  %v1355_v46 = vadd.f32 %v1354_v28, %v1353_v32 }
 0x23d   :  { %v2147_v43 = vsub.f32 %v2146_v41, %v2788_v39 }
 0x23e   :  { %v1356_v44 = vsub.f32 %v1355_v46, %v2729_v30 }
 0x23f   :  { %v2152_v47 = vmul.f32 0.9, %v2147_v43  ;;  %vm2148_vm14 = vcmp.gt.f32.partialorder %v2147_v43, 1.0 }
 0x240   :  { %vm1357_vm15 = vcmp.gt.f32.partialorder %v1356_v44, 1.0  ;;  %v1362_v50 = vmul.f32 0.9, %v1356_v44  ;;  %v2797_v53 = vsel %vm2148_vm14, 1.0, %v3636_v1 }
 0x241   :  { %v2730_v58 = vsel %vm1357_vm15, 1.0, %v3636_v1  ;;  %2151 = vst [vmem:[%s5262_s8 + $0x58] sm:$0x1] %v2797_v53  ;;  %v2153_v49 = vadd.f32 %v2152_v47, %v3743_v17 }
 0x242   :  { %1360 = vst [vmem:[%s5263_s9 + $0x2d] sm:$0x1] %v2730_v58  ;;  %v1363_v51 = vadd.f32 %v1362_v50, %v1361_v48  ;;  %v2009_v55 = vld [vmem:[%s5262_s8 + $0x50] sm:$0xff] }
 0x243   :  { %v1308_v63 = vpop.f32.mrf.mxu0  ;;  %3441 = vmatmul.mubr.f32.vlgmr.msra.gmra.mxu0 %v2009_v55  ;;  %v2154_v56 = vsub.f32 %v2153_v49, %v2797_v53 }
 0x244   :  { %v1364_v57 = vsub.f32 %v1363_v51, %v2730_v58  ;;  %v1309_v59 = vadd.f32 %v4635_v5, %v1308_v63  ;;  %3479 = vmatpush3.msra.mxu0 %v4748_v11  ;;  %3510 = vmatprep.mubr.msk.f32.mxu0 %vm3637_vm0, %v3636_v1 }
 0x245   :  { %v3302_v61 = vpop.f32.mrf.mxu0  ;;  %vm2155_vm1 = vcmp.gt.f32.partialorder %v2154_v56, 1.0  ;;  %v2159_v62 = vmul.f32 0.9, %v2154_v56  ;;  %3480 = vmatprep.subr.mxu0 %v3636_v1 }
 0x246   :  { %vm1365_vm2 = vcmp.gt.f32.partialorder %v1364_v57, 1.0  ;;  %v1370_v0 = vmul.f32 0.9, %v1364_v57  ;;  %1312 = vst [vmem:[#allocation2 + $0x30] sm:$0xff] %v1309_v59  ;;  %v2798_v6 = vsel %vm2155_vm1, 1.0, %v3636_v1  ;;  %3481 = vmatpush3.msra.mxu0 %v4755_v31 }
 0x247   :  { %v2731_v3 = vsel %vm1365_vm2, 1.0, %v3636_v1  ;;  %2158 = vst [vmem:[%s5262_s8 + $0x59] sm:$0x1] %v2798_v6  ;;  %v2160_v11 = vadd.f32 %v2159_v62, %v3743_v17  ;;  %3482 = vmatprep.subr.mxu0 %v3636_v1 }
 0x248   :  { %1368 = vst [vmem:[%s5263_s9 + $0x2e] sm:$0x1] %v2731_v3  ;;  %v1371_v7 = vadd.f32 %v1370_v0, %v1369_v9  ;;  %3483 = vmatpush3.msra.mxu0 %v4767_v23 }
 0x249   :  { %v2161_v12 = vsub.f32 %v2160_v11, %v2798_v6  ;;  %3484 = vmatprep.subr.mxu0 %v3636_v1 }
 0x24a   :  { %v1372_v31 = vsub.f32 %v1371_v7, %v2731_v3  ;;  %3485 = vmatpush3.msra.mxu0 %v4771_v54 }
 0x24b   :  { %vm2162_vm0 = vcmp.gt.f32.partialorder %v2161_v12, 1.0  ;;  %v2166_v4 = vmul.f32 0.9, %v2161_v12  ;;  %3486 = vmatprep.subr.mxu0 %v3636_v1 }
 0x24c   :  { %vm1373_vm3 = vcmp.gt.f32.partialorder %v1372_v31, 1.0  ;;  %v1506_v19 = vmul.f32 0.9, %v1372_v31  ;;  %v2799_v13 = vsel %vm2162_vm0, 1.0, %v3636_v1  ;;  %3487 = vmatpush3.msra.mxu0 %v4776_v40 }
 0x24d   :  { %v2732_v14 = vsel %vm1373_vm3, 1.0, %v3636_v1  ;;  %v1505_v22 = vld [vmem:[#allocation2 + $0x30] sm:$0x1]  ;;  %2165 = vst [vmem:[%s5262_s8 + $0x5a] sm:$0x1] %v2799_v13  ;;  %v2167_v23 = vadd.f32 %v2166_v4, %v3743_v17  ;;  %3488 = vmatprep.subr.mxu0 %v3636_v1 }
 0x24e   :  { %1376 = vst [vmem:[%s5263_s9 + $0x2f] sm:$0x1] %v2732_v14  ;;  %v1507_v54 = vadd.f32 %v1506_v19, %v1505_v22  ;;  %3489 = vmatpush3.msra.mxu0 %v4788_v42  ;;  %v1513_v33 = vld [vmem:[#allocation2 + $0x31] sm:$0x1]  ;;  %v1521_v38 = vld [vmem:[#allocation2 + $0x32] sm:$0x1] }
 0x24f   :  { %v2168_v24 = vsub.f32 %v2167_v23, %v2799_v13  ;;  %3490 = vmatprep.subr.mxu0 %v3636_v1  ;;  %v1529_v46 = vld [vmem:[#allocation2 + $0x33] sm:$0x1]  ;;  %v1537_v58 = vld [vmem:[#allocation2 + $0x34] sm:$0x1]  ;;  %v1545_v57 = vld [vmem:[#allocation2 + $0x35] sm:$0x1] }
 0x250   :  { %v1508_v40 = vsub.f32 %v1507_v54, %v2732_v14  ;;  %3491 = vmatpush3.msra.mxu0 %v4792_v45  ;;  %v1553_v7 = vld [vmem:[#allocation2 + $0x36] sm:$0x1] }
 0x251   :  { %vm2169_vm4 = vcmp.gt.f32.partialorder %v2168_v24, 1.0  ;;  %v2173_v18 = vmul.f32 0.9, %v2168_v24  ;;  %3492 = vmatprep.subr.mxu0 %v3636_v1 }
 0x252   :  { %vm1509_vm5 = vcmp.gt.f32.partialorder %v1508_v40, 1.0  ;;  %v1514_v27 = vmul.f32 0.9, %v1508_v40  ;;  %v2800_v26 = vsel %vm2169_vm4, 1.0, %v3636_v1  ;;  %3493 = vmatpush3.msra.mxu0 %v4797_v35 }
 0x253   :  { %v2741_v29 = vsel %vm1509_vm5, 1.0, %v3636_v1  ;;  %2172 = vst [vmem:[%s5262_s8 + $0x5b] sm:$0x1] %v2800_v26  ;;  %v2174_v42 = vadd.f32 %v2173_v18, %v3743_v17  ;;  %3494 = vmatprep.subr.mxu0 %v3636_v1 }
 0x254   :  { %1512 = vst [vmem:[%s5263_s9 + $0x30] sm:$0x1] %v2741_v29  ;;  %v1515_v45 = vadd.f32 %v1514_v27, %v1513_v33  ;;  %3495 = vmatpush3.msra.mxu0 %v4809_v52  ;;  %v1561_v27 = vld [vmem:[#allocation2 + $0x37] sm:$0x1] }
 0x255   :  { %v2175_v34 = vsub.f32 %v2174_v42, %v2800_v26  ;;  %3496 = vmatprep.subr.mxu0 %v3636_v1 }
 0x256   :  { %v1516_v35 = vsub.f32 %v1515_v45, %v2741_v29  ;;  %3497 = vmatpush3.msra.mxu0 %v4813_v2 }
 0x257   :  { %vm2176_vm6 = vcmp.gt.f32.partialorder %v2175_v34, 1.0  ;;  %v2180_v36 = vmul.f32 0.9, %v2175_v34  ;;  %3498 = vmatprep.subr.mxu0 %v3636_v1 }
 0x258   :  { %vm1517_vm7 = vcmp.gt.f32.partialorder %v1516_v35, 1.0  ;;  %v1522_v21 = vmul.f32 0.9, %v1516_v35  ;;  %v2801_v25 = vsel %vm2176_vm6, 1.0, %v3636_v1  ;;  %3499 = vmatpush3.msra.mxu0 %v4818_v60 }
 0x259   :  { %v2742_v37 = vsel %vm1517_vm7, 1.0, %v3636_v1  ;;  %2179 = vst [vmem:[%s5262_s8 + $0x5c] sm:$0x1] %v2801_v25  ;;  %v2181_v52 = vadd.f32 %v2180_v36, %v3743_v17  ;;  %3500 = vmatprep.subr.mxu0 %v3636_v1 }
 0x25a   :  { %1520 = vst [vmem:[%s5263_s9 + $0x31] sm:$0x1] %v2742_v37  ;;  %v1523_v2 = vadd.f32 %v1522_v21, %v1521_v38  ;;  %3501 = vmatpush3.msra.mxu0 %v4830_v8 }
 0x25b   :  { %v2182_v28 = vsub.f32 %v2181_v52, %v2801_v25  ;;  %3502 = vmatprep.subr.mxu0 %v3636_v1 }
 0x25c   :  { %v1524_v60 = vsub.f32 %v1523_v2, %v2742_v37  ;;  %3503 = vmatpush3.msra.mxu0 %v4834_v10 }
 0x25d   :  { %vm2183_vm8 = vcmp.gt.f32.partialorder %v2182_v28, 1.0  ;;  %v2187_v39 = vmul.f32 0.9, %v2182_v28  ;;  %3504 = vmatprep.subr.mxu0 %v3636_v1 }
 0x25e   :  { %vm1525_vm9 = vcmp.gt.f32.partialorder %v1524_v60, 1.0  ;;  %v1530_v30 = vmul.f32 0.9, %v1524_v60  ;;  %v2802_v32 = vsel %vm2183_vm8, 1.0, %v3636_v1  ;;  %3505 = vmatpush3.msra.mxu0 %v4839_v15 }
 0x25f   :  { %v2743_v41 = vsel %vm1525_vm9, 1.0, %v3636_v1  ;;  %2186 = vst [vmem:[%s5262_s8 + $0x5d] sm:$0x1] %v2802_v32  ;;  %v2188_v8 = vadd.f32 %v2187_v39, %v3743_v17  ;;  %3506 = vmatprep.subr.mxu0 %v3636_v1 }
 0x260   :  { %1528 = vst [vmem:[%s5263_s9 + $0x32] sm:$0x1] %v2743_v41  ;;  %v1531_v10 = vadd.f32 %v1530_v30, %v1529_v46  ;;  %3507 = vmatpush3.msra.mxu0 %v4851_v16 }
 0x261   :  { %v2189_v43 = vsub.f32 %v2188_v8, %v2802_v32  ;;  %3508 = vmatprep.subr.mxu0 %v3636_v1 }
 0x262   :  { %v1532_v15 = vsub.f32 %v1531_v10, %v2743_v41  ;;  %3509 = vmatpush3.msra.mxu0 %v4855_v20 }
 0x263   :  { %vm2190_vm10 = vcmp.gt.f32.partialorder %v2189_v43, 1.0  ;;  %v2194_v44 = vmul.f32 0.9, %v2189_v43 }
 0x264   :  { %vm1533_vm11 = vcmp.gt.f32.partialorder %v1532_v15, 1.0  ;;  %v1538_v47 = vmul.f32 0.9, %v1532_v15  ;;  %v2803_v50 = vsel %vm2190_vm10, 1.0, %v3636_v1 }
 0x265   :  { %v2744_v53 = vsel %vm1533_vm11, 1.0, %v3636_v1  ;;  %2193 = vst [vmem:[%s5262_s8 + $0x5e] sm:$0x1] %v2803_v50  ;;  %v2195_v16 = vadd.f32 %v2194_v44, %v3743_v17 }
 0x266   :  { %1536 = vst [vmem:[%s5263_s9 + $0x33] sm:$0x1] %v2744_v53  ;;  %v1539_v20 = vadd.f32 %v1538_v47, %v1537_v58 }
 0x267   :  { %v2196_v48 = vsub.f32 %v2195_v16, %v2803_v50 }
 0x268   :  { %v1540_v49 = vsub.f32 %v1539_v20, %v2744_v53 }
 0x269   :  { %vm2197_vm12 = vcmp.gt.f32.partialorder %v2196_v48, 1.0  ;;  %v2337_v51 = vmul.f32 0.9, %v2196_v48 }
 0x26a   :  { %vm1541_vm13 = vcmp.gt.f32.partialorder %v1540_v49, 1.0  ;;  %v1546_v55 = vmul.f32 0.9, %v1540_v49  ;;  %v2804_v63 = vsel %vm2197_vm12, 1.0, %v3636_v1 }
 0x26b   :  { %v2745_v56 = vsel %vm1541_vm13, 1.0, %v3636_v1  ;;  %2200 = vst [vmem:[%s5262_s8 + $0x5f] sm:$0x1] %v2804_v63  ;;  %v2338_v59 = vadd.f32 %v2337_v51, %v3743_v17 }
 0x26c   :  { %1544 = vst [vmem:[%s5263_s9 + $0x34] sm:$0x1] %v2745_v56  ;;  %v1547_v61 = vadd.f32 %v1546_v55, %v1545_v57 }
 0x26d   :  { %v2339_v62 = vsub.f32 %v2338_v59, %v2804_v63 }
 0x26e   :  { %v1548_v0 = vsub.f32 %v1547_v61, %v2745_v56 }
 0x26f   :  { %v2344_v6 = vmul.f32 0.9, %v2339_v62  ;;  %vm2340_vm14 = vcmp.gt.f32.partialorder %v2339_v62, 1.0 }
 0x270   :  { %vm1549_vm15 = vcmp.gt.f32.partialorder %v1548_v0, 1.0  ;;  %v1554_v3 = vmul.f32 0.9, %v1548_v0  ;;  %v2813_v9 = vsel %vm2340_vm14, 1.0, %v3636_v1 }
 0x271   :  { %v2746_v11 = vsel %vm1549_vm15, 1.0, %v3636_v1  ;;  %2343 = vst [vmem:[%s5262_s8 + $0x60] sm:$0x1] %v2813_v9  ;;  %v2345_v12 = vadd.f32 %v2344_v6, %v3743_v17 }
 0x272   :  { %1552 = vst [vmem:[%s5263_s9 + $0x35] sm:$0x1] %v2746_v11  ;;  %v1555_v31 = vadd.f32 %v1554_v3, %v1553_v7  ;;  %v2201_v4 = vld [vmem:[%s5262_s8 + $0x58] sm:$0xff] }
 0x273   :  { %v1500_v19 = vpop.f32.mrf.mxu1  ;;  %3476 = vmatmul.mubr.f32.vlgmr.msra.gmra.mxu1 %v2201_v4  ;;  %v2346_v13 = vsub.f32 %v2345_v12, %v2813_v9 }
 0x274   :  { %v1556_v14 = vsub.f32 %v1555_v31, %v2746_v11  ;;  %v1501_v22 = vadd.f32 %v4635_v5, %v1500_v19 }
 0x275   :  { %v3337_v23 = vpop.f32.mrf.mxu1  ;;  %vm2347_vm1 = vcmp.gt.f32.partialorder %v2346_v13, 1.0  ;;  %v2351_v54 = vmul.f32 0.9, %v2346_v13 }
 0x276   :  { %vm1557_vm2 = vcmp.gt.f32.partialorder %v1556_v14, 1.0  ;;  %v1562_v24 = vmul.f32 0.9, %v1556_v14  ;;  %1504 = vst [vmem:[#allocation2 + $0x38] sm:$0xff] %v1501_v22  ;;  %v2814_v40 = vsel %vm2347_vm1, 1.0, %v3636_v1 }
 0x277   :  { %v2747_v18 = vsel %vm1557_vm2, 1.0, %v3636_v1  ;;  %2350 = vst [vmem:[%s5262_s8 + $0x61] sm:$0x1] %v2814_v40  ;;  %v2352_v26 = vadd.f32 %v2351_v54, %v3743_v17 }
 0x278   :  { %1560 = vst [vmem:[%s5263_s9 + $0x36] sm:$0x1] %v2747_v18  ;;  %v1563_v5 = vadd.f32 %v1562_v24, %v1561_v27  ;;  %v5070_v27 = vld [vmem:[%s5258_s4] ss:$0 sm:$0xff] }
 0x279   :  { %v2353_v29 = vsub.f32 %v2352_v26, %v2814_v40 }
 0x27a   :  { %v1564_v33 = vsub.f32 %v1563_v5, %v2747_v18 }
 0x27b   :  { %vm2354_vm0 = vcmp.gt.f32.partialorder %v2353_v29, 1.0  ;;  %v2358_v42 = vmul.f32 0.9, %v2353_v29 }
 0x27c   :  { %vm1565_vm3 = vcmp.gt.f32.partialorder %v1564_v33, 1.0  ;;  %v1698_v45 = vmul.f32 0.9, %v1564_v33  ;;  %v2815_v34 = vsel %vm2354_vm0, 1.0, %v3636_v1 }
 0x27d   :  { %v2748_v35 = vsel %vm1565_vm3, 1.0, %v3636_v1  ;;  %v1697_v36 = vld [vmem:[#allocation2 + $0x38] sm:$0x1]  ;;  %2357 = vst [vmem:[%s5262_s8 + $0x62] sm:$0x1] %v2815_v34  ;;  %v2359_v21 = vadd.f32 %v2358_v42, %v3743_v17 }
 0x27e   :  { %1568 = vst [vmem:[%s5263_s9 + $0x37] sm:$0x1] %v2748_v35  ;;  %v1699_v25 = vadd.f32 %v1698_v45, %v1697_v36  ;;  %v1705_v39 = vld [vmem:[#allocation2 + $0x39] sm:$0x1]  ;;  %v1713_v44 = vld [vmem:[#allocation2 + $0x3a] sm:$0x1] }
 0x27f   :  { %v2360_v37 = vsub.f32 %v2359_v21, %v2815_v34  ;;  %v1721_v51 = vld [vmem:[#allocation2 + $0x3b] sm:$0x1]  ;;  %v1729_v6 = vld [vmem:[#allocation2 + $0x3c] sm:$0x1]  ;;  %v1737_v19 = vld [vmem:[#allocation2 + $0x3d] sm:$0x1] }
 0x280   :  { %v1700_v38 = vsub.f32 %v1699_v25, %v2748_v35  ;;  %v1745_v23 = vld [vmem:[#allocation2 + $0x3e] sm:$0x1]  ;;  %v1753_v42 = vld [vmem:[#allocation2 + $0x3f] sm:$0x1] }
 0x281   :  { %vm2361_vm4 = vcmp.gt.f32.partialorder %v2360_v37, 1.0  ;;  %v2365_v52 = vmul.f32 0.9, %v2360_v37 }
 0x282   :  { %vm1701_vm5 = vcmp.gt.f32.partialorder %v1700_v38, 1.0  ;;  %v1706_v2 = vmul.f32 0.9, %v1700_v38  ;;  %v2816_v28 = vsel %vm2361_vm4, 1.0, %v3636_v1 }
 0x283   :  { %v2757_v60 = vsel %vm1701_vm5, 1.0, %v3636_v1  ;;  %2364 = vst [vmem:[%s5262_s8 + $0x63] sm:$0x1] %v2816_v28  ;;  %v2366_v30 = vadd.f32 %v2365_v52, %v3743_v17 }
 0x284   :  { %1704 = vst [vmem:[%s5263_s9 + $0x38] sm:$0x1] %v2757_v60  ;;  %v1707_v32 = vadd.f32 %v1706_v2, %v1705_v39 }
 0x285   :  { %v2367_v41 = vsub.f32 %v2366_v30, %v2816_v28 }
 0x286   :  { %v1708_v46 = vsub.f32 %v1707_v32, %v2757_v60 }
 0x287   :  { %vm2368_vm6 = vcmp.gt.f32.partialorder %v2367_v41, 1.0  ;;  %v2372_v8 = vmul.f32 0.9, %v2367_v41 }
 0x288   :  { %vm1709_vm7 = vcmp.gt.f32.partialorder %v1708_v46, 1.0  ;;  %v1714_v10 = vmul.f32 0.9, %v1708_v46  ;;  %v2817_v43 = vsel %vm2368_vm6, 1.0, %v3636_v1 }
 0x289   :  { %v2758_v15 = vsel %vm1709_vm7, 1.0, %v3636_v1  ;;  %2371 = vst [vmem:[%s5262_s8 + $0x64] sm:$0x1] %v2817_v43  ;;  %v2373_v47 = vadd.f32 %v2372_v8, %v3743_v17 }
 0x28a   :  { %1712 = vst [vmem:[%s5263_s9 + $0x39] sm:$0x1] %v2758_v15  ;;  %v1715_v50 = vadd.f32 %v1714_v10, %v1713_v44 }
 0x28b   :  { %v2374_v53 = vsub.f32 %v2373_v47, %v2817_v43 }
 0x28c   :  { %v1716_v58 = vsub.f32 %v1715_v50, %v2758_v15 }
 0x28d   :  { %vm2375_vm8 = vcmp.gt.f32.partialorder %v2374_v53, 1.0  ;;  %v2379_v16 = vmul.f32 0.9, %v2374_v53 }
 0x28e   :  { %vm1717_vm9 = vcmp.gt.f32.partialorder %v1716_v58, 1.0  ;;  %v1722_v20 = vmul.f32 0.9, %v1716_v58  ;;  %v2818_v48 = vsel %vm2375_vm8, 1.0, %v3636_v1 }
 0x28f   :  { %v2759_v49 = vsel %vm1717_vm9, 1.0, %v3636_v1  ;;  %2378 = vst [vmem:[%s5262_s8 + $0x65] sm:$0x1] %v2818_v48  ;;  %v2380_v55 = vadd.f32 %v2379_v16, %v3743_v17 }
 0x290   :  { %1720 = vst [vmem:[%s5263_s9 + $0x3a] sm:$0x1] %v2759_v49  ;;  %v1723_v63 = vadd.f32 %v1722_v20, %v1721_v51 }
 0x291   :  { %v2381_v56 = vsub.f32 %v2380_v55, %v2818_v48 }
 0x292   :  { %v1724_v57 = vsub.f32 %v1723_v63, %v2759_v49 }
 0x293   :  { %vm2382_vm10 = vcmp.gt.f32.partialorder %v2381_v56, 1.0  ;;  %v2386_v59 = vmul.f32 0.9, %v2381_v56 }
 0x294   :  { %vm1725_vm11 = vcmp.gt.f32.partialorder %v1724_v57, 1.0  ;;  %v1730_v61 = vmul.f32 0.9, %v1724_v57  ;;  %v2819_v62 = vsel %vm2382_vm10, 1.0, %v3636_v1 }
 0x295   :  { %v2760_v0 = vsel %vm1725_vm11, 1.0, %v3636_v1  ;;  %2385 = vst [vmem:[%s5262_s8 + $0x66] sm:$0x1] %v2819_v62  ;;  %v2387_v3 = vadd.f32 %v2386_v59, %v3743_v17 }
 0x296   :  { %1728 = vst [vmem:[%s5263_s9 + $0x3b] sm:$0x1] %v2760_v0  ;;  %v1731_v9 = vadd.f32 %v1730_v61, %v1729_v6 }
 0x297   :  { %v2388_v11 = vsub.f32 %v2387_v3, %v2819_v62 }
 0x298   :  { %v1732_v7 = vsub.f32 %v1731_v9, %v2760_v0 }
 0x299   :  { %vm2389_vm12 = vcmp.gt.f32.partialorder %v2388_v11, 1.0 }
 0x29a   :  { %vm1733_vm13 = vcmp.gt.f32.partialorder %v1732_v7, 1.0  ;;  %v1738_v12 = vmul.f32 0.9, %v1732_v7  ;;  %v2820_v31 = vsel %vm2389_vm12, 1.0, %v3636_v1 }
 0x29b   :  { %v2761_v4 = vsel %vm1733_vm13, 1.0, %v3636_v1  ;;  %2392 = vst [vmem:[%s5262_s8 + $0x67] sm:$0x1] %v2820_v31 }
 0x29c   :  { %1736 = vst [vmem:[%s5263_s9 + $0x3c] sm:$0x1] %v2761_v4  ;;  %v1739_v17 = vadd.f32 %v1738_v12, %v1737_v19 }
 0x29e   :  { %v1740_v13 = vsub.f32 %v1739_v17, %v2761_v4 }
 0x2a0   :  { %vm1741_vm14 = vcmp.gt.f32.partialorder %v1740_v13, 1.0  ;;  %v1746_v14 = vmul.f32 0.9, %v1740_v13 }
 0x2a1   :  { %v2762_v22 = vsel %vm1741_vm14, 1.0, %v3636_v1 }
 0x2a2   :  { %1744 = vst [vmem:[%s5263_s9 + $0x3d] sm:$0x1] %v2762_v22  ;;  %v1747_v54 = vadd.f32 %v1746_v14, %v1745_v23  ;;  %v2393_v24 = vld [vmem:[%s5262_s8 + $0x60] sm:$0xff] }
 0x2a3   :  { %v1692_v40 = vpop.f32.mrf.mxu0  ;;  %3511 = vmatmul.mubr.f32.vlgmr.msra.gmra.mxu0 %v2393_v24 }
 0x2a4   :  { %v1748_v18 = vsub.f32 %v1747_v54, %v2762_v22  ;;  %v1693_v26 = vadd.f32 %v5070_v27, %v1692_v40 }
 0x2a5   :  { %v3372_v5 = vpop.f32.mrf.mxu0 }
 0x2a6   :  { %vm1749_vm15 = vcmp.gt.f32.partialorder %v1748_v18, 1.0  ;;  %v1754_v29 = vmul.f32 0.9, %v1748_v18  ;;  %1696 = vst [vmem:[#allocation2 + $0x40] sm:$0xff] %v1693_v26 }
 0x2a7   :  { %v2763_v33 = vsel %vm1749_vm15, 1.0, %v3636_v1 }
 0x2a8   :  { %1752 = vst [vmem:[%s5263_s9 + $0x3e] sm:$0x1] %v2763_v33  ;;  %v1755_v45 = vadd.f32 %v1754_v29, %v1753_v42 }
 0x2aa   :  { %v1756_v34 = vsub.f32 %v1755_v45, %v2763_v33 }
 0x2ac   :  { %vm1757_vm1 = vcmp.gt.f32.partialorder %v1756_v34, 1.0  ;;  %v1890_v35 = vmul.f32 0.9, %v1756_v34 }
 0x2ad   :  { %v2764_v36 = vsel %vm1757_vm1, 1.0, %v3636_v1  ;;  %v1889_v21 = vld [vmem:[#allocation2 + $0x40] sm:$0x1]  ;;  %v1897_v2 = vld [vmem:[#allocation2 + $0x41] sm:$0x1] }
 0x2ae   :  { %1760 = vst [vmem:[%s5263_s9 + $0x3f] sm:$0x1] %v2764_v36  ;;  %v1891_v25 = vadd.f32 %v1890_v35, %v1889_v21  ;;  %v1905_v32 = vld [vmem:[#allocation2 + $0x42] sm:$0x1]  ;;  %v1913_v43 = vld [vmem:[#allocation2 + $0x43] sm:$0x1] }
 0x2af   :  { %v1921_v53 = vld [vmem:[#allocation2 + $0x44] sm:$0x1]  ;;  %v1929_v49 = vld [vmem:[#allocation2 + $0x45] sm:$0x1]  ;;  %v1937_v57 = vld [vmem:[#allocation2 + $0x46] sm:$0x1] }
 0x2b0   :  { %v1892_v37 = vsub.f32 %v1891_v25, %v2764_v36  ;;  %v1945_v11 = vld [vmem:[#allocation2 + $0x47] sm:$0x1] }
 0x2b2   :  { %vm1893_vm2 = vcmp.gt.f32.partialorder %v1892_v37, 1.0  ;;  %v1898_v38 = vmul.f32 0.9, %v1892_v37 }
 0x2b3   :  { %v2773_v52 = vsel %vm1893_vm2, 1.0, %v3636_v1 }
 0x2b4   :  { %1896 = vst [vmem:[%s5263_s9 + $0x40] sm:$0x1] %v2773_v52  ;;  %v1899_v28 = vadd.f32 %v1898_v38, %v1897_v2 }
 0x2b6   :  { %v1900_v60 = vsub.f32 %v1899_v28, %v2773_v52 }
 0x2b8   :  { %vm1901_vm0 = vcmp.gt.f32.partialorder %v1900_v60, 1.0  ;;  %v1906_v39 = vmul.f32 0.9, %v1900_v60 }
 0x2b9   :  { %v2774_v30 = vsel %vm1901_vm0, 1.0, %v3636_v1 }
 0x2ba   :  { %1904 = vst [vmem:[%s5263_s9 + $0x41] sm:$0x1] %v2774_v30  ;;  %v1907_v41 = vadd.f32 %v1906_v39, %v1905_v32 }
 0x2bc   :  { %v1908_v46 = vsub.f32 %v1907_v41, %v2774_v30 }
 0x2be   :  { %vm1909_vm3 = vcmp.gt.f32.partialorder %v1908_v46, 1.0  ;;  %v1914_v8 = vmul.f32 0.9, %v1908_v46 }
 0x2bf   :  { %v2775_v10 = vsel %vm1909_vm3, 1.0, %v3636_v1 }
 0x2c0   :  { %1912 = vst [vmem:[%s5263_s9 + $0x42] sm:$0x1] %v2775_v10  ;;  %v1915_v15 = vadd.f32 %v1914_v8, %v1913_v43 }
 0x2c2   :  { %v1916_v44 = vsub.f32 %v1915_v15, %v2775_v10 }
 0x2c4   :  { %vm1917_vm4 = vcmp.gt.f32.partialorder %v1916_v44, 1.0  ;;  %v1922_v47 = vmul.f32 0.9, %v1916_v44 }
 0x2c5   :  { %v2776_v50 = vsel %vm1917_vm4, 1.0, %v3636_v1 }
 0x2c6   :  { %1920 = vst [vmem:[%s5263_s9 + $0x43] sm:$0x1] %v2776_v50  ;;  %v1923_v58 = vadd.f32 %v1922_v47, %v1921_v53 }
 0x2c8   :  { %v1924_v16 = vsub.f32 %v1923_v58, %v2776_v50 }
 0x2ca   :  { %vm1925_vm5 = vcmp.gt.f32.partialorder %v1924_v16, 1.0  ;;  %v1930_v20 = vmul.f32 0.9, %v1924_v16 }
 0x2cb   :  { %v2777_v48 = vsel %vm1925_vm5, 1.0, %v3636_v1 }
 0x2cc   :  { %1928 = vst [vmem:[%s5263_s9 + $0x44] sm:$0x1] %v2777_v48  ;;  %v1931_v51 = vadd.f32 %v1930_v20, %v1929_v49 }
 0x2ce   :  { %v1932_v55 = vsub.f32 %v1931_v51, %v2777_v48 }
 0x2d0   :  { %vm1933_vm6 = vcmp.gt.f32.partialorder %v1932_v55, 1.0  ;;  %v1938_v63 = vmul.f32 0.9, %v1932_v55 }
 0x2d1   :  { %v2778_v56 = vsel %vm1933_vm6, 1.0, %v3636_v1 }
 0x2d2   :  { %1936 = vst [vmem:[%s5263_s9 + $0x45] sm:$0x1] %v2778_v56  ;;  %v1939_v59 = vadd.f32 %v1938_v63, %v1937_v57 }
 0x2d3   :  { %v1884_v61 = vpop.f32.mrf.mxu1 }
 0x2d4   :  { %v1940_v62 = vsub.f32 %v1939_v59, %v2778_v56  ;;  %v1885_v0 = vadd.f32 %v5070_v27, %v1884_v61 }
 0x2d5   :  { %v3407_v6 = vpop.f32.mrf.mxu1 }
 0x2d6   :  { %vm1941_vm7 = vcmp.gt.f32.partialorder %v1940_v62, 1.0  ;;  %v1946_v3 = vmul.f32 0.9, %v1940_v62  ;;  %1888 = vst [vmem:[#allocation2 + $0x48] sm:$0xff] %v1885_v0 }
 0x2d7   :  { %v2779_v9 = vsel %vm1941_vm7, 1.0, %v3636_v1 }
 0x2d8   :  { %1944 = vst [vmem:[%s5263_s9 + $0x46] sm:$0x1] %v2779_v9  ;;  %v1947_v7 = vadd.f32 %v1946_v3, %v1945_v11 }
 0x2da   :  { %v1948_v12 = vsub.f32 %v1947_v7, %v2779_v9 }
 0x2dc   :  { %vm1949_vm8 = vcmp.gt.f32.partialorder %v1948_v12, 1.0  ;;  %v2082_v31 = vmul.f32 0.9, %v1948_v12 }
 0x2dd   :  { %v2780_v4 = vsel %vm1949_vm8, 1.0, %v3636_v1  ;;  %v2081_v19 = vld [vmem:[#allocation2 + $0x48] sm:$0x1]  ;;  %v2089_v23 = vld [vmem:[#allocation2 + $0x49] sm:$0x1] }
 0x2de   :  { %1952 = vst [vmem:[%s5263_s9 + $0x47] sm:$0x1] %v2780_v4  ;;  %v2083_v17 = vadd.f32 %v2082_v31, %v2081_v19  ;;  %v2097_v26 = vld [vmem:[#allocation2 + $0x4a] sm:$0x1]  ;;  %v2105_v45 = vld [vmem:[#allocation2 + $0x4b] sm:$0x1] }
 0x2df   :  { %v2113_v25 = vld [vmem:[#allocation2 + $0x4c] sm:$0x1]  ;;  %v2121_v28 = vld [vmem:[#allocation2 + $0x4d] sm:$0x1]  ;;  %v2129_v41 = vld [vmem:[#allocation2 + $0x4e] sm:$0x1] }
 0x2e0   :  { %v2084_v13 = vsub.f32 %v2083_v17, %v2780_v4  ;;  %v2137_v50 = vld [vmem:[#allocation2 + $0x4f] sm:$0x1] }
 0x2e2   :  { %vm2085_vm9 = vcmp.gt.f32.partialorder %v2084_v13, 1.0  ;;  %v2090_v14 = vmul.f32 0.9, %v2084_v13 }
 0x2e3   :  { %v2789_v22 = vsel %vm2085_vm9, 1.0, %v3636_v1 }
 0x2e4   :  { %2088 = vst [vmem:[%s5263_s9 + $0x48] sm:$0x1] %v2789_v22  ;;  %v2091_v54 = vadd.f32 %v2090_v14, %v2089_v23 }
 0x2e6   :  { %v2092_v24 = vsub.f32 %v2091_v54, %v2789_v22 }
 0x2e8   :  { %vm2093_vm10 = vcmp.gt.f32.partialorder %v2092_v24, 1.0  ;;  %v2098_v40 = vmul.f32 0.9, %v2092_v24 }
 0x2e9   :  { %v2790_v18 = vsel %vm2093_vm10, 1.0, %v3636_v1 }
 0x2ea   :  { %2096 = vst [vmem:[%s5263_s9 + $0x49] sm:$0x1] %v2790_v18  ;;  %v2099_v5 = vadd.f32 %v2098_v40, %v2097_v26 }
 0x2ec   :  { %v2100_v29 = vsub.f32 %v2099_v5, %v2790_v18 }
 0x2ee   :  { %vm2101_vm11 = vcmp.gt.f32.partialorder %v2100_v29, 1.0  ;;  %v2106_v33 = vmul.f32 0.9, %v2100_v29 }
 0x2ef   :  { %v2791_v42 = vsel %vm2101_vm11, 1.0, %v3636_v1 }
 0x2f0   :  { %2104 = vst [vmem:[%s5263_s9 + $0x4a] sm:$0x1] %v2791_v42  ;;  %v2107_v34 = vadd.f32 %v2106_v33, %v2105_v45 }
 0x2f2   :  { %v2108_v35 = vsub.f32 %v2107_v34, %v2791_v42 }
 0x2f4   :  { %vm2109_vm12 = vcmp.gt.f32.partialorder %v2108_v35, 1.0  ;;  %v2114_v36 = vmul.f32 0.9, %v2108_v35 }
 0x2f5   :  { %v2792_v21 = vsel %vm2109_vm12, 1.0, %v3636_v1 }
 0x2f6   :  { %2112 = vst [vmem:[%s5263_s9 + $0x4b] sm:$0x1] %v2792_v21  ;;  %v2115_v37 = vadd.f32 %v2114_v36, %v2113_v25 }
 0x2f8   :  { %v2116_v38 = vsub.f32 %v2115_v37, %v2792_v21 }
 0x2fa   :  { %vm2117_vm13 = vcmp.gt.f32.partialorder %v2116_v38, 1.0  ;;  %v2122_v52 = vmul.f32 0.9, %v2116_v38 }
 0x2fb   :  { %v2793_v2 = vsel %vm2117_vm13, 1.0, %v3636_v1 }
 0x2fc   :  { %2120 = vst [vmem:[%s5263_s9 + $0x4c] sm:$0x1] %v2793_v2  ;;  %v2123_v60 = vadd.f32 %v2122_v52, %v2121_v28 }
 0x2fe   :  { %v2124_v39 = vsub.f32 %v2123_v60, %v2793_v2 }
 0x300   :  { %vm2125_vm14 = vcmp.gt.f32.partialorder %v2124_v39, 1.0  ;;  %v2130_v30 = vmul.f32 0.9, %v2124_v39 }
 0x301   :  { %v2794_v32 = vsel %vm2125_vm14, 1.0, %v3636_v1 }
 0x302   :  { %2128 = vst [vmem:[%s5263_s9 + $0x4d] sm:$0x1] %v2794_v32  ;;  %v2131_v46 = vadd.f32 %v2130_v30, %v2129_v41 }
 0x303   :  { %v2076_v8 = vpop.f32.mrf.mxu0 }
 0x304   :  { %v2132_v10 = vsub.f32 %v2131_v46, %v2794_v32  ;;  %v2077_v43 = vadd.f32 %v5070_v27, %v2076_v8 }
 0x305   :  { %v3442_v15 = vpop.f32.mrf.mxu0 }
 0x306   :  { %vm2133_vm15 = vcmp.gt.f32.partialorder %v2132_v10, 1.0  ;;  %v2138_v44 = vmul.f32 0.9, %v2132_v10  ;;  %2080 = vst [vmem:[#allocation2 + $0x50] sm:$0xff] %v2077_v43 }
 0x307   :  { %v2795_v47 = vsel %vm2133_vm15, 1.0, %v3636_v1 }
 0x308   :  { %2136 = vst [vmem:[%s5263_s9 + $0x4e] sm:$0x1] %v2795_v47  ;;  %v2139_v53 = vadd.f32 %v2138_v44, %v2137_v50 }
 0x30a   :  { %v2140_v58 = vsub.f32 %v2139_v53, %v2795_v47 }
 0x30c   :  { %vm2141_vm1 = vcmp.gt.f32.partialorder %v2140_v58, 1.0  ;;  %v2274_v16 = vmul.f32 0.9, %v2140_v58 }
 0x30d   :  { %v2796_v20 = vsel %vm2141_vm1, 1.0, %v3636_v1  ;;  %v2273_v48 = vld [vmem:[#allocation2 + $0x50] sm:$0x1]  ;;  %v2281_v56 = vld [vmem:[#allocation2 + $0x51] sm:$0x1] }
 0x30e   :  { %2144 = vst [vmem:[%s5263_s9 + $0x4f] sm:$0x1] %v2796_v20  ;;  %v2275_v49 = vadd.f32 %v2274_v16, %v2273_v48  ;;  %v2289_v0 = vld [vmem:[#allocation2 + $0x52] sm:$0x1]  ;;  %v2297_v7 = vld [vmem:[#allocation2 + $0x53] sm:$0x1] }
 0x30f   :  { %v2305_v17 = vld [vmem:[#allocation2 + $0x54] sm:$0x1]  ;;  %v2313_v54 = vld [vmem:[#allocation2 + $0x55] sm:$0x1]  ;;  %v2321_v5 = vld [vmem:[#allocation2 + $0x56] sm:$0x1] }
 0x310   :  { %v2276_v51 = vsub.f32 %v2275_v49, %v2796_v20  ;;  %v2329_v21 = vld [vmem:[#allocation2 + $0x57] sm:$0x1] }
 0x312   :  { %vm2277_vm2 = vcmp.gt.f32.partialorder %v2276_v51, 1.0  ;;  %v2282_v55 = vmul.f32 0.9, %v2276_v51 }
 0x313   :  { %v2805_v63 = vsel %vm2277_vm2, 1.0, %v3636_v1 }
 0x314   :  { %2280 = vst [vmem:[%s5263_s9 + $0x50] sm:$0x1] %v2805_v63  ;;  %v2283_v57 = vadd.f32 %v2282_v55, %v2281_v56 }
 0x316   :  { %v2284_v59 = vsub.f32 %v2283_v57, %v2805_v63 }
 0x318   :  { %vm2285_vm0 = vcmp.gt.f32.partialorder %v2284_v59, 1.0  ;;  %v2290_v61 = vmul.f32 0.9, %v2284_v59 }
 0x319   :  { %v2806_v62 = vsel %vm2285_vm0, 1.0, %v3636_v1 }
 0x31a   :  { %2288 = vst [vmem:[%s5263_s9 + $0x51] sm:$0x1] %v2806_v62  ;;  %v2291_v6 = vadd.f32 %v2290_v61, %v2289_v0 }
 0x31c   :  { %v2292_v3 = vsub.f32 %v2291_v6, %v2806_v62 }
 0x31e   :  { %vm2293_vm3 = vcmp.gt.f32.partialorder %v2292_v3, 1.0  ;;  %v2298_v9 = vmul.f32 0.9, %v2292_v3 }
 0x31f   :  { %v2807_v11 = vsel %vm2293_vm3, 1.0, %v3636_v1 }
 0x320   :  { %2296 = vst [vmem:[%s5263_s9 + $0x52] sm:$0x1] %v2807_v11  ;;  %v2299_v12 = vadd.f32 %v2298_v9, %v2297_v7 }
 0x322   :  { %v2300_v31 = vsub.f32 %v2299_v12, %v2807_v11 }
 0x324   :  { %vm2301_vm4 = vcmp.gt.f32.partialorder %v2300_v31, 1.0  ;;  %v2306_v4 = vmul.f32 0.9, %v2300_v31 }
 0x325   :  { %v2808_v19 = vsel %vm2301_vm4, 1.0, %v3636_v1 }
 0x326   :  { %2304 = vst [vmem:[%s5263_s9 + $0x53] sm:$0x1] %v2808_v19  ;;  %v2307_v13 = vadd.f32 %v2306_v4, %v2305_v17 }
 0x328   :  { %v2308_v14 = vsub.f32 %v2307_v13, %v2808_v19 }
 0x32a   :  { %vm2309_vm5 = vcmp.gt.f32.partialorder %v2308_v14, 1.0  ;;  %v2314_v22 = vmul.f32 0.9, %v2308_v14 }
 0x32b   :  { %v2809_v23 = vsel %vm2309_vm5, 1.0, %v3636_v1  ;;  %vm2595_vm5 = vcmask 1040384  }
 0x32c   :  { %2312 = vst [vmem:[%s5263_s9 + $0x54] sm:$0x1] %v2809_v23  ;;  %v2315_v24 = vadd.f32 %v2314_v22, %v2313_v54 }
 0x32e   :  { %v2316_v40 = vsub.f32 %v2315_v24, %v2809_v23 }
 0x330   :  { %vm2317_vm6 = vcmp.gt.f32.partialorder %v2316_v40, 1.0  ;;  %v2322_v18 = vmul.f32 0.9, %v2316_v40 }
 0x331   :  { %v2810_v26 = vsel %vm2317_vm6, 1.0, %v3636_v1 }
 0x332   :  { %2320 = vst [vmem:[%s5263_s9 + $0x55] sm:$0x1] %v2810_v26  ;;  %v2323_v29 = vadd.f32 %v2322_v18, %v2321_v5 }
 0x333   :  { %v2268_v33 = vpop.f32.mrf.mxu1 }
 0x334   :  { %v2324_v42 = vsub.f32 %v2323_v29, %v2810_v26  ;;  %v2269_v45 = vadd.f32 %v5070_v27, %v2268_v33 }
 0x335   :  { %v3477_v34 = vpop.f32.mrf.mxu1 }
 0x336   :  { %vm2325_vm7 = vcmp.gt.f32.partialorder %v2324_v42, 1.0  ;;  %v2330_v35 = vmul.f32 0.9, %v2324_v42  ;;  %2272 = vst [vmem:[#allocation2 + $0x58] sm:$0xff] %v2269_v45 }
 0x337   :  { %v2811_v36 = vsel %vm2325_vm7, 1.0, %v3636_v1 }
 0x338   :  { %2328 = vst [vmem:[%s5263_s9 + $0x56] sm:$0x1] %v2811_v36  ;;  %v2331_v25 = vadd.f32 %v2330_v35, %v2329_v21 }
 0x33a   :  { %v2332_v37 = vsub.f32 %v2331_v25, %v2811_v36 }
 0x33c   :  { %vm2333_vm8 = vcmp.gt.f32.partialorder %v2332_v37, 1.0  ;;  %v2466_v38 = vmul.f32 0.9, %v2332_v37 }
 0x33d   :  { %v2812_v52 = vsel %vm2333_vm8, 1.0, %v3636_v1  ;;  %v2465_v2 = vld [vmem:[#allocation2 + $0x58] sm:$0x1]  ;;  %v2473_v32 = vld [vmem:[#allocation2 + $0x59] sm:$0x1] }
 0x33e   :  { %2336 = vst [vmem:[%s5263_s9 + $0x57] sm:$0x1] %v2812_v52  ;;  %v2467_v28 = vadd.f32 %v2466_v38, %v2465_v2  ;;  %v2481_v43 = vld [vmem:[#allocation2 + $0x5a] sm:$0x1]  ;;  %v2489_v53 = vld [vmem:[#allocation2 + $0x5b] sm:$0x1] }
 0x33f   :  { %v2497_v48 = vld [vmem:[#allocation2 + $0x5c] sm:$0x1]  ;;  %v2505_v56 = vld [vmem:[#allocation2 + $0x5d] sm:$0x1]  ;;  %v2513_v6 = vld [vmem:[#allocation2 + $0x5e] sm:$0x1] }
 0x340   :  { %v2468_v60 = vsub.f32 %v2467_v28, %v2812_v52  ;;  %v2521_v19 = vld [vmem:[#allocation2 + $0x5f] sm:$0x1]  ;;  %v2593_v38 = vld [vmem:[%s5259_s5] sm:$0x1] }
 0x342   :  { %vm2469_vm9 = vcmp.gt.f32.partialorder %v2468_v60, 1.0  ;;  %v2474_v39 = vmul.f32 0.9, %v2468_v60 }
 0x343   :  { %v2821_v30 = vsel %vm2469_vm9, 1.0, %v3636_v1 }
 0x344   :  { %2472 = vst [vmem:[%s5263_s9 + $0x58] sm:$0x1] %v2821_v30  ;;  %v2475_v41 = vadd.f32 %v2474_v39, %v2473_v32 }
 0x346   :  { %v2476_v46 = vsub.f32 %v2475_v41, %v2821_v30 }
 0x348   :  { %vm2477_vm10 = vcmp.gt.f32.partialorder %v2476_v46, 1.0  ;;  %v2482_v8 = vmul.f32 0.9, %v2476_v46 }
 0x349   :  { %v2822_v10 = vsel %vm2477_vm10, 1.0, %v3636_v1 }
 0x34a   :  { %2480 = vst [vmem:[%s5263_s9 + $0x59] sm:$0x1] %v2822_v10  ;;  %v2483_v15 = vadd.f32 %v2482_v8, %v2481_v43 }
 0x34c   :  { %v2484_v44 = vsub.f32 %v2483_v15, %v2822_v10 }
 0x34e   :  { %vm2485_vm11 = vcmp.gt.f32.partialorder %v2484_v44, 1.0  ;;  %v2490_v47 = vmul.f32 0.9, %v2484_v44 }
 0x34f   :  { %v2823_v50 = vsel %vm2485_vm11, 1.0, %v3636_v1 }
 0x350   :  { %2488 = vst [vmem:[%s5263_s9 + $0x5a] sm:$0x1] %v2823_v50  ;;  %v2491_v58 = vadd.f32 %v2490_v47, %v2489_v53 }
 0x352   :  { %v2492_v16 = vsub.f32 %v2491_v58, %v2823_v50 }
 0x354   :  { %v2498_v20 = vmul.f32 0.9, %v2492_v16  ;;  %vm2493_vm12 = vcmp.gt.f32.partialorder %v2492_v16, 1.0 }
 0x355   :  { %v2824_v49 = vsel %vm2493_vm12, 1.0, %v3636_v1 }
 0x356   :  { %v2499_v51 = vadd.f32 %v2498_v20, %v2497_v48  ;;  %2496 = vst [vmem:[%s5263_s9 + $0x5b] sm:$0x1] %v2824_v49 }
 0x358   :  { %v2500_v55 = vsub.f32 %v2499_v51, %v2824_v49 }
 0x35a   :  { %vm2501_vm13 = vcmp.gt.f32.partialorder %v2500_v55, 1.0  ;;  %v2506_v63 = vmul.f32 0.9, %v2500_v55  ;;  %v2599_v55 = vld [vmem:[%s5260_s6] sm:$0x1] }
 0x35b   :  { %v2825_v57 = vsel %vm2501_vm13, 1.0, %v3636_v1 }
 0x35c   :  { %2504 = vst [vmem:[%s5263_s9 + $0x5c] sm:$0x1] %v2825_v57  ;;  %v2507_v59 = vadd.f32 %v2506_v63, %v2505_v56 }
 0x35e   :  { %v2508_v61 = vsub.f32 %v2507_v59, %v2825_v57 }
 0x360   :  { %vm2509_vm14 = vcmp.gt.f32.partialorder %v2508_v61, 1.0  ;;  %v2514_v62 = vmul.f32 0.9, %v2508_v61 }
 0x361   :  { %v2826_v0 = vsel %vm2509_vm14, 1.0, %v3636_v1 }
 0x362   :  { %2512 = vst [vmem:[%s5263_s9 + $0x5d] sm:$0x1] %v2826_v0  ;;  %v2515_v3 = vadd.f32 %v2514_v62, %v2513_v6 }
 0x363   :  { %v2460_v9 = vpop.f32.mrf.mxu0 }
 0x364   :  { %v2461_v11 = vadd.f32 %v5070_v27, %v2460_v9  ;;  %v2516_v7 = vsub.f32 %v2515_v3, %v2826_v0 }
 0x365   :  { %v3512_v12 = vpop.f32.mrf.mxu0 }
 0x366   :  { %2464 = vst [vmem:[#allocation2 + $0x60] sm:$0xff] %v2461_v11  ;;  %vm2517_vm15 = vcmp.gt.f32.partialorder %v2516_v7, 1.0  ;;  %v2522_v31 = vmul.f32 0.9, %v2516_v7 }
 0x367   :  { %v2827_v4 = vsel %vm2517_vm15, 1.0, %v3636_v1 }
 0x368   :  { %2520 = vst [vmem:[%s5263_s9 + $0x5e] sm:$0x1] %v2827_v4  ;;  %v2523_v17 = vadd.f32 %v2522_v31, %v2521_v19 }
 0x36a   :  { %v2524_v13 = vsub.f32 %v2523_v17, %v2827_v4 }
 0x36c   :  { %vm2525_vm1 = vcmp.gt.f32.partialorder %v2524_v13, 1.0  ;;  %v2530_v14 = vmul.f32 0.9, %v2524_v13 }
 0x36d   :  { %v2828_v22 = vsel %vm2525_vm1, 1.0, %v3636_v1  ;;  %v2529_v23 = vld [vmem:[#allocation2 + $0x60] sm:$0x1]  ;;  %v2537_v18 = vld [vmem:[#allocation2 + $0x61] sm:$0x1] }
 0x36e   :  { %2528 = vst [vmem:[%s5263_s9 + $0x5f] sm:$0x1] %v2828_v22  ;;  %v2531_v27 = vadd.f32 %v2530_v14, %v2529_v23  ;;  %v2545_v42 = vld [vmem:[#allocation2 + $0x62] sm:$0x1]  ;;  %v2553_v21 = vld [vmem:[#allocation2 + $0x63] sm:$0x1] }
 0x36f   :  { %v2561_v28 = vld [vmem:[#allocation2 + $0x64] sm:$0x1]  ;;  %v2569_v8 = vld [vmem:[#allocation2 + $0x65] sm:$0x1]  ;;  %v2577_v47 = vld [vmem:[#allocation2 + $0x66] sm:$0x1] }
 0x370   :  { %v2532_v54 = vsub.f32 %v2531_v27, %v2828_v22  ;;  %v2585_v20 = vld [vmem:[#allocation2 + $0x67] sm:$0x1] }
 0x372   :  { %vm2533_vm2 = vcmp.gt.f32.partialorder %v2532_v54, 1.0  ;;  %v2538_v24 = vmul.f32 0.9, %v2532_v54 }
 0x373   :  { %v2829_v40 = vsel %vm2533_vm2, 1.0, %v3636_v1 }
 0x374   :  { %2536 = vst [vmem:[%s5263_s9 + $0x60] sm:$0x1] %v2829_v40  ;;  %v2539_v26 = vadd.f32 %v2538_v24, %v2537_v18 }
 0x376   :  { %v2540_v5 = vsub.f32 %v2539_v26, %v2829_v40 }
 0x378   :  { %vm2541_vm0 = vcmp.gt.f32.partialorder %v2540_v5, 1.0  ;;  %v2546_v29 = vmul.f32 0.9, %v2540_v5 }
 0x379   :  { %v2830_v33 = vsel %vm2541_vm0, 1.0, %v3636_v1 }
 0x37a   :  { %2544 = vst [vmem:[%s5263_s9 + $0x61] sm:$0x1] %v2830_v33  ;;  %v2547_v45 = vadd.f32 %v2546_v29, %v2545_v42 }
 0x37c   :  { %v2548_v34 = vsub.f32 %v2547_v45, %v2830_v33 }
 0x37e   :  { %vm2549_vm3 = vcmp.gt.f32.partialorder %v2548_v34, 1.0  ;;  %v2554_v35 = vmul.f32 0.9, %v2548_v34 }
 0x37f   :  { %v2831_v36 = vsel %vm2549_vm3, 1.0, %v3636_v1 }
 0x380   :  { %2552 = vst [vmem:[%s5263_s9 + $0x62] sm:$0x1] %v2831_v36  ;;  %v2555_v25 = vadd.f32 %v2554_v35, %v2553_v21 }
 0x382   :  { %v2556_v37 = vsub.f32 %v2555_v25, %v2831_v36 }
 0x384   :  { %vm2557_vm4 = vcmp.gt.f32.partialorder %v2556_v37, 1.0  ;;  %v2562_v52 = vmul.f32 0.9, %v2556_v37 }
 0x385   :  { %v2832_v2 = vsel %vm2557_vm4, 1.0, %v3636_v1 }
 0x386   :  { %2560 = vst [vmem:[%s5263_s9 + $0x63] sm:$0x1] %v2832_v2  ;;  %v2563_v60 = vadd.f32 %v2562_v52, %v2561_v28  ;;  %v2594_v39 = vmul.f32 %v2832_v2, %v2593_v38 }
 0x388   :  { %v2564_v30 = vsub.f32 %v2563_v60, %v2832_v2  ;;  %v2596_v32 = vsel %vm2595_vm5, %v2594_v39, 0.0 }
 0x389   :  { %2597 = vadd.xlane.f32.xlu0 %v2596_v32 }
 0x38a   :  { %vm2565_vm6 = vcmp.gt.f32.partialorder %v2564_v30, 1.0  ;;  %v2570_v41 = vmul.f32 0.9, %v2564_v30 }
 0x38b   :  { %v2833_v46 = vsel %vm2565_vm6, 1.0, %v3636_v1 }
 0x38c   :  { %2568 = vst [vmem:[%s5263_s9 + $0x64] sm:$0x1] %v2833_v46  ;;  %v2571_v10 = vadd.f32 %v2570_v41, %v2569_v8 }
 0x38e   :  { %v2572_v43 = vsub.f32 %v2571_v10, %v2833_v46 }
 0x390   :  { %vm2573_vm7 = vcmp.gt.f32.partialorder %v2572_v43, 1.0  ;;  %v2578_v15 = vmul.f32 0.9, %v2572_v43 }
 0x391   :  { %v2834_v44 = vsel %vm2573_vm7, 1.0, %v3636_v1 }
 0x392   :  { %2576 = vst [vmem:[%s5263_s9 + $0x65] sm:$0x1] %v2834_v44  ;;  %v2579_v50 = vadd.f32 %v2578_v15, %v2577_v47 }
 0x394   :  { %v2580_v53 = vsub.f32 %v2579_v50, %v2834_v44 }
 0x396   :  { %vm2581_vm8 = vcmp.gt.f32.partialorder %v2580_v53, 1.0  ;;  %v2586_v58 = vmul.f32 0.9, %v2580_v53 }
 0x397   :  { %v2835_v16 = vsel %vm2581_vm8, 1.0, %v3636_v1 }
 0x398   :  { %2584 = vst [vmem:[%s5263_s9 + $0x66] sm:$0x1] %v2835_v16  ;;  %v2587_v48 = vadd.f32 %v2586_v58, %v2585_v20 }
 0x39a   :  { %v2588_v49 = vsub.f32 %v2587_v48, %v2835_v16 }
 0x39c   :  { %vm2589_vm9 = vcmp.gt.f32.partialorder %v2588_v49, 1.0 }
 0x39d   :  { %v2836_v51 = vsel %vm2589_vm9, 1.0, %v3636_v1 }
 0x39e   :  { %2592 = vst [vmem:[%s5263_s9 + $0x67] sm:$0x1] %v2836_v51 }
 0x412   :  { %v2598_v63 = vpop.xlane.xlu0 %2597 }
 0x413   :  { %v2600_v56 = vadd.f32 %v2599_v55, %v2598_v63 }
 0x415   :  { %2601 = vst [vmem:[#allocation10] sm:$0x1] %v2600_v56 }
 0x416   :  { %3614 = shalt.err (!%p3611_p0)
}
 0x417   :  { %2611 = dma.vmem_to_hbm [thread:$0]  %s2609_s21, 16, %s5261_s7, [#allocation5]  }
 0x418   :  { %3629 = dma.done.wait [#allocation5], 16  }
 0x419   :  { %3630 = vsyncadd [#allocation5], 4294967280 }
 0x41a   :  { %2623 = vsyncpa [#allocation4], 1 }
 0x41b   :  { %2624 = vsyncpa [#allocation9], 1 }
 0x41c   :  { %2625 = vsyncpa [#allocation5], 1 }
 0x41d   :  { %2626 = vsyncpa [#allocation6], 1 }

</bundles_post_ra>
